<compile_context>
chip_gen: v7x
topology: tpu7x:2x2x1
jax: 0.10.0
libtpu: 0.0.40
codegen_flags: <defaults>
</compile_context>

<pallas_src>
import math
from functools import partial

import jax
import jax.numpy as jnp
from jax.experimental import pallas as pl
from jax.experimental.pallas import tpu as pltpu


_GELU_C = math.sqrt(2.0 / math.pi)
_LANES = 128
_HIDDEN_ALIGN = 512   # hidden dim padded to this so 512/1024 chunk sizes divide it


def _new_gelu(x):
    # exact tanh-approx GELU used in the PyTorch module
    return 0.5 * x * (1.0 + jnp.tanh(_GELU_C * (x + 0.044715 * x * x * x)))


def _round_up(a, b):
    return ((a + b - 1) // b) * b


def _pad2(a, r, c):
    pr, pc = r - a.shape[0], c - a.shape[1]
    if pr == 0 and pc == 0:
        return a  # no copy when padding is a no-op
    return jnp.pad(a, ((0, pr), (0, pc)))


def prepare_mlp_params(w_fc, b_fc, w_proj, b_proj):
    """One-time weight prep (do this at model init, NOT per forward call).

    Takes PyTorch nn.Linear (out, in) weights, transposes to (in, out) so both
    in-kernel GEMMs consume a canonical (K, N) RHS, and zero-pads to
    lane/chunk-friendly sizes.  Zero padding is numerically inert
    (gelu(0) = 0 and zero weight rows/cols contribute nothing).
    """
    hidden, n_embd = w_fc.shape
    assert w_proj.shape == (n_embd, hidden)
    kp = _round_up(n_embd, _LANES)
    hp = _round_up(hidden, _HIDDEN_ALIGN)
    if b_fc is None:
        b_fc = jnp.zeros((hidden,), dtype=w_fc.dtype)
    if b_proj is None:
        b_proj = jnp.zeros((n_embd,), dtype=w_proj.dtype)
    wfc_p = _pad2(w_fc.T, kp, hp)                       # (Kp, Hp)
    wproj_p = _pad2(w_proj.T, hp, kp)                   # (Hp, Kp)
    bfc_p = _pad2(b_fc.reshape(1, hidden), 1, hp)       # (1, Hp)
    bproj_p = _pad2(b_proj.reshape(1, n_embd), 1, kp)   # (1, Kp)
    return wfc_p, bfc_p, wproj_p, bproj_p


# --------------------------------------------------------------------------
# Kernels
# --------------------------------------------------------------------------

def _mlp_kernel_resident(x_ref, wfc_ref, bfc_ref, wproj_ref, bproj_ref, o_ref):
    # grid = (row tile i [parallel],); weights fully VMEM-resident.
    # Constant index_maps mean the weight blocks are DMA'd from HBM once per
    # call (Pallas skips re-fetch when block indices do not change).
    h = jnp.dot(x_ref[...], wfc_ref[...], preferred_element_type=jnp.float32)
    h = h + bfc_ref[...].astype(jnp.float32)
    g = _new_gelu(h).astype(wproj_ref.dtype)     # GELU in f32 (v5e-safe)
    y = jnp.dot(g, wproj_ref[...], preferred_element_type=jnp.float32)
    y = y + bproj_ref[...].astype(jnp.float32)
    o_ref[...] = y.astype(o_ref.dtype)           # dropout = identity (inference)


def _mlp_kernel_chunked(x_ref, wfc_ref, bfc_ref, wproj_ref, bproj_ref,
                        o_ref, acc_ref):
    # grid = (row tile i [parallel], hidden chunk j [arbitrary, innermost]).
    # x_ref:     (tm, Kp)      wfc_ref: (Kp, tn)     bfc_ref:   (1, tn)
    # wproj_ref: (tn, Kp)      bproj_ref: (1, Kp)
    # o_ref:     (tm, Kp)  same block across j -> written only on last chunk
    # acc_ref:   (tm, Kp)  f32 accumulator scratch
    j = pl.program_id(1)

    h = jnp.dot(x_ref[...], wfc_ref[...], preferred_element_type=jnp.float32)
    h = h + bfc_ref[...].astype(jnp.float32)
    g = _new_gelu(h).astype(wproj_ref.dtype)
    contrib = jnp.dot(g, wproj_ref[...], preferred_element_type=jnp.float32)

    @pl.when(j == 0)
    def _():
        acc_ref[...] = contrib        # direct write: no zero-init + RMW

    @pl.when(j > 0)
    def _():
        acc_ref[...] += contrib

    @pl.when(j == pl.num_programs(1) - 1)
    def _():
        y = acc_ref[...] + bproj_ref[...].astype(jnp.float32)
        o_ref[...] = y.astype(o_ref.dtype)   # dropout = identity (inference)


# --------------------------------------------------------------------------
# Wrapper
# --------------------------------------------------------------------------

def _vmem_budget_bytes():
    cap = None
    try:
        cap = getattr(pltpu.get_tpu_info(), "vmem_capacity_bytes", None)
    except Exception:
        cap = None
    if not cap:
        cap = 64 << 20
    # ~25% headroom for compiler scratch / double-buffering:
    #   v7x (64 MiB)  -> ~48 MiB ;  v5e/v6e (128 MiB) -> ~96 MiB (cap 100 MiB).
    return max(32 << 20, min(int(cap) * 3 // 4, 100 << 20))


def _pick_tm(rows, tm):
    if rows < 256:
        # decode / tiny batch: don't pad rows up to a huge tile
        return max(16, _round_up(rows, 16))
    rp0 = _round_up(rows, 256)
    tm_eff = min(tm, rp0)
    if tm_eff == rp0 and rp0 >= 512:
        # split into >=2 row tiles so both v7x TensorCores get work
        tm_eff = rp0 // 2
    return tm_eff


@partial(jax.jit, static_argnames=("tm", "tn", "chunk_hidden"))
def mlp_forward(x, wfc_p, bfc_p, wproj_p, bproj_p, *, tm=512, tn=1024,
                chunk_hidden=None):
    """MLP forward.  x: (..., n_embd); weights prepared by prepare_mlp_params.

    chunk_hidden: None = auto (resident weights if they fit VMEM budget),
                  True/False forces the chunked / resident path.
    """
    orig_shape = x.shape
    n_embd = orig_shape[-1]
    kp, hp = wfc_p.shape

    rows = 1
    for d in orig_shape[:-1]:
        rows *= d

    tm_eff = _pick_tm(rows, tm)
    rp = _round_up(rows, tm_eff)

    x2 = x.reshape(rows, n_embd)
    if (rp, kp) != (rows, n_embd):
        x2 = jnp.pad(x2, ((0, rp - rows), (0, kp - n_embd)))

    itm = x2.dtype.itemsize
    itw = wfc_p.dtype.itemsize
    budget = _vmem_budget_bytes()

    # Resident-path footprint estimate: weights (+biases) double-buffered
    # (but DMA'd once), double-buffered x/out tiles, and the (tm, Hp)
    # f32 h / model-dtype g intermediates.
    resident_bytes = (4 * kp * hp * itw
                      + 2 * (hp + kp) * itw
                      + 4 * tm_eff * kp * itm
                      + tm_eff * hp * (4 + itw))

    if chunk_hidden is None:
        use_chunked = resident_bytes > budget
    else:
        use_chunked = bool(chunk_hidden)

    grid_i = rp // tm_eff

    if not use_chunked:
        out2 = pl.pallas_call(
            _mlp_kernel_resident,
            out_shape=jax.ShapeDtypeStruct((rp, kp), x.dtype),
            grid_spec=pltpu.PrefetchScalarGridSpec(
                num_scalar_prefetch=0,
                grid=(grid_i,),
                in_specs=[
                    pl.BlockSpec((tm_eff, kp), lambda i: (i, 0)),  # x rows tile
                    pl.BlockSpec((kp, hp), lambda i: (0, 0)),      # c_fc^T (resident)
                    pl.BlockSpec((1, hp), lambda i: (0, 0)),       # c_fc bias
                    pl.BlockSpec((hp, kp), lambda i: (0, 0)),      # c_proj^T (resident)
                    pl.BlockSpec((1, kp), lambda i: (0, 0)),       # c_proj bias
                ],
                out_specs=pl.BlockSpec((tm_eff, kp), lambda i: (i, 0)),
            ),
            compiler_params=pltpu.CompilerParams(
                dimension_semantics=("parallel",),
                vmem_limit_bytes=budget,
            ),
        )(x2, wfc_p, bfc_p, wproj_p, bproj_p)
    else:
        # Chunk the hidden (4*n_embd) dimension; tn_eff divides Hp and <= tn.
        tn_req = max(512, tn)
        tn_eff = 512 * math.gcd(hp // 512, tn_req // 512)

        def _chunk_bytes(t):
            return (2 * (tm_eff * kp * itm + kp * t * itw + t * itw
                         + t * kp * itw + kp * itw + tm_eff * kp * itm)
                    + tm_eff * kp * 4 + tm_eff * t * (4 + itw))

        if tn_eff > 512 and _chunk_bytes(tn_eff) > budget:
            tn_eff = 512   # Hp is a multiple of 512, so this always divides

        grid = (grid_i, hp // tn_eff)
        out2 = pl.pallas_call(
            _mlp_kernel_chunked,
            out_shape=jax.ShapeDtypeStruct((rp, kp), x.dtype),
            grid_spec=pltpu.PrefetchScalarGridSpec(
                num_scalar_prefetch=0,
                grid=grid,
                in_specs=[
                    pl.BlockSpec((tm_eff, kp), lambda i, j: (i, 0)),  # x rows tile
                    pl.BlockSpec((kp, tn_eff), lambda i, j: (0, j)),  # c_fc^T chunk
                    pl.BlockSpec((1, tn_eff), lambda i, j: (0, j)),   # c_fc bias chunk
                    pl.BlockSpec((tn_eff, kp), lambda i, j: (j, 0)),  # c_proj^T chunk
                    pl.BlockSpec((1, kp), lambda i, j: (0, 0)),       # c_proj bias
                ],
                out_specs=pl.BlockSpec((tm_eff, kp), lambda i, j: (i, 0)),
                scratch_shapes=[pltpu.VMEM((tm_eff, kp), jnp.float32)],
            ),
            compiler_params=pltpu.CompilerParams(
                dimension_semantics=("parallel", "arbitrary"),
                vmem_limit_bytes=budget,
            ),
        )(x2, wfc_p, bfc_p, wproj_p, bproj_p)

    return out2[:rows, :n_embd].reshape(orig_shape)


def _reference(x, w_fc, b_fc, w_proj, b_proj):
    h = jnp.einsum("...i,oi->...o", x, w_fc) + b_fc
    g = _new_gelu(h)
    return jnp.einsum("...i,oi->...o", g, w_proj) + b_proj


if __name__ == "__main__":
    # Small but multi-tile shapes: rows=400 (2 row tiles after tm adaptation),
    # n_embd=160 (padded to 256 lanes), hidden=640 (padded to 1024) so padding,
    # resident and chunked (2x512) paths plus the no-bias path are exercised.
    batch, seq, n_embd = 2, 200, 160
    hidden = 4 * n_embd

    key = jax.random.PRNGKey(0)
    kx, k1, k2, k3, k4 = jax.random.split(key, 5)

    x = jax.random.normal(kx, (batch, seq, n_embd), dtype=jnp.float32)
    w_fc = jax.random.normal(k1, (hidden, n_embd), dtype=jnp.float32) * 0.02
    b_fc = jax.random.normal(k2, (hidden,), dtype=jnp.float32) * 0.02
    w_proj = jax.random.normal(k3, (n_embd, hidden), dtype=jnp.float32) * 0.02
    b_proj = jax.random.normal(k4, (n_embd,), dtype=jnp.float32) * 0.02

    ref = _reference(x, w_fc, b_fc, w_proj, b_proj)

    # One-time weight prep (model-init time).
    params = prepare_mlp_params(w_fc, b_fc, w_proj, b_proj)

    # 1) auto path (weights fully VMEM-resident at this size)
    out = jax.block_until_ready(mlp_forward(x, *params))
    assert out.shape == x.shape
    err = float(jnp.max(jnp.abs(out - ref)))
    assert err < 2e-3, f"resident path max abs err {err}"

    # 2) forced hidden-chunked fallback path (two 512-wide chunks)
    out_c = jax.block_until_ready(
        mlp_forward(x, *params, tn=512, chunk_hidden=True))
    err_c = float(jnp.max(jnp.abs(out_c - ref)))
    assert err_c < 2e-3, f"chunked path max abs err {err_c}"

    # 3) bias=False path (config.bias=False)
    params_nb = prepare_mlp_params(w_fc, None, w_proj, None)
    ref_nb = _reference(x, w_fc, jnp.zeros((hidden,), jnp.float32),
                        w_proj, jnp.zeros((n_embd,), jnp.float32))
    out_nb = jax.block_until_ready(mlp_forward(x, *params_nb))
    err_nb = float(jnp.max(jnp.abs(out_nb - ref_nb)))
    assert err_nb < 2e-3, f"no-bias path max abs err {err_nb}"

    print("KERNEL_OK")
</pallas_src>

<mosaic_0001>
module attributes {stable_mosaic.version = 11 : i64} {
  func.func @_mlp_kernel_resident(%arg0: i32, %arg1: memref<256x256xf32, #tpu.memory_space<vmem>>, %arg2: memref<256x1024xf32, #tpu.memory_space<vmem>>, %arg3: memref<1x1024xf32, #tpu.memory_space<vmem>>, %arg4: memref<1024x256xf32, #tpu.memory_space<vmem>>, %arg5: memref<1x256xf32, #tpu.memory_space<vmem>>, %arg6: memref<256x256xf32, #tpu.memory_space<vmem>>) attributes {dimension_semantics = [#tpu.dimension_semantics<parallel>], iteration_bounds = array<i64: 2>, scalar_prefetch = 0 : i64, scratch_operands = 0 : i64, tpu.core_type = #tpu.core_type<tc>, window_params = [{transform_indices = @transform_0, window_bounds = array<i64: 256, 256>}, {pipeline_mode = #tpu.pipeline_mode<synchronous>, transform_indices = @transform_1, window_bounds = array<i64: 256, 1024>}, {pipeline_mode = #tpu.pipeline_mode<synchronous>, transform_indices = @transform_2, window_bounds = array<i64: 1, 1024>}, {pipeline_mode = #tpu.pipeline_mode<synchronous>, transform_indices = @transform_3, window_bounds = array<i64: 1024, 256>}, {pipeline_mode = #tpu.pipeline_mode<synchronous>, transform_indices = @transform_4, window_bounds = array<i64: 1, 256>}, {transform_indices = @transform_5, window_bounds = array<i64: 256, 256>}]} {
    %c0 = arith.constant 0 : index
    %c0_0 = arith.constant 0 : index
    %0 = vector.load %arg1[%c0, %c0_0] : memref<256x256xf32, #tpu.memory_space<vmem>>, vector<256x256xf32>
    %c0_1 = arith.constant 0 : index
    %c0_2 = arith.constant 0 : index
    %1 = vector.load %arg2[%c0_1, %c0_2] : memref<256x1024xf32, #tpu.memory_space<vmem>>, vector<256x1024xf32>
    %cst = arith.constant dense<0.000000e+00> : vector<256x1024xf32>
    %2 = tpu.matmul %0, %1, %cst {dimension_numbers = #tpu.dot_dimension_numbers<[1], [0], [0], [1], [0, 0, 1, 1], [], []>} : vector<256x256xf32>, vector<256x1024xf32>, vector<256x1024xf32> -> vector<256x1024xf32>
    %c0_3 = arith.constant 0 : index
    %c0_4 = arith.constant 0 : index
    %3 = vector.load %arg3[%c0_3, %c0_4] : memref<1x1024xf32, #tpu.memory_space<vmem>>, vector<1x1024xf32>
    %4 = vector.broadcast %3 : vector<1x1024xf32> to vector<256x1024xf32>
    %5 = arith.addf %2, %4 : vector<256x1024xf32>
    %cst_5 = arith.constant 5.000000e-01 : f32
    %6 = vector.broadcast %cst_5 : f32 to vector<256x1024xf32>
    %7 = arith.mulf %6, %5 : vector<256x1024xf32>
    %cst_6 = arith.constant 4.471500e-02 : f32
    %8 = vector.broadcast %cst_6 : f32 to vector<256x1024xf32>
    %9 = arith.mulf %8, %5 : vector<256x1024xf32>
    %10 = arith.mulf %9, %5 : vector<256x1024xf32>
    %11 = arith.mulf %10, %5 : vector<256x1024xf32>
    %12 = arith.addf %5, %11 : vector<256x1024xf32>
    %cst_7 = arith.constant 0.797884583 : f32
    %13 = vector.broadcast %cst_7 : f32 to vector<256x1024xf32>
    %14 = arith.mulf %13, %12 : vector<256x1024xf32>
    %15 = math.tanh %14 : vector<256x1024xf32>
    %cst_8 = arith.constant 1.000000e+00 : f32
    %16 = vector.broadcast %cst_8 : f32 to vector<256x1024xf32>
    %17 = arith.addf %16, %15 : vector<256x1024xf32>
    %18 = arith.mulf %7, %17 : vector<256x1024xf32>
    %c0_9 = arith.constant 0 : index
    %c0_10 = arith.constant 0 : index
    %19 = vector.load %arg4[%c0_9, %c0_10] : memref<1024x256xf32, #tpu.memory_space<vmem>>, vector<1024x256xf32>
    %cst_11 = arith.constant dense<0.000000e+00> : vector<256x256xf32>
    %20 = tpu.matmul %18, %19, %cst_11 {dimension_numbers = #tpu.dot_dimension_numbers<[1], [0], [0], [1], [0, 0, 1, 1], [], []>} : vector<256x1024xf32>, vector<1024x256xf32>, vector<256x256xf32> -> vector<256x256xf32>
    %c0_12 = arith.constant 0 : index
    %c0_13 = arith.constant 0 : index
    %21 = vector.load %arg5[%c0_12, %c0_13] : memref<1x256xf32, #tpu.memory_space<vmem>>, vector<1x256xf32>
    %22 = vector.broadcast %21 : vector<1x256xf32> to vector<256x256xf32>
    %23 = arith.addf %20, %22 : vector<256x256xf32>
    %c0_14 = arith.constant 0 : index
    %c0_15 = arith.constant 0 : index
    %24 = vector.load %arg6[%c0_14, %c0_15] : memref<256x256xf32, #tpu.memory_space<vmem>>, vector<256x256xf32>
    tpu.vector_store %arg6[%c0_14, %c0_15], %23 {strides = array<i32>} : memref<256x256xf32, #tpu.memory_space<vmem>>, vector<256x256xf32>,
    return
  }
  func.func @transform_0(%arg0: i32) -> (i32, i32) {
    %c0_i32 = arith.constant 0 : i32
    %c0_i32_0 = arith.constant 0 : i32
    return %arg0, %c0_i32 : i32, i32
  }
  func.func @transform_1(%arg0: i32) -> (i32, i32) {
    %c0_i32 = arith.constant 0 : i32
    %c0_i32_0 = arith.constant 0 : i32
    %c0_i32_1 = arith.constant 0 : i32
    return %c0_i32, %c0_i32_0 : i32, i32
  }
  func.func @transform_2(%arg0: i32) -> (i32, i32) {
    %c0_i32 = arith.constant 0 : i32
    %c0_i32_0 = arith.constant 0 : i32
    %c0_i32_1 = arith.constant 0 : i32
    return %c0_i32, %c0_i32_0 : i32, i32
  }
  func.func @transform_3(%arg0: i32) -> (i32, i32) {
    %c0_i32 = arith.constant 0 : i32
    %c0_i32_0 = arith.constant 0 : i32
    %c0_i32_1 = arith.constant 0 : i32
    return %c0_i32, %c0_i32_0 : i32, i32
  }
  func.func @transform_4(%arg0: i32) -> (i32, i32) {
    %c0_i32 = arith.constant 0 : i32
    %c0_i32_0 = arith.constant 0 : i32
    %c0_i32_1 = arith.constant 0 : i32
    return %c0_i32, %c0_i32_0 : i32, i32
  }
  func.func @transform_5(%arg0: i32) -> (i32, i32) {
    %c0_i32 = arith.constant 0 : i32
    %c0_i32_0 = arith.constant 0 : i32
    return %arg0, %c0_i32 : i32, i32
  }
}

</mosaic_0001>

<bundles_post_ra>
// kernel: mlp_forward.1
= control target key start
LH: loop header
LB: loop body
LE: loop exit
PB: predicated region body
PF: predicated region fallthrough
CT: control target
= control target key end

     0   :  { %10 = vsyncpa [#allocation3], 0  ;;  %s6894_s18 = smov 0   ;;  %s12517_s0 = inlined_call_operand.vmem [shape: f32[512,256], index: 0, kind: input, shape index: {}]   ;;  %s12518_s1 = inlined_call_operand.vmem [shape: f32[256,1024], index: 1, kind: input, shape index: {}]   ;;  %s12519_s2 = inlined_call_operand.vmem [shape: f32[1,1024], index: 2, kind: input, shape index: {}]   ;;  %s12520_s3 = inlined_call_operand.hbm [shape: f32[1024,256], index: 3, kind: input, shape index: {}]   ;;  %s12521_s4 = inlined_call_operand.vmem [shape: f32[1,256], index: 4, kind: input, shape index: {}]   ;;  %s12522_s5 = inlined_call_operand.vmem [shape: f32[512,256], index: 5, kind: output, shape index: {}]  }
   0x1 LB: > { %s5372_s19 = sadd.s32 4294967295, %s6859_s18   ;;  %p5374_p0 = scmp.ge.s32.totalorder %s6859_s18, 1  ;;  %s6859_s18 = sphi %s6894_s18, %s16_s18  }
   0x2   : > { %p157_p1 = scmp.lt.s32.totalorder %s6859_s18, 3  ;;  %s6861_s20 = smov [#allocation2]  }
   0x3   : > { %s175_s21 = sshll.u32 %s6861_s20, 4  ;;  %p6908_p3 = scmp.eq.s32.totalorder %s5372_s19, 0  ;;  %s176_s21 = int_to_ptr.vmem [resolvable:$true] %s175_s21 }
   0x4   : > { %p6902_p2 = pnand %p5374_p0, %p157_p1  ;;  %s6821_s27 = scalar_lea.hbm %s12520_s3, 32768 }
   0x5   : > { %s12593_s23 = scalar_select %p6908_p3, 1, 0 }
   0x6   : > { %s12592_s22 = scalar_select %p6902_p2, 1, 0 }
   0x7   : > { %p6161_p4 = pneg %p6902_p2  ;;  %p6822_p6 = scmp.ne.s32.totalorder %s12520_s3, %s6821_s27 }
   0x8   : > { %p6828_p10 = scmp.lt.u32.totalorder %s6821_s27, %s12520_s3 }
   0x9   : > { %p6916_p5 = pnand %p6908_p3, %p6161_p4 }
   0xb   : > { %p6823_p7 = pneg %p6916_p5 }
   0xd   : > { %p6824_p8 = pnand %p6823_p7, %p6822_p6 }
   0xf   : > { %p6825_p9 = pneg %p6824_p8 }
  0x11   : > { %p6830_p11 = pnand %p6828_p10, %p6825_p9 }
  0x13   : > { %6833 = shalt.err (!%p6830_p11)
}
  0x14   : > { %s6834_s7 = scalar_lea.vmem %s176_s21, 32768  ;;  %p6842_p1 = scmp.lt.s32.totalorder %s176_s21, %s176_s21 }
  0x15   : > { %p6835_p12 = scmp.ne.s32.totalorder %s176_s21, %s6834_s7  ;;  %p6843_p4 = scmp.lt.s32.totalorder %s6834_s7, %s6834_s7 }
  0x17   : > { %p6837_p13 = pnand %p6835_p12, %p6823_p7  ;;  %p6844_p3 = por %p6843_p4, %p6842_p1 }
  0x19   : > { %p6838_p0 = pneg %p6837_p13 }
  0x1b   : > { %p6845_p2 = pnand %p6844_p3, %p6838_p0 }
  0x1d   : > { %6848 = shalt.err (!%p6845_p2)
}
  0x1e   : > { %s6862_s8 = smov 256   ;;  %s6863_s9 = smov 16  }
  0x1f   : > { %6164 = dma.hbm_to_vmem [thread:$0]  (!%p6916_p5), %s12520_s3, 32768, %s176_s21, [#allocation3], %s6862_s8, %s6862_s8, %s6863_s9  }
  0x20   : > { %p12595_p6 = scmp.ne.s32.totalorder %s12592_s22, 0 }
  0x22   : > { %204 = sbr.rel (%p12595_p6) target bundleno = 1236 (0x4d4), region = 40 }
  0x29   : > { %p12596_p8 = scmp.ne.s32.totalorder %s12593_s23, 0 }
  0x2b   : > { %6854 = dma.done.wait (%p12596_p8), [#allocation3], 32768  }
  0x2c   : > { %6856 = vsyncadd (%p12596_p8), [#allocation3], 4294934528  ;;  %v313_v0 = vld [vmem:[%s12518_s1 + $0x8] sm:$0xff]  ;;  %v312_v2 = vld [vmem:[%s12518_s1] sm:$0xff]  ;;  %s5379_s9 = sshll.u32 %s5372_s19, 5 }
  0x2d   : > { %v321_v1 = vld [vmem:[%s12518_s1 + $0x48] sm:$0xff]  ;;  %v320_v4 = vld [vmem:[%s12518_s1 + $0x40] sm:$0xff]  ;;  %p235_p2 = scmp.lt.s32.totalorder %s5379_s9, 63 }
  0x2e   : > { %v5389_v3 = vpack.c.bf16 %v321_v1, %v313_v0  ;;  %v329_v5 = vld [vmem:[%s12518_s1 + $0x88] sm:$0xff]  ;;  %v5391_v7 = vpack.c.bf16 %v320_v4, %v312_v2  ;;  %v328_v9 = vld [vmem:[%s12518_s1 + $0x80] sm:$0xff] }
  0x2f   : > { %v337_v6 = vld [vmem:[%s12518_s1 + $0xc8] sm:$0xff]  ;;  %v336_v10 = vld [vmem:[%s12518_s1 + $0xc0] sm:$0xff]  ;;  %s12986_s9 = smov (!%p235_p2, %s5379_s9), 63 }
  0x30   : > { %v5393_v8 = vpack.c.bf16 %v337_v6, %v329_v5  ;;  %v345_v11 = vld [vmem:[%s12518_s1 + $0x108] sm:$0xff]  ;;  %5390 = vmatprep.subr.bf16.mxu1 %v5389_v3  ;;  %v5395_v13 = vpack.c.bf16 %v336_v10, %v328_v9  ;;  %v344_v15 = vld [vmem:[%s12518_s1 + $0x100] sm:$0xff]  ;;  %s5387_s11 = sshll.u32 %s12986_s9, 4 }
  0x31   : > { %v353_v12 = vld [vmem:[%s12518_s1 + $0x148] sm:$0xff]  ;;  %5392 = vmatpush1.bf16.msra.mxu1 %v5391_v7  ;;  %v352_v16 = vld [vmem:[%s12518_s1 + $0x140] sm:$0xff]  ;;  %s7030_s23 = scalar_lea.vmem %s12517_s0, %s5387_s11  ;;  %s12384_s8 = scalar_lea.vmem %s12522_s5, %s5387_s11 }
  0x32   : > { %5394 = vmatprep.subr.bf16.mxu1 %v5393_v8  ;;  %v5397_v14 = vpack.c.bf16 %v353_v12, %v345_v11  ;;  %v361_v17 = vld [vmem:[%s12518_s1 + $0x188] sm:$0xff]  ;;  %v5399_v19 = vpack.c.bf16 %v352_v16, %v344_v15  ;;  %v360_v21 = vld [vmem:[%s12518_s1 + $0x180] sm:$0xff] }
  0x33   : > { %v369_v18 = vld [vmem:[%s12518_s1 + $0x1c8] sm:$0xff]  ;;  %v368_v22 = vld [vmem:[%s12518_s1 + $0x1c0] sm:$0xff] }
  0x34   : > { %v5401_v20 = vpack.c.bf16 %v369_v18, %v361_v17  ;;  %v377_v23 = vld [vmem:[%s12518_s1 + $0x208] sm:$0xff]  ;;  %v5403_v25 = vpack.c.bf16 %v368_v22, %v360_v21  ;;  %v376_v27 = vld [vmem:[%s12518_s1 + $0x200] sm:$0xff] }
  0x35   : > { %5396 = vmatpush1.bf16.msra.mxu1 %v5395_v13  ;;  %v385_v24 = vld [vmem:[%s12518_s1 + $0x248] sm:$0xff]  ;;  %v384_v28 = vld [vmem:[%s12518_s1 + $0x240] sm:$0xff] }
  0x36   : > { %5398 = vmatprep.subr.bf16.mxu1 %v5397_v14  ;;  %v5405_v26 = vpack.c.bf16 %v385_v24, %v377_v23  ;;  %v393_v29 = vld [vmem:[%s12518_s1 + $0x288] sm:$0xff]  ;;  %v5407_v31 = vpack.c.bf16 %v384_v28, %v376_v27  ;;  %v392_v33 = vld [vmem:[%s12518_s1 + $0x280] sm:$0xff] }
  0x37   : > { %v401_v30 = vld [vmem:[%s12518_s1 + $0x2c8] sm:$0xff]  ;;  %v400_v34 = vld [vmem:[%s12518_s1 + $0x2c0] sm:$0xff] }
  0x38   : > { %v5409_v32 = vpack.c.bf16 %v401_v30, %v393_v29  ;;  %v409_v35 = vld [vmem:[%s12518_s1 + $0x308] sm:$0xff]  ;;  %v5411_v37 = vpack.c.bf16 %v400_v34, %v392_v33  ;;  %v408_v39 = vld [vmem:[%s12518_s1 + $0x300] sm:$0xff]  ;;  %v323_v33 = vld [vmem:[%s12518_s1 + $0x58] sm:$0xff] }
  0x39   : > { %5400 = vmatpush1.bf16.msra.mxu1 %v5399_v19  ;;  %v417_v36 = vld [vmem:[%s12518_s1 + $0x348] sm:$0xff]  ;;  %v416_v40 = vld [vmem:[%s12518_s1 + $0x340] sm:$0xff] }
  0x3a   : > { %5402 = vmatprep.subr.bf16.mxu1 %v5401_v20  ;;  %v5413_v38 = vpack.c.bf16 %v417_v36, %v409_v35  ;;  %v7039_v41 = vld [vmem:[%s7030_s23 + $0x8] sm:$0xff]  ;;  %v5415_v44 = vpack.c.bf16 %v416_v40, %v408_v39  ;;  %v424_v46 = vld [vmem:[%s12518_s1 + $0x380] sm:$0xff]  ;;  %v314_v36 = vld [vmem:[%s12518_s1 + $0x10] sm:$0xff] }
  0x3b   : > { %v425_v42 = vld [vmem:[%s12518_s1 + $0x388] sm:$0xff]  ;;  %674 = vmatprep.mubr.f32.mxu1 %v7039_v41  ;;  %v432_v47 = vld [vmem:[%s12518_s1 + $0x3c0] sm:$0xff]  ;;  %v339_v39 = vld [vmem:[%s12518_s1 + $0xd8] sm:$0xff] }
  0x3c   : > { %v433_v43 = vld [vmem:[%s12518_s1 + $0x3c8] sm:$0xff]  ;;  %v5419_v50 = vpack.c.bf16 %v432_v47, %v424_v46  ;;  %v440_v52 = vld [vmem:[%s12518_s1 + $0x400] sm:$0xff]  ;;  %v338_v46 = vld [vmem:[%s12518_s1 + $0xd0] sm:$0xff] }
  0x3d   : > { %5404 = vmatpush1.bf16.msra.mxu1 %v5403_v25  ;;  %v5417_v45 = vpack.c.bf16 %v433_v43, %v425_v42  ;;  %v441_v48 = vld [vmem:[%s12518_s1 + $0x408] sm:$0xff]  ;;  %v448_v53 = vld [vmem:[%s12518_s1 + $0x440] sm:$0xff]  ;;  %v7172_v43 = vld [vmem:[%s7030_s23 + $0x18] sm:$0xff] }
  0x3e   : > { %5406 = vmatprep.subr.bf16.mxu1 %v5405_v26  ;;  %v449_v49 = vld [vmem:[%s12518_s1 + $0x448] sm:$0xff]  ;;  %v5423_v56 = vpack.c.bf16 %v448_v53, %v440_v52  ;;  %v456_v58 = vld [vmem:[%s12518_s1 + $0x480] sm:$0xff]  ;;  %v347_v47 = vld [vmem:[%s12518_s1 + $0x118] sm:$0xff] }
  0x3f   : > { %v5421_v51 = vpack.c.bf16 %v449_v49, %v441_v48  ;;  %v457_v54 = vld [vmem:[%s12518_s1 + $0x488] sm:$0xff]  ;;  %v464_v59 = vld [vmem:[%s12518_s1 + $0x4c0] sm:$0xff]  ;;  %v355_v48 = vld [vmem:[%s12518_s1 + $0x158] sm:$0xff] }
  0x40   : > { %v465_v55 = vld [vmem:[%s12518_s1 + $0x4c8] sm:$0xff]  ;;  %v5427_v62 = vpack.c.bf16 %v464_v59, %v456_v58  ;;  %v472_v0 = vld [vmem:[%s12518_s1 + $0x500] sm:$0xff]  ;;  %v7189_v49 = vld [vmem:[%s7030_s23 + $0x10] sm:$0xff]  ;;  %v5461_v52 = vpack.c.bf16 %v355_v48, %v347_v47 }
  0x41   : > { %5408 = vmatpush1.bf16.msra.mxu1 %v5407_v31  ;;  %v5425_v57 = vpack.c.bf16 %v465_v55, %v457_v54  ;;  %v473_v60 = vld [vmem:[%s12518_s1 + $0x508] sm:$0xff]  ;;  %v480_v1 = vld [vmem:[%s12518_s1 + $0x540] sm:$0xff]  ;;  %v346_v53 = vld [vmem:[%s12518_s1 + $0x110] sm:$0xff] }
  0x42   : > { %5410 = vmatprep.subr.bf16.mxu1 %v5409_v32  ;;  %v481_v61 = vld [vmem:[%s12518_s1 + $0x548] sm:$0xff]  ;;  %v5431_v4 = vpack.c.bf16 %v480_v1, %v472_v0  ;;  %v488_v6 = vld [vmem:[%s12518_s1 + $0x580] sm:$0xff]  ;;  %v315_v32 = vld [vmem:[%s12518_s1 + $0x18] sm:$0xff] }
  0x43   : > { %v5429_v63 = vpack.c.bf16 %v481_v61, %v473_v60  ;;  %v489_v2 = vld [vmem:[%s12518_s1 + $0x588] sm:$0xff]  ;;  %v496_v7 = vld [vmem:[%s12518_s1 + $0x5c0] sm:$0xff]  ;;  %v5453_v35 = vpack.c.bf16 %v323_v33, %v315_v32  ;;  %v354_v54 = vld [vmem:[%s12518_s1 + $0x150] sm:$0xff] }
  0x44   : > { %v497_v3 = vld [vmem:[%s12518_s1 + $0x5c8] sm:$0xff]  ;;  %v5435_v10 = vpack.c.bf16 %v496_v7, %v488_v6  ;;  %v504_v12 = vld [vmem:[%s12518_s1 + $0x600] sm:$0xff]  ;;  %v363_v55 = vld [vmem:[%s12518_s1 + $0x198] sm:$0xff]  ;;  %v5463_v58 = vpack.c.bf16 %v354_v54, %v346_v53 }
  0x45   : > { %5412 = vmatpush1.bf16.msra.mxu1 %v5411_v37  ;;  %v5433_v5 = vpack.c.bf16 %v497_v3, %v489_v2  ;;  %v505_v8 = vld [vmem:[%s12518_s1 + $0x608] sm:$0xff]  ;;  %v512_v13 = vld [vmem:[%s12518_s1 + $0x640] sm:$0xff]  ;;  %v322_v37 = vld [vmem:[%s12518_s1 + $0x50] sm:$0xff] }
  0x46   : > { %5414 = vmatprep.subr.bf16.mxu1 %v5413_v38  ;;  %v513_v9 = vld [vmem:[%s12518_s1 + $0x648] sm:$0xff]  ;;  %v5439_v16 = vpack.c.bf16 %v512_v13, %v504_v12  ;;  %v520_v18 = vld [vmem:[%s12518_s1 + $0x680] sm:$0xff]  ;;  %v331_v38 = vld [vmem:[%s12518_s1 + $0x98] sm:$0xff]  ;;  %v5455_v42 = vpack.c.bf16 %v322_v37, %v314_v36 }
  0x47   : > { %v5437_v11 = vpack.c.bf16 %v513_v9, %v505_v8  ;;  %v521_v14 = vld [vmem:[%s12518_s1 + $0x688] sm:$0xff]  ;;  %v528_v19 = vld [vmem:[%s12518_s1 + $0x6c0] sm:$0xff]  ;;  %v7212_v59 = vld [vmem:[%s7030_s23 + $0x38] sm:$0xff] }
  0x48   : > { %v529_v15 = vld [vmem:[%s12518_s1 + $0x6c8] sm:$0xff]  ;;  %v5443_v22 = vpack.c.bf16 %v528_v19, %v520_v18  ;;  %v536_v24 = vld [vmem:[%s12518_s1 + $0x700] sm:$0xff]  ;;  %v362_v61 = vld [vmem:[%s12518_s1 + $0x190] sm:$0xff] }
  0x49   : > { %5416 = vmatpush1.bf16.msra.mxu1 %v5415_v44  ;;  %v5441_v17 = vpack.c.bf16 %v529_v15, %v521_v14  ;;  %v537_v20 = vld [vmem:[%s12518_s1 + $0x708] sm:$0xff]  ;;  %v544_v25 = vld [vmem:[%s12518_s1 + $0x740] sm:$0xff]  ;;  %v5457_v44 = vpack.c.bf16 %v339_v39, %v331_v38  ;;  %v387_v0 = vld [vmem:[%s12518_s1 + $0x258] sm:$0xff] }
  0x4a   : > { %5418 = vmatprep.subr.bf16.mxu1 %v5417_v45  ;;  %v545_v21 = vld [vmem:[%s12518_s1 + $0x748] sm:$0xff]  ;;  %v5447_v28 = vpack.c.bf16 %v544_v25, %v536_v24  ;;  %v552_v30 = vld [vmem:[%s12518_s1 + $0x780] sm:$0xff]  ;;  %v330_v45 = vld [vmem:[%s12518_s1 + $0x90] sm:$0xff] }
  0x4b   : > { %v5445_v23 = vpack.c.bf16 %v545_v21, %v537_v20  ;;  %v553_v26 = vld [vmem:[%s12518_s1 + $0x788] sm:$0xff]  ;;  %v560_v31 = vld [vmem:[%s12518_s1 + $0x7c0] sm:$0xff]  ;;  %v7229_v1 = vld [vmem:[%s7030_s23 + $0x30] sm:$0xff] }
  0x4c   : > { %v561_v27 = vld [vmem:[%s12518_s1 + $0x7c8] sm:$0xff]  ;;  %v5451_v34 = vpack.c.bf16 %v560_v31, %v552_v30  ;;  %v7169_v40 = vld [vmem:[%s7030_s23] sm:$0xff]  ;;  %v386_v6 = vld [vmem:[%s12518_s1 + $0x250] sm:$0xff] }
  0x4d   : > { %5420 = vmatpush1.bf16.msra.mxu1 %v5419_v50  ;;  %v5449_v29 = vpack.c.bf16 %v561_v27, %v553_v26  ;;  %v5459_v50 = vpack.c.bf16 %v338_v46, %v330_v45  ;;  %v7232_v3 = vld [vmem:[%s7030_s23 + $0x48] sm:$0xff]  ;;  %v395_v7 = vld [vmem:[%s12518_s1 + $0x298] sm:$0xff]  ;;  %v7249_v9 = vld [vmem:[%s7030_s23 + $0x40] sm:$0xff] }
  0x4e   : > { %5422 = vmatprep.subr.bf16.mxu1 %v5421_v51  ;;  %v7192_v51 = vld [vmem:[%s7030_s23 + $0x28] sm:$0xff]  ;;  %v403_v8 = vld [vmem:[%s12518_s1 + $0x2d8] sm:$0xff]  ;;  %v394_v13 = vld [vmem:[%s12518_s1 + $0x290] sm:$0xff] }
  0x4f   : > { %v5473_v12 = vpack.c.bf16 %v403_v8, %v395_v7  ;;  %v402_v14 = vld [vmem:[%s12518_s1 + $0x2d0] sm:$0xff]  ;;  %v411_v15 = vld [vmem:[%s12518_s1 + $0x318] sm:$0xff]  ;;  %v7272_v19 = vld [vmem:[%s7030_s23 + $0x68] sm:$0xff] }
  0x50   : > { %v5475_v18 = vpack.c.bf16 %v402_v14, %v394_v13  ;;  %v410_v21 = vld [vmem:[%s12518_s1 + $0x310] sm:$0xff]  ;;  %v435_v24 = vld [vmem:[%s12518_s1 + $0x3d8] sm:$0xff]  ;;  %v7289_v25 = vld [vmem:[%s7030_s23 + $0x60] sm:$0xff] }
  0x51   : > { %5424 = vmatpush1.bf16.msra.mxu1 %v5423_v56  ;;  %v371_v56 = vld [vmem:[%s12518_s1 + $0x1d8] sm:$0xff]  ;;  %v434_v30 = vld [vmem:[%s12518_s1 + $0x3d0] sm:$0xff]  ;;  %v7392_v14 = vld [vmem:[%s7030_s23 + $0xc8] sm:$0xff] }
  0x52   : > { %5426 = vmatprep.subr.bf16.mxu1 %v5425_v57  ;;  %v7209_v57 = vld [vmem:[%s7030_s23 + $0x20] sm:$0xff]  ;;  %v5465_v60 = vpack.c.bf16 %v371_v56, %v363_v55  ;;  %v7292_v27 = vld [vmem:[%s7030_s23 + $0x78] sm:$0xff]  ;;  %v7309_v33 = vld [vmem:[%s7030_s23 + $0x70] sm:$0xff] }
  0x53   : > { %v443_v31 = vld [vmem:[%s12518_s1 + $0x418] sm:$0xff]  ;;  %v442_v37 = vld [vmem:[%s12518_s1 + $0x410] sm:$0xff]  ;;  %v7352_v56 = vld [vmem:[%s7030_s23 + $0xa8] sm:$0xff] }
  0x54   : > { %v451_v32 = vld [vmem:[%s12518_s1 + $0x458] sm:$0xff]  ;;  %v450_v38 = vld [vmem:[%s12518_s1 + $0x450] sm:$0xff] }
  0x55   : > { %5428 = vmatpush1.bf16.msra.mxu1 %v5427_v62  ;;  %v370_v62 = vld [vmem:[%s12518_s1 + $0x1d0] sm:$0xff]  ;;  %v5485_v36 = vpack.c.bf16 %v451_v32, %v443_v31  ;;  %v459_v39 = vld [vmem:[%s12518_s1 + $0x498] sm:$0xff]  ;;  %v5487_v45 = vpack.c.bf16 %v450_v38, %v442_v37  ;;  %v3943_v31 = vld [vmem:[#allocation2 + $0x8] sm:$0xff] }
  0x56   : > { %5430 = vmatprep.subr.bf16.mxu1 %v5429_v63  ;;  %v379_v63 = vld [vmem:[%s12518_s1 + $0x218] sm:$0xff]  ;;  %v5467_v2 = vpack.c.bf16 %v370_v62, %v362_v61  ;;  %v458_v48 = vld [vmem:[%s12518_s1 + $0x490] sm:$0xff]  ;;  %v3942_v37 = vld [vmem:[#allocation2] sm:$0xff] }
  0x57   : > { %v7332_v46 = vld [vmem:[%s7030_s23 + $0x98] sm:$0xff]  ;;  %v7349_v54 = vld [vmem:[%s7030_s23 + $0x90] sm:$0xff] }
  0x58   : > { %v483_v53 = vld [vmem:[%s12518_s1 + $0x558] sm:$0xff]  ;;  %v482_v61 = vld [vmem:[%s12518_s1 + $0x550] sm:$0xff] }
  0x59   : > { %5432 = vmatpush1.bf16.msra.mxu1 %v5431_v4  ;;  %v5469_v4 = vpack.c.bf16 %v387_v0, %v379_v63  ;;  %v491_v62 = vld [vmem:[%s12518_s1 + $0x598] sm:$0xff]  ;;  %v7369_v0 = vld [vmem:[%s7030_s23 + $0xa0] sm:$0xff]  ;;  %v498_v7 = vld [vmem:[%s12518_s1 + $0x5d0] sm:$0xff] }
  0x5a   : > { %5434 = vmatprep.subr.bf16.mxu1 %v5433_v5  ;;  %v378_v5 = vld [vmem:[%s12518_s1 + $0x210] sm:$0xff]  ;;  %v499_v63 = vld [vmem:[%s12518_s1 + $0x5d8] sm:$0xff] }
  0x5b   : > { %v507_v8 = vld [vmem:[%s12518_s1 + $0x618] sm:$0xff]  ;;  %v3944_v38 = vld [vmem:[#allocation2 + $0x10] sm:$0xff] }
  0x5c   : > { %v3945_v32 = vld [vmem:[#allocation2 + $0x18] sm:$0xff] }
  0x5d   : > { %5436 = vmatpush1.bf16.msra.mxu1 %v5435_v10  ;;  %v5471_v10 = vpack.c.bf16 %v386_v6, %v378_v5  ;;  %v5497_v5 = vpack.c.bf16 %v499_v63, %v491_v62  ;;  %v490_v6 = vld [vmem:[%s12518_s1 + $0x590] sm:$0xff]  ;;  %v3946_v62 = vld [vmem:[#allocation2 + $0x20] sm:$0xff] }
  0x5e   : > { %5438 = vmatprep.subr.bf16.mxu1 %v5437_v11  ;;  %v7252_v11 = vld [vmem:[%s7030_s23 + $0x58] sm:$0xff]  ;;  %v5499_v13 = vpack.c.bf16 %v498_v7, %v490_v6  ;;  %v3948_v63 = vld [vmem:[#allocation2 + $0x30] sm:$0xff] }
  0x5f   : > { %v7452_v6 = vld [vmem:[%s7030_s23 + $0xf8] sm:$0xff] }
  0x61   : > { %5440 = vmatpush1.bf16.msra.mxu1 %v5439_v16  ;;  %v419_v16 = vld [vmem:[%s12518_s1 + $0x358] sm:$0xff] }
  0x62   : > { %5442 = vmatprep.subr.bf16.mxu1 %v5441_v17  ;;  %v7269_v17 = vld [vmem:[%s7030_s23 + $0x50] sm:$0xff]  ;;  %v5477_v20 = vpack.c.bf16 %v419_v16, %v411_v15 }
  0x63   : > { %v506_v16 = vld [vmem:[%s12518_s1 + $0x610] sm:$0xff] }
  0x65   : > { %5444 = vmatpush1.bf16.msra.mxu1 %v5443_v22  ;;  %v418_v22 = vld [vmem:[%s12518_s1 + $0x350] sm:$0xff] }
  0x66   : > { %5446 = vmatprep.subr.bf16.mxu1 %v5445_v23  ;;  %v427_v23 = vld [vmem:[%s12518_s1 + $0x398] sm:$0xff]  ;;  %v5479_v26 = vpack.c.bf16 %v418_v22, %v410_v21  ;;  %v7408_v22 = vld [vmem:[%s7030_s23 + $0xc0] sm:$0xff] }
  0x67   : > { %v531_v21 = vld [vmem:[%s12518_s1 + $0x6d8] sm:$0xff] }
  0x69   : > { %5448 = vmatpush1.bf16.msra.mxu1 %v5447_v28  ;;  %v5481_v28 = vpack.c.bf16 %v435_v24, %v427_v23  ;;  %v7412_v23 = vld [vmem:[%s7030_s23 + $0xd8] sm:$0xff] }
  0x6a   : > { %5450 = vmatprep.subr.bf16.mxu1 %v5449_v29  ;;  %v426_v29 = vld [vmem:[%s12518_s1 + $0x390] sm:$0xff] }
  0x6d   : > { %5452 = vmatpush1.bf16.msra.mxu1 %v5451_v34  ;;  %v5483_v34 = vpack.c.bf16 %v434_v30, %v426_v29  ;;  %v539_v30 = vld [vmem:[%s12518_s1 + $0x718] sm:$0xff] }
  0x6e   : > { %5454 = vmatprep.subr.bf16.mxu1 %v5453_v35  ;;  %v7312_v35 = vld [vmem:[%s7030_s23 + $0x88] sm:$0xff] }
  0x70   : > { %675 = vmatmul.mubr.f32.vlgmr.msra.gmra.mrb[0].mxu1 %v7169_v40 }
  0x71   : > { %5456 = vmatpush1.bf16.msra.mxu1 %v5455_v42  ;;  %680 = vmatprep.mubr.f32.mxu1 %v7172_v43  ;;  %v467_v42 = vld [vmem:[%s12518_s1 + $0x4d8] sm:$0xff] }
  0x72   : > { %5458 = vmatprep.subr.bf16.mxu1 %v5457_v44  ;;  %v7329_v44 = vld [vmem:[%s7030_s23 + $0x80] sm:$0xff]  ;;  %v5489_v47 = vpack.c.bf16 %v467_v42, %v459_v39  ;;  %v7428_v39 = vld [vmem:[%s7030_s23 + $0xd0] sm:$0xff]  ;;  %v5647_v42 = vpack.c.bf16 %v3944_v38, %v3942_v37 }
  0x73   : > { %v3954_v38 = vld [vmem:[#allocation2 + $0x60] sm:$0xff] }
  0x74   : > { %681 = vmatmul.mubr.f32.gmra.mrb[2].mxu1 %v7189_v49 }
  0x75   : > { %686 = vmatprep.mubr.f32.mxu1 %v7192_v51  ;;  %5460 = vmatpush1.bf16.msra.mxu1 %v5459_v50  ;;  %v466_v50 = vld [vmem:[%s12518_s1 + $0x4d0] sm:$0xff] }
  0x76   : > { %5462 = vmatprep.subr.bf16.mxu1 %v5461_v52  ;;  %v475_v52 = vld [vmem:[%s12518_s1 + $0x518] sm:$0xff]  ;;  %v5491_v55 = vpack.c.bf16 %v466_v50, %v458_v48  ;;  %v538_v48 = vld [vmem:[%s12518_s1 + $0x710] sm:$0xff] }
  0x77   : > { %v546_v50 = vld [vmem:[%s12518_s1 + $0x750] sm:$0xff] }
  0x78   : > { %687 = vmatmul.mubr.f32.gmra.mrb[4].mxu1 %v7209_v57  ;;  %v5511_v7 = vpack.c.bf16 %v546_v50, %v538_v48  ;;  %v7477_v48 = vld [vmem:[%s7030_s23 + $0x100] sm:$0xff]  ;;  %v7480_v50 = vld [vmem:[%s7030_s23 + $0x118] sm:$0xff] }
  0x79   : > { %692 = vmatprep.mubr.f32.mxu1 %v7212_v59  ;;  %5464 = vmatpush1.bf16.msra.mxu1 %v5463_v58  ;;  %v5493_v58 = vpack.c.bf16 %v483_v53, %v475_v52  ;;  %v555_v53 = vld [vmem:[%s12518_s1 + $0x798] sm:$0xff] }
  0x7a   : > { %5466 = vmatprep.subr.bf16.mxu1 %v5465_v60  ;;  %v474_v60 = vld [vmem:[%s12518_s1 + $0x510] sm:$0xff] }
  0x7c   : > { %693 = vmatmul.mubr.f32.gmra.mrb[6].mxu1 %v7229_v1 }
  0x7d   : > { %698 = vmatprep.mubr.f32.mxu1 %v7232_v3  ;;  %5468 = vmatpush1.bf16.msra.mxu1 %v5467_v2  ;;  %v5495_v2 = vpack.c.bf16 %v482_v61, %v474_v60  ;;  %v563_v60 = vld [vmem:[%s12518_s1 + $0x7d8] sm:$0xff] }
  0x7e   : > { %5470 = vmatprep.subr.bf16.mxu1 %v5469_v4  ;;  %v7372_v4 = vld [vmem:[%s7030_s23 + $0xb8] sm:$0xff] }
  0x80   : > { %699 = vmatmul.mubr.f32.gmra.mrb[8].mxu1 %v7249_v9 }
  0x81   : > { %704 = vmatprep.mubr.f32.mxu1 %v7252_v11  ;;  %5472 = vmatpush1.bf16.msra.mxu1 %v5471_v10  ;;  %v515_v10 = vld [vmem:[%s12518_s1 + $0x658] sm:$0xff] }
  0x82   : > { %5474 = vmatprep.subr.bf16.mxu1 %v5473_v12  ;;  %v7389_v12 = vld [vmem:[%s7030_s23 + $0xb0] sm:$0xff]  ;;  %v5501_v15 = vpack.c.bf16 %v515_v10, %v507_v8 }
  0x83   : > { %v554_v8 = vld [vmem:[%s12518_s1 + $0x790] sm:$0xff] }
  0x84   : > { %705 = vmatmul.mubr.f32.gmra.mrb[10].mxu1 %v7269_v17  ;;  %v562_v10 = vld [vmem:[%s12518_s1 + $0x7d0] sm:$0xff] }
  0x85   : > { %710 = vmatprep.mubr.f32.mxu1 %v7272_v19  ;;  %5476 = vmatpush1.bf16.msra.mxu1 %v5475_v18  ;;  %v514_v18 = vld [vmem:[%s12518_s1 + $0x650] sm:$0xff] }
  0x86   : > { %5478 = vmatprep.subr.bf16.mxu1 %v5477_v20  ;;  %v523_v20 = vld [vmem:[%s12518_s1 + $0x698] sm:$0xff]  ;;  %v5503_v24 = vpack.c.bf16 %v514_v18, %v506_v16  ;;  %v3951_v16 = vld [vmem:[#allocation2 + $0x48] sm:$0xff] }
  0x87   : > { %v5505_v29 = vpack.c.bf16 %v531_v21, %v523_v20  ;;  %v3953_v18 = vld [vmem:[#allocation2 + $0x58] sm:$0xff]  ;;  %v325_v20 = vld [vmem:[%s12518_s1 + $0x68] sm:$0xff] }
  0x88   : > { %711 = vmatmul.mubr.f32.gmra.mrb[12].mxu1 %v7289_v25  ;;  %v5653_v21 = vpack.c.bf16 %v3953_v18, %v3951_v16  ;;  %v7493_v16 = vld [vmem:[%s7030_s23 + $0x120] sm:$0xff]  ;;  %v7496_v18 = vld [vmem:[%s7030_s23 + $0x138] sm:$0xff] }
  0x89   : > { %716 = vmatprep.mubr.f32.mxu1 %v7292_v27  ;;  %5480 = vmatpush1.bf16.msra.mxu1 %v5479_v26  ;;  %v522_v26 = vld [vmem:[%s12518_s1 + $0x690] sm:$0xff] }
  0x8a   : > { %5482 = vmatprep.subr.bf16.mxu1 %v5481_v28  ;;  %v530_v28 = vld [vmem:[%s12518_s1 + $0x6d0] sm:$0xff] }
  0x8c   : > { %717 = vmatmul.mubr.f32.gmra.mrb[14].mxu1 %v7309_v33 }
  0x8d   : > { %722 = vmatprep.mubr.f32.mxu1 %v7312_v35  ;;  %5484 = vmatpush1.bf16.msra.mxu1 %v5483_v34  ;;  %v547_v34 = vld [vmem:[%s12518_s1 + $0x758] sm:$0xff] }
  0x8e   : > { %5486 = vmatprep.subr.bf16.mxu1 %v5485_v36  ;;  %v5645_v36 = vpack.c.bf16 %v3945_v32, %v3943_v31  ;;  %v5509_v52 = vpack.c.bf16 %v547_v34, %v539_v30  ;;  %v5515_v30 = vpack.c.bf16 %v562_v10, %v554_v8  ;;  %v7472_v31 = vld [vmem:[%s7030_s23 + $0x108] sm:$0xff]  ;;  %v3962_v10 = vld [vmem:[#allocation2 + $0xa0] sm:$0xff] }
  0x8f   : > { %v3955_v34 = vld [vmem:[#allocation2 + $0x68] sm:$0xff] }
  0x90   : > { %723 = vmatmul.mubr.f32.gmra.mrb[16].mxu1 %v7329_v44  ;;  %5646 = vmatprep.subr.bf16.mxu0 %v5645_v36  ;;  %v3957_v36 = vld [vmem:[#allocation2 + $0x78] sm:$0xff] }
  0x91   : > { %728 = vmatprep.mubr.f32.mxu1 %v7332_v46  ;;  %5488 = vmatpush1.bf16.msra.mxu1 %v5487_v45  ;;  %v7432_v45 = vld [vmem:[%s7030_s23 + $0xe8] sm:$0xff]  ;;  %v5657_v37 = vpack.c.bf16 %v3957_v36, %v3955_v34 }
  0x92   : > { %5490 = vmatprep.subr.bf16.mxu1 %v5489_v47  ;;  %v5507_v47 = vpack.c.bf16 %v530_v28, %v522_v26  ;;  %5648 = vmatpush1.bf16.msra.mxu0 %v5647_v42  ;;  %v3952_v26 = vld [vmem:[#allocation2 + $0x50] sm:$0xff]  ;;  %v7504_v34 = vld [vmem:[%s7030_s23 + $0x148] sm:$0xff] }
  0x93   : > { %v3956_v42 = vld [vmem:[#allocation2 + $0x70] sm:$0xff]  ;;  %v3971_v36 = vld [vmem:[#allocation2 + $0xe8] sm:$0xff] }
  0x94   : > { %729 = vmatmul.mubr.f32.gmra.mrb[18].mxu1 %v7349_v54 }
  0x95   : > { %734 = vmatprep.mubr.f32.mxu1 %v7352_v56  ;;  %5492 = vmatpush1.bf16.msra.mxu1 %v5491_v55  ;;  %v3947_v55 = vld [vmem:[#allocation2 + $0x28] sm:$0xff] }
  0x96   : > { %5494 = vmatprep.subr.bf16.mxu1 %v5493_v58  ;;  %v3949_v58 = vld [vmem:[#allocation2 + $0x38] sm:$0xff] }
  0x97   : > { %v5649_v61 = vpack.c.bf16 %v3949_v58, %v3947_v55  ;;  %v3958_v58 = vld [vmem:[#allocation2 + $0x80] sm:$0xff] }
  0x98   : > { %735 = vmatmul.mubr.f32.gmra.mrb[20].mxu1 %v7369_v0 }
  0x99   : > { %740 = vmatprep.mubr.f32.mxu1 %v7372_v4  ;;  %5496 = vmatpush1.bf16.msra.mxu1 %v5495_v2  ;;  %v7448_v2 = vld [vmem:[%s7030_s23 + $0xe0] sm:$0xff] }
  0x9a   : > { %5498 = vmatprep.subr.bf16.mxu1 %v5497_v5  ;;  %v5651_v5 = vpack.c.bf16 %v3948_v63, %v3946_v62  ;;  %5650 = vmatprep.subr.bf16.mxu0 %v5649_v61  ;;  %v7485_v62 = vld [vmem:[%s7030_s23 + $0x110] sm:$0xff]  ;;  %v7488_v63 = vld [vmem:[%s7030_s23 + $0x128] sm:$0xff] }
  0x9c   : > { %741 = vmatmul.mubr.f32.gmra.mrb[22].mxu1 %v7389_v12  ;;  %5652 = vmatpush1.bf16.msra.mxu0 %v5651_v5  ;;  %v3963_v5 = vld [vmem:[#allocation2 + $0xa8] sm:$0xff] }
  0x9d   : > { %746 = vmatprep.mubr.f32.mxu1 %v7392_v14  ;;  %5500 = vmatpush1.bf16.msra.mxu1 %v5499_v13  ;;  %v5513_v13 = vpack.c.bf16 %v563_v60, %v555_v53  ;;  %v3961_v53 = vld [vmem:[#allocation2 + $0x98] sm:$0xff]  ;;  %v3960_v60 = vld [vmem:[#allocation2 + $0x90] sm:$0xff] }
  0x9e   : > { %5502 = vmatprep.subr.bf16.mxu1 %v5501_v15  ;;  %v317_v15 = vld [vmem:[%s12518_s1 + $0x28] sm:$0xff]  ;;  %5654 = vmatprep.subr.bf16.mxu0 %v5653_v21  ;;  %v5663_v61 = vpack.c.bf16 %v3960_v60, %v3958_v58  ;;  %v3969_v21 = vld [vmem:[#allocation2 + $0xd8] sm:$0xff] }
  0x9f   : > { %v5517_v32 = vpack.c.bf16 %v325_v20, %v317_v15  ;;  %v3967_v20 = vld [vmem:[#allocation2 + $0xc8] sm:$0xff]  ;;  %v3977_v60 = vld [vmem:[#allocation2 + $0x118] sm:$0xff] }
  0xa0   : > { %747 = vmatmul.mubr.f32.gmra.mrb[24].mxu1 %v7408_v22  ;;  %v3975_v58 = vld [vmem:[#allocation2 + $0x108] sm:$0xff] }
  0xa1   : > { %752 = vmatprep.mubr.f32.mxu1 %v7412_v23  ;;  %5504 = vmatpush1.bf16.msra.mxu1 %v5503_v24  ;;  %v3950_v24 = vld [vmem:[#allocation2 + $0x40] sm:$0xff] }
  0xa2   : > { %5506 = vmatprep.subr.bf16.mxu1 %v5505_v29  ;;  %v5655_v28 = vpack.c.bf16 %v3952_v26, %v3950_v24  ;;  %v7469_v29 = vld [vmem:[%s7030_s23 + $0xf0] sm:$0xff]  ;;  %v5669_v24 = vpack.c.bf16 %v3969_v21, %v3967_v20  ;;  %v3966_v26 = vld [vmem:[#allocation2 + $0xc0] sm:$0xff]  ;;  %v3981_v20 = vld [vmem:[#allocation2 + $0x138] sm:$0xff] }
  0xa4   : > { %753 = vmatmul.mubr.f32.gmra.mrb[26].mxu1 %v7428_v39  ;;  %5656 = vmatpush1.bf16.msra.mxu0 %v5655_v28  ;;  %v3968_v28 = vld [vmem:[#allocation2 + $0xd0] sm:$0xff] }
  0xa5   : > { %758 = vmatprep.mubr.f32.mxu1 %v7432_v45  ;;  %5508 = vmatpush1.bf16.msra.mxu1 %v5507_v47  ;;  %v5659_v47 = vpack.c.bf16 %v3956_v42, %v3954_v38  ;;  %v3970_v42 = vld [vmem:[#allocation2 + $0xe0] sm:$0xff] }
  0xa6   : > { %5510 = vmatprep.subr.bf16.mxu1 %v5509_v52  ;;  %5658 = vmatprep.subr.bf16.mxu0 %v5657_v37  ;;  %v3959_v52 = vld [vmem:[#allocation2 + $0x88] sm:$0xff]  ;;  %v3973_v37 = vld [vmem:[#allocation2 + $0xf8] sm:$0xff] }
  0xa7   : > { %v5661_v55 = vpack.c.bf16 %v3961_v53, %v3959_v52  ;;  %v5673_v38 = vpack.c.bf16 %v3973_v37, %v3971_v36  ;;  %v7509_v53 = vld [vmem:[%s7030_s23 + $0x140] sm:$0xff]  ;;  %v7528_v36 = vld [vmem:[%s7030_s23 + $0x178] sm:$0xff]  ;;  %v3983_v37 = vld [vmem:[#allocation2 + $0x148] sm:$0xff] }
  0xa8   : > { %759 = vmatmul.mubr.f32.gmra.mrb[28].mxu1 %v7448_v2  ;;  %5660 = vmatpush1.bf16.msra.mxu0 %v5659_v47  ;;  %v3972_v47 = vld [vmem:[#allocation2 + $0xf0] sm:$0xff] }
  0xa9   : > { %764 = vmatprep.mubr.f32.mxu1 %v7452_v6  ;;  %5512 = vmatpush1.bf16.msra.mxu1 %v5511_v7  ;;  %v3965_v7 = vld [vmem:[#allocation2 + $0xb8] sm:$0xff]  ;;  %v5675_v52 = vpack.c.bf16 %v3972_v47, %v3970_v42  ;;  %v3982_v47 = vld [vmem:[#allocation2 + $0x140] sm:$0xff] }
  0xaa   : > { %5514 = vmatprep.subr.bf16.mxu1 %v5513_v13  ;;  %5662 = vmatprep.subr.bf16.mxu0 %v5661_v55  ;;  %v5665_v8 = vpack.c.bf16 %v3965_v7, %v3963_v5  ;;  %v3964_v13 = vld [vmem:[#allocation2 + $0xb0] sm:$0xff]  ;;  %v7512_v55 = vld [vmem:[%s7030_s23 + $0x158] sm:$0xff]  ;;  %v3974_v5 = vld [vmem:[#allocation2 + $0x100] sm:$0xff] }
  0xab   : > { %v5667_v15 = vpack.c.bf16 %v3964_v13, %v3962_v10  ;;  %v3976_v7 = vld [vmem:[#allocation2 + $0x110] sm:$0xff]  ;;  %v7520_v13 = vld [vmem:[%s7030_s23 + $0x168] sm:$0xff] }
  0xac   : > { %765 = vmatmul.mubr.f32.gmra.mrb[30].mxu1 %v7469_v29  ;;  %5664 = vmatpush1.bf16.msra.mxu0 %v5663_v61  ;;  %v5677_v61 = vpack.c.bf16 %v3977_v60, %v3975_v58  ;;  %v7517_v10 = vld [vmem:[%s7030_s23 + $0x150] sm:$0xff] }
  0xad   : > { %770 = vmatprep.mubr.f32.mxu1 %v7472_v31  ;;  %5516 = vmatpush1.bf16.msra.mxu1 %v5515_v30  ;;  %v5671_v30 = vpack.c.bf16 %v3968_v28, %v3966_v26  ;;  %v3980_v26 = vld [vmem:[#allocation2 + $0x130] sm:$0xff] }
  0xae   : > { %5518 = vmatprep.subr.bf16.mxu1 %v5517_v32  ;;  %5666 = vmatprep.subr.bf16.mxu0 %v5665_v8  ;;  %v7501_v32 = vld [vmem:[%s7030_s23 + $0x130] sm:$0xff]  ;;  %v5679_v8 = vpack.c.bf16 %v3976_v7, %v3974_v5  ;;  %v3987_v5 = vld [vmem:[#allocation2 + $0x168] sm:$0xff]  ;;  %v3989_v7 = vld [vmem:[#allocation2 + $0x178] sm:$0xff] }
  0xaf   : > { %v7533_v60 = vld [vmem:[%s7030_s23 + $0x170] sm:$0xff] }
  0xb0   : > { %771 = vmatmul.mubr.f32.gmra.mrb[32].mxu1 %v7477_v48  ;;  %5668 = vmatpush1.bf16.msra.mxu0 %v5667_v15  ;;  %v3979_v15 = vld [vmem:[#allocation2 + $0x128] sm:$0xff] }
  0xb1   : > { %776 = vmatprep.mubr.f32.mxu1 %v7480_v50  ;;  %5670 = vmatprep.subr.bf16.mxu0 %v5669_v24  ;;  %v5681_v21 = vpack.c.bf16 %v3981_v20, %v3979_v15  ;;  %v3978_v24 = vld [vmem:[#allocation2 + $0x120] sm:$0xff]  ;;  %v3988_v20 = vld [vmem:[#allocation2 + $0x170] sm:$0xff] }
  0xb2   : > { %v5683_v28 = vpack.c.bf16 %v3980_v26, %v3978_v24  ;;  %v3986_v15 = vld [vmem:[#allocation2 + $0x160] sm:$0xff]  ;;  %v7544_v26 = vld [vmem:[%s7030_s23 + $0x198] sm:$0xff] }
  0xb3   : > { %v7541_v24 = vld [vmem:[%s7030_s23 + $0x180] sm:$0xff]  ;;  %12597 = vst [vmem:[#allocation5_spill] sm:$0xff] %v7544_v26 }
  0xb4   : > { %777 = vmatmul.mubr.f32.gmra.mrb[34].mxu1 %v7485_v62  ;;  %5672 = vmatpush1.bf16.msra.mxu0 %v5671_v30  ;;  %v7525_v30 = vld [vmem:[%s7030_s23 + $0x160] sm:$0xff] }
  0xb5   : > { %782 = vmatprep.mubr.f32.mxu1 %v7488_v63  ;;  %5674 = vmatprep.subr.bf16.mxu0 %v5673_v38  ;;  %v3985_v38 = vld [vmem:[#allocation2 + $0x158] sm:$0xff] }
  0xb6   : > { %v5685_v42 = vpack.c.bf16 %v3985_v38, %v3983_v37  ;;  %v3993_v37 = vld [vmem:[#allocation2 + $0x198] sm:$0xff] }
  0xb8   : > { %783 = vmatmul.mubr.f32.gmra.mrb[36].mxu1 %v7493_v16  ;;  %5676 = vmatpush1.bf16.msra.mxu0 %v5675_v52  ;;  %v3984_v52 = vld [vmem:[#allocation2 + $0x150] sm:$0xff] }
  0xb9   : > { %788 = vmatprep.mubr.f32.mxu1 %v7496_v18  ;;  %5678 = vmatprep.subr.bf16.mxu0 %v5677_v61  ;;  %v5687_v58 = vpack.c.bf16 %v3984_v52, %v3982_v47  ;;  %v7536_v61 = vld [vmem:[%s7030_s23 + $0x188] sm:$0xff]  ;;  %v3992_v47 = vld [vmem:[#allocation2 + $0x190] sm:$0xff] }
  0xbc   : > { %789 = vmatmul.mubr.f32.gmra.mrb[38].mxu1 %v7501_v32  ;;  %5680 = vmatpush1.bf16.msra.mxu0 %v5679_v8  ;;  %v5689_v8 = vpack.c.bf16 %v3989_v7, %v3987_v5  ;;  %v7552_v5 = vld [vmem:[%s7030_s23 + $0x1a8] sm:$0xff] }
  0xbd   : > { %794 = vmatprep.mubr.f32.mxu1 %v7504_v34  ;;  %5682 = vmatprep.subr.bf16.mxu0 %v5681_v21  ;;  %v5691_v21 = vpack.c.bf16 %v3988_v20, %v3986_v15  ;;  %12598 = vst [vmem:[#allocation6_spill] sm:$0xff] %v7552_v5  ;;  %v3995_v7 = vld [vmem:[#allocation2 + $0x1a8] sm:$0xff]  ;;  %v3994_v20 = vld [vmem:[#allocation2 + $0x1a0] sm:$0xff] }
  0xc0   : > { %795 = vmatmul.mubr.f32.gmra.mrb[40].mxu1 %v7509_v53  ;;  %5684 = vmatpush1.bf16.msra.mxu0 %v5683_v28  ;;  %v3991_v28 = vld [vmem:[#allocation2 + $0x188] sm:$0xff] }
  0xc1   : > { %800 = vmatprep.mubr.f32.mxu1 %v7512_v55  ;;  %5686 = vmatprep.subr.bf16.mxu0 %v5685_v42  ;;  %v5693_v38 = vpack.c.bf16 %v3993_v37, %v3991_v28  ;;  %v3990_v42 = vld [vmem:[#allocation2 + $0x180] sm:$0xff] }
  0xc2   : > { %v5695_v52 = vpack.c.bf16 %v3992_v47, %v3990_v42  ;;  %v7557_v37 = vld [vmem:[%s7030_s23 + $0x1a0] sm:$0xff]  ;;  %v7560_v42 = vld [vmem:[%s7030_s23 + $0x1b8] sm:$0xff] }
  0xc3   : > { %v4001_v47 = vld [vmem:[#allocation2 + $0x1d8] sm:$0xff] }
  0xc4   : > { %801 = vmatmul.mubr.f32.gmra.mrb[42].mxu1 %v7517_v10  ;;  %5688 = vmatpush1.bf16.msra.mxu0 %v5687_v58  ;;  %v7549_v58 = vld [vmem:[%s7030_s23 + $0x190] sm:$0xff] }
  0xc5   : > { %806 = vmatprep.mubr.f32.mxu1 %v7520_v13  ;;  %5690 = vmatprep.subr.bf16.mxu0 %v5689_v8  ;;  %v3997_v8 = vld [vmem:[#allocation2 + $0x1b8] sm:$0xff] }
  0xc6   : > { %v5697_v15 = vpack.c.bf16 %v3997_v8, %v3995_v7  ;;  %v4000_v7 = vld [vmem:[#allocation2 + $0x1d0] sm:$0xff] }
  0xc8   : > { %807 = vmatmul.mubr.f32.gmra.mrb[44].mxu1 %v7525_v30  ;;  %5692 = vmatpush1.bf16.msra.mxu0 %v5691_v21  ;;  %v3996_v21 = vld [vmem:[#allocation2 + $0x1b0] sm:$0xff] }
  0xc9   : > { %812 = vmatprep.mubr.f32.mxu1 %v7528_v36  ;;  %5694 = vmatprep.subr.bf16.mxu0 %v5693_v38  ;;  %v5699_v28 = vpack.c.bf16 %v3996_v21, %v3994_v20  ;;  %v3999_v38 = vld [vmem:[#allocation2 + $0x1c8] sm:$0xff]  ;;  %v7565_v20 = vld [vmem:[%s7030_s23 + $0x1b0] sm:$0xff] }
  0xca   : > { %v7568_v21 = vld [vmem:[%s7030_s23 + $0x1c8] sm:$0xff] }
  0xcb   : > { %12599 = vst [vmem:[#allocation7_spill] sm:$0xff] %v7568_v21 }
  0xcc   : > { %813 = vmatmul.mubr.f32.gmra.mrb[46].mxu1 %v7533_v60  ;;  %5696 = vmatpush1.bf16.msra.mxu0 %v5695_v52  ;;  %v3998_v52 = vld [vmem:[#allocation2 + $0x1c0] sm:$0xff] }
  0xcd   : > { %818 = vmatprep.mubr.f32.mxu1 %v7536_v61  ;;  %5698 = vmatprep.subr.bf16.mxu0 %v5697_v15  ;;  %v5703_v8 = vpack.c.bf16 %v4000_v7, %v3998_v52  ;;  %v4003_v15 = vld [vmem:[#allocation2 + $0x1e8] sm:$0xff]  ;;  %v7573_v7 = vld [vmem:[%s7030_s23 + $0x1c0] sm:$0xff] }
  0xce   : > { %12600 = vst [vmem:[#allocation8_spill] sm:$0xff] %v7573_v7 }
  0xd0   : > { %819 = vmatmul.mubr.f32.gmra.mrb[48].mxu1 %v7541_v24  ;;  %5700 = vmatpush1.bf16.msra.mxu0 %v5699_v28 }
  0xd1   : > { %824 = vmatprep.mubr.f32.mxu1 %v7544_v26  ;;  %v5701_v26 = vpack.c.bf16 %v4001_v47, %v3999_v38  ;;  %v4002_v38 = vld [vmem:[#allocation2 + $0x1e0] sm:$0xff]  ;;  %v4004_v47 = vld [vmem:[#allocation2 + $0x1f0] sm:$0xff] }
  0xd2   : > { %v5707_v52 = vpack.c.bf16 %v4004_v47, %v4002_v38  ;;  %v7592_v38 = vld [vmem:[%s7030_s23 + $0x1f8] sm:$0xff] }
  0xd3   : > { %5702 = vmatprep.subr.bf16.mxu0 %v5701_v26  ;;  %v7576_v26 = vld [vmem:[%s7030_s23 + $0x1d8] sm:$0xff]  ;;  %12605 = vst [vmem:[#allocation13_spill] sm:$0xff] %v7592_v38 }
  0xd4   : > { %825 = vmatmul.mubr.f32.gmra.mrb[50].mxu1 %v7549_v58  ;;  %5704 = vmatpush1.bf16.msra.mxu0 %v5703_v8  ;;  %12601 = vst [vmem:[#allocation9_spill] sm:$0xff] %v7576_v26  ;;  %v7584_v8 = vld [vmem:[%s7030_s23 + $0x1e8] sm:$0xff]  ;;  %v4009_v47 = vld [vmem:[#allocation2 + $0x218] sm:$0xff] }
  0xd5   : > { %830 = vmatprep.mubr.f32.mxu1 %v7552_v5  ;;  %v4005_v5 = vld [vmem:[#allocation2 + $0x1f8] sm:$0xff]  ;;  %12603 = vst [vmem:[#allocation11_spill] sm:$0xff] %v7584_v8 }
  0xd6   : > { %v5705_v28 = vpack.c.bf16 %v4005_v5, %v4003_v15  ;;  %v7581_v5 = vld [vmem:[%s7030_s23 + $0x1d0] sm:$0xff]  ;;  %v7589_v15 = vld [vmem:[%s7030_s23 + $0x1e0] sm:$0xff] }
  0xd7   : > { %12602 = vst [vmem:[#allocation10_spill] sm:$0xff] %v7581_v5  ;;  %12604 = vst [vmem:[#allocation12_spill] sm:$0xff] %v7589_v15 }
  0xd8   : > { %831 = vmatmul.mubr.f32.gmra.mrb[52].mxu1 %v7557_v37  ;;  %5706 = vmatprep.subr.bf16.mxu0 %v5705_v28  ;;  %v4007_v28 = vld [vmem:[#allocation2 + $0x208] sm:$0xff] }
  0xd9   : > { %836 = vmatprep.mubr.f32.mxu1 %v7560_v42  ;;  %5708 = vmatpush1.bf16.msra.mxu0 %v5707_v52  ;;  %v7597_v52 = vld [vmem:[%s7030_s23 + $0x1f0] sm:$0xff] }
  0xda   : > { %12606 = vst [vmem:[#allocation14_spill] sm:$0xff] %v7597_v52 }
  0xdc   : > { %837 = vmatmul.mubr.f32.gmra.mrb[54].mxu1 %v7565_v20 }
  0xdd   : > { %842 = vmatprep.mubr.f32.mxu1 %v7568_v21  ;;  %v5709_v21 = vpack.c.bf16 %v4009_v47, %v4007_v28  ;;  %v341_v28 = vld [vmem:[%s12518_s1 + $0xe8] sm:$0xff] }
  0xdf   : > { %5710 = vmatprep.subr.bf16.mxu0 %v5709_v21 }
  0xe0   : > { %843 = vmatmul.mubr.f32.gmra.mrb[56].mxu1 %v7573_v7  ;;  %v349_v7 = vld [vmem:[%s12518_s1 + $0x128] sm:$0xff] }
  0xe1   : > { %848 = vmatprep.mubr.f32.mxu1 %v7576_v26  ;;  %v333_v26 = vld [vmem:[%s12518_s1 + $0xa8] sm:$0xff] }
  0xe2   : > { %v5521_v47 = vpack.c.bf16 %v341_v28, %v333_v26  ;;  %v365_v28 = vld [vmem:[%s12518_s1 + $0x1a8] sm:$0xff] }
  0xe4   : > { %849 = vmatmul.mubr.f32.gmra.mrb[58].mxu1 %v7581_v5  ;;  %v316_v5 = vld [vmem:[%s12518_s1 + $0x20] sm:$0xff] }
  0xe5   : > { %854 = vmatprep.mubr.f32.mxu1 %v7584_v8  ;;  %v324_v8 = vld [vmem:[%s12518_s1 + $0x60] sm:$0xff] }
  0xe6   : > { %v5519_v21 = vpack.c.bf16 %v324_v8, %v316_v5  ;;  %v348_v5 = vld [vmem:[%s12518_s1 + $0x120] sm:$0xff] }
  0xe7   : > { %v356_v8 = vld [vmem:[%s12518_s1 + $0x160] sm:$0xff] }
  0xe8   : > { %855 = vmatmul.mubr.f32.gmra.mrb[60].mxu1 %v7589_v15  ;;  %v340_v15 = vld [vmem:[%s12518_s1 + $0xe0] sm:$0xff] }
  0xe9   : > { %860 = vmatprep.mubr.f32.mxu1 %v7592_v38  ;;  %v332_v38 = vld [vmem:[%s12518_s1 + $0xa0] sm:$0xff] }
  0xec   : > { %861 = vmatmul.mubr.f32.gmra.mrb[62].mxu1 %v7597_v52  ;;  %v357_v52 = vld [vmem:[%s12518_s1 + $0x168] sm:$0xff] }
  0xed   : > { %931 = vmatprep.mubr.f32.mxu1 %v7039_v41  ;;  %v5523_v41 = vpack.c.bf16 %v340_v15, %v332_v38  ;;  %v5525_v26 = vpack.c.bf16 %v357_v52, %v349_v7  ;;  %v364_v15 = vld [vmem:[%s12518_s1 + $0x1a0] sm:$0xff]  ;;  %v381_v52 = vld [vmem:[%s12518_s1 + $0x228] sm:$0xff] }
  0xee   : > { %v372_v38 = vld [vmem:[%s12518_s1 + $0x1e0] sm:$0xff] }
  0xf0   : > { %932 = vmatmul.mubr.f32.vlgmr.msra.gmra.mrb[64].mxu1 %v7169_v40  ;;  %v373_v40 = vld [vmem:[%s12518_s1 + $0x1e8] sm:$0xff] }
  0xf1   : > { %5520 = vmatpush1.bf16.msra.mxu1 %v5519_v21  ;;  %937 = vmatprep.mubr.f32.mxu1 %v7172_v43  ;;  %v5527_v43 = vpack.c.bf16 %v356_v8, %v348_v5  ;;  %v5529_v7 = vpack.c.bf16 %v373_v40, %v365_v28  ;;  %v396_v8 = vld [vmem:[%s12518_s1 + $0x2a0] sm:$0xff]  ;;  %v413_v40 = vld [vmem:[%s12518_s1 + $0x328] sm:$0xff] }
  0xf2   : > { %5522 = vmatprep.subr.bf16.mxu1 %v5521_v47  ;;  %v380_v47 = vld [vmem:[%s12518_s1 + $0x220] sm:$0xff] }
  0xf3   : > { %v404_v28 = vld [vmem:[%s12518_s1 + $0x2e0] sm:$0xff] }
  0xf4   : > { %938 = vmatmul.mubr.f32.gmra.mrb[66].mxu1 %v7189_v49  ;;  %v389_v49 = vld [vmem:[%s12518_s1 + $0x268] sm:$0xff] }
  0xf5   : > { %943 = vmatprep.mubr.f32.mxu1 %v7192_v51  ;;  %5524 = vmatpush1.bf16.msra.mxu1 %v5523_v41  ;;  %v5531_v51 = vpack.c.bf16 %v372_v38, %v364_v15  ;;  %v5533_v21 = vpack.c.bf16 %v389_v49, %v381_v52  ;;  %v388_v41 = vld [vmem:[%s12518_s1 + $0x260] sm:$0xff]  ;;  %v429_v38 = vld [vmem:[%s12518_s1 + $0x3a8] sm:$0xff] }
  0xf6   : > { %5526 = vmatprep.subr.bf16.mxu1 %v5525_v26  ;;  %v397_v26 = vld [vmem:[%s12518_s1 + $0x2a8] sm:$0xff]  ;;  %v420_v15 = vld [vmem:[%s12518_s1 + $0x360] sm:$0xff] }
  0xf7   : > { %v428_v49 = vld [vmem:[%s12518_s1 + $0x3a0] sm:$0xff] }
  0xf8   : > { %944 = vmatmul.mubr.f32.gmra.mrb[68].mxu1 %v7209_v57  ;;  %v405_v57 = vld [vmem:[%s12518_s1 + $0x2e8] sm:$0xff] }
  0xf9   : > { %949 = vmatprep.mubr.f32.mxu1 %v7212_v59  ;;  %5528 = vmatpush1.bf16.msra.mxu1 %v5527_v43  ;;  %v5535_v59 = vpack.c.bf16 %v388_v41, %v380_v47  ;;  %v5537_v5 = vpack.c.bf16 %v405_v57, %v397_v26  ;;  %v444_v41 = vld [vmem:[%s12518_s1 + $0x420] sm:$0xff]  ;;  %v461_v57 = vld [vmem:[%s12518_s1 + $0x4a8] sm:$0xff] }
  0xfa   : > { %5530 = vmatprep.subr.bf16.mxu1 %v5529_v7  ;;  %v412_v7 = vld [vmem:[%s12518_s1 + $0x320] sm:$0xff] }
  0xfb   : > { %v452_v26 = vld [vmem:[%s12518_s1 + $0x460] sm:$0xff] }
  0xfc   : > { %950 = vmatmul.mubr.f32.gmra.mrb[70].mxu1 %v7229_v1  ;;  %v421_v1 = vld [vmem:[%s12518_s1 + $0x368] sm:$0xff] }
  0xfd   : > { %955 = vmatprep.mubr.f32.mxu1 %v7232_v3  ;;  %5532 = vmatpush1.bf16.msra.mxu1 %v5531_v51  ;;  %v5539_v3 = vpack.c.bf16 %v404_v28, %v396_v8  ;;  %v5541_v43 = vpack.c.bf16 %v421_v1, %v413_v40  ;;  %v436_v51 = vld [vmem:[%s12518_s1 + $0x3e0] sm:$0xff]  ;;  %v477_v28 = vld [vmem:[%s12518_s1 + $0x528] sm:$0xff] }
  0xfe   : > { %5534 = vmatprep.subr.bf16.mxu1 %v5533_v21  ;;  %v445_v21 = vld [vmem:[%s12518_s1 + $0x428] sm:$0xff]  ;;  %v468_v8 = vld [vmem:[%s12518_s1 + $0x4e0] sm:$0xff] }
  0xff   : > { %v476_v1 = vld [vmem:[%s12518_s1 + $0x520] sm:$0xff] }
 0x100   : > { %956 = vmatmul.mubr.f32.gmra.mrb[72].mxu1 %v7249_v9  ;;  %v437_v9 = vld [vmem:[%s12518_s1 + $0x3e8] sm:$0xff] }
 0x101   : > { %961 = vmatprep.mubr.f32.mxu1 %v7252_v11  ;;  %5536 = vmatpush1.bf16.msra.mxu1 %v5535_v59  ;;  %v5543_v11 = vpack.c.bf16 %v420_v15, %v412_v7  ;;  %v5545_v52 = vpack.c.bf16 %v437_v9, %v429_v38  ;;  %v492_v15 = vld [vmem:[%s12518_s1 + $0x5a0] sm:$0xff]  ;;  %v509_v9 = vld [vmem:[%s12518_s1 + $0x628] sm:$0xff] }
 0x102   : > { %5538 = vmatprep.subr.bf16.mxu1 %v5537_v5  ;;  %v460_v5 = vld [vmem:[%s12518_s1 + $0x4a0] sm:$0xff] }
 0x103   : > { %v500_v38 = vld [vmem:[%s12518_s1 + $0x5e0] sm:$0xff] }
 0x104   : > { %962 = vmatmul.mubr.f32.gmra.mrb[74].mxu1 %v7269_v17  ;;  %v453_v17 = vld [vmem:[%s12518_s1 + $0x468] sm:$0xff] }
 0x105   : > { %967 = vmatprep.mubr.f32.mxu1 %v7272_v19  ;;  %5540 = vmatpush1.bf16.msra.mxu1 %v5539_v3  ;;  %v5547_v19 = vpack.c.bf16 %v436_v51, %v428_v49  ;;  %v5549_v47 = vpack.c.bf16 %v453_v17, %v445_v21  ;;  %v484_v3 = vld [vmem:[%s12518_s1 + $0x560] sm:$0xff]  ;;  %v525_v51 = vld [vmem:[%s12518_s1 + $0x6a8] sm:$0xff] }
 0x106   : > { %5542 = vmatprep.subr.bf16.mxu1 %v5541_v43  ;;  %v493_v43 = vld [vmem:[%s12518_s1 + $0x5a8] sm:$0xff]  ;;  %v516_v49 = vld [vmem:[%s12518_s1 + $0x660] sm:$0xff] }
 0x107   : > { %v524_v17 = vld [vmem:[%s12518_s1 + $0x6a0] sm:$0xff] }
 0x108   : > { %968 = vmatmul.mubr.f32.gmra.mrb[76].mxu1 %v7289_v25  ;;  %v469_v25 = vld [vmem:[%s12518_s1 + $0x4e8] sm:$0xff] }
 0x109   : > { %973 = vmatprep.mubr.f32.mxu1 %v7292_v27  ;;  %5544 = vmatpush1.bf16.msra.mxu1 %v5543_v11  ;;  %v5551_v27 = vpack.c.bf16 %v452_v26, %v444_v41  ;;  %v5553_v59 = vpack.c.bf16 %v469_v25, %v461_v57  ;;  %v540_v26 = vld [vmem:[%s12518_s1 + $0x720] sm:$0xff]  ;;  %v557_v25 = vld [vmem:[%s12518_s1 + $0x7a8] sm:$0xff] }
 0x10a   : > { %5546 = vmatprep.subr.bf16.mxu1 %v5545_v52  ;;  %v508_v52 = vld [vmem:[%s12518_s1 + $0x620] sm:$0xff] }
 0x10b   : > { %v548_v57 = vld [vmem:[%s12518_s1 + $0x760] sm:$0xff] }
 0x10c   : > { %974 = vmatmul.mubr.f32.gmra.mrb[78].mxu1 %v7309_v33  ;;  %v485_v33 = vld [vmem:[%s12518_s1 + $0x568] sm:$0xff] }
 0x10d   : > { %979 = vmatprep.mubr.f32.mxu1 %v7312_v35  ;;  %5548 = vmatpush1.bf16.msra.mxu1 %v5547_v19  ;;  %v5555_v35 = vpack.c.bf16 %v468_v8, %v460_v5  ;;  %v5557_v40 = vpack.c.bf16 %v485_v33, %v477_v28  ;;  %v532_v19 = vld [vmem:[%s12518_s1 + $0x6e0] sm:$0xff]  ;;  %v319_v8 = vld [vmem:[%s12518_s1 + $0x38] sm:$0xff]  ;;  %v570_v33 = vlaneseq }
 0x10e   : > { %5550 = vmatprep.subr.bf16.mxu1 %v5549_v47  ;;  %v541_v47 = vld [vmem:[%s12518_s1 + $0x728] sm:$0xff]  ;;  %v564_v5 = vld [vmem:[%s12518_s1 + $0x7e0] sm:$0xff] }
 0x110   : > { %980 = vmatmul.mubr.f32.gmra.mrb[80].mxu1 %v7329_v44  ;;  %v501_v44 = vld [vmem:[%s12518_s1 + $0x5e8] sm:$0xff] }
 0x111   : > { %985 = vmatprep.mubr.f32.mxu1 %v7332_v46  ;;  %5552 = vmatpush1.bf16.msra.mxu1 %v5551_v27  ;;  %v5559_v46 = vpack.c.bf16 %v484_v3, %v476_v1  ;;  %v5561_v7 = vpack.c.bf16 %v501_v44, %v493_v43  ;;  %v7864_v1 = vld [vmem:[#allocation2 + $0x258] sm:$0xff]  ;;  %v7868_v3 = vld [vmem:[#allocation2 + $0x250] sm:$0xff] }
 0x112   : > { %5554 = vmatprep.subr.bf16.mxu1 %v5553_v59  ;;  %v556_v59 = vld [vmem:[%s12518_s1 + $0x7a0] sm:$0xff]  ;;  %v7873_v43 = vld [vmem:[%s12518_s1 + $0xb8] sm:$0xff] }
 0x113   : > { %v7878_v44 = vld [vmem:[%s12518_s1 + $0xf8] sm:$0xff] }
 0x114   : > { %986 = vmatmul.mubr.f32.gmra.mrb[82].mxu1 %v7349_v54  ;;  %v517_v54 = vld [vmem:[%s12518_s1 + $0x668] sm:$0xff] }
 0x115   : > { %991 = vmatprep.mubr.f32.mxu1 %v7352_v56  ;;  %5556 = vmatpush1.bf16.msra.mxu1 %v5555_v35  ;;  %v5563_v56 = vpack.c.bf16 %v500_v38, %v492_v15  ;;  %v5565_v11 = vpack.c.bf16 %v517_v54, %v509_v9  ;;  %v7860_v35 = vld [vmem:[%s12518_s1 + $0x70] sm:$0xff]  ;;  %v7890_v15 = vld [vmem:[#allocation2 + $0x268] sm:$0xff]  ;;  %v7892_v38 = vld [vmem:[#allocation2 + $0x278] sm:$0xff] }
 0x116   : > { %5558 = vmatprep.subr.bf16.mxu1 %v5557_v40  ;;  %v7862_v40 = vld [vmem:[#allocation2 + $0x248] sm:$0xff]  ;;  %v7894_v9 = vld [vmem:[#allocation2 + $0x260] sm:$0xff]  ;;  %v7896_v54 = vld [vmem:[#allocation2 + $0x270] sm:$0xff] }
 0x118   : > { %992 = vmatmul.mubr.f32.gmra.mrb[84].mxu1 %v7369_v0  ;;  %v533_v0 = vld [vmem:[%s12518_s1 + $0x6e8] sm:$0xff] }
 0x119   : > { %997 = vmatprep.mubr.f32.mxu1 %v7372_v4  ;;  %5560 = vmatpush1.bf16.msra.mxu1 %v5559_v46  ;;  %v5567_v4 = vpack.c.bf16 %v516_v49, %v508_v52  ;;  %v5569_v21 = vpack.c.bf16 %v533_v0, %v525_v51  ;;  %v7883_v46 = vld [vmem:[%s12518_s1 + $0xb0] sm:$0xff]  ;;  %v7918_v51 = vld [vmem:[#allocation2 + $0x288] sm:$0xff]  ;;  %v7920_v0 = vld [vmem:[#allocation2 + $0x298] sm:$0xff] }
 0x11a   : > { %5562 = vmatprep.subr.bf16.mxu1 %v5561_v7  ;;  %12608 = vst [vmem:[#allocation16_spill] sm:$0xff] %v7883_v46  ;;  %v7888_v7 = vld [vmem:[%s12518_s1 + $0xf0] sm:$0xff]  ;;  %v8030_v46 = vld [vmem:[%s12518_s1 + $0x2f8] sm:$0xff] }
 0x11b   : > { %v7911_v52 = vld [vmem:[%s12518_s1 + $0x130] sm:$0xff]  ;;  %12626 = vst [vmem:[#allocation34_spill] sm:$0xff] %v8030_v46 }
 0x11c   : > { %998 = vmatmul.mubr.f32.gmra.mrb[86].mxu1 %v7389_v12  ;;  %v549_v12 = vld [vmem:[%s12518_s1 + $0x768] sm:$0xff]  ;;  %12611 = vst [vmem:[#allocation19_spill] sm:$0xff] %v7911_v52  ;;  %v7916_v49 = vld [vmem:[%s12518_s1 + $0x170] sm:$0xff]  ;;  %v8070_v52 = vld [vmem:[%s12518_s1 + $0x338] sm:$0xff] }
 0x11d   : > { %1003 = vmatprep.mubr.f32.mxu1 %v7392_v14  ;;  %5564 = vmatpush1.bf16.msra.mxu1 %v5563_v56  ;;  %v5571_v14 = vpack.c.bf16 %v532_v19, %v524_v17  ;;  %v5573_v41 = vpack.c.bf16 %v549_v12, %v541_v47  ;;  %v7901_v56 = vld [vmem:[%s12518_s1 + $0x138] sm:$0xff]  ;;  %12612 = vst [vmem:[#allocation20_spill] sm:$0xff] %v7916_v49  ;;  %v7929_v17 = vld [vmem:[#allocation2 + $0x290] sm:$0xff]  ;;  %v8052_v49 = vld [vmem:[#allocation2 + $0x2e8] sm:$0xff] }
 0x11e   : > { %5566 = vmatprep.subr.bf16.mxu1 %v5565_v11  ;;  %12609 = vst [vmem:[#allocation17_spill] sm:$0xff] %v7901_v56  ;;  %v7906_v11 = vld [vmem:[%s12518_s1 + $0x178] sm:$0xff]  ;;  %v7949_v12 = vld [vmem:[%s12518_s1 + $0x1f0] sm:$0xff]  ;;  %12629 = vst [vmem:[#allocation37_spill] sm:$0xff] %v8052_v49 }
 0x11f   : > { %12610 = vst [vmem:[#allocation18_spill] sm:$0xff] %v7906_v11  ;;  %v7934_v19 = vld [vmem:[%s12518_s1 + $0x1b8] sm:$0xff]  ;;  %12616 = vst [vmem:[#allocation24_spill] sm:$0xff] %v7949_v12  ;;  %v8056_v11 = vld [vmem:[#allocation2 + $0x2e0] sm:$0xff] }
 0x120   : > { %1004 = vmatmul.mubr.f32.gmra.mrb[88].mxu1 %v7408_v22  ;;  %v565_v22 = vld [vmem:[%s12518_s1 + $0x7e8] sm:$0xff]  ;;  %12613 = vst [vmem:[#allocation21_spill] sm:$0xff] %v7934_v19  ;;  %v7939_v47 = vld [vmem:[%s12518_s1 + $0x1f8] sm:$0xff]  ;;  %12631 = vst [vmem:[#allocation39_spill] sm:$0xff] %v8056_v11 }
 0x121   : > { %1009 = vmatprep.mubr.f32.mxu1 %v7412_v23  ;;  %5568 = vmatpush1.bf16.msra.mxu1 %v5567_v4  ;;  %v5575_v23 = vpack.c.bf16 %v548_v57, %v540_v26  ;;  %v5577_v27 = vpack.c.bf16 %v565_v22, %v557_v25  ;;  %12614 = vst [vmem:[#allocation22_spill] sm:$0xff] %v7939_v47  ;;  %v7960_v57 = vld [vmem:[#allocation2 + $0x2a8] sm:$0xff]  ;;  %v7962_v25 = vld [vmem:[#allocation2 + $0x2b8] sm:$0xff]  ;;  %v7964_v22 = vld [vmem:[#allocation2 + $0x2a0] sm:$0xff] }
 0x122   : > { %5570 = vmatprep.subr.bf16.mxu1 %v5569_v21  ;;  %v7927_v21 = vld [vmem:[#allocation2 + $0x280] sm:$0xff]  ;;  %12617 = vst [vmem:[#allocation25_spill] sm:$0xff] %v7964_v22  ;;  %v8010_v26 = vld [vmem:[#allocation2 + $0x2d0] sm:$0xff]  ;;  %v8054_v56 = vld [vmem:[#allocation2 + $0x2f8] sm:$0xff] }
 0x123   : > { %12624 = vst [vmem:[#allocation32_spill] sm:$0xff] %v8010_v26  ;;  %12630 = vst [vmem:[#allocation38_spill] sm:$0xff] %v8054_v56  ;;  %v8065_v19 = vld [vmem:[#allocation2 + $0x2f0] sm:$0xff]  ;;  %v8094_v22 = vld [vmem:[#allocation2 + $0x308] sm:$0xff] }
 0x124   : > { %1010 = vmatmul.mubr.f32.gmra.mrb[90].mxu1 %v7428_v39  ;;  %v327_v39 = vld [vmem:[%s12518_s1 + $0x78] sm:$0xff]  ;;  %12632 = vst [vmem:[#allocation40_spill] sm:$0xff] %v8065_v19  ;;  %12633 = vst [vmem:[#allocation41_spill] sm:$0xff] %v8070_v52  ;;  %v8092_v47 = vld [vmem:[%s12518_s1 + $0x370] sm:$0xff] }
 0x125   : > { %1015 = vmatprep.mubr.f32.mxu1 %v7432_v45  ;;  %5572 = vmatpush1.bf16.msra.mxu1 %v5571_v14  ;;  %v5579_v45 = vpack.c.bf16 %v564_v5, %v556_v59  ;;  %v5581_v28 = vpack.c.bf16 %v327_v39, %v319_v8  ;;  %v8008_v59 = vld [vmem:[#allocation2 + $0x2c0] sm:$0xff]  ;;  %12636 = vst [vmem:[#allocation44_spill] sm:$0xff] %v8092_v47  ;;  %12637 = vst [vmem:[#allocation45_spill] sm:$0xff] %v8094_v22  ;;  %v8154_v47 = vld [vmem:[#allocation2 + $0x338] sm:$0xff] }
 0x126   : > { %5574 = vmatprep.subr.bf16.mxu1 %v5573_v41  ;;  %12623 = vst [vmem:[#allocation31_spill] sm:$0xff] %v8008_v59  ;;  %v8015_v41 = vld [vmem:[%s12518_s1 + $0x2b8] sm:$0xff]  ;;  %v8107_v26 = vld [vmem:[#allocation2 + $0x300] sm:$0xff]  ;;  %12646 = vst [vmem:[#allocation54_spill] sm:$0xff] %v8154_v47 }
 0x127   : > { %12625 = vst [vmem:[#allocation33_spill] sm:$0xff] %v8015_v41  ;;  %v8105_v59 = vld [vmem:[#allocation2 + $0x318] sm:$0xff]  ;;  %12639 = vst [vmem:[#allocation47_spill] sm:$0xff] %v8107_v26  ;;  %v8164_v22 = vld [vmem:[#allocation2 + $0x320] sm:$0xff] }
 0x128   : > { %1016 = vmatmul.mubr.f32.gmra.mrb[92].mxu1 %v7448_v2  ;;  %v7830_v2 = vshrl.u32 %v570_v33, 7  ;;  %v7996_v33 = vld [vmem:[#allocation2 + $0x2c8] sm:$0xff]  ;;  %12638 = vst [vmem:[#allocation46_spill] sm:$0xff] %v8105_v59  ;;  %12647 = vst [vmem:[#allocation55_spill] sm:$0xff] %v8164_v22 }
 0x129   : > { %1021 = vmatprep.mubr.f32.mxu1 %v7452_v6  ;;  %5576 = vmatpush1.bf16.msra.mxu1 %v5575_v23  ;;  %v568_v6 = vld [vmem:[%s12519_s2] sm:$0xff]  ;;  %v7966_v23 = vld [vmem:[#allocation2 + $0x2b0] sm:$0xff]  ;;  %12622 = vst [vmem:[#allocation30_spill] sm:$0xff] %v7996_v33 }
 0x12a   : > { %5578 = vmatprep.subr.bf16.mxu1 %v5577_v27  ;;  %12607 = vst [vmem:[#allocation15_spill] sm:$0xff] %v7830_v2  ;;  %v7976_v27 = vld [vmem:[%s12518_s1 + $0x278] sm:$0xff]  ;;  %v8109_v33 = vld [vmem:[#allocation2 + $0x310] sm:$0xff] }
 0x12b   : > { %12619 = vst [vmem:[#allocation27_spill] sm:$0xff] %v7976_v27  ;;  %v8087_v27 = vld [vmem:[%s12518_s1 + $0x330] sm:$0xff]  ;;  %12640 = vst [vmem:[#allocation48_spill] sm:$0xff] %v8109_v33 }
 0x12c   : > { %1022 = vmatmul.mubr.f32.gmra.mrb[94].mxu1 %v7469_v29  ;;  %v12537_v29 = vsub.s32 0, %v7830_v2  ;;  %12635 = vst [vmem:[#allocation43_spill] sm:$0xff] %v8087_v27  ;;  %v8152_v27 = vld [vmem:[#allocation2 + $0x328] sm:$0xff] }
 0x12d   : > { %1027 = vmatprep.mubr.f32.mxu1 %v7472_v31  ;;  %5580 = vmatpush1.bf16.msra.mxu1 %v5579_v45  ;;  %v7838_v31 = vld [vmem:[#allocation2 + $0x200] sm:$0xff]  ;;  %v7989_v45 = vld [vmem:[%s12518_s1 + $0x230] sm:$0xff]  ;;  %12645 = vst [vmem:[#allocation53_spill] sm:$0xff] %v8152_v27 }
 0x12e   : > { %5582 = vmatprep.subr.bf16.mxu1 %v5581_v28  ;;  %v7925_v4 = vrot.slane %v568_v6, %v12537_v29  ;;  %12620 = vst [vmem:[#allocation28_spill] sm:$0xff] %v7989_v45  ;;  %v7994_v28 = vld [vmem:[%s12518_s1 + $0x270] sm:$0xff] }
 0x12f   : > { %12621 = vst [vmem:[#allocation29_spill] sm:$0xff] %v7994_v28  ;;  %v8123_v28 = vld [vmem:[%s12518_s1 + $0x3b8] sm:$0xff] }
 0x130   : > { %1028 = vmatmul.mubr.f32.gmra.mrb[96].mxu1 %v7477_v48  ;;  %v7840_v48 = vld [vmem:[#allocation2 + $0x210] sm:$0xff]  ;;  %12641 = vst [vmem:[#allocation49_spill] sm:$0xff] %v8123_v28 }
 0x131   : > { %1033 = vmatprep.mubr.f32.mxu1 %v7480_v50  ;;  %v7842_v50 = vld [vmem:[#allocation2 + $0x228] sm:$0xff] }
 0x134   : > { %1034 = vmatmul.mubr.f32.gmra.mrb[98].mxu1 %v7485_v62  ;;  %v7844_v62 = vld [vmem:[#allocation2 + $0x238] sm:$0xff] }
 0x135   : > { %1039 = vmatprep.mubr.f32.mxu1 %v7488_v63  ;;  %v12536_v63 = vsub.s32 1, %v7830_v2 }
 0x137   : > { %v7954_v14 = vrot.slane %v568_v6, %v12536_v63  ;;  %v7998_v6 = vld [vmem:[#allocation2 + $0x2d8] sm:$0xff] }
 0x138   : > { %1040 = vmatmul.mubr.f32.gmra.mrb[100].mxu1 %v7493_v16  ;;  %v7848_v16 = vld [vmem:[#allocation2 + $0x220] sm:$0xff] }
 0x139   : > { %1045 = vmatprep.mubr.f32.mxu1 %v7496_v18  ;;  %v7850_v18 = vld [vmem:[#allocation2 + $0x230] sm:$0xff] }
 0x13c   : > { %1046 = vmatmul.mubr.f32.gmra.mrb[102].mxu1 %v7501_v32  ;;  %v7855_v32 = vld [vmem:[%s12518_s1 + $0x30] sm:$0xff] }
 0x13d   : > { %1051 = vmatprep.mubr.f32.mxu1 %v7504_v34  ;;  %v7866_v34 = vld [vmem:[#allocation2 + $0x240] sm:$0xff] }
 0x140   : > { %1052 = vmatmul.mubr.f32.gmra.mrb[104].mxu1 %v7509_v53  ;;  %v7944_v53 = vld [vmem:[%s12518_s1 + $0x1b0] sm:$0xff] }
 0x141   : > { %12615 = vst [vmem:[#allocation23_spill] sm:$0xff] %v7944_v53  ;;  %1057 = vmatprep.mubr.f32.mxu1 %v7512_v55  ;;  %v7971_v55 = vld [vmem:[%s12518_s1 + $0x238] sm:$0xff] }
 0x142   : > { %12618 = vst [vmem:[#allocation26_spill] sm:$0xff] %v7971_v55  ;;  %v8075_v53 = vld [vmem:[%s12518_s1 + $0x378] sm:$0xff]  ;;  %v8166_v55 = vld [vmem:[#allocation2 + $0x330] sm:$0xff] }
 0x143   : > { %v676_v63 = vpop.f32.mrb[0].mxu1  ;;  %12634 = vst [vmem:[#allocation42_spill] sm:$0xff] %v8075_v53  ;;  %12648 = vst [vmem:[#allocation56_spill] sm:$0xff] %v8166_v55 }
 0x144   : > { %v8018_v29 = vadd.f32 %v676_v63, %v7925_v4  ;;  %v678_v2 = vpop.f32.mrb[1].mxu1  ;;  %1058 = vmatmul.mubr.f32.gmra.mrb[106].mxu1 %v7517_v10  ;;  %v8035_v63 = vld [vmem:[%s12518_s1 + $0x2b0] sm:$0xff] }
 0x145   : > { %12627 = vst [vmem:[#allocation35_spill] sm:$0xff] %v8035_v63  ;;  %v8040_v10 = vld [vmem:[%s12518_s1 + $0x2f0] sm:$0xff]  ;;  %v8043_v8 = vadd.f32 %v678_v2, %v7954_v14  ;;  %1063 = vmatprep.mubr.f32.mxu1 %v7520_v13 }
 0x146   : > { %12628 = vst [vmem:[#allocation36_spill] sm:$0xff] %v8040_v10  ;;  %v1894_v2 = vmul.f32 0.044715, %v8018_v29  ;;  %v8139_v63 = vld [vmem:[%s12518_s1 + $0x3b0] sm:$0xff] }
 0x147   : > { %v682_v12 = vpop.f32.mrb[2].mxu1  ;;  %v1895_v13 = vmul.f32 0.044715, %v8043_v8  ;;  %12643 = vst [vmem:[#allocation51_spill] sm:$0xff] %v8139_v63  ;;  %v8144_v10 = vld [vmem:[%s12518_s1 + $0x3f0] sm:$0xff] }
 0x148   : > { %v2150_v5 = vmul.f32 %v1894_v2, %v8018_v29  ;;  %v8098_v45 = vadd.f32 %v682_v12, %v7925_v4  ;;  %v684_v39 = vpop.f32.mrb[3].mxu1  ;;  %1064 = vmatmul.mubr.f32.gmra.mrb[108].mxu1 %v7525_v30  ;;  %12644 = vst [vmem:[#allocation52_spill] sm:$0xff] %v8144_v10 }
 0x149   : > { %v8112_v2 = vadd.f32 %v684_v39, %v7954_v14  ;;  %1069 = vmatprep.mubr.f32.mxu1 %v7528_v36  ;;  %v2151_v12 = vmul.f32 %v1895_v13, %v8043_v8  ;;  %v8128_v39 = vld [vmem:[%s12518_s1 + $0x3f8] sm:$0xff] }
 0x14a   : > { %12642 = vst [vmem:[#allocation50_spill] sm:$0xff] %v8128_v39  ;;  %v1902_v36 = vmul.f32 0.044715, %v8098_v45  ;;  %v2406_v13 = vmul.f32 %v2150_v5, %v8018_v29 }
 0x14b   : > { %v1903_v41 = vmul.f32 0.044715, %v8112_v2  ;;  %v688_v46 = vpop.f32.mrb[4].mxu1  ;;  %v2407_v5 = vmul.f32 %v2151_v12, %v8043_v8 }
 0x14c   : > { %v2158_v52 = vmul.f32 %v1902_v36, %v8098_v45  ;;  %v8158_v53 = vadd.f32 %v688_v46, %v7925_v4  ;;  %v690_v11 = vpop.f32.mrb[5].mxu1  ;;  %1070 = vmatmul.mubr.f32.gmra.mrb[110].mxu1 %v7533_v60  ;;  %v2662_v12 = vadd.f32 %v2406_v13, %v8018_v29 }
 0x14d   : > { %v2159_v26 = vmul.f32 %v1903_v41, %v8112_v2  ;;  %v8170_v33 = vadd.f32 %v690_v11, %v7954_v14  ;;  %1075 = vmatprep.mubr.f32.mxu1 %v7536_v61  ;;  %v2663_v46 = vadd.f32 %v2407_v5, %v8043_v8  ;;  %v12651_v61 = vld [vmem:[#allocation5_spill] sm:$0xff] }
 0x14e   : > { %v1910_v36 = vmul.f32 0.044715, %v8158_v53  ;;  %v2918_v13 = vmul.f32 0.7978846, %v2662_v12  ;;  %v2414_v30 = vmul.f32 %v2158_v52, %v8098_v45 }
 0x14f   : > { %v1911_v41 = vmul.f32 0.044715, %v8170_v33  ;;  %v694_v39 = vpop.f32.mrb[6].mxu1  ;;  %v2919_v11 = vmul.f32 0.7978846, %v2663_v46  ;;  %v2415_v59 = vmul.f32 %v2159_v26, %v8112_v2  ;;  %v8193_v46 = vld [vmem:[%s12518_s1 + $0x438] sm:$0xff] }
 0x150   : > { %v2166_v5 = vmul.f32 %v1910_v36, %v8158_v53  ;;  %v8186_v60 = vadd.f32 %v694_v39, %v7925_v4  ;;  %v696_v12 = vpop.f32.mrb[7].mxu1  ;;  %1076 = vmatmul.mubr.f32.gmra.mrb[112].mxu1 %v7541_v24  ;;  %6178 = vtanh.f32 %v2918_v13  ;;  %v2670_v52 = vadd.f32 %v2414_v30, %v8098_v45  ;;  %12649 = vst [vmem:[#allocation57_spill] sm:$0xff] %v8193_v46  ;;  %v8198_v26 = vld [vmem:[%s12518_s1 + $0x478] sm:$0xff] }
 0x151   : > { %12650 = vst [vmem:[#allocation58_spill] sm:$0xff] %v8198_v26  ;;  %v2167_v36 = vmul.f32 %v1911_v41, %v8170_v33  ;;  %v8202_v39 = vadd.f32 %v696_v12, %v7954_v14  ;;  %1081 = vmatprep.mubr.f32.mxu1 %v12651_v61  ;;  %6180 = vtanh.f32 %v2919_v11  ;;  %v2671_v24 = vadd.f32 %v2415_v59, %v8112_v2 }
 0x152   : > { %v1918_v30 = vmul.f32 0.044715, %v8186_v60  ;;  %v8208_v13 = vmul.f32 0.5, %v8018_v29  ;;  %v2926_v28 = vmul.f32 0.7978846, %v2670_v52  ;;  %v2422_v63 = vmul.f32 %v2166_v5, %v8158_v53 }
 0x153   : > { %v1919_v10 = vmul.f32 0.044715, %v8202_v39  ;;  %v700_v22 = vpop.f32.mrb[8].mxu1  ;;  %v2927_v41 = vmul.f32 0.7978846, %v2671_v24  ;;  %v2423_v12 = vmul.f32 %v2167_v36, %v8170_v33  ;;  %v12652_v36 = vld [vmem:[#allocation6_spill] sm:$0xff] }
 0x154   : > { %v2174_v11 = vmul.f32 %v1918_v30, %v8186_v60  ;;  %v8217_v59 = vadd.f32 %v700_v22, %v7925_v4  ;;  %v702_v55 = vpop.f32.mrb[9].mxu1  ;;  %1082 = vmatmul.mubr.f32.gmra.mrb[114].mxu1 %v7549_v58  ;;  %6182 = vtanh.f32 %v2926_v28  ;;  %v2678_v29 = vadd.f32 %v2422_v63, %v8158_v53 }
 0x155   : > { %v2175_v5 = vmul.f32 %v1919_v10, %v8202_v39  ;;  %v8223_v52 = vadd.f32 %v702_v55, %v7954_v14  ;;  %1087 = vmatprep.mubr.f32.mxu1 %v12652_v36  ;;  %6184 = vtanh.f32 %v2927_v41  ;;  %v2679_v24 = vadd.f32 %v2423_v12, %v8170_v33 }
 0x156   : > { %v1926_v30 = vmul.f32 0.044715, %v8217_v59  ;;  %v1639_v22 = vmul.f32 0.5, %v8043_v8  ;;  %v2934_v61 = vmul.f32 0.7978846, %v2678_v29  ;;  %v2430_v58 = vmul.f32 %v2174_v11, %v8186_v60  ;;  %v8244_v11 = vld [vmem:[%s12518_s1 + $0x430] sm:$0xff] }
 0x157   : > { %v1927_v28 = vmul.f32 0.044715, %v8223_v52  ;;  %v706_v63 = vpop.f32.mrb[10].mxu1  ;;  %v8232_v10 = vmul.f32 0.5, %v8098_v45  ;;  %v2935_v55 = vmul.f32 0.7978846, %v2679_v24  ;;  %v2431_v46 = vmul.f32 %v2175_v5, %v8202_v39 }
 0x158   : > { %v2182_v41 = vmul.f32 %v1926_v30, %v8217_v59  ;;  %v8237_v12 = vadd.f32 %v706_v63, %v7925_v4  ;;  %v708_v36 = vpop.f32.mrb[11].mxu1  ;;  %1088 = vmatmul.mubr.f32.gmra.mrb[116].mxu1 %v7557_v37  ;;  %6186 = vtanh.f32 %v2934_v61  ;;  %v2686_v8 = vadd.f32 %v2430_v58, %v8186_v60  ;;  %12653 = vst [vmem:[#allocation5_spill] sm:$0xff] %v8244_v11  ;;  %v8255_v37 = vld [vmem:[%s12518_s1 + $0x470] sm:$0xff]  ;;  %v8257_v61 = vld [vmem:[#allocation2 + $0x348] sm:$0xff]  ;;  %v8259_v24 = vld [vmem:[#allocation2 + $0x358] sm:$0xff] }
 0x159   : > { %v2183_v45 = vmul.f32 %v1927_v28, %v8223_v52  ;;  %v8248_v29 = vadd.f32 %v708_v36, %v7954_v14  ;;  %1093 = vmatprep.mubr.f32.mxu1 %v7560_v42  ;;  %6188 = vtanh.f32 %v2935_v55  ;;  %v2687_v5 = vadd.f32 %v2431_v46, %v8202_v39  ;;  %12654 = vst [vmem:[#allocation6_spill] sm:$0xff] %v8255_v37 }
 0x15a   : > { %12655 = vst [vmem:[#allocation59_spill] sm:$0xff] %v8257_v61  ;;  %12656 = vst [vmem:[#allocation60_spill] sm:$0xff] %v8259_v24  ;;  %v6179_v30 = vpop.eup %6178  ;;  %v1934_v58 = vmul.f32 0.044715, %v8237_v12  ;;  %v1647_v28 = vmul.f32 0.5, %v8112_v2  ;;  %v2438_v42 = vmul.f32 %v2182_v41, %v8217_v59  ;;  %v12658_v61 = vld [vmem:[#allocation8_spill] sm:$0xff] }
 0x15b   : > { %v2942_v63 = vmul.f32 0.7978846, %v2686_v8  ;;  %v6181_v55 = vpop.eup %6180  ;;  %v1935_v46 = vmul.f32 0.044715, %v8248_v29  ;;  %v712_v36 = vpop.f32.mrb[12].mxu1  ;;  %v3430_v26 = vadd.f32 1.0, %v6179_v30  ;;  %v2439_v47 = vmul.f32 %v2183_v45, %v8223_v52 }
 0x15c   : > { %v2943_v27 = vmul.f32 0.7978846, %v2687_v5  ;;  %v714_v19 = vpop.f32.mrb[13].mxu1  ;;  %1094 = vmatmul.mubr.f32.gmra.mrb[118].mxu1 %v7565_v20  ;;  %v3431_v49 = vadd.f32 1.0, %v6181_v55  ;;  %v8273_v8 = vadd.f32 %v712_v36, %v7925_v4  ;;  %v12657_v45 = vld [vmem:[#allocation7_spill] sm:$0xff]  ;;  %v2190_v30 = vmul.f32 %v1934_v58, %v8237_v12 }
 0x15d   : > { %6190 = vtanh.f32 %v2942_v63  ;;  %v2191_v41 = vmul.f32 %v1935_v46, %v8248_v29  ;;  %v8276_v5 = vadd.f32 %v714_v19, %v7954_v14  ;;  %1099 = vmatprep.mubr.f32.mxu1 %v12657_v45  ;;  %v2695_v55 = vadd.f32 %v2439_v47, %v8223_v52 }
 0x15e   : > { %6192 = vtanh.f32 %v2943_v27  ;;  %v6183_v20 = vpop.eup %6182  ;;  %v3687_v63 = vmul.f32 %v3431_v49, %v1639_v22  ;;  %v2694_v56 = vadd.f32 %v2438_v42, %v8217_v59  ;;  %v3686_v36 = vmul.f32 %v3430_v26, %v8208_v13  ;;  %v12659_v13 = vld [vmem:[#allocation9_spill] sm:$0xff] }
 0x15f   : > { %v6185_v2 = vpop.eup %6184  ;;  %v1943_v46 = vmul.f32 0.044715, %v8276_v5  ;;  %v718_v11 = vpop.f32.mrb[14].mxu1  ;;  %v3438_v37 = vadd.f32 1.0, %v6183_v20  ;;  %v2447_v19 = vmul.f32 %v2191_v41, %v8248_v29  ;;  %v1655_v47 = vmul.f32 0.5, %v8170_v33  ;;  %v8296_v41 = vld [vmem:[#allocation2 + $0x340] sm:$0xff] }
 0x160   : > { %v8286_v45 = vadd.f32 %v718_v11, %v7925_v4  ;;  %v720_v27 = vpop.f32.mrb[15].mxu1  ;;  %1100 = vmatmul.mubr.f32.gmra.mrb[120].mxu1 %v12658_v61  ;;  %4274 = vmatprep.mubr.f32.mxu0 %v3687_v63  ;;  %v3439_v49 = vadd.f32 1.0, %v6185_v2  ;;  %v2951_v22 = vmul.f32 0.7978846, %v2695_v55  ;;  %v1942_v58 = vmul.f32 0.044715, %v8273_v8 }
 0x161   : > { %v2199_v42 = vmul.f32 %v1943_v46, %v8276_v5  ;;  %v8293_v26 = vadd.f32 %v720_v27, %v7954_v14  ;;  %4275 = vmatmul.mubr.f32.vlgmr.msra.gmra.mrb[0].mxu0 %v3686_v36  ;;  %1105 = vmatprep.mubr.f32.mxu1 %v12659_v13  ;;  %v2950_v11 = vmul.f32 0.7978846, %v2694_v56  ;;  %v8298_v20 = vld [vmem:[#allocation2 + $0x350] sm:$0xff]  ;;  %v12660_v33 = vpack.c.bf16 %v7840_v48, %v7838_v31 }
 0x162   : > { %v6187_v61 = vpop.eup %6186  ;;  %v3695_v2 = vmul.f32 %v3439_v49, %v1647_v28  ;;  %v3694_v63 = vmul.f32 %v3438_v37, %v8232_v10  ;;  %6194 = vtanh.f32 %v2951_v22  ;;  %v2703_v55 = vadd.f32 %v2447_v19, %v8248_v29  ;;  %v12662_v28 = vld [vmem:[#allocation10_spill] sm:$0xff]  ;;  %v12663_v22 = vld [vmem:[#allocation11_spill] sm:$0xff] }
 0x163   : > { %5712 = vmatpush1.bf16.msra.mxu0 %v12660_v33  ;;  %v6189_v46 = vpop.eup %6188  ;;  %v1951_v36 = vmul.f32 0.044715, %v8293_v26  ;;  %v724_v27 = vpop.f32.mrb[16].mxu1  ;;  %v3446_v56 = vadd.f32 1.0, %v6187_v61  ;;  %v12661_v13 = vpack.c.bf16 %v7844_v62, %v7842_v50  ;;  %6196 = vtanh.f32 %v2950_v11 }
 0x164   : > { %v2446_v24 = vmul.f32 %v2190_v30, %v8237_v12  ;;  %v1950_v31 = vmul.f32 0.044715, %v8286_v45  ;;  %v726_v48 = vpop.f32.mrb[17].mxu1  ;;  %1106 = vmatmul.mubr.f32.gmra.mrb[122].mxu1 %v12662_v28  ;;  %4280 = vmatprep.mubr.f32.mxu0 %v3695_v2  ;;  %v3447_v10 = vadd.f32 1.0, %v6189_v46  ;;  %v2959_v37 = vmul.f32 0.7978846, %v2703_v55 }
 0x165   : > { %5714 = vmatprep.subr.bf16.mxu0 %v12661_v13  ;;  %v5751_v19 = vpack.c.bf16 %v8298_v20, %v8296_v41  ;;  %v2198_v49 = vmul.f32 %v1942_v58, %v8273_v8  ;;  %4281 = vmatmul.mubr.f32.gmra.mrb[2].mxu0 %v3694_v63  ;;  %v1654_v50 = vmul.f32 0.5, %v8158_v53  ;;  %v1663_v62 = vmul.f32 0.5, %v8202_v39  ;;  %v12667_v28 = vld [vmem:[#allocation13_spill] sm:$0xff]  ;;  %v12740_v20 = vld [vmem:[#allocation52_spill] sm:$0xff] }
 0x166   : > { %1111 = vmatprep.mubr.f32.mxu1 %v12663_v22  ;;  %v1662_v30 = vmul.f32 0.5, %v8186_v60  ;;  %v2207_v61 = vmul.f32 %v1951_v36, %v8293_v26  ;;  %v3703_v33 = vmul.f32 %v3447_v10, %v1655_v47  ;;  %v12664_v2 = vpack.c.bf16 %v7850_v18, %v7848_v16 }
 0x167   : > { %v6191_v11 = vpop.eup %6190  ;;  %6198 = vtanh.f32 %v2959_v37  ;;  %v2702_v58 = vadd.f32 %v2446_v24, %v8237_v12  ;;  %v8325_v55 = vadd.f32 %v726_v48, %v7954_v14  ;;  %v730_v53 = vpop.f32.mrb[18].mxu1  ;;  %v3702_v46 = vmul.f32 %v3446_v56, %v1654_v50  ;;  %v12666_v24 = vld [vmem:[#allocation12_spill] sm:$0xff] }
 0x168   : > { %5716 = vmatpush1.bf16.msra.mxu0 %v12664_v2  ;;  %v6193_v63 = vpop.eup %6192  ;;  %v3454_v39 = vadd.f32 1.0, %v6191_v11  ;;  %v12665_v60 = vpack.c.bf16 %v7864_v1, %v7862_v40  ;;  %v2455_v47 = vmul.f32 %v2199_v42, %v8276_v5  ;;  %v2206_v36 = vmul.f32 %v1950_v31, %v8286_v45  ;;  %v732_v18 = vpop.f32.mrb[19].mxu1  ;;  %1112 = vmatmul.mubr.f32.gmra.mrb[124].mxu1 %v12666_v24 }
 0x169   : > { %v8333_v16 = vadd.f32 %v724_v27, %v7925_v4  ;;  %4286 = vmatprep.mubr.f32.mxu0 %v3703_v33  ;;  %v3455_v13 = vadd.f32 1.0, %v6193_v63  ;;  %v2958_v48 = vmul.f32 0.7978846, %v2702_v58  ;;  %v8337_v56 = vadd.f32 %v732_v18, %v7954_v14  ;;  %1117 = vmatprep.mubr.f32.mxu1 %v12667_v28  ;;  %v12670_v33 = vld [vmem:[#allocation14_spill] sm:$0xff] }
 0x16a   : > { %5718 = vmatprep.subr.bf16.mxu0 %v12665_v60  ;;  %4287 = vmatmul.mubr.f32.gmra.mrb[4].mxu0 %v3702_v46  ;;  %v1671_v40 = vmul.f32 0.5, %v8223_v52  ;;  %v1670_v1 = vmul.f32 0.5, %v8217_v59  ;;  %v8343_v42 = vmul.f32 0.5, %v8237_v12  ;;  %v12668_v31 = vpack.c.bf16 %v7868_v3, %v7866_v34 }
 0x16b   : > { %v3711_v27 = vmul.f32 %v3455_v13, %v1663_v62  ;;  %v1679_v10 = vmul.f32 0.5, %v8248_v29  ;;  %6200 = vtanh.f32 %v2958_v48  ;;  %v2711_v37 = vadd.f32 %v2455_v47, %v8276_v5  ;;  %v736_v50 = vpop.f32.mrb[20].mxu1 }
 0x16c   : > { %5720 = vmatpush1.bf16.msra.mxu0 %v12668_v31  ;;  %v1959_v22 = vmul.f32 0.044715, %v8325_v55  ;;  %v3710_v11 = vmul.f32 %v3454_v39, %v1662_v30  ;;  %v2454_v59 = vmul.f32 %v2198_v49, %v8273_v8  ;;  %v12669_v52 = vpack.c.bf16 %v7892_v38, %v7890_v15  ;;  %v6195_v34 = vpop.eup %6194  ;;  %v738_v62 = vpop.f32.mrb[21].mxu1  ;;  %1118 = vmatmul.mubr.f32.gmra.mrb[126].mxu1 %v12670_v33  ;;  %v6690_v38 = vld [vmem:[%s7030_s23 + $0x8] sm:$0xff] }
 0x16d   : > { %v2463_v12 = vmul.f32 %v2207_v61, %v8293_v26  ;;  %v1958_v3 = vmul.f32 0.044715, %v8333_v16  ;;  %v8358_v29 = vadd.f32 %v730_v53, %v7925_v4  ;;  %4292 = vmatprep.mubr.f32.mxu0 %v3711_v27  ;;  %v2967_v30 = vmul.f32 0.7978846, %v2711_v37  ;;  %v6197_v49 = vpop.eup %6196  ;;  %1188 = vmatprep.mubr.f32.mxu1 %v6690_v38 }
 0x16e   : > { %5722 = vmatprep.subr.bf16.mxu0 %v12669_v52  ;;  %v2462_v2 = vmul.f32 %v2206_v36, %v8286_v45  ;;  %v1967_v58 = vmul.f32 0.044715, %v8337_v56  ;;  %v8364_v15 = vadd.f32 %v736_v50, %v7925_v4  ;;  %4293 = vmatmul.mubr.f32.gmra.mrb[6].mxu0 %v3710_v11  ;;  %v3463_v61 = vadd.f32 1.0, %v6195_v34 }
 0x16f   : > { %v2710_v63 = vadd.f32 %v2454_v59, %v8273_v8  ;;  %v8369_v53 = vadd.f32 %v738_v62, %v7954_v14  ;;  %v3462_v46 = vadd.f32 1.0, %v6197_v49  ;;  %6202 = vtanh.f32 %v2967_v30  ;;  %v742_v36 = vpop.f32.mrb[22].mxu1  ;;  %v6694_v49 = vld [vmem:[%s7030_s23 + $0x28] sm:$0xff] }
 0x170   : > { %v12671_v39 = vpack.c.bf16 %v7896_v54, %v7894_v9  ;;  %v2719_v60 = vadd.f32 %v2463_v12, %v8293_v26  ;;  %v2215_v47 = vmul.f32 %v1959_v22, %v8325_v55  ;;  %v3719_v18 = vmul.f32 %v3463_v61, %v1671_v40  ;;  %v744_v31 = vpop.f32.mrb[23].mxu1  ;;  %v6691_v9 = vld [vmem:[%s7030_s23] sm:$0xff] }
 0x171   : > { %v2966_v24 = vmul.f32 0.7978846, %v2710_v63  ;;  %v2718_v13 = vadd.f32 %v2462_v2, %v8286_v45  ;;  %v12672_v48 = vpack.c.bf16 %v7920_v0, %v7918_v51  ;;  %v6199_v28 = vpop.eup %6198  ;;  %v2214_v27 = vmul.f32 %v1958_v3, %v8333_v16  ;;  %1189 = vmatmul.mubr.f32.vlgmr.msra.gmra.mrb[128].mxu1 %v6691_v9  ;;  %v6695_v9 = vld [vmem:[%s7030_s23 + $0x20] sm:$0xff] }
 0x172   : > { %5724 = vmatpush1.bf16.msra.mxu0 %v12671_v39  ;;  %v3718_v54 = vmul.f32 %v3462_v46, %v1670_v1  ;;  %v8383_v37 = vmul.f32 0.5, %v8276_v5  ;;  %v2975_v22 = vmul.f32 0.7978846, %v2719_v60  ;;  %v1966_v40 = vmul.f32 0.044715, %v8358_v29  ;;  %4298 = vmatprep.mubr.f32.mxu0 %v3719_v18  ;;  %v6692_v5 = vld [vmem:[%s7030_s23 + $0x18] sm:$0xff] }
 0x173   : > { %5726 = vmatprep.subr.bf16.mxu0 %v12672_v48  ;;  %v2223_v50 = vmul.f32 %v1967_v58, %v8337_v56  ;;  %v12673_v51 = vpack.c.bf16 %v7860_v35, %v7855_v32  ;;  %v3471_v0 = vadd.f32 1.0, %v6199_v28  ;;  %6204 = vtanh.f32 %v2966_v24  ;;  %1194 = vmatprep.mubr.f32.mxu1 %v6692_v5  ;;  %v748_v12 = vpop.f32.mrb[24].mxu1  ;;  %v12687_v5 = vld [vmem:[#allocation19_spill] sm:$0xff] }
 0x174   : > { %v1974_v11 = vmul.f32 0.044715, %v8364_v15  ;;  %v1975_v59 = vmul.f32 0.044715, %v8369_v53  ;;  %4299 = vmatmul.mubr.f32.gmra.mrb[8].mxu0 %v3718_v54  ;;  %6206 = vtanh.f32 %v2975_v22  ;;  %v2974_v1 = vmul.f32 0.7978846, %v2718_v13 }
 0x175   : > { %5584 = vmatpush1.bf16.msra.mxu1 %v12673_v51  ;;  %v8394_v52 = vadd.f32 %v742_v36, %v7925_v4  ;;  %v3727_v34 = vmul.f32 %v3471_v0, %v1679_v10  ;;  %v12674_v32 = vpack.c.bf16 %v7878_v44, %v7873_v43  ;;  %v8400_v35 = vmul.f32 0.5, %v8273_v8  ;;  %v6201_v33 = vpop.eup %6200  ;;  %v750_v2 = vpop.f32.mrb[25].mxu1  ;;  %v6693_v10 = vld [vmem:[%s7030_s23 + $0x10] sm:$0xff]  ;;  %v12680_v36 = vld [vmem:[#allocation17_spill] sm:$0xff]  ;;  %v6696_v0 = vld [vmem:[%s7030_s23 + $0x38] sm:$0xff] }
 0x176   : > { %v2471_v3 = vmul.f32 %v2215_v47, %v8325_v55  ;;  %v12675_v62 = vpack.c.bf16 %v7929_v17, %v7927_v21  ;;  %v8407_v30 = vadd.f32 %v744_v31, %v7954_v14  ;;  %1195 = vmatmul.mubr.f32.gmra.mrb[130].mxu1 %v6693_v10  ;;  %v8411_v43 = vmul.f32 0.5, %v8293_v26  ;;  %v12679_v47 = vld [vmem:[#allocation18_spill] sm:$0xff]  ;;  %v12690_v10 = vld [vmem:[#allocation21_spill] sm:$0xff] }
 0x177   : > { %5586 = vmatprep.subr.bf16.mxu1 %v12674_v32  ;;  %6208 = vtanh.f32 %v2974_v1  ;;  %v2470_v44 = vmul.f32 %v2214_v27, %v8333_v16  ;;  %v12676_v8 = vpack.c.bf16 %v7962_v25, %v7960_v57  ;;  %v2222_v21 = vmul.f32 %v1966_v40, %v8358_v29  ;;  %4304 = vmatprep.mubr.f32.mxu0 %v3727_v34  ;;  %v12677_v57 = vld [vmem:[#allocation16_spill] sm:$0xff]  ;;  %v754_v60 = vpop.f32.mrb[26].mxu1 }
 0x178   : > { %5728 = vmatpush1.bf16.msra.mxu0 %v12675_v62  ;;  %v3470_v17 = vadd.f32 1.0, %v6201_v33  ;;  %1200 = vmatprep.mubr.f32.mxu1 %v6694_v49  ;;  %v8420_v58 = vmul.f32 0.5, %v8286_v45  ;;  %v2727_v38 = vadd.f32 %v2471_v3, %v8325_v55  ;;  %v8424_v26 = vmul.f32 %v1974_v11, %v8364_v15  ;;  %v12693_v49 = vld [vmem:[#allocation31_spill] sm:$0xff] }
 0x179   : > { %5730 = vmatprep.subr.bf16.mxu0 %v12676_v8  ;;  %v2231_v61 = vmul.f32 %v1975_v59, %v8369_v53  ;;  %v12678_v25 = vpack.c.bf16 %v7888_v7, %v12677_v57  ;;  %v2726_v63 = vadd.f32 %v2470_v44, %v8333_v16  ;;  %v2479_v46 = vmul.f32 %v2223_v50, %v8337_v56  ;;  %v12682_v7 = vld [vmem:[#allocation25_spill] sm:$0xff]  ;;  %v6203_v28 = vpop.eup %6202  ;;  %v12686_v59 = vld [vmem:[#allocation20_spill] sm:$0xff] }
 0x17a   : > { %v1982_v39 = vmul.f32 0.044715, %v8394_v52  ;;  %v3726_v45 = vmul.f32 %v3470_v17, %v8343_v42  ;;  %v12681_v18 = vpack.c.bf16 %v12679_v47, %v12680_v36  ;;  %v8438_v24 = vmul.f32 0.5, %v8325_v55  ;;  %v756_v42 = vpop.f32.mrb[27].mxu1  ;;  %1201 = vmatmul.mubr.f32.gmra.mrb[132].mxu1 %v6695_v9  ;;  %v12684_v55 = vld [vmem:[#allocation30_spill] sm:$0xff]  ;;  %v12692_v17 = vld [vmem:[#allocation32_spill] sm:$0xff] }
 0x17b   : > { %5588 = vmatpush1.bf16.msra.mxu1 %v12678_v25  ;;  %v2983_v13 = vmul.f32 0.7978846, %v2727_v38  ;;  %v12683_v48 = vpack.c.bf16 %v7966_v23, %v12682_v7  ;;  %v1983_v27 = vmul.f32 0.044715, %v8407_v30  ;;  %v8445_v31 = vadd.f32 %v748_v12, %v7925_v4  ;;  %1206 = vmatprep.mubr.f32.mxu1 %v6696_v0  ;;  %v760_v62 = vpop.f32.mrb[28].mxu1  ;;  %v6698_v47 = vld [vmem:[%s7030_s23 + $0x48] sm:$0xff] }
 0x17c   : > { %5590 = vmatprep.subr.bf16.mxu1 %v12681_v18  ;;  %v2982_v54 = vmul.f32 0.7978846, %v2726_v63  ;;  %v2735_v22 = vadd.f32 %v2479_v46, %v8337_v56  ;;  %v12685_v40 = vpack.c.bf16 %v7998_v6, %v12684_v55  ;;  %v8453_v50 = vadd.f32 %v750_v2, %v7954_v14  ;;  %4305 = vmatmul.mubr.f32.gmra.mrb[10].mxu0 %v3726_v45  ;;  %v12689_v2 = vld [vmem:[#allocation22_spill] sm:$0xff]  ;;  %v762_v63 = vpop.f32.mrb[29].mxu1  ;;  %v12699_v9 = vld [vmem:[#allocation23_spill] sm:$0xff] }
 0x17d   : > { %5732 = vmatpush1.bf16.msra.mxu0 %v12683_v48  ;;  %v8456_v23 = vadd.f32 %v754_v60, %v7925_v4  ;;  %v3479_v51 = vadd.f32 1.0, %v6203_v28  ;;  %6210 = vtanh.f32 %v2983_v13  ;;  %v8460_v11 = vadd.f32 %v756_v42, %v7954_v14  ;;  %v6205_v34 = vpop.eup %6204  ;;  %v12695_v46 = vld [vmem:[#allocation38_spill] sm:$0xff]  ;;  %v12698_v42 = vld [vmem:[#allocation24_spill] sm:$0xff]  ;;  %v12701_v0 = vld [vmem:[#allocation27_spill] sm:$0xff] }
 0x17e   : > { %5734 = vmatprep.subr.bf16.mxu0 %v12685_v40  ;;  %v12688_v1 = vpack.c.bf16 %v12686_v59, %v12687_v5  ;;  %6212 = vtanh.f32 %v2982_v54  ;;  %v2991_v6 = vmul.f32 0.7978846, %v2735_v22  ;;  %v2478_v12 = vmul.f32 %v2222_v21, %v8358_v29  ;;  %v6207_v21 = vpop.eup %6206  ;;  %v12702_v59 = vld [vmem:[#allocation26_spill] sm:$0xff] }
 0x17f   : > { %v2238_v32 = vmul.f32 %v1982_v39, %v8394_v52  ;;  %v3735_v3 = vmul.f32 %v3479_v51, %v8383_v37  ;;  %v8469_v33 = vmul.f32 0.5, %v8333_v16  ;;  %v12691_v44 = vpack.c.bf16 %v12689_v2, %v12690_v10  ;;  %v6697_v16 = vld [vmem:[%s7030_s23 + $0x30] sm:$0xff]  ;;  %v12696_v39 = vld [vmem:[#allocation37_spill] sm:$0xff]  ;;  %v766_v40 = vpop.f32.mrb[30].mxu1 }
 0x180   : > { %5592 = vmatpush1.bf16.msra.mxu1 %v12688_v1  ;;  %v2487_v8 = vmul.f32 %v2231_v61, %v8369_v53  ;;  %v12694_v38 = vpack.c.bf16 %v12692_v17, %v12693_v49  ;;  %v2239_v57 = vmul.f32 %v1983_v27, %v8407_v30  ;;  %v1990_v37 = vmul.f32 0.044715, %v8445_v31  ;;  %v12705_v1 = vld [vmem:[#allocation39_spill] sm:$0xff] }
 0x181   : > { %5594 = vmatprep.subr.bf16.mxu1 %v12691_v44  ;;  %v3478_v25 = vadd.f32 1.0, %v6205_v34  ;;  %1207 = vmatmul.mubr.f32.gmra.mrb[134].mxu1 %v6697_v16  ;;  %6214 = vtanh.f32 %v2991_v6  ;;  %v12697_v45 = vpack.c.bf16 %v12695_v46, %v12696_v39  ;;  %v1991_v61 = vmul.f32 0.044715, %v8453_v50  ;;  %v6209_v13 = vpop.eup %6208  ;;  %v768_v34 = vpop.f32.mrb[31].mxu1 }
 0x182   : > { %5736 = vmatpush1.bf16.msra.mxu0 %v12694_v38  ;;  %4310 = vmatprep.mubr.f32.mxu0 %v3735_v3  ;;  %v3487_v60 = vadd.f32 1.0, %v6207_v21  ;;  %v8487_v36 = vmul.f32 0.5, %v8337_v56  ;;  %v2734_v18 = vadd.f32 %v2478_v12, %v8358_v29  ;;  %v1998_v7 = vmul.f32 0.044715, %v8456_v23  ;;  %v6699_v3 = vld [vmem:[%s7030_s23 + $0x40] sm:$0xff]  ;;  %v12708_v21 = vld [vmem:[#allocation28_spill] sm:$0xff] }
 0x183   : > { %5738 = vmatprep.subr.bf16.mxu0 %v12697_v45  ;;  %1212 = vmatprep.mubr.f32.mxu1 %v6698_v47  ;;  %v1999_v48 = vmul.f32 0.044715, %v8460_v11  ;;  %v3734_v28 = vmul.f32 %v3478_v25, %v8400_v35  ;;  %v2743_v27 = vadd.f32 %v2487_v8, %v8369_v53  ;;  %v12700_v54 = vpack.c.bf16 %v12698_v42, %v12699_v9  ;;  %v12704_v35 = vld [vmem:[#allocation40_spill] sm:$0xff]  ;;  %v12707_v38 = vld [vmem:[#allocation29_spill] sm:$0xff]  ;;  %v12710_v25 = vld [vmem:[#allocation46_spill] sm:$0xff]  ;;  %v772_v45 = vpop.f32.mrb[32].mxu1 }
 0x184   : > { %v8498_v22 = vadd.f32 %v760_v62, %v7925_v4  ;;  %v3743_v56 = vmul.f32 %v3487_v60, %v8411_v43  ;;  %v3486_v55 = vadd.f32 1.0, %v6209_v13  ;;  %v2990_v51 = vmul.f32 0.7978846, %v2734_v18  ;;  %v6700_v8 = vld [vmem:[%s7030_s23 + $0x58] sm:$0xff]  ;;  %v12713_v60 = vld [vmem:[#allocation34_spill] sm:$0xff]  ;;  %v12714_v47 = vld [vmem:[#allocation33_spill] sm:$0xff] }
 0x185   : > { %5596 = vmatpush1.bf16.msra.mxu1 %v12700_v54  ;;  %v12703_v5 = vpack.c.bf16 %v12701_v0, %v12702_v59  ;;  %v12706_v6 = vpack.c.bf16 %v12704_v35, %v12705_v1  ;;  %4311 = vmatmul.mubr.f32.gmra.mrb[12].mxu0 %v3734_v28  ;;  %v8508_v12 = vadd.f32 %v762_v63, %v7954_v14  ;;  %v8512_v43 = vmul.f32 0.5, %v8358_v29  ;;  %v12711_v63 = vld [vmem:[#allocation45_spill] sm:$0xff]  ;;  %v12716_v13 = vld [vmem:[#allocation48_spill] sm:$0xff]  ;;  %v6701_v54 = vld [vmem:[%s7030_s23 + $0x50] sm:$0xff] }
 0x186   : > { %1213 = vmatmul.mubr.f32.gmra.mrb[136].mxu1 %v6699_v3  ;;  %v2999_v62 = vmul.f32 0.7978846, %v2743_v27  ;;  %v2486_v2 = vmul.f32 %v8424_v26, %v8364_v15  ;;  %v8517_v10 = vmul.f32 %v1990_v37, %v8445_v31  ;;  %v8520_v44 = vmul.f32 %v1991_v61, %v8453_v50  ;;  %4316 = vmatprep.mubr.f32.mxu0 %v3743_v56  ;;  %v6702_v0 = vld [vmem:[%s7030_s23 + $0x68] sm:$0xff]  ;;  %v12720_v35 = vld [vmem:[#allocation53_spill] sm:$0xff] }
 0x187   : > { %5598 = vmatprep.subr.bf16.mxu1 %v12703_v5  ;;  %5740 = vmatpush1.bf16.msra.mxu0 %v12706_v6  ;;  %6216 = vtanh.f32 %v2990_v51  ;;  %v8524_v17 = vmul.f32 0.5, %v8369_v53  ;;  %v8527_v29 = vmul.f32 %v1998_v7, %v8456_v23  ;;  %v3742_v49 = vmul.f32 %v3486_v55, %v8420_v58  ;;  %v6211_v46 = vpop.eup %6210  ;;  %v12717_v7 = vld [vmem:[#allocation47_spill] sm:$0xff]  ;;  %v12719_v5 = vld [vmem:[#allocation54_spill] sm:$0xff] }
 0x188   : > { %1218 = vmatprep.mubr.f32.mxu1 %v6700_v8  ;;  %6218 = vtanh.f32 %v2999_v62  ;;  %v2742_v26 = vadd.f32 %v2486_v2, %v8364_v15  ;;  %v12709_v37 = vpack.c.bf16 %v12707_v38, %v12708_v21  ;;  %v12712_v16 = vpack.c.bf16 %v12710_v25, %v12711_v63  ;;  %v6213_v27 = vpop.eup %6212  ;;  %v12722_v62 = vld [vmem:[#allocation36_spill] sm:$0xff]  ;;  %v12723_v2 = vld [vmem:[#allocation35_spill] sm:$0xff] }
 0x189   : > { %v8538_v53 = vmul.f32 %v1999_v48, %v8460_v11  ;;  %v2006_v39 = vmul.f32 0.044715, %v8498_v22  ;;  %v2495_v58 = vmul.f32 %v2239_v57, %v8407_v30  ;;  %v2494_v61 = vmul.f32 %v2238_v32, %v8394_v52  ;;  %4317 = vmatmul.mubr.f32.gmra.mrb[14].mxu0 %v3742_v49  ;;  %v774_v57 = vpop.f32.mrb[33].mxu1  ;;  %v12728_v63 = vld [vmem:[#allocation56_spill] sm:$0xff] }
 0x18a   : > { %5600 = vmatpush1.bf16.msra.mxu1 %v12709_v37  ;;  %5742 = vmatprep.subr.bf16.mxu0 %v12712_v16  ;;  %v12715_v18 = vpack.c.bf16 %v12713_v60, %v12714_v47  ;;  %v12718_v28 = vpack.c.bf16 %v12716_v13, %v12717_v7  ;;  %v2007_v48 = vmul.f32 0.044715, %v8508_v12  ;;  %v8551_v42 = vadd.f32 %v766_v40, %v7925_v4  ;;  %v778_v21 = vpop.f32.mrb[34].mxu1  ;;  %v12725_v37 = vld [vmem:[#allocation42_spill] sm:$0xff]  ;;  %v12729_v16 = vld [vmem:[#allocation55_spill] sm:$0xff]  ;;  %v6704_v7 = vld [vmem:[%s7030_s23 + $0x78] sm:$0xff] }
 0x18b   : > { %v3495_v9 = vadd.f32 1.0, %v6211_v46  ;;  %1219 = vmatmul.mubr.f32.gmra.mrb[138].mxu1 %v6701_v54  ;;  %v2998_v32 = vmul.f32 0.7978846, %v2742_v26  ;;  %v8555_v56 = vadd.f32 %v768_v34, %v7954_v14  ;;  %v3494_v55 = vadd.f32 1.0, %v6213_v27  ;;  %v6215_v1 = vpop.eup %6214 }
 0x18c   : > { %5602 = vmatprep.subr.bf16.mxu1 %v12715_v18  ;;  %5744 = vmatpush1.bf16.msra.mxu0 %v12718_v28  ;;  %v8558_v51 = vadd.f32 %v772_v45, %v7925_v4  ;;  %v2751_v59 = vadd.f32 %v2495_v58, %v8407_v30  ;;  %v12721_v40 = vpack.c.bf16 %v12719_v5, %v12720_v35  ;;  %v8567_v3 = vmul.f32 0.5, %v8364_v15  ;;  %v12726_v15 = vld [vmem:[#allocation41_spill] sm:$0xff]  ;;  %v780_v58 = vpop.f32.mrb[35].mxu1 }
 0x18d   : > { %1224 = vmatprep.mubr.f32.mxu1 %v6702_v0  ;;  %v3751_v6 = vmul.f32 %v3495_v9, %v8438_v24  ;;  %6220 = vtanh.f32 %v2998_v32  ;;  %v2750_v34 = vadd.f32 %v2494_v61, %v8394_v52  ;;  %v12724_v8 = vpack.c.bf16 %v12722_v62, %v12723_v2  ;;  %v6703_v61 = vld [vmem:[%s7030_s23 + $0x60] sm:$0xff]  ;;  %v12731_v9 = vld [vmem:[#allocation44_spill] sm:$0xff] }
 0x18e   : > { %5746 = vmatprep.subr.bf16.mxu0 %v12721_v40  ;;  %v8574_v49 = vmul.f32 %v2006_v39, %v8498_v22  ;;  %v3750_v26 = vmul.f32 %v3494_v55, %v8469_v33  ;;  %v3503_v38 = vadd.f32 1.0, %v6215_v1  ;;  %v3007_v24 = vmul.f32 0.7978846, %v2751_v59  ;;  %v12734_v32 = vld [vmem:[#allocation60_spill] sm:$0xff]  ;;  %v12737_v40 = vld [vmem:[#allocation50_spill] sm:$0xff]  ;;  %v12738_v1 = vld [vmem:[#allocation49_spill] sm:$0xff] }
 0x18f   : > { %5604 = vmatpush1.bf16.msra.mxu1 %v12724_v8  ;;  %v12727_v25 = vpack.c.bf16 %v12725_v37, %v12726_v15  ;;  %v12730_v46 = vpack.c.bf16 %v12728_v63, %v12729_v16  ;;  %v8584_v45 = vmul.f32 %v2007_v48, %v8508_v12  ;;  %v2014_v39 = vmul.f32 0.044715, %v8551_v42  ;;  %4322 = vmatprep.mubr.f32.mxu0 %v3751_v6 }
 0x190   : > { %v8588_v33 = vadd.f32 %v774_v57, %v7954_v14  ;;  %1225 = vmatmul.mubr.f32.gmra.mrb[140].mxu1 %v6703_v61  ;;  %v3006_v60 = vmul.f32 0.7978846, %v2750_v34  ;;  %v2015_v47 = vmul.f32 0.044715, %v8555_v56  ;;  %4323 = vmatmul.mubr.f32.gmra.mrb[16].mxu0 %v3750_v26  ;;  %v2022_v18 = vmul.f32 0.044715, %v8558_v51 }
 0x191   : > { %5606 = vmatprep.subr.bf16.mxu1 %v12727_v25  ;;  %5748 = vmatpush1.bf16.msra.mxu0 %v12730_v46  ;;  %v3759_v13 = vmul.f32 %v3503_v38, %v8487_v36  ;;  %6222 = vtanh.f32 %v3007_v24  ;;  %v8596_v28 = vadd.f32 %v778_v21, %v7925_v4  ;;  %v8599_v27 = vmul.f32 0.5, %v8407_v30  ;;  %v12732_v57 = vld [vmem:[#allocation43_spill] sm:$0xff]  ;;  %v6217_v0 = vpop.eup %6216  ;;  %v784_v30 = vpop.f32.mrb[36].mxu1  ;;  %v6706_v24 = vld [vmem:[%s7030_s23 + $0x88] sm:$0xff] }
 0x192   : > { %1230 = vmatprep.mubr.f32.mxu1 %v6704_v7  ;;  %6224 = vtanh.f32 %v3006_v60  ;;  %v2503_v48 = vmul.f32 %v8520_v44, %v8453_v50  ;;  %v12733_v54 = vpack.c.bf16 %v12731_v9, %v12732_v57  ;;  %v12735_v36 = vld [vmem:[#allocation59_spill] sm:$0xff]  ;;  %v8610_v59 = vadd.f32 %v780_v58, %v7954_v14  ;;  %v6219_v34 = vpop.eup %6218  ;;  %v6707_v9 = vld [vmem:[%s7030_s23 + $0x80] sm:$0xff] }
 0x193   : > { %v12736_v55 = vpack.c.bf16 %v12734_v32, %v12735_v36  ;;  %4328 = vmatprep.mubr.f32.mxu0 %v3759_v13  ;;  %v8613_v5 = vmul.f32 0.5, %v8394_v52  ;;  %v2502_v44 = vmul.f32 %v8517_v10, %v8445_v31  ;;  %v2511_v35 = vmul.f32 %v8538_v53, %v8460_v11  ;;  %v786_v52 = vpop.f32.mrb[37].mxu1  ;;  %v6705_v26 = vld [vmem:[%s7030_s23 + $0x70] sm:$0xff] }
 0x194   : > { %5608 = vmatpush1.bf16.msra.mxu1 %v12733_v54  ;;  %v12739_v6 = vpack.c.bf16 %v12737_v40, %v12738_v1  ;;  %v8623_v62 = vmul.f32 %v2014_v39, %v8551_v42  ;;  %v2023_v2 = vmul.f32 0.044715, %v8588_v33  ;;  %v3502_v8 = vadd.f32 1.0, %v6217_v0  ;;  %v790_v61 = vpop.f32.mrb[38].mxu1 }
 0x195   : > { %5750 = vmatprep.subr.bf16.mxu0 %v12736_v55  ;;  %1231 = vmatmul.mubr.f32.gmra.mrb[142].mxu1 %v6705_v26  ;;  %v2759_v38 = vadd.f32 %v2503_v48, %v8453_v50  ;;  %v8632_v10 = vmul.f32 %v2015_v47, %v8555_v56  ;;  %v8635_v53 = vmul.f32 %v2022_v18, %v8558_v51  ;;  %v3511_v21 = vadd.f32 1.0, %v6219_v34  ;;  %v12743_v47 = vld [vmem:[#allocation58_spill] sm:$0xff]  ;;  %v792_v48 = vpop.f32.mrb[39].mxu1  ;;  %v6708_v55 = vld [vmem:[%s7030_s23 + $0x98] sm:$0xff] }
 0x196   : > { %5610 = vmatprep.subr.bf16.mxu1 %v12739_v6  ;;  %5752 = vmatpush1.bf16.msra.mxu0 %v5751_v19  ;;  %v2758_v37 = vadd.f32 %v2502_v44, %v8445_v31  ;;  %v3758_v15 = vmul.f32 %v3502_v8, %v8512_v43  ;;  %v2030_v25 = vmul.f32 0.044715, %v8596_v28  ;;  %v2767_v41 = vadd.f32 %v2511_v35, %v8460_v11  ;;  %v12741_v19 = vld [vmem:[#allocation51_spill] sm:$0xff]  ;;  %v12744_v43 = vld [vmem:[#allocation57_spill] sm:$0xff]  ;;  %v12746_v44 = vld [vmem:[#allocation6_spill] sm:$0xff] }
 0x197   : > { %1236 = vmatprep.mubr.f32.mxu1 %v6706_v24  ;;  %v3015_v63 = vmul.f32 0.7978846, %v2759_v38  ;;  %v12742_v16 = vpack.c.bf16 %v12740_v20, %v12741_v19  ;;  %v2031_v46 = vmul.f32 0.044715, %v8610_v59  ;;  %v3767_v39 = vmul.f32 %v3511_v21, %v8524_v17  ;;  %v6221_v13 = vpop.eup %6220  ;;  %v12747_v35 = vld [vmem:[#allocation5_spill] sm:$0xff]  ;;  %v6709_v21 = vld [vmem:[%s7030_s23 + $0x90] sm:$0xff] }
 0x198   : > { %v8648_v58 = vadd.f32 %v784_v30, %v7925_v4  ;;  %v3014_v60 = vmul.f32 0.7978846, %v2758_v37  ;;  %v12745_v18 = vpack.c.bf16 %v12743_v47, %v12744_v43  ;;  %v8654_v7 = vmul.f32 %v2023_v2, %v8588_v33  ;;  %4329 = vmatmul.mubr.f32.gmra.mrb[18].mxu0 %v3758_v15  ;;  %v796_v2 = vpop.f32.mrb[40].mxu1  ;;  %v6711_v43 = vld [vmem:[%s7030_s23 + $0xa0] sm:$0xff] }
 0x199   : > { %5612 = vmatpush1.bf16.msra.mxu1 %v12742_v16  ;;  %v8658_v17 = vmul.f32 0.5, %v8453_v50  ;;  %6226 = vtanh.f32 %v3015_v63  ;;  %v3023_v57 = vmul.f32 0.7978846, %v2767_v41  ;;  %4334 = vmatprep.mubr.f32.mxu0 %v3767_v39  ;;  %v3510_v54 = vadd.f32 1.0, %v6221_v13  ;;  %v798_v38 = vpop.f32.mrb[41].mxu1  ;;  %v6712_v13 = vld [vmem:[%s7030_s23 + $0xb8] sm:$0xff] }
 0x19a   : > { %5614 = vmatprep.subr.bf16.mxu1 %v12745_v18  ;;  %1237 = vmatmul.mubr.f32.gmra.mrb[144].mxu1 %v6707_v9  ;;  %v8661_v32 = vadd.f32 %v786_v52, %v7954_v14  ;;  %v8664_v36 = vmul.f32 0.5, %v8445_v31  ;;  %6228 = vtanh.f32 %v3014_v60  ;;  %v8668_v0 = vmul.f32 %v2030_v25, %v8596_v28  ;;  %v802_v39 = vpop.f32.mrb[42].mxu1 }
 0x19b   : > { %1242 = vmatprep.mubr.f32.mxu1 %v6708_v55  ;;  %v8671_v50 = vmul.f32 0.5, %v8460_v11  ;;  %6230 = vtanh.f32 %v3023_v57  ;;  %v2510_v30 = vmul.f32 %v8527_v29, %v8456_v23  ;;  %v12748_v40 = vpack.c.bf16 %v12746_v44, %v12747_v35  ;;  %v6223_v31 = vpop.eup %6222  ;;  %v804_v47 = vpop.f32.mrb[43].mxu1 }
 0x19c   : > { %v8679_v1 = vmul.f32 %v2031_v46, %v8610_v59  ;;  %v3766_v6 = vmul.f32 %v3510_v54, %v8567_v3  ;;  %v2038_v34 = vmul.f32 0.044715, %v8648_v58  ;;  %v2519_v11 = vmul.f32 %v8584_v45, %v8508_v12  ;;  %v6225_v8 = vpop.eup %6224  ;;  %v6710_v45 = vld [vmem:[%s7030_s23 + $0xa8] sm:$0xff] }
 0x19d   : > { %5616 = vmatpush1.bf16.msra.mxu1 %v12748_v40  ;;  %v3519_v52 = vadd.f32 1.0, %v6223_v31  ;;  %v8686_v29 = vadd.f32 %v790_v61, %v7925_v4  ;;  %v8689_v26 = vadd.f32 %v792_v48, %v7954_v14  ;;  %v2766_v3 = vadd.f32 %v2510_v30, %v8456_v23 }
 0x19e   : > { %1243 = vmatmul.mubr.f32.gmra.mrb[146].mxu1 %v6709_v21  ;;  %4335 = vmatmul.mubr.f32.gmra.mrb[20].mxu0 %v3766_v6  ;;  %v2039_v24 = vmul.f32 0.044715, %v8661_v32  ;;  %v3518_v37 = vadd.f32 1.0, %v6225_v8  ;;  %v8695_v15 = vmul.f32 0.5, %v8456_v23  ;;  %v2775_v25 = vadd.f32 %v2519_v11, %v8508_v12  ;;  %v6713_v11 = vld [vmem:[%s7030_s23 + $0xb0] sm:$0xff] }
 0x19f   : > { %1248 = vmatprep.mubr.f32.mxu1 %v6710_v45  ;;  %v3775_v63 = vmul.f32 %v3519_v52, %v8599_v27  ;;  %v8701_v41 = vadd.f32 %v796_v2, %v7925_v4  ;;  %v3022_v20 = vmul.f32 0.7978846, %v2766_v3  ;;  %v2518_v19 = vmul.f32 %v8574_v49, %v8498_v22  ;;  %v6714_v3 = vld [vmem:[%s7030_s23 + $0xc8] sm:$0xff] }
 0x1a0   : > { %v8706_v16 = vmul.f32 %v2038_v34, %v8648_v58  ;;  %v3774_v23 = vmul.f32 %v3518_v37, %v8613_v5  ;;  %v8710_v46 = vadd.f32 %v798_v38, %v7954_v14  ;;  %v3031_v61 = vmul.f32 0.7978846, %v2775_v25 }
 0x1a1   : > { %4340 = vmatprep.mubr.f32.mxu0 %v3775_v63  ;;  %v2046_v27 = vmul.f32 0.044715, %v8686_v29  ;;  %v2047_v60 = vmul.f32 0.044715, %v8689_v26  ;;  %6232 = vtanh.f32 %v3022_v20  ;;  %v2774_v49 = vadd.f32 %v2518_v19, %v8498_v22 }
 0x1a2   : > { %1249 = vmatmul.mubr.f32.gmra.mrb[148].mxu1 %v6711_v43  ;;  %v8717_v18 = vmul.f32 %v2039_v24, %v8661_v32  ;;  %4341 = vmatmul.mubr.f32.gmra.mrb[22].mxu0 %v3774_v23  ;;  %v8720_v5 = vmul.f32 0.5, %v8508_v12  ;;  %6234 = vtanh.f32 %v3031_v61  ;;  %v2527_v48 = vmul.f32 %v8632_v10, %v8555_v56  ;;  %v808_v10 = vpop.f32.mrb[44].mxu1 }
 0x1a3   : > { %1254 = vmatprep.mubr.f32.mxu1 %v6712_v13  ;;  %v6227_v9 = vpop.eup %6226  ;;  %v2054_v57 = vmul.f32 0.044715, %v8701_v41  ;;  %v8727_v54 = vmul.f32 0.5, %v8498_v22  ;;  %v3030_v55 = vmul.f32 0.7978846, %v2774_v49  ;;  %v2526_v30 = vmul.f32 %v8623_v62, %v8551_v42  ;;  %v810_v62 = vpop.f32.mrb[45].mxu1 }
 0x1a4   : > { %v6229_v44 = vpop.eup %6228  ;;  %v3527_v12 = vadd.f32 1.0, %v6227_v9  ;;  %v2055_v35 = vmul.f32 0.044715, %v8710_v46  ;;  %v8733_v40 = vadd.f32 %v802_v39, %v7925_v4  ;;  %v2783_v31 = vadd.f32 %v2527_v48, %v8555_v56  ;;  %v814_v20 = vpop.f32.mrb[46].mxu1  ;;  %v6716_v13 = vld [vmem:[%s7030_s23 + $0xd8] sm:$0xff] }
 0x1a5   : > { %v6231_v6 = vpop.eup %6230  ;;  %v8737_v34 = vmul.f32 %v2046_v27, %v8686_v29  ;;  %v8740_v22 = vmul.f32 %v2047_v60, %v8689_v26  ;;  %v3526_v2 = vadd.f32 1.0, %v6229_v44  ;;  %6236 = vtanh.f32 %v3030_v55  ;;  %v816_v61 = vpop.f32.mrb[47].mxu1  ;;  %v6715_v27 = vld [vmem:[%s7030_s23 + $0xc0] sm:$0xff] }
 0x1a6   : > { %1255 = vmatmul.mubr.f32.gmra.mrb[150].mxu1 %v6713_v11  ;;  %v3783_v8 = vmul.f32 %v3527_v12, %v8658_v17  ;;  %v3535_v52 = vadd.f32 1.0, %v6231_v6  ;;  %v8745_v38 = vadd.f32 %v804_v47, %v7954_v14  ;;  %v8748_v21 = vmul.f32 0.5, %v8555_v56  ;;  %v820_v44 = vpop.f32.mrb[48].mxu1  ;;  %v6718_v11 = vld [vmem:[%s7030_s23 + $0xe8] sm:$0xff] }
 0x1a7   : > { %1260 = vmatprep.mubr.f32.mxu1 %v6714_v3  ;;  %v3782_v24 = vmul.f32 %v3526_v2, %v8664_v36  ;;  %v8753_v37 = vmul.f32 %v2054_v57, %v8701_v41  ;;  %v3039_v45 = vmul.f32 0.7978846, %v2783_v31  ;;  %v2782_v25 = vadd.f32 %v2526_v30, %v8551_v42  ;;  %v6717_v31 = vld [vmem:[%s7030_s23 + $0xd0] sm:$0xff] }
 0x1a8   : > { %4346 = vmatprep.mubr.f32.mxu0 %v3783_v8  ;;  %v8757_v17 = vmul.f32 %v2055_v35, %v8710_v46  ;;  %v3791_v63 = vmul.f32 %v3535_v52, %v8671_v50  ;;  %v2062_v56 = vmul.f32 0.044715, %v8733_v40  ;;  %v2535_v19 = vmul.f32 %v8654_v7, %v8588_v33 }
 0x1a9   : > { %4347 = vmatmul.mubr.f32.gmra.mrb[24].mxu0 %v3782_v24  ;;  %v8764_v36 = vadd.f32 %v808_v10, %v7925_v4  ;;  %6238 = vtanh.f32 %v3039_v45  ;;  %v8767_v23 = vmul.f32 0.5, %v8551_v42  ;;  %v3038_v39 = vmul.f32 0.7978846, %v2782_v25  ;;  %v822_v10 = vpop.f32.mrb[49].mxu1 }
 0x1aa   : > { %1261 = vmatmul.mubr.f32.gmra.mrb[152].mxu1 %v6715_v27  ;;  %4352 = vmatprep.mubr.f32.mxu0 %v3791_v63  ;;  %v2063_v50 = vmul.f32 0.044715, %v8745_v38  ;;  %v8772_v60 = vadd.f32 %v810_v62, %v7954_v14  ;;  %v2791_v7 = vadd.f32 %v2535_v19, %v8588_v33  ;;  %v2534_v47 = vmul.f32 %v8635_v53, %v8558_v51 }
 0x1ab   : > { %v6233_v43 = vpop.eup %6232  ;;  %6240 = vtanh.f32 %v3038_v39  ;;  %v8778_v42 = vadd.f32 %v814_v20, %v7925_v4  ;;  %v8781_v49 = vmul.f32 0.5, %v8588_v33  ;;  %1266 = vmatprep.mubr.f32.mxu1 %v6716_v13  ;;  %v2543_v48 = vmul.f32 %v8679_v1, %v8610_v59  ;;  %v826_v20 = vpop.f32.mrb[50].mxu1 }
 0x1ac   : > { %v6235_v9 = vpop.eup %6234  ;;  %v3534_v57 = vadd.f32 1.0, %v6233_v43  ;;  %v8787_v55 = vadd.f32 %v816_v61, %v7954_v14  ;;  %v3047_v53 = vmul.f32 0.7978846, %v2791_v7  ;;  %v2790_v30 = vadd.f32 %v2534_v47, %v8558_v51  ;;  %v828_v39 = vpop.f32.mrb[51].mxu1  ;;  %v6719_v61 = vld [vmem:[%s7030_s23 + $0xe0] sm:$0xff]  ;;  %v6720_v47 = vld [vmem:[%s7030_s23 + $0xf8] sm:$0xff] }
 0x1ad   : > { %v3543_v12 = vadd.f32 1.0, %v6235_v9  ;;  %v2070_v35 = vmul.f32 0.044715, %v8764_v36  ;;  %v8792_v33 = vadd.f32 %v820_v44, %v7925_v4  ;;  %v2799_v1 = vadd.f32 %v2543_v48, %v8610_v59  ;;  %v832_v44 = vpop.f32.mrb[52].mxu1 }
 0x1ae   : > { %1267 = vmatmul.mubr.f32.gmra.mrb[154].mxu1 %v6717_v31  ;;  %v3790_v6 = vmul.f32 %v3534_v57, %v8695_v15  ;;  %v2071_v2 = vmul.f32 0.044715, %v8772_v60  ;;  %6242 = vtanh.f32 %v3047_v53  ;;  %v3046_v62 = vmul.f32 0.7978846, %v2790_v30  ;;  %v834_v31 = vpop.f32.mrb[53].mxu1 }
 0x1af   : > { %1272 = vmatprep.mubr.f32.mxu1 %v6718_v11  ;;  %v6237_v8 = vpop.eup %6236  ;;  %v8800_v52 = vmul.f32 %v2062_v56, %v8733_v40  ;;  %v3799_v3 = vmul.f32 %v3543_v12, %v8720_v5  ;;  %v2078_v24 = vmul.f32 0.044715, %v8778_v42  ;;  %v3055_v45 = vmul.f32 0.7978846, %v2799_v1  ;;  %v6721_v1 = vld [vmem:[%s7030_s23 + $0xf0] sm:$0xff] }
 0x1b0   : > { %4353 = vmatmul.mubr.f32.gmra.mrb[26].mxu0 %v3790_v6  ;;  %v3542_v25 = vadd.f32 1.0, %v6237_v8  ;;  %v2079_v15 = vmul.f32 0.044715, %v8787_v55  ;;  %6244 = vtanh.f32 %v3046_v62  ;;  %v2542_v63 = vmul.f32 %v8668_v0, %v8596_v28  ;;  %v6722_v62 = vld [vmem:[%s7030_s23 + $0x108] sm:$0xff] }
 0x1b1   : > { %v8808_v19 = vmul.f32 %v2063_v50, %v8745_v38  ;;  %4358 = vmatprep.mubr.f32.mxu0 %v3799_v3  ;;  %v8811_v56 = vmul.f32 0.5, %v8558_v51  ;;  %v2086_v5 = vmul.f32 0.044715, %v8792_v33  ;;  %6246 = vtanh.f32 %v3055_v45 }
 0x1b2   : > { %1273 = vmatmul.mubr.f32.gmra.mrb[156].mxu1 %v6719_v61  ;;  %v3798_v27 = vmul.f32 %v3542_v25, %v8727_v54  ;;  %v8817_v7 = vmul.f32 %v2070_v35, %v8764_v36  ;;  %v8820_v0 = vmul.f32 %v2071_v2, %v8772_v60  ;;  %v2798_v50 = vadd.f32 %v2542_v63, %v8596_v28  ;;  %v838_v63 = vpop.f32.mrb[54].mxu1 }
 0x1b3   : > { %1278 = vmatprep.mubr.f32.mxu1 %v6720_v47  ;;  %v6239_v51 = vpop.eup %6238  ;;  %v8825_v43 = vmul.f32 %v2078_v24, %v8778_v42  ;;  %v8828_v13 = vadd.f32 %v822_v10, %v7954_v14  ;;  %v8831_v54 = vmul.f32 0.5, %v8610_v59  ;;  %v2551_v48 = vmul.f32 %v8717_v18, %v8661_v32  ;;  %v840_v61 = vpop.f32.mrb[55].mxu1  ;;  %v6724_v47 = vld [vmem:[%s7030_s23 + $0x118] sm:$0xff] }
 0x1b4   : > { %4359 = vmatmul.mubr.f32.gmra.mrb[28].mxu0 %v3798_v27  ;;  %v3551_v9 = vadd.f32 1.0, %v6239_v51  ;;  %v8836_v57 = vmul.f32 %v2079_v15, %v8787_v55  ;;  %v3054_v53 = vmul.f32 0.7978846, %v2798_v50  ;;  %v2550_v30 = vmul.f32 %v8706_v16, %v8648_v58  ;;  %v6723_v27 = vld [vmem:[%s7030_s23 + $0x100] sm:$0xff] }
 0x1b5   : > { %v6241_v12 = vpop.eup %6240  ;;  %v8841_v35 = vmul.f32 %v2086_v5, %v8792_v33  ;;  %v8844_v59 = vmul.f32 0.5, %v8596_v28  ;;  %v8847_v18 = vadd.f32 %v826_v20, %v7925_v4  ;;  %v2807_v10 = vadd.f32 %v2551_v48, %v8661_v32 }
 0x1b6   : > { %1279 = vmatmul.mubr.f32.gmra.mrb[158].mxu1 %v6721_v1  ;;  %v3807_v6 = vmul.f32 %v3551_v9, %v8748_v21  ;;  %v3550_v2 = vadd.f32 1.0, %v6241_v12  ;;  %6248 = vtanh.f32 %v3054_v53  ;;  %v8853_v16 = vadd.f32 %v828_v39, %v7954_v14 }
 0x1b7   : > { %1284 = vmatprep.mubr.f32.mxu1 %v6722_v62  ;;  %v2087_v28 = vmul.f32 0.044715, %v8828_v13  ;;  %v3063_v11 = vmul.f32 0.7978846, %v2807_v10  ;;  %v2806_v8 = vadd.f32 %v2550_v30, %v8648_v58  ;;  %v8859_v3 = vadd.f32 %v832_v44, %v7925_v4 }
 0x1b8   : > { %v6243_v24 = vpop.eup %6242  ;;  %4364 = vmatprep.mubr.f32.mxu0 %v3807_v6  ;;  %v3806_v21 = vmul.f32 %v3550_v2, %v8767_v23  ;;  %v8863_v45 = vmul.f32 0.5, %v8661_v32  ;;  %v2559_v25 = vmul.f32 %v8740_v22, %v8689_v26  ;;  %v2558_v15 = vmul.f32 %v8737_v34, %v8686_v29 }
 0x1b9   : > { %v3559_v20 = vadd.f32 1.0, %v6243_v24  ;;  %6250 = vtanh.f32 %v3063_v11  ;;  %v3062_v5 = vmul.f32 0.7978846, %v2806_v8  ;;  %v8870_v39 = vadd.f32 %v834_v31, %v7954_v14  ;;  %v844_v31 = vpop.f32.mrb[56].mxu1  ;;  %v6725_v11 = vld [vmem:[%s7030_s23 + $0x110] sm:$0xff]  ;;  %v6726_v24 = vld [vmem:[%s7030_s23 + $0x128] sm:$0xff] }
 0x1ba   : > { %1285 = vmatmul.mubr.f32.gmra.mrb[160].mxu1 %v6723_v27  ;;  %v6245_v23 = vpop.eup %6244  ;;  %4365 = vmatmul.mubr.f32.gmra.mrb[30].mxu0 %v3806_v21  ;;  %v2094_v32 = vmul.f32 0.044715, %v8847_v18  ;;  %v2095_v22 = vmul.f32 0.044715, %v8853_v16  ;;  %v2815_v50 = vadd.f32 %v2559_v25, %v8689_v26  ;;  %v2814_v34 = vadd.f32 %v2558_v15, %v8686_v29  ;;  %v846_v62 = vpop.f32.mrb[57].mxu1 }
 0x1bb   : > { %1290 = vmatprep.mubr.f32.mxu1 %v6724_v47  ;;  %v6247_v51 = vpop.eup %6246  ;;  %v3815_v48 = vmul.f32 %v3559_v20, %v8781_v49  ;;  %v3558_v9 = vadd.f32 1.0, %v6245_v23  ;;  %6252 = vtanh.f32 %v3062_v5  ;;  %v2102_v53 = vmul.f32 0.044715, %v8859_v3  ;;  %v6728_v47 = vld [vmem:[%s7030_s23 + $0x138] sm:$0xff] }
 0x1bc   : > { %v8881_v30 = vmul.f32 %v2087_v28, %v8828_v13  ;;  %v3567_v44 = vadd.f32 1.0, %v6247_v51  ;;  %v3071_v12 = vmul.f32 0.7978846, %v2815_v50  ;;  %v3070_v10 = vmul.f32 0.7978846, %v2814_v34 }
 0x1bd   : > { %4370 = vmatprep.mubr.f32.mxu0 %v3815_v48  ;;  %v3814_v1 = vmul.f32 %v3558_v9, %v8811_v56  ;;  %v8885_v6 = vmul.f32 0.5, %v8648_v58  ;;  %v2103_v49 = vmul.f32 0.044715, %v8870_v39  ;;  %v8889_v2 = vadd.f32 %v838_v63, %v7925_v4 }
 0x1be   : > { %1291 = vmatmul.mubr.f32.gmra.mrb[162].mxu1 %v6725_v11  ;;  %v3823_v28 = vmul.f32 %v3567_v44, %v8831_v54  ;;  %6254 = vtanh.f32 %v3071_v12  ;;  %v8894_v8 = vadd.f32 %v840_v61, %v7954_v14  ;;  %v2567_v56 = vmul.f32 %v8757_v17, %v8710_v46  ;;  %v463_v44 = vld [vmem:[%s12518_s1 + $0x4b8] sm:$0xff] }
 0x1bf   : > { %1296 = vmatprep.mubr.f32.mxu1 %v6726_v24  ;;  %4371 = vmatmul.mubr.f32.gmra.mrb[32].mxu0 %v3814_v1  ;;  %v8900_v58 = vmul.f32 %v2094_v32, %v8847_v18  ;;  %v8903_v21 = vmul.f32 0.5, %v8689_v26  ;;  %6256 = vtanh.f32 %v3070_v10  ;;  %v2566_v54 = vmul.f32 %v8753_v37, %v8701_v41  ;;  %v850_v26 = vpop.f32.mrb[58].mxu1  ;;  %v6727_v32 = vld [vmem:[%s7030_s23 + $0x120] sm:$0xff]  ;;  %v6729_v24 = vld [vmem:[%s7030_s23 + $0x130] sm:$0xff] }
 0x1c0   : > { %v6249_v25 = vpop.eup %6248  ;;  %4376 = vmatprep.mubr.f32.mxu0 %v3823_v28  ;;  %v8908_v15 = vmul.f32 %v2095_v22, %v8853_v16  ;;  %v8911_v17 = vmul.f32 %v2102_v53, %v8859_v3  ;;  %v8914_v63 = vmul.f32 0.5, %v8686_v29  ;;  %v2823_v20 = vadd.f32 %v2567_v56, %v8710_v46  ;;  %v8923_v23 = vpop.f32.mrb[59].mxu1 }
 0x1c1   : > { %v3566_v5 = vadd.f32 1.0, %v6249_v25  ;;  %v8918_v61 = vmul.f32 %v2103_v49, %v8870_v39  ;;  %v2822_v37 = vadd.f32 %v2566_v54, %v8701_v41  ;;  %v2575_v27 = vmul.f32 %v8808_v19, %v8745_v38 }
 0x1c2   : > { %1297 = vmatmul.mubr.f32.gmra.mrb[164].mxu1 %v6727_v32  ;;  %v2110_v22 = vmul.f32 0.044715, %v8889_v2  ;;  %v8928_v29 = vmul.f32 0.044715, %v8894_v8  ;;  %v3079_v50 = vmul.f32 0.7978846, %v2823_v20  ;;  %v2574_v34 = vmul.f32 %v8800_v52, %v8733_v40 }
 0x1c3   : > { %1302 = vmatprep.mubr.f32.mxu1 %v6728_v47  ;;  %v6251_v51 = vpop.eup %6250  ;;  %v3822_v48 = vmul.f32 %v3566_v5, %v8844_v59  ;;  %v3078_v9 = vmul.f32 0.7978846, %v2822_v37  ;;  %v8935_v19 = vadd.f32 %v844_v31, %v7925_v4  ;;  %v2831_v53 = vadd.f32 %v2575_v27, %v8745_v38  ;;  %v471_v52 = vld [vmem:[%s12518_s1 + $0x4f8] sm:$0xff]  ;;  %v8950_v31 = vpop.f32.mrb[60].mxu1  ;;  %v6730_v5 = vld [vmem:[%s7030_s23 + $0x148] sm:$0xff] }
 0x1c4   : > { %v3575_v12 = vadd.f32 1.0, %v6251_v51  ;;  %v8945_v10 = vmul.f32 0.5, %v8710_v46  ;;  %6258 = vtanh.f32 %v3079_v50  ;;  %v8948_v59 = vadd.f32 %v846_v62, %v7954_v14  ;;  %v462_v46 = vld [vmem:[%s12518_s1 + $0x4b0] sm:$0xff]  ;;  %v8962_v56 = vpop.f32.mrb[61].mxu1  ;;  %v4051_v50 = vld [vmem:[#allocation2 + $0x368] sm:$0xff] }
 0x1c5   : > { %v6253_v1 = vpop.eup %6252  ;;  %4377 = vmatmul.mubr.f32.gmra.mrb[34].mxu0 %v3822_v48  ;;  %6260 = vtanh.f32 %v3078_v9  ;;  %v3087_v49 = vmul.f32 0.7978846, %v2831_v53  ;;  %v2830_v11 = vadd.f32 %v2574_v34, %v8733_v40  ;;  %v8954_v28 = vadd.f32 %v850_v26, %v7925_v4  ;;  %v470_v62 = vld [vmem:[%s12518_s1 + $0x4f0] sm:$0xff]  ;;  %v4053_v34 = vld [vmem:[#allocation2 + $0x378] sm:$0xff]  ;;  %v8978_v53 = vpop.f32.mrb[62].mxu1 }
 0x1c6   : > { %1303 = vmatmul.mubr.f32.gmra.mrb[166].mxu1 %v6729_v24  ;;  %v3831_v54 = vmul.f32 %v3575_v12, %v8863_v45  ;;  %v3574_v25 = vadd.f32 1.0, %v6253_v1  ;;  %v8967_v20 = vmul.f32 0.5, %v8701_v41  ;;  %v5617_v26 = vpack.c.bf16 %v471_v52, %v463_v44  ;;  %v4052_v9 = vld [vmem:[#allocation2 + $0x370] sm:$0xff]  ;;  %v8983_v1 = vpop.f32.mrb[63].mxu1 }
 0x1c7   : > { %1308 = vmatprep.mubr.f32.mxu1 %v6730_v5  ;;  %v8971_v37 = vmul.f32 %v2110_v22, %v8889_v2  ;;  %v2118_v27 = vmul.f32 0.044715, %v8935_v19  ;;  %6262 = vtanh.f32 %v3087_v49  ;;  %v3086_v32 = vmul.f32 0.7978846, %v2830_v11  ;;  %v4050_v22 = vld [vmem:[#allocation2 + $0x360] sm:$0xff] }
 0x1c8   : > { %v6255_v47 = vpop.eup %6254  ;;  %4382 = vmatprep.mubr.f32.mxu0 %v3831_v54  ;;  %v3830_v45 = vmul.f32 %v3574_v25, %v8885_v6  ;;  %v2119_v41 = vmul.f32 0.044715, %v8948_v59  ;;  %5618 = vmatprep.subr.bf16.mxu1 %v5617_v26  ;;  %v2583_v51 = vmul.f32 %v8820_v0, %v8772_v60  ;;  %v5619_v48 = vpack.c.bf16 %v470_v62, %v462_v46  ;;  %v6731_v49 = vld [vmem:[%s7030_s23 + $0x140] sm:$0xff]  ;;  %v6732_v26 = vld [vmem:[%s7030_s23 + $0x158] sm:$0xff] }
 0x1c9   : > { %v6257_v44 = vpop.eup %6256  ;;  %v3583_v52 = vadd.f32 1.0, %v6255_v47  ;;  %6264 = vtanh.f32 %v3086_v32  ;;  %v2126_v12 = vmul.f32 0.044715, %v8954_v28  ;;  %v2582_v6 = vmul.f32 %v8817_v7, %v8764_v36 }
 0x1ca   : > { %1309 = vmatmul.mubr.f32.gmra.mrb[168].mxu1 %v6731_v49  ;;  %4383 = vmatmul.mubr.f32.gmra.mrb[36].mxu0 %v3830_v45  ;;  %v3582_v0 = vadd.f32 1.0, %v6257_v44  ;;  %v8988_v11 = vadd.f32 %v8923_v23, %v7954_v14  ;;  %v2839_v46 = vadd.f32 %v2583_v51, %v8772_v60  ;;  %v5753_v62 = vpack.c.bf16 %v4053_v34, %v4051_v50  ;;  %v9003_v50 = vpop.f32.mrb[64].mxu1 }
 0x1cb   : > { %5620 = vmatpush1.bf16.msra.mxu1 %v5619_v48  ;;  %v3839_v24 = vmul.f32 %v3583_v52, %v8903_v21  ;;  %v8994_v54 = vmul.f32 %v8928_v29, %v8894_v8  ;;  %v2838_v7 = vadd.f32 %v2582_v6, %v8764_v36  ;;  %v5755_v25 = vpack.c.bf16 %v4052_v9, %v4050_v22  ;;  %v6733_v48 = vld [vmem:[%s7030_s23 + $0x150] sm:$0xff] }
 0x1cc   : > { %1314 = vmatprep.mubr.f32.mxu1 %v6732_v26  ;;  %v3838_v5 = vmul.f32 %v3582_v0, %v8914_v63  ;;  %v1807_v23 = vmul.f32 0.5, %v8745_v38  ;;  %v9001_v32 = vmul.f32 0.5, %v8733_v40  ;;  %v3095_v47 = vmul.f32 0.7978846, %v2839_v46  ;;  %5754 = vmatprep.subr.bf16.mxu0 %v5753_v62  ;;  %v9013_v63 = vpop.f32.mrb[65].mxu1 }
 0x1cd   : > { %4388 = vmatprep.mubr.f32.mxu0 %v3839_v24  ;;  %v9006_v21 = vmul.f32 %v2118_v27, %v8935_v19  ;;  %v9009_v29 = vmul.f32 %v2119_v41, %v8948_v59  ;;  %v3094_v34 = vmul.f32 0.7978846, %v2838_v7  ;;  %5756 = vmatpush1.bf16.msra.mxu0 %v5755_v25  ;;  %v2591_v38 = vmul.f32 %v8836_v57, %v8787_v55  ;;  %v479_v41 = vld [vmem:[%s12518_s1 + $0x538] sm:$0xff]  ;;  %v9041_v46 = vpop.f32.mrb[66].mxu1 }
 0x1ce   : > { %v6259_v40 = vpop.eup %6258  ;;  %4389 = vmatmul.mubr.f32.gmra.mrb[38].mxu0 %v3838_v5  ;;  %v9016_v45 = vmul.f32 %v2126_v12, %v8954_v28  ;;  %v2127_v51 = vmul.f32 0.044715, %v8988_v11  ;;  %6266 = vtanh.f32 %v3095_v47  ;;  %v2590_v27 = vmul.f32 %v8825_v43, %v8778_v42  ;;  %v487_v57 = vld [vmem:[%s12518_s1 + $0x578] sm:$0xff]  ;;  %1315 = vmatmul.mubr.f32.gmra.mrb[170].mxu1 %v6733_v48  ;;  %v6734_v12 = vld [vmem:[%s7030_s23 + $0x168] sm:$0xff]  ;;  %v9054_v26 = vpop.f32.mrb[67].mxu1  ;;  %v4056_v48 = vld [vmem:[#allocation2 + $0x390] sm:$0xff] }
 0x1cf   : > { %v6261_v22 = vpop.eup %6260  ;;  %v3591_v9 = vadd.f32 1.0, %v6259_v40  ;;  %v9029_v44 = vmul.f32 0.5, %v8772_v60  ;;  %6268 = vtanh.f32 %v3094_v34  ;;  %v2847_v52 = vadd.f32 %v2591_v38, %v8787_v55  ;;  %1320 = vmatprep.mubr.f32.mxu1 %v6734_v12  ;;  %v4055_v34 = vld [vmem:[#allocation2 + $0x388] sm:$0xff]  ;;  %v6735_v38 = vld [vmem:[%s7030_s23 + $0x160] sm:$0xff]  ;;  %v9070_v12 = vpop.f32.mrb[68].mxu1 }
 0x1d0   : > { %v3590_v43 = vadd.f32 1.0, %v6261_v22  ;;  %v9034_v6 = vmul.f32 0.5, %v8764_v36  ;;  %v9038_v49 = vadd.f32 %v8950_v31, %v7925_v4  ;;  %v2846_v0 = vadd.f32 %v2590_v27, %v8778_v42  ;;  %v478_v36 = vld [vmem:[%s12518_s1 + $0x530] sm:$0xff] }
 0x1d1   : > { %v6263_v60 = vpop.eup %6262  ;;  %v3847_v62 = vmul.f32 %v3591_v9, %v8945_v10  ;;  %v9046_v24 = vadd.f32 %v8962_v56, %v7954_v14  ;;  %v3103_v7 = vmul.f32 0.7978846, %v2847_v52  ;;  %v5621_v25 = vpack.c.bf16 %v487_v57, %v479_v41  ;;  %v486_v31 = vld [vmem:[%s12518_s1 + $0x570] sm:$0xff]  ;;  %v4054_v57 = vld [vmem:[#allocation2 + $0x380] sm:$0xff] }
 0x1d2   : > { %v3846_v5 = vmul.f32 %v3590_v43, %v8967_v20  ;;  %v3599_v47 = vadd.f32 1.0, %v6263_v60  ;;  %v9058_v10 = vmul.f32 %v2127_v51, %v8988_v11  ;;  %v3102_v56 = vmul.f32 0.7978846, %v2846_v0  ;;  %1321 = vmatmul.mubr.f32.gmra.mrb[172].mxu1 %v6735_v38  ;;  %v4057_v51 = vld [vmem:[#allocation2 + $0x398] sm:$0xff]  ;;  %v9078_v0 = vpop.f32.mrb[69].mxu1 }
 0x1d3   : > { %v6265_v40 = vpop.eup %6264  ;;  %4394 = vmatprep.mubr.f32.mxu0 %v3847_v62  ;;  %v9062_v27 = vmul.f32 0.5, %v8787_v55  ;;  %6270 = vtanh.f32 %v3103_v7  ;;  %v9066_v41 = vadd.f32 %v8978_v53, %v7925_v4  ;;  %5622 = vmatprep.subr.bf16.mxu1 %v5621_v25  ;;  %v2599_v20 = vmul.f32 %v8881_v30, %v8828_v13  ;;  %v6736_v55 = vld [vmem:[%s7030_s23 + $0x178] sm:$0xff]  ;;  %v12749_v7 = vld [vmem:[#allocation15_spill] sm:$0xff] }
 0x1d4   : > { %4395 = vmatmul.mubr.f32.gmra.mrb[40].mxu0 %v3846_v5  ;;  %v3855_v22 = vmul.f32 %v3599_v47, %v1807_v23  ;;  %v3598_v9 = vadd.f32 1.0, %v6265_v40  ;;  %6272 = vtanh.f32 %v3102_v56  ;;  %v5623_v52 = vpack.c.bf16 %v486_v31, %v478_v36  ;;  %1326 = vmatprep.mubr.f32.mxu1 %v6736_v55  ;;  %v9099_v40 = vpop.f32.mrb[70].mxu1 }
 0x1d5   : > { %v2134_v4 = vmul.f32 0.044715, %v9038_v49  ;;  %v2135_v53 = vmul.f32 0.044715, %v9046_v24  ;;  %v2855_v43 = vadd.f32 %v2599_v20, %v8828_v13  ;;  %v2598_v30 = vmul.f32 %v8841_v35, %v8792_v33  ;;  %v6737_v35 = vld [vmem:[%s7030_s23 + $0x170] sm:$0xff] }
 0x1d6   : > { %4400 = vmatprep.mubr.f32.mxu0 %v3855_v22  ;;  %v3854_v23 = vmul.f32 %v3598_v9, %v9001_v32  ;;  %5624 = vmatpush1.bf16.msra.mxu1 %v5623_v52  ;;  %v5757_v60 = vpack.c.bf16 %v4057_v51, %v4055_v34  ;;  %v5759_v62 = vpack.c.bf16 %v4056_v48, %v4054_v57  ;;  %v580_v25 = vsub.s32 2, %v12749_v7  ;;  %v6738_v34 = vld [vmem:[%s12519_s2] sm:$0xff]  ;;  %v6739_v22 = vld [vmem:[%s7030_s23 + $0x188] sm:$0xff]  ;;  %v9104_v9 = vpop.f32.mrb[71].mxu1 }
 0x1d7   : > { %v9084_v36 = vadd.f32 %v8983_v1, %v7954_v14  ;;  %v3111_v31 = vmul.f32 0.7978846, %v2855_v43  ;;  %v2854_v5 = vadd.f32 %v2598_v30, %v8792_v33  ;;  %v584_v47 = vsub.s32 3, %v12749_v7  ;;  %1327 = vmatmul.mubr.f32.gmra.mrb[174].mxu1 %v6737_v35 }
 0x1d8   : > { %v6267_v56 = vpop.eup %6266  ;;  %4401 = vmatmul.mubr.f32.gmra.mrb[42].mxu0 %v3854_v23  ;;  %v2142_v32 = vmul.f32 0.044715, %v9066_v41  ;;  %5758 = vmatprep.subr.bf16.mxu0 %v5757_v60  ;;  %v9093_v38 = vrot.slane %v6738_v34, %v580_v25  ;;  %v2607_v14 = vmul.f32 %v8908_v15, %v8853_v16  ;;  %v2606_v1 = vmul.f32 %v8900_v58, %v8847_v18  ;;  %v495_v60 = vld [vmem:[%s12518_s1 + $0x5b8] sm:$0xff] }
 0x1d9   : > { %v6269_v20 = vpop.eup %6268  ;;  %v3607_v51 = vadd.f32 1.0, %v6267_v56  ;;  %6274 = vtanh.f32 %v3111_v31  ;;  %v3110_v57 = vmul.f32 0.7978846, %v2854_v5  ;;  %5760 = vmatpush1.bf16.msra.mxu0 %v5759_v62  ;;  %v9101_v48 = vrot.slane %v6738_v34, %v584_v47  ;;  %1332 = vmatprep.mubr.f32.mxu1 %v6739_v22  ;;  %v6740_v62 = vld [vmem:[%s7030_s23 + $0x180] sm:$0xff]  ;;  %v6741_v47 = vld [vmem:[%s7030_s23 + $0x198] sm:$0xff] }
 0x1da   : > { %v3606_v52 = vadd.f32 1.0, %v6269_v20  ;;  %v9108_v15 = vadd.f32 %v9003_v50, %v9093_v38  ;;  %v2863_v58 = vadd.f32 %v2607_v14, %v8853_v16  ;;  %v2862_v55 = vadd.f32 %v2606_v1, %v8847_v18  ;;  %v503_v50 = vld [vmem:[%s12518_s1 + $0x5f8] sm:$0xff] }
 0x1db   : > { %v3863_v43 = vmul.f32 %v3607_v51, %v9029_v44  ;;  %v2143_v30 = vmul.f32 0.044715, %v9084_v36  ;;  %6276 = vtanh.f32 %v3110_v57  ;;  %v9116_v23 = vadd.f32 %v9013_v63, %v9101_v48  ;;  %1333 = vmatmul.mubr.f32.gmra.mrb[176].mxu1 %v6740_v62  ;;  %v9131_v63 = vpop.f32.mrb[72].mxu1 }
 0x1dc   : > { %v3862_v25 = vmul.f32 %v3606_v52, %v9034_v6  ;;  %v1896_v44 = vmul.f32 0.044715, %v9108_v15  ;;  %v3119_v31 = vmul.f32 0.7978846, %v2863_v58  ;;  %v9129_v5 = vadd.f32 %v9041_v46, %v9093_v38  ;;  %1338 = vmatprep.mubr.f32.mxu1 %v6741_v47  ;;  %v9150_v57 = vpop.f32.mrb[73].mxu1  ;;  %v4061_v58 = vld [vmem:[#allocation2 + $0x3b8] sm:$0xff] }
 0x1dd   : > { %v6271_v35 = vpop.eup %6270  ;;  %4406 = vmatprep.mubr.f32.mxu0 %v3863_v43  ;;  %v9135_v56 = vmul.f32 %v2134_v4, %v9038_v49  ;;  %v9138_v34 = vmul.f32 %v2135_v53, %v9046_v24  ;;  %v1822_v6 = vmul.f32 0.5, %v8778_v42  ;;  %v3118_v14 = vmul.f32 0.7978846, %v2862_v55  ;;  %v494_v4 = vld [vmem:[%s12518_s1 + $0x5b0] sm:$0xff]  ;;  %v4058_v55 = vld [vmem:[#allocation2 + $0x3a0] sm:$0xff] }
 0x1de   : > { %v6273_v1 = vpop.eup %6272  ;;  %4407 = vmatmul.mubr.f32.gmra.mrb[44].mxu0 %v3862_v25  ;;  %v3615_v46 = vadd.f32 1.0, %v6271_v35  ;;  %v9142_v20 = vmul.f32 %v2142_v32, %v9066_v41  ;;  %6278 = vtanh.f32 %v3119_v31  ;;  %v5625_v51 = vpack.c.bf16 %v503_v50, %v495_v60  ;;  %v502_v53 = vld [vmem:[%s12518_s1 + $0x5f0] sm:$0xff]  ;;  %v4059_v32 = vld [vmem:[#allocation2 + $0x3a8] sm:$0xff] }
 0x1df   : > { %v3614_v42 = vadd.f32 1.0, %v6273_v1  ;;  %v1831_v22 = vmul.f32 0.5, %v8828_v13  ;;  %v2152_v52 = vmul.f32 %v1896_v44, %v9108_v15  ;;  %6280 = vtanh.f32 %v3118_v14  ;;  %v6742_v43 = vld [vmem:[%s7030_s23 + $0x190] sm:$0xff]  ;;  %v9161_v13 = vpop.f32.mrb[74].mxu1  ;;  %v6743_v44 = vld [vmem:[%s7030_s23 + $0x1a8] sm:$0xff] }
 0x1e0   : > { %1339 = vmatmul.mubr.f32.gmra.mrb[178].mxu1 %v6742_v43  ;;  %v3871_v60 = vmul.f32 %v3615_v46, %v9062_v27  ;;  %v9157_v50 = vmul.f32 %v2143_v30, %v9084_v36  ;;  %v1897_v62 = vmul.f32 0.044715, %v9116_v23  ;;  %v1904_v25 = vmul.f32 0.044715, %v9129_v5  ;;  %5626 = vmatprep.subr.bf16.mxu1 %v5625_v51  ;;  %v4060_v31 = vld [vmem:[#allocation2 + $0x3b0] sm:$0xff]  ;;  %v9170_v14 = vpop.f32.mrb[75].mxu1 }
 0x1e1   : > { %1344 = vmatprep.mubr.f32.mxu1 %v6743_v44  ;;  %v3870_v47 = vmul.f32 %v3614_v42, %v1822_v6  ;;  %v9166_v35 = vadd.f32 %v9054_v26, %v9101_v48  ;;  %v2615_v27 = vmul.f32 %v8918_v61, %v8870_v39  ;;  %v5627_v30 = vpack.c.bf16 %v502_v53, %v494_v4 }
 0x1e2   : > { %4412 = vmatprep.mubr.f32.mxu0 %v3871_v60  ;;  %v1830_v1 = vmul.f32 0.5, %v8792_v33  ;;  %v9174_v46 = vmul.f32 0.5, %v8853_v16  ;;  %v2614_v6 = vmul.f32 %v8911_v17, %v8859_v3  ;;  %v5761_v51 = vpack.c.bf16 %v4061_v58, %v4059_v32  ;;  %v6744_v32 = vld [vmem:[%s7030_s23 + $0x1a0] sm:$0xff] }
 0x1e3   : > { %v6275_v42 = vpop.eup %6274  ;;  %4413 = vmatmul.mubr.f32.gmra.mrb[46].mxu0 %v3870_v47  ;;  %v2408_v26 = vmul.f32 %v2152_v52, %v9108_v15  ;;  %v9180_v61 = vmul.f32 0.5, %v8847_v18  ;;  %v2871_v4 = vadd.f32 %v2615_v27, %v8870_v39  ;;  %5628 = vmatpush1.bf16.msra.mxu1 %v5627_v30  ;;  %v5763_v33 = vpack.c.bf16 %v4060_v31, %v4058_v55  ;;  %v9191_v52 = vpop.f32.mrb[76].mxu1 }
 0x1e4   : > { %v3623_v53 = vadd.f32 1.0, %v6275_v42  ;;  %v9184_v16 = vmul.f32 0.5, %v9108_v15  ;;  %v9187_v43 = vmul.f32 %v1897_v62, %v9116_v23  ;;  %v2870_v17 = vadd.f32 %v2614_v6, %v8859_v3  ;;  %5762 = vmatprep.subr.bf16.mxu0 %v5761_v51  ;;  %1345 = vmatmul.mubr.f32.gmra.mrb[180].mxu1 %v6744_v32  ;;  %v6745_v62 = vld [vmem:[%s7030_s23 + $0x1b8] sm:$0xff]  ;;  %v9200_v44 = vpop.f32.mrb[77].mxu1 }
 0x1e5   : > { %v6277_v18 = vpop.eup %6276  ;;  %v9194_v58 = vmul.f32 %v1904_v25, %v9129_v5  ;;  %v1905_v55 = vmul.f32 0.044715, %v9166_v35  ;;  %v3127_v60 = vmul.f32 0.7978846, %v2871_v4  ;;  %5764 = vmatpush1.bf16.msra.mxu0 %v5763_v33  ;;  %v2623_v31 = vmul.f32 %v8994_v54, %v8894_v8  ;;  %1350 = vmatprep.mubr.f32.mxu1 %v6745_v62  ;;  %v511_v42 = vld [vmem:[%s12518_s1 + $0x638] sm:$0xff]  ;;  %v9223_v33 = vpop.f32.mrb[78].mxu1 }
 0x1e6   : > { %v3879_v47 = vmul.f32 %v3623_v53, %v1831_v22  ;;  %v3622_v27 = vadd.f32 1.0, %v6277_v18  ;;  %v9203_v30 = vmul.f32 0.5, %v8870_v39  ;;  %v3126_v6 = vmul.f32 0.7978846, %v2870_v17  ;;  %v519_v22 = vld [vmem:[%s12518_s1 + $0x678] sm:$0xff] }
 0x1e7   : > { %v2664_v25 = vadd.f32 %v2408_v26, %v9108_v15  ;;  %6282 = vtanh.f32 %v3127_v60  ;;  %v9208_v51 = vadd.f32 %v9070_v12, %v9093_v38  ;;  %v2879_v54 = vadd.f32 %v2623_v31, %v8894_v8  ;;  %v6746_v26 = vld [vmem:[%s7030_s23 + $0x1b0] sm:$0xff]  ;;  %v6747_v60 = vld [vmem:[%s7030_s23 + $0x1c8] sm:$0xff] }
 0x1e8   : > { %v6279_v39 = vpop.eup %6278  ;;  %4418 = vmatprep.mubr.f32.mxu0 %v3879_v47  ;;  %v3878_v4 = vmul.f32 %v3622_v27, %v1830_v1  ;;  %v9218_v15 = vmul.f32 0.5, %v8859_v3  ;;  %6284 = vtanh.f32 %v3126_v6  ;;  %v2622_v12 = vmul.f32 %v8971_v37, %v8889_v2  ;;  %1351 = vmatmul.mubr.f32.gmra.mrb[182].mxu1 %v6746_v26  ;;  %v510_v3 = vld [vmem:[%s12518_s1 + $0x630] sm:$0xff]  ;;  %v9236_v37 = vpop.f32.mrb[79].mxu1  ;;  %v4063_v27 = vld [vmem:[#allocation2 + $0x3c8] sm:$0xff]  ;;  %v4065_v6 = vld [vmem:[#allocation2 + $0x3d8] sm:$0xff] }
 0x1e9   : > { %v6281_v53 = vpop.eup %6280  ;;  %v3631_v17 = vadd.f32 1.0, %v6279_v39  ;;  %v9226_v32 = vmul.f32 %v1905_v55, %v9166_v35  ;;  %v9230_v18 = vadd.f32 %v9078_v0, %v9101_v48  ;;  %v3135_v1 = vmul.f32 0.7978846, %v2879_v54  ;;  %1356 = vmatprep.mubr.f32.mxu1 %v6747_v60  ;;  %v518_v0 = vld [vmem:[%s12518_s1 + $0x670] sm:$0xff]  ;;  %v6749_v60 = vld [vmem:[%s7030_s23 + $0x1d8] sm:$0xff] }
 0x1ea   : > { %4419 = vmatmul.mubr.f32.gmra.mrb[48].mxu0 %v3878_v4  ;;  %v3630_v31 = vadd.f32 1.0, %v6281_v53  ;;  %v9239_v62 = vmul.f32 0.5, %v8894_v8  ;;  %v2878_v55 = vadd.f32 %v2622_v12, %v8889_v2  ;;  %v5629_v47 = vpack.c.bf16 %v519_v22, %v511_v42  ;;  %v4062_v4 = vld [vmem:[#allocation2 + $0x3c0] sm:$0xff]  ;;  %v4064_v8 = vld [vmem:[#allocation2 + $0x3d0] sm:$0xff] }
 0x1eb   : > { %v2920_v54 = vmul.f32 0.7978846, %v2664_v25  ;;  %v3887_v39 = vmul.f32 %v3631_v17, %v9174_v46  ;;  %v1912_v26 = vmul.f32 0.044715, %v9208_v51  ;;  %6286 = vtanh.f32 %v3135_v1  ;;  %v6748_v25 = vld [vmem:[%s7030_s23 + $0x1c0] sm:$0xff]  ;;  %v9255_v46 = vpop.f32.mrb[80].mxu1 }
 0x1ec   : > { %v3886_v53 = vmul.f32 %v3630_v31, %v9180_v61  ;;  %v3134_v12 = vmul.f32 0.7978846, %v2878_v55  ;;  %v9250_v42 = vadd.f32 %v9099_v40, %v9093_v38  ;;  %5630 = vmatprep.subr.bf16.mxu1 %v5629_v47  ;;  %v2631_v22 = vmul.f32 %v9009_v29, %v8948_v59  ;;  %1357 = vmatmul.mubr.f32.gmra.mrb[184].mxu1 %v6748_v25  ;;  %v9265_v31 = vpop.f32.mrb[81].mxu1 }
 0x1ed   : > { %4424 = vmatprep.mubr.f32.mxu0 %v3887_v39  ;;  %v1913_v17 = vmul.f32 0.044715, %v9230_v18  ;;  %v9260_v1 = vadd.f32 %v9104_v9, %v9101_v48  ;;  %v5631_v61 = vpack.c.bf16 %v518_v0, %v510_v3  ;;  %v2630_v40 = vmul.f32 %v9006_v21, %v8935_v19  ;;  %1362 = vmatprep.mubr.f32.mxu1 %v6749_v60 }
 0x1ee   : > { %4425 = vmatmul.mubr.f32.gmra.mrb[50].mxu0 %v3886_v53  ;;  %6288 = vtanh.f32 %v3134_v12  ;;  %v2887_v29 = vadd.f32 %v2631_v22, %v8948_v59  ;;  %v5765_v55 = vpack.c.bf16 %v4065_v6, %v4063_v27  ;;  %v5767_v47 = vpack.c.bf16 %v4064_v8, %v4062_v4  ;;  %v6750_v6 = vld [vmem:[%s7030_s23 + $0x1d0] sm:$0xff] }
 0x1ef   : > { %6290 = vtanh.f32 %v2920_v54  ;;  %v9269_v39 = vmul.f32 %v1912_v26, %v9208_v51  ;;  %v9272_v9 = vmul.f32 0.5, %v8889_v2  ;;  %5632 = vmatpush1.bf16.msra.mxu1 %v5631_v61  ;;  %v2886_v21 = vadd.f32 %v2630_v40, %v8935_v19  ;;  %v9281_v54 = vpop.f32.mrb[82].mxu1  ;;  %v535_v40 = vld [vmem:[%s12518_s1 + $0x6f8] sm:$0xff] }
 0x1f0   : > { %v1920_v3 = vmul.f32 0.044715, %v9250_v42  ;;  %v3143_v0 = vmul.f32 0.7978846, %v2887_v29  ;;  %5766 = vmatprep.subr.bf16.mxu0 %v5765_v55  ;;  %v2639_v53 = vmul.f32 %v9058_v10, %v8988_v11  ;;  %v2638_v27 = vmul.f32 %v9016_v45, %v8954_v28  ;;  %1363 = vmatmul.mubr.f32.gmra.mrb[186].mxu1 %v6750_v6  ;;  %v6751_v10 = vld [vmem:[%s7030_s23 + $0x1e8] sm:$0xff]  ;;  %v6752_v6 = vld [vmem:[%s7030_s23 + $0x1e0] sm:$0xff] }
 0x1f1   : > { %v6283_v2 = vpop.eup %6282  ;;  %v9284_v26 = vmul.f32 %v1913_v17, %v9230_v18  ;;  %v1921_v4 = vmul.f32 0.044715, %v9260_v1  ;;  %v3142_v8 = vmul.f32 0.7978846, %v2886_v21  ;;  %5768 = vmatpush1.bf16.msra.mxu0 %v5767_v47  ;;  %v9289_v12 = vadd.f32 %v9131_v63, %v9093_v38  ;;  %1368 = vmatprep.mubr.f32.mxu1 %v6751_v10  ;;  %v527_v17 = vld [vmem:[%s12518_s1 + $0x6b8] sm:$0xff]  ;;  %v9300_v63 = vpop.f32.mrb[83].mxu1 }
 0x1f2   : > { %v6285_v22 = vpop.eup %6284  ;;  %v3639_v45 = vadd.f32 1.0, %v6283_v2  ;;  %6292 = vtanh.f32 %v3143_v0  ;;  %v2895_v25 = vadd.f32 %v2639_v53, %v8988_v11  ;;  %v2894_v61 = vadd.f32 %v2638_v27, %v8954_v28  ;;  %v526_v27 = vld [vmem:[%s12518_s1 + $0x6b0] sm:$0xff]  ;;  %v4067_v10 = vld [vmem:[#allocation2 + $0x3e8] sm:$0xff] }
 0x1f3   : > { %v3638_v60 = vadd.f32 1.0, %v6285_v22  ;;  %v9303_v29 = vmul.f32 0.5, %v8948_v59  ;;  %6294 = vtanh.f32 %v3142_v8  ;;  %v9307_v55 = vadd.f32 %v9150_v57, %v9101_v48  ;;  %v534_v59 = vld [vmem:[%s12518_s1 + $0x6f0] sm:$0xff]  ;;  %v4069_v22 = vld [vmem:[#allocation2 + $0x3f8] sm:$0xff] }
 0x1f4   : > { %v3895_v47 = vmul.f32 %v3639_v45, %v9203_v30  ;;  %v9311_v21 = vmul.f32 %v1920_v3, %v9250_v42  ;;  %v3151_v0 = vmul.f32 0.7978846, %v2895_v25  ;;  %v3150_v53 = vmul.f32 0.7978846, %v2894_v61  ;;  %1369 = vmatmul.mubr.f32.gmra.mrb[188].mxu1 %v6752_v6  ;;  %v9325_v45 = vpop.f32.mrb[84].mxu1  ;;  %v6753_v25 = vld [vmem:[%s7030_s23 + $0x1f8] sm:$0xff] }
 0x1f5   : > { %v6287_v57 = vpop.eup %6286  ;;  %v3894_v2 = vmul.f32 %v3638_v60, %v9218_v15  ;;  %v9322_v30 = vmul.f32 %v1921_v4, %v9260_v1  ;;  %v1928_v3 = vmul.f32 0.044715, %v9289_v12  ;;  %v5633_v8 = vpack.c.bf16 %v535_v40, %v527_v17  ;;  %1374 = vmatprep.mubr.f32.mxu1 %v6753_v25  ;;  %v4066_v4 = vld [vmem:[#allocation2 + $0x3e0] sm:$0xff]  ;;  %v4068_v60 = vld [vmem:[#allocation2 + $0x3f0] sm:$0xff]  ;;  %v9334_v17 = vpop.f32.mrb[85].mxu1 }
 0x1f6   : > { %12750 = vst [vmem:[#allocation7_spill] sm:$0xff] %v9311_v21  ;;  %4430 = vmatprep.mubr.f32.mxu0 %v3895_v47  ;;  %v3647_v61 = vadd.f32 1.0, %v6287_v57  ;;  %6296 = vtanh.f32 %v3151_v0  ;;  %v9330_v6 = vadd.f32 %v9161_v13, %v9093_v38  ;;  %v2647_v15 = vmul.f32 %v9138_v34, %v9046_v24  ;;  %12751 = vst [vmem:[#allocation8_spill] sm:$0xff] %v9334_v17  ;;  %v6754_v21 = vld [vmem:[%s7030_s23 + $0x1f0] sm:$0xff] }
 0x1f7   : > { %4431 = vmatmul.mubr.f32.gmra.mrb[52].mxu0 %v3894_v2  ;;  %v1862_v40 = vmul.f32 0.5, %v8935_v19  ;;  %v1929_v25 = vmul.f32 0.044715, %v9307_v55  ;;  %6298 = vtanh.f32 %v3150_v53  ;;  %5634 = vmatprep.subr.bf16.mxu1 %v5633_v8  ;;  %v5635_v47 = vpack.c.bf16 %v534_v59, %v526_v27  ;;  %v9343_v2 = vpop.f32.mrb[86].mxu1  ;;  %v6755_v59 = vld [vmem:[%s7030_s23 + $0x8] sm:$0xff] }
 0x1f8   : > { %v6289_v0 = vpop.eup %6288  ;;  %v3903_v13 = vmul.f32 %v3647_v61, %v9239_v62  ;;  %v2903_v57 = vadd.f32 %v2647_v15, %v9046_v24  ;;  %v2646_v34 = vmul.f32 %v9135_v56, %v9038_v49  ;;  %v5769_v7 = vpack.c.bf16 %v4069_v22, %v4067_v10  ;;  %1375 = vmatmul.mubr.f32.gmra.mrb[190].mxu1 %v6754_v21  ;;  %v9354_v8 = vpop.f32.mrb[87].mxu1 }
 0x1f9   : > { %v9345_v19 = vpop.eup %6290  ;;  %v3646_v17 = vadd.f32 1.0, %v6289_v0  ;;  %v9348_v53 = vmul.f32 0.5, %v8988_v11  ;;  %v9351_v27 = vmul.f32 0.5, %v8954_v28  ;;  %5636 = vmatpush1.bf16.msra.mxu1 %v5635_v47  ;;  %v5771_v62 = vpack.c.bf16 %v4068_v60, %v4066_v4  ;;  %1445 = vmatprep.mubr.f32.mxu1 %v6755_v59  ;;  %v543_v47 = vld [vmem:[%s12518_s1 + $0x738] sm:$0xff] }
 0x1fa   : > { %4436 = vmatprep.mubr.f32.mxu0 %v3903_v13  ;;  %v9357_v56 = vmul.f32 %v1928_v3, %v9289_v12  ;;  %v1936_v21 = vmul.f32 0.044715, %v9330_v6  ;;  %v3159_v10 = vmul.f32 0.7978846, %v2903_v57  ;;  %v2902_v22 = vadd.f32 %v2646_v34, %v9038_v49  ;;  %5770 = vmatprep.subr.bf16.mxu0 %v5769_v7 }
 0x1fb   : > { %v3902_v11 = vmul.f32 %v3646_v17, %v9272_v9  ;;  %v9363_v28 = vmul.f32 %v1929_v25, %v9307_v55  ;;  %v9367_v61 = vadd.f32 %v9170_v14, %v9101_v48  ;;  %5772 = vmatpush1.bf16.msra.mxu0 %v5771_v62  ;;  %v2655_v3 = vmul.f32 %v9157_v50, %v9084_v36  ;;  %v9376_v9 = vpop.f32.mrb[88].mxu1 }
 0x1fc   : > { %v6293_v15 = vpop.eup %6292  ;;  %v9372_v4 = vmul.f32 0.5, %v9046_v24  ;;  %6300 = vtanh.f32 %v3159_v10  ;;  %v3158_v60 = vmul.f32 0.7978846, %v2902_v22  ;;  %v2654_v7 = vmul.f32 %v9142_v20, %v9066_v41  ;;  %12752 = vst [vmem:[#allocation9_spill] sm:$0xff] %v9376_v9  ;;  %v551_v20 = vld [vmem:[%s12518_s1 + $0x778] sm:$0xff]  ;;  %v9393_v0 = vpop.f32.mrb[89].mxu1 }
 0x1fd   : > { %v6295_v17 = vpop.eup %6294  ;;  %4437 = vmatmul.mubr.f32.gmra.mrb[54].mxu0 %v3902_v11  ;;  %v3655_v25 = vadd.f32 1.0, %v6293_v15  ;;  %v9380_v14 = vadd.f32 %v9191_v52, %v9093_v38  ;;  %v9384_v50 = vadd.f32 %v9200_v44, %v9101_v48  ;;  %v2911_v24 = vadd.f32 %v2655_v3, %v9084_v36  ;;  %12753 = vst [vmem:[#allocation10_spill] sm:$0xff] %v9393_v0  ;;  %v542_v10 = vld [vmem:[%s12518_s1 + $0x730] sm:$0xff]  ;;  %v4071_v22 = vld [vmem:[#allocation2 + $0x408] sm:$0xff] }
 0x1fe   : > { %v3654_v13 = vadd.f32 1.0, %v6295_v17  ;;  %v9396_v52 = vmul.f32 %v1936_v21, %v9330_v6  ;;  %6302 = vtanh.f32 %v3158_v60  ;;  %v2910_v44 = vadd.f32 %v2654_v7, %v9066_v41  ;;  %v550_v21 = vld [vmem:[%s12518_s1 + $0x770] sm:$0xff]  ;;  %v4073_v60 = vld [vmem:[#allocation2 + $0x418] sm:$0xff]  ;;  %v9415_v7 = vpop.f32.mrb[90].mxu1 }
 0x1ff   : > { %v3911_v57 = vmul.f32 %v3655_v25, %v9303_v29  ;;  %v3167_v34 = vmul.f32 0.7978846, %v2911_v24  ;;  %v9402_v62 = vadd.f32 %v9223_v33, %v9093_v38  ;;  %v9406_v59 = vadd.f32 %v9236_v37, %v9101_v48  ;;  %v9419_v0 = vpop.f32.mrb[91].mxu1 }
 0x200   : > { %v6297_v11 = vpop.eup %6296  ;;  %v3910_v29 = vmul.f32 %v3654_v13, %v1862_v40  ;;  %v1937_v3 = vmul.f32 0.044715, %v9367_v61  ;;  %v3166_v15 = vmul.f32 0.7978846, %v2910_v44  ;;  %v5637_v33 = vpack.c.bf16 %v551_v20, %v543_v47 }
 0x201   : > { %v6299_v37 = vpop.eup %6298  ;;  %4442 = vmatprep.mubr.f32.mxu0 %v3911_v57  ;;  %v3663_v17 = vadd.f32 1.0, %v6297_v11  ;;  %v1944_v25 = vmul.f32 0.044715, %v9380_v14  ;;  %v1945_v24 = vmul.f32 0.044715, %v9384_v50  ;;  %6304 = vtanh.f32 %v3167_v34 }
 0x202   : > { %4443 = vmatmul.mubr.f32.gmra.mrb[56].mxu0 %v3910_v29  ;;  %v3662_v9 = vadd.f32 1.0, %v6299_v37  ;;  %6306 = vtanh.f32 %v3166_v15  ;;  %5638 = vmatprep.subr.bf16.mxu1 %v5637_v33  ;;  %v2409_v40 = vmul.f32 %v9187_v43, %v9116_v23  ;;  %v5639_v47 = vpack.c.bf16 %v550_v21, %v542_v10  ;;  %v9432_v33 = vpop.f32.mrb[92].mxu1 }
 0x203   : > { %v3919_v20 = vmul.f32 %v3663_v17, %v9348_v53  ;;  %v1952_v13 = vmul.f32 0.044715, %v9402_v62  ;;  %v1953_v44 = vmul.f32 0.044715, %v9406_v59  ;;  %v5773_v57 = vpack.c.bf16 %v4073_v60, %v4071_v22  ;;  %v559_v17 = vld [vmem:[%s12518_s1 + $0x7b8] sm:$0xff] }
 0x204   : > { %v3918_v11 = vmul.f32 %v3662_v9, %v9351_v27  ;;  %v9428_v34 = vmul.f32 %v1937_v3, %v9367_v61  ;;  %v1878_v29 = vmul.f32 0.5, %v9038_v49  ;;  %v2665_v15 = vadd.f32 %v2409_v40, %v9116_v23  ;;  %5640 = vmatpush1.bf16.msra.mxu1 %v5639_v47  ;;  %v9441_v9 = vpop.f32.mrb[93].mxu1  ;;  %v9467_v40 = vld [vmem:[#allocation2 + $0x410] sm:$0xff] }
 0x205   : > { %4448 = vmatprep.mubr.f32.mxu0 %v3919_v20  ;;  %v9435_v43 = vmul.f32 %v1944_v25, %v9380_v14  ;;  %v1887_v53 = vmul.f32 0.5, %v9084_v36  ;;  %v1886_v10 = vmul.f32 0.5, %v9066_v41  ;;  %5774 = vmatprep.subr.bf16.mxu0 %v5773_v57  ;;  %v2417_v27 = vmul.f32 %v9226_v32, %v9166_v35 }
 0x206   : > { %v6301_v49 = vpop.eup %6300  ;;  %4449 = vmatmul.mubr.f32.gmra.mrb[58].mxu0 %v3918_v11  ;;  %v9444_v21 = vmul.f32 %v1945_v24, %v9384_v50  ;;  %v9447_v22 = vmul.f32 0.5, %v9116_v23  ;;  %v2921_v3 = vmul.f32 0.7978846, %v2665_v15  ;;  %v2416_v36 = vmul.f32 %v9194_v58, %v9129_v5  ;;  %v567_v23 = vld [vmem:[%s12518_s1 + $0x7f8] sm:$0xff]  ;;  %v9465_v24 = vld [vmem:[#allocation2 + $0x400] sm:$0xff] }
 0x207   : > { %v3671_v60 = vadd.f32 1.0, %v6301_v49  ;;  %v9452_v41 = vmul.f32 %v1952_v13, %v9402_v62  ;;  %v9455_v32 = vmul.f32 %v1953_v44, %v9406_v59  ;;  %v2673_v37 = vadd.f32 %v2417_v27, %v9166_v35  ;;  %v9474_v13 = vpop.f32.mrb[94].mxu1 }
 0x208   : > { %v6303_v25 = vpop.eup %6302  ;;  %6308 = vtanh.f32 %v2921_v3  ;;  %v3432_v58 = vadd.f32 1.0, %v9345_v19  ;;  %v9471_v47 = vadd.f32 %v9255_v46, %v9093_v38  ;;  %v2672_v20 = vadd.f32 %v2416_v36, %v9129_v5  ;;  %v9481_v15 = vpop.f32.mrb[95].mxu1 }
 0x209   : > { %v3927_v44 = vmul.f32 %v3671_v60, %v9372_v4  ;;  %v3670_v57 = vadd.f32 1.0, %v6303_v25  ;;  %v9479_v11 = vadd.f32 %v9265_v31, %v9101_v48  ;;  %v2929_v19 = vmul.f32 0.7978846, %v2673_v37  ;;  %v558_v4 = vld [vmem:[%s12518_s1 + $0x7b0] sm:$0xff] }
 0x20a   : > { %v2928_v27 = vmul.f32 0.7978846, %v2672_v20  ;;  %v9485_v49 = vadd.f32 %v9281_v54, %v9093_v38  ;;  %v9489_v46 = vadd.f32 %v9300_v63, %v9101_v48  ;;  %v5641_v3 = vpack.c.bf16 %v567_v23, %v559_v17  ;;  %v566_v31 = vld [vmem:[%s12518_s1 + $0x7f0] sm:$0xff]  ;;  %v9505_v20 = vpop.f32.mrb[96].mxu1 }
 0x20b   : > { %v6305_v36 = vpop.eup %6304  ;;  %4454 = vmatprep.mubr.f32.mxu0 %v3927_v44  ;;  %v3926_v60 = vmul.f32 %v3670_v57, %v1878_v29  ;;  %6310 = vtanh.f32 %v2929_v19  ;;  %v2425_v63 = vmul.f32 %v9284_v26, %v9230_v18  ;;  %v9502_v23 = vmul.f32 %v3432_v58, %v9184_v16  ;;  %12755 = vst [vmem:[#allocation12_spill] sm:$0xff] %v9505_v20  ;;  %v9509_v54 = vpop.f32.mrb[97].mxu1 }
 0x20c   : > { %12754 = vst [vmem:[#allocation11_spill] sm:$0xff] %v9485_v49  ;;  %v6307_v37 = vpop.eup %6306  ;;  %v3679_v17 = vadd.f32 1.0, %v6305_v36  ;;  %v1960_v25 = vmul.f32 0.044715, %v9471_v47  ;;  %6312 = vtanh.f32 %v2928_v27  ;;  %5642 = vmatprep.subr.bf16.mxu1 %v5641_v3  ;;  %v1961_v44 = vmul.f32 0.044715, %v9479_v11 }
 0x20d   : > { %4455 = vmatmul.mubr.f32.gmra.mrb[60].mxu0 %v3926_v60  ;;  %v3678_v29 = vadd.f32 1.0, %v6307_v37  ;;  %v2681_v57 = vadd.f32 %v2425_v63, %v9230_v18  ;;  %v5643_v19 = vpack.c.bf16 %v566_v31, %v558_v4  ;;  %12756 = vst [vmem:[#allocation13_spill] sm:$0xff] %v9509_v54  ;;  %v1968_v36 = vmul.f32 0.044715, %v9485_v49  ;;  %v12758_v63 = vld [vmem:[#allocation7_spill] sm:$0xff] }
 0x20e   : > { %v3935_v26 = vmul.f32 %v3679_v17, %v1887_v53  ;;  %v1969_v16 = vmul.f32 0.044715, %v9489_v46  ;;  %v2424_v58 = vmul.f32 %v9269_v39, %v9208_v51  ;;  %v1649_v3 = vmul.f32 0.5, %v9166_v35  ;;  %v9529_v35 = vpop.f32.mrb[98].mxu1 }
 0x20f   : > { %v3934_v27 = vmul.f32 %v3678_v29, %v1886_v10  ;;  %v9517_v60 = vmul.f32 0.5, %v9129_v5  ;;  %v2937_v37 = vmul.f32 0.7978846, %v2681_v57  ;;  %5644 = vmatpush1.bf16.msra.mxu1 %v5643_v19  ;;  %v9520_v4 = vmul.f32 %v1960_v25, %v9471_v47  ;;  %12757 = vst [vmem:[#allocation14_spill] sm:$0xff] %v9529_v35  ;;  %v9539_v25 = vpop.f32.mrb[99].mxu1 }
 0x210   : > { %4460 = vmatprep.mubr.f32.mxu0 %v3935_v26  ;;  %v2680_v53 = vadd.f32 %v2424_v58, %v9208_v51  ;;  %v9525_v31 = vadd.f32 %v9325_v45, %v9093_v38  ;;  %v2433_v39 = vmul.f32 %v9322_v30, %v9260_v1  ;;  %v9532_v5 = vmul.f32 %v1961_v44, %v9479_v11  ;;  %v4075_v44 = vld [vmem:[#allocation2 + $0x428] sm:$0xff] }
 0x211   : > { %4461 = vmatmul.mubr.f32.gmra.mrb[62].mxu0 %v3934_v27  ;;  %v9535_v10 = vmul.f32 0.5, %v9230_v18  ;;  %6314 = vtanh.f32 %v2937_v37  ;;  %v2432_v17 = vmul.f32 %v12758_v63, %v9250_v42  ;;  %12759 = vst [vmem:[#allocation16_spill] sm:$0xff] %v9539_v25  ;;  %v9542_v29 = vmul.f32 %v1968_v36, %v9485_v49  ;;  %v6756_v18 = vld [vmem:[%s7030_s23] sm:$0xff]  ;;  %v4077_v27 = vld [vmem:[#allocation2 + $0x438] sm:$0xff]  ;;  %v9554_v63 = vld [vmem:[#allocation2 + $0x430] sm:$0xff] }
 0x212   : > { %v6309_v45 = vpop.eup %6308  ;;  %v9545_v30 = vmul.f32 %v1969_v16, %v9489_v46  ;;  %v2936_v57 = vmul.f32 0.7978846, %v2680_v53  ;;  %v2689_v19 = vadd.f32 %v2433_v39, %v9260_v1  ;;  %1446 = vmatmul.mubr.f32.vlgmr.msra.gmra.mrb[192].mxu1 %v6756_v18  ;;  %v9550_v58 = vmul.f32 0.5, %v9208_v51  ;;  %v9552_v37 = vld [vmem:[#allocation2 + $0x420] sm:$0xff]  ;;  %v12761_v36 = vld [vmem:[#allocation8_spill] sm:$0xff]  ;;  %v6759_v49 = vld [vmem:[%s7030_s23 + $0x28] sm:$0xff] }
 0x213   : > { %12760 = vst [vmem:[#allocation18_spill] sm:$0xff] %v9542_v29  ;;  %v3433_v26 = vadd.f32 1.0, %v6309_v45  ;;  %v9558_v25 = vadd.f32 %v12761_v36, %v9101_v48  ;;  %v2688_v16 = vadd.f32 %v2432_v17, %v9250_v42  ;;  %v6757_v53 = vld [vmem:[%s7030_s23 + $0x18] sm:$0xff]  ;;  %v1976_v39 = vmul.f32 0.044715, %v9525_v31  ;;  %v4079_v29 = vld [vmem:[#allocation2 + $0x448] sm:$0xff] }
 0x214   : > { %1451 = vmatprep.mubr.f32.mxu1 %v6757_v53  ;;  %6316 = vtanh.f32 %v2936_v57  ;;  %v2945_v45 = vmul.f32 0.7978846, %v2689_v19  ;;  %v9565_v51 = vadd.f32 %v9343_v2, %v9093_v38  ;;  %v9570_v36 = vadd.f32 %v9354_v8, %v9101_v48  ;;  %v9574_v57 = vpop.f32.mrb[100].mxu1 }
 0x215   : > { %v6311_v18 = vpop.eup %6310  ;;  %v3689_v35 = vmul.f32 %v3433_v26, %v9447_v22  ;;  %v2944_v54 = vmul.f32 0.7978846, %v2688_v16  ;;  %v2441_v17 = vmul.f32 %v9363_v28, %v9307_v55  ;;  %12762 = vst [vmem:[#allocation17_spill] sm:$0xff] %v9574_v57  ;;  %v5777_v20 = vpack.c.bf16 %v4077_v27, %v4075_v44  ;;  %v4081_v22 = vld [vmem:[#allocation2 + $0x458] sm:$0xff]  ;;  %v6758_v26 = vld [vmem:[%s7030_s23 + $0x10] sm:$0xff]  ;;  %v9579_v16 = vpop.f32.mrb[101].mxu1 }
 0x216   : > { %v6313_v53 = vpop.eup %6312  ;;  %v3441_v19 = vadd.f32 1.0, %v6311_v18  ;;  %v5779_v2 = vpack.c.bf16 %v9554_v63, %v9552_v37  ;;  %6318 = vtanh.f32 %v2945_v45  ;;  %1452 = vmatmul.mubr.f32.gmra.mrb[194].mxu1 %v6758_v26  ;;  %v1977_v28 = vmul.f32 0.044715, %v9558_v25 }
 0x217   : > { %4531 = vmatprep.mubr.f32.mxu0 %v3689_v35  ;;  %v3440_v8 = vadd.f32 1.0, %v6313_v53  ;;  %6320 = vtanh.f32 %v2944_v54  ;;  %v2697_v57 = vadd.f32 %v2441_v17, %v9307_v55  ;;  %1457 = vmatprep.mubr.f32.mxu1 %v6759_v49  ;;  %v9586_v27 = vmul.f32 0.5, %v9260_v1  ;;  %v9591_v35 = vpop.f32.mrb[102].mxu1 }
 0x218   : > { %4532 = vmatmul.mubr.f32.vlgmr.msra.gmra.mrb[0].mxu0 %v9502_v23  ;;  %v3697_v44 = vmul.f32 %v3441_v19, %v1649_v3  ;;  %v1984_v37 = vmul.f32 0.044715, %v9565_v51  ;;  %v2440_v63 = vmul.f32 %v9357_v56, %v9289_v12  ;;  %v12763_v54 = vpack.c.bf16 %v9467_v40, %v9465_v24  ;;  %v9600_v3 = vpop.f32.mrb[103].mxu1  ;;  %v4078_v40 = vld [vmem:[#allocation2 + $0x440] sm:$0xff] }
 0x219   : > { %v9597_v45 = vmul.f32 %v1976_v39, %v9525_v31  ;;  %v1985_v49 = vmul.f32 0.044715, %v9570_v36  ;;  %v2953_v23 = vmul.f32 0.7978846, %v2697_v57  ;;  %v5781_v1 = vpack.c.bf16 %v4081_v22, %v4079_v29  ;;  %v4080_v39 = vld [vmem:[#allocation2 + $0x450] sm:$0xff]  ;;  %v12764_v22 = vld [vmem:[#allocation9_spill] sm:$0xff] }
 0x21a   : > { %5776 = vmatpush1.bf16.msra.mxu0 %v12763_v54  ;;  %4537 = vmatprep.mubr.f32.mxu0 %v3697_v44  ;;  %v3696_v18 = vmul.f32 %v3440_v8, %v9517_v60  ;;  %v9604_v56 = vmul.f32 0.5, %v9250_v42  ;;  %v2696_v24 = vadd.f32 %v2440_v63, %v9289_v12  ;;  %v2449_v17 = vmul.f32 %v9428_v34, %v9367_v61  ;;  %v6761_v8 = vld [vmem:[%s7030_s23 + $0x38] sm:$0xff] }
 0x21b   : > { %5778 = vmatprep.subr.bf16.mxu0 %v5777_v20  ;;  %v6315_v57 = vpop.eup %6314  ;;  %v9610_v29 = vmul.f32 %v1977_v28, %v9558_v25  ;;  %v9613_v53 = vmul.f32 0.5, %v9307_v55  ;;  %6322 = vtanh.f32 %v2953_v23  ;;  %v2448_v42 = vmul.f32 %v9396_v52, %v9330_v6  ;;  %v6760_v20 = vld [vmem:[%s7030_s23 + $0x20] sm:$0xff]  ;;  %v9624_v28 = vpop.f32.mrb[104].mxu1 }
 0x21c   : > { %1458 = vmatmul.mubr.f32.gmra.mrb[196].mxu1 %v6760_v20  ;;  %4538 = vmatmul.mubr.f32.gmra.mrb[2].mxu0 %v3696_v18  ;;  %v3449_v60 = vadd.f32 1.0, %v6315_v57  ;;  %v2952_v19 = vmul.f32 0.7978846, %v2696_v24  ;;  %v9620_v26 = vadd.f32 %v12764_v22, %v9093_v38  ;;  %v2705_v34 = vadd.f32 %v2449_v17, %v9367_v61  ;;  %v9633_v54 = vpop.f32.mrb[105].mxu1  ;;  %v12765_v17 = vld [vmem:[#allocation10_spill] sm:$0xff]  ;;  %v6762_v20 = vld [vmem:[%s7030_s23 + $0x30] sm:$0xff] }
 0x21d   : > { %1463 = vmatprep.mubr.f32.mxu1 %v6761_v8  ;;  %v9627_v55 = vmul.f32 %v1984_v37, %v9565_v51  ;;  %v9630_v52 = vmul.f32 %v1985_v49, %v9570_v36  ;;  %v5783_v44 = vpack.c.bf16 %v4080_v39, %v4078_v40  ;;  %v2704_v63 = vadd.f32 %v2448_v42, %v9330_v6  ;;  %v4083_v57 = vld [vmem:[#allocation2 + $0x468] sm:$0xff]  ;;  %v4085_v42 = vld [vmem:[#allocation2 + $0x478] sm:$0xff] }
 0x21e   : > { %5780 = vmatpush1.bf16.msra.mxu0 %v5779_v2  ;;  %v6317_v23 = vpop.eup %6316  ;;  %v3705_v18 = vmul.f32 %v3449_v60, %v9535_v10  ;;  %v9637_v24 = vmul.f32 0.5, %v9289_v12  ;;  %6324 = vtanh.f32 %v2952_v19  ;;  %v2961_v2 = vmul.f32 0.7978846, %v2705_v34  ;;  %v4082_v19 = vld [vmem:[#allocation2 + $0x460] sm:$0xff]  ;;  %v6763_v22 = vld [vmem:[%s7030_s23 + $0x48] sm:$0xff]  ;;  %v9655_v34 = vpop.f32.mrb[106].mxu1 }
 0x21f   : > { %5782 = vmatprep.subr.bf16.mxu0 %v5781_v1  ;;  %v3448_v37 = vadd.f32 1.0, %v6317_v23  ;;  %v9641_v49 = vadd.f32 %v12765_v17, %v9101_v48  ;;  %v9644_v40 = vmul.f32 0.5, %v9367_v61  ;;  %v2960_v39 = vmul.f32 0.7978846, %v2704_v63  ;;  %v4084_v61 = vld [vmem:[#allocation2 + $0x470] sm:$0xff] }
 0x220   : > { %1464 = vmatmul.mubr.f32.gmra.mrb[198].mxu1 %v6762_v20  ;;  %v6319_v10 = vpop.eup %6318  ;;  %4543 = vmatprep.mubr.f32.mxu0 %v3705_v18  ;;  %v1992_v12 = vmul.f32 0.044715, %v9620_v26  ;;  %6326 = vtanh.f32 %v2961_v2  ;;  %v9650_v1 = vadd.f32 %v9415_v7, %v9093_v38  ;;  %v2457_v60 = vmul.f32 %v9444_v21, %v9384_v50  ;;  %v9662_v7 = vpop.f32.mrb[107].mxu1 }
 0x221   : > { %1469 = vmatprep.mubr.f32.mxu1 %v6763_v22  ;;  %v6321_v8 = vpop.eup %6320  ;;  %v3704_v63 = vmul.f32 %v3448_v37, %v9550_v58  ;;  %v3457_v23 = vadd.f32 1.0, %v6319_v10  ;;  %6328 = vtanh.f32 %v2960_v39  ;;  %v9660_v18 = vadd.f32 %v9419_v0, %v9101_v48 }
 0x222   : > { %5784 = vmatpush1.bf16.msra.mxu0 %v5783_v44  ;;  %v3456_v21 = vadd.f32 1.0, %v6321_v8  ;;  %v2713_v2 = vadd.f32 %v2457_v60, %v9384_v50  ;;  %v2456_v17 = vmul.f32 %v9435_v43, %v9380_v14  ;;  %v5785_v20 = vpack.c.bf16 %v4085_v42, %v4083_v57  ;;  %v6764_v43 = vld [vmem:[%s7030_s23 + $0x40] sm:$0xff]  ;;  %v9678_v57 = vpop.f32.mrb[108].mxu1 }
 0x223   : > { %4544 = vmatmul.mubr.f32.gmra.mrb[4].mxu0 %v3704_v63  ;;  %v3713_v58 = vmul.f32 %v3457_v23, %v9586_v27  ;;  %v1993_v44 = vmul.f32 0.044715, %v9641_v49  ;;  %v9670_v37 = vmul.f32 0.5, %v9330_v6  ;;  %v5787_v0 = vpack.c.bf16 %v4084_v61, %v4082_v19  ;;  %v9688_v61 = vpop.f32.mrb[109].mxu1 }
 0x224   : > { %v9673_v39 = vmul.f32 %v1992_v12, %v9620_v26  ;;  %v2000_v10 = vmul.f32 0.044715, %v9650_v1  ;;  %v2969_v22 = vmul.f32 0.7978846, %v2713_v2  ;;  %v2712_v60 = vadd.f32 %v2456_v17, %v9380_v14  ;;  %5786 = vmatprep.subr.bf16.mxu0 %v5785_v20  ;;  %1470 = vmatmul.mubr.f32.gmra.mrb[200].mxu1 %v6764_v43 }
 0x225   : > { %v6323_v27 = vpop.eup %6322  ;;  %4549 = vmatprep.mubr.f32.mxu0 %v3713_v58  ;;  %v3712_v6 = vmul.f32 %v3456_v21, %v9604_v56  ;;  %v2001_v42 = vmul.f32 0.044715, %v9660_v18  ;;  %v9684_v12 = vadd.f32 %v9432_v33, %v9093_v38  ;;  %v2465_v19 = vmul.f32 %v9455_v32, %v9406_v59  ;;  %v6765_v56 = vld [vmem:[%s7030_s23 + $0x58] sm:$0xff] }
 0x226   : > { %5788 = vmatpush1.bf16.msra.mxu0 %v5787_v0  ;;  %v3465_v8 = vadd.f32 1.0, %v6323_v27  ;;  %6330 = vtanh.f32 %v2969_v22  ;;  %v2968_v63 = vmul.f32 0.7978846, %v2712_v60  ;;  %v2464_v23 = vmul.f32 %v9452_v41, %v9402_v62  ;;  %1475 = vmatprep.mubr.f32.mxu1 %v6765_v56  ;;  %v6766_v0 = vld [vmem:[%s7030_s23 + $0x50] sm:$0xff]  ;;  %v4086_v27 = vld [vmem:[#allocation2 + $0x480] sm:$0xff] }
 0x227   : > { %4550 = vmatmul.mubr.f32.gmra.mrb[6].mxu0 %v3712_v6  ;;  %v9694_v21 = vmul.f32 %v1993_v44, %v9641_v49  ;;  %v9697_v33 = vmul.f32 0.5, %v9384_v50  ;;  %v9701_v32 = vadd.f32 %v9441_v9, %v9101_v48  ;;  %v2721_v2 = vadd.f32 %v2465_v19, %v9406_v59  ;;  %v4087_v44 = vld [vmem:[#allocation2 + $0x488] sm:$0xff]  ;;  %v9710_v50 = vpop.f32.mrb[110].mxu1 }
 0x228   : > { %v6325_v17 = vpop.eup %6324  ;;  %v3721_v20 = vmul.f32 %v3465_v8, %v9613_v53  ;;  %v9706_v41 = vmul.f32 %v2000_v10, %v9650_v1  ;;  %6332 = vtanh.f32 %v2968_v63  ;;  %v2720_v58 = vadd.f32 %v2464_v23, %v9402_v62  ;;  %1476 = vmatmul.mubr.f32.gmra.mrb[202].mxu1 %v6766_v0  ;;  %v4089_v53 = vld [vmem:[#allocation2 + $0x498] sm:$0xff]  ;;  %v6767_v10 = vld [vmem:[%s7030_s23 + $0x68] sm:$0xff]  ;;  %v9726_v23 = vpop.f32.mrb[111].mxu1 }
 0x229   : > { %v3464_v22 = vadd.f32 1.0, %v6325_v17  ;;  %v9713_v9 = vmul.f32 %v2001_v42, %v9660_v18  ;;  %v9716_v60 = vmul.f32 0.5, %v9380_v14  ;;  %v2977_v43 = vmul.f32 0.7978846, %v2721_v2  ;;  %1481 = vmatprep.mubr.f32.mxu1 %v6767_v10  ;;  %v4088_v14 = vld [vmem:[#allocation2 + $0x490] sm:$0xff]  ;;  %12766 = vst [vmem:[#allocation25_spill] sm:$0xff] %v9726_v23 }
 0x22a   : > { %v6327_v6 = vpop.eup %6326  ;;  %4555 = vmatprep.mubr.f32.mxu0 %v3721_v20  ;;  %v2008_v19 = vmul.f32 0.044715, %v9684_v12  ;;  %v2976_v8 = vmul.f32 0.7978846, %v2720_v58  ;;  %v9722_v63 = vadd.f32 %v9474_v13, %v9093_v38  ;;  %v2473_v42 = vmul.f32 %v9532_v5, %v9479_v11  ;;  %v6768_v5 = vld [vmem:[%s7030_s23 + $0x60] sm:$0xff]  ;;  %v9736_v10 = vpop.f32.mrb[112].mxu1 }
 0x22b   : > { %v6329_v56 = vpop.eup %6328  ;;  %v3720_v2 = vmul.f32 %v3464_v22, %v9637_v24  ;;  %v3473_v17 = vadd.f32 1.0, %v6327_v6  ;;  %v2009_v20 = vmul.f32 0.044715, %v9701_v32  ;;  %6334 = vtanh.f32 %v2977_v43  ;;  %12767 = vst [vmem:[#allocation30_spill] sm:$0xff] %v9736_v10  ;;  %v6774_v23 = vld [vmem:[%s7030_s23 + $0x90] sm:$0xff] }
 0x22c   : > { %v3472_v0 = vadd.f32 1.0, %v6329_v56  ;;  %6336 = vtanh.f32 %v2976_v8  ;;  %v9732_v13 = vadd.f32 %v9481_v15, %v9101_v48  ;;  %v2729_v58 = vadd.f32 %v2473_v42, %v9479_v11  ;;  %1482 = vmatmul.mubr.f32.gmra.mrb[204].mxu1 %v6768_v5  ;;  %v9741_v8 = vpop.f32.mrb[113].mxu1 }
 0x22d   : > { %4556 = vmatmul.mubr.f32.gmra.mrb[8].mxu0 %v3720_v2  ;;  %v3729_v24 = vmul.f32 %v3473_v17, %v9644_v40  ;;  %v2472_v22 = vmul.f32 %v9520_v4, %v9471_v47  ;;  %v5789_v43 = vpack.c.bf16 %v4089_v53, %v4087_v44  ;;  %v5791_v6 = vpack.c.bf16 %v4088_v14, %v4086_v27  ;;  %v6769_v2 = vld [vmem:[%s7030_s23 + $0x78] sm:$0xff]  ;;  %v12769_v14 = vld [vmem:[#allocation11_spill] sm:$0xff] }
 0x22e   : > { %12768 = vst [vmem:[#allocation20_spill] sm:$0xff] %v9741_v8  ;;  %v9744_v56 = vmul.f32 %v2008_v19, %v9684_v12  ;;  %v9747_v15 = vmul.f32 0.5, %v9406_v59  ;;  %v2016_v42 = vmul.f32 0.044715, %v9722_v63  ;;  %v2985_v5 = vmul.f32 0.7978846, %v2729_v58  ;;  %1487 = vmatprep.mubr.f32.mxu1 %v6769_v2 }
 0x22f   : > { %4561 = vmatprep.mubr.f32.mxu0 %v3729_v24  ;;  %v3728_v40 = vmul.f32 %v3472_v0, %v9670_v37  ;;  %v9753_v4 = vmul.f32 0.5, %v9402_v62  ;;  %v2728_v44 = vadd.f32 %v2472_v22, %v9471_v47  ;;  %5790 = vmatprep.subr.bf16.mxu0 %v5789_v43  ;;  %v2481_v59 = vmul.f32 %v9545_v30, %v9489_v46  ;;  %v12770_v37 = vld [vmem:[#allocation18_spill] sm:$0xff]  ;;  %v6770_v62 = vld [vmem:[%s7030_s23 + $0x70] sm:$0xff]  ;;  %v9765_v0 = vpop.f32.mrb[114].mxu1  ;;  %v12772_v30 = vld [vmem:[#allocation12_spill] sm:$0xff] }
 0x230   : > { %v6331_v53 = vpop.eup %6330  ;;  %v9759_v27 = vmul.f32 %v2009_v20, %v9701_v32  ;;  %v2017_v19 = vmul.f32 0.044715, %v9732_v13  ;;  %6338 = vtanh.f32 %v2985_v5  ;;  %5792 = vmatpush1.bf16.msra.mxu0 %v5791_v6  ;;  %v2480_v17 = vmul.f32 %v12770_v37, %v12769_v14  ;;  %1488 = vmatmul.mubr.f32.gmra.mrb[206].mxu1 %v6770_v62  ;;  %12771 = vst [vmem:[#allocation19_spill] sm:$0xff] %v9765_v0  ;;  %v6771_v43 = vld [vmem:[%s7030_s23 + $0x88] sm:$0xff]  ;;  %v9773_v5 = vpop.f32.mrb[115].mxu1  ;;  %v4093_v0 = vld [vmem:[#allocation2 + $0x4b8] sm:$0xff] }
 0x231   : > { %4562 = vmatmul.mubr.f32.gmra.mrb[10].mxu0 %v3728_v40  ;;  %v3481_v58 = vadd.f32 1.0, %v6331_v53  ;;  %v2984_v24 = vmul.f32 0.7978846, %v2728_v44  ;;  %v9769_v22 = vadd.f32 %v12772_v30, %v9093_v38  ;;  %v2737_v20 = vadd.f32 %v2481_v59, %v9489_v46  ;;  %1493 = vmatprep.mubr.f32.mxu1 %v6771_v43  ;;  %12773 = vst [vmem:[#allocation22_spill] sm:$0xff] %v9773_v5  ;;  %v12774_v43 = vld [vmem:[#allocation13_spill] sm:$0xff]  ;;  %v4091_v5 = vld [vmem:[#allocation2 + $0x4a8] sm:$0xff] }
 0x232   : > { %v6333_v6 = vpop.eup %6332  ;;  %v9776_v2 = vmul.f32 %v2016_v42, %v9722_v63  ;;  %v9779_v37 = vmul.f32 0.5, %v9479_v11  ;;  %v9782_v40 = vmul.f32 0.5, %v9471_v47  ;;  %v2736_v44 = vadd.f32 %v2480_v17, %v12769_v14  ;;  %v6772_v17 = vld [vmem:[%s7030_s23 + $0x80] sm:$0xff] }
 0x233   : > { %v3737_v53 = vmul.f32 %v3481_v58, %v9697_v33  ;;  %v3480_v59 = vadd.f32 1.0, %v6333_v6  ;;  %6340 = vtanh.f32 %v2984_v24  ;;  %v2993_v62 = vmul.f32 0.7978846, %v2737_v20  ;;  %v4090_v20 = vld [vmem:[#allocation2 + $0x4a0] sm:$0xff]  ;;  %v4092_v6 = vld [vmem:[#allocation2 + $0x4b0] sm:$0xff] }
 0x234   : > { %v9787_v30 = vmul.f32 %v2017_v19, %v9732_v13  ;;  %v9791_v42 = vadd.f32 %v12774_v43, %v9101_v48  ;;  %v2992_v11 = vmul.f32 0.7978846, %v2736_v44  ;;  %v2489_v47 = vmul.f32 %v9610_v29, %v9558_v25  ;;  %1494 = vmatmul.mubr.f32.gmra.mrb[208].mxu1 %v6772_v17  ;;  %v6773_v44 = vld [vmem:[%s7030_s23 + $0x98] sm:$0xff]  ;;  %v9802_v43 = vpop.f32.mrb[116].mxu1 }
 0x235   : > { %v6335_v33 = vpop.eup %6334  ;;  %4567 = vmatprep.mubr.f32.mxu0 %v3737_v53  ;;  %v3736_v58 = vmul.f32 %v3480_v59, %v9716_v60  ;;  %v2024_v19 = vmul.f32 0.044715, %v9769_v22  ;;  %v9799_v24 = vmul.f32 0.5, %v9489_v46  ;;  %6342 = vtanh.f32 %v2993_v62  ;;  %1499 = vmatprep.mubr.f32.mxu1 %v6773_v44  ;;  %12775 = vst [vmem:[#allocation21_spill] sm:$0xff] %v9802_v43  ;;  %v12776_v53 = vld [vmem:[#allocation14_spill] sm:$0xff]  ;;  %v12777_v60 = vld [vmem:[#allocation16_spill] sm:$0xff] }
 0x236   : > { %v6337_v29 = vpop.eup %6336  ;;  %v3489_v8 = vadd.f32 1.0, %v6335_v33  ;;  %6344 = vtanh.f32 %v2992_v11  ;;  %v9806_v17 = vadd.f32 %v12776_v53, %v9093_v38  ;;  %v9810_v59 = vadd.f32 %v12777_v60, %v9101_v48  ;;  %v9812_v46 = vpop.f32.mrb[117].mxu1 }
 0x237   : > { %12778 = vst [vmem:[#allocation32_spill] sm:$0xff] %v9812_v46  ;;  %4568 = vmatmul.mubr.f32.gmra.mrb[12].mxu0 %v3736_v58  ;;  %v3488_v62 = vadd.f32 1.0, %v6337_v29  ;;  %v2745_v44 = vadd.f32 %v2489_v47, %v9558_v25  ;;  %v2488_v43 = vmul.f32 %v9597_v45, %v9525_v31  ;;  %v5793_v33 = vpack.c.bf16 %v4093_v0, %v4091_v5  ;;  %v9823_v46 = vpop.f32.mrb[118].mxu1 }
 0x238   : > { %v3745_v11 = vmul.f32 %v3489_v8, %v9747_v15  ;;  %v2025_v53 = vmul.f32 0.044715, %v9791_v42  ;;  %v9820_v10 = vmul.f32 0.5, %v12769_v14  ;;  %v5795_v60 = vpack.c.bf16 %v4092_v6, %v4090_v20  ;;  %1500 = vmatmul.mubr.f32.gmra.mrb[210].mxu1 %v6774_v23  ;;  %12779 = vst [vmem:[#allocation31_spill] sm:$0xff] %v9823_v46  ;;  %v6775_v8 = vld [vmem:[%s7030_s23 + $0xa8] sm:$0xff]  ;;  %v9831_v15 = vpop.f32.mrb[119].mxu1 }
 0x239   : > { %v3744_v58 = vmul.f32 %v3488_v62, %v9753_v4  ;;  %v9827_v47 = vmul.f32 %v2024_v19, %v9769_v22  ;;  %v3001_v29 = vmul.f32 0.7978846, %v2745_v44  ;;  %v2744_v45 = vadd.f32 %v2488_v43, %v9525_v31  ;;  %5794 = vmatprep.subr.bf16.mxu0 %v5793_v33  ;;  %1505 = vmatprep.mubr.f32.mxu1 %v6775_v8  ;;  %v12781_v4 = vld [vmem:[#allocation17_spill] sm:$0xff] }
 0x23a   : > { %12780 = vst [vmem:[#allocation38_spill] sm:$0xff] %v9831_v15  ;;  %v6339_v14 = vpop.eup %6338  ;;  %4573 = vmatprep.mubr.f32.mxu0 %v3745_v11  ;;  %v2032_v23 = vmul.f32 0.044715, %v9806_v17  ;;  %v2033_v0 = vmul.f32 0.044715, %v9810_v59  ;;  %5796 = vmatpush1.bf16.msra.mxu0 %v5795_v60  ;;  %v9837_v5 = vadd.f32 %v12781_v4, %v9093_v38  ;;  %v2497_v19 = vmul.f32 %v9630_v52, %v9570_v36  ;;  %v6776_v11 = vld [vmem:[%s7030_s23 + $0xa0] sm:$0xff] }
 0x23b   : > { %4574 = vmatmul.mubr.f32.gmra.mrb[14].mxu0 %v3744_v58  ;;  %v3497_v20 = vadd.f32 1.0, %v6339_v14  ;;  %6346 = vtanh.f32 %v3001_v29  ;;  %v3000_v6 = vmul.f32 0.7978846, %v2744_v45  ;;  %v2496_v43 = vmul.f32 %v9627_v55, %v9565_v51  ;;  %v9855_v60 = vpop.f32.mrb[120].mxu1  ;;  %v6779_v15 = vld [vmem:[%s7030_s23 + $0xc8] sm:$0xff] }
 0x23c   : > { %v9844_v62 = vmul.f32 %v2025_v53, %v9791_v42  ;;  %v9847_v44 = vmul.f32 0.5, %v9558_v25  ;;  %v9851_v33 = vadd.f32 %v9579_v16, %v9101_v48  ;;  %v2753_v52 = vadd.f32 %v2497_v19, %v9570_v36  ;;  %1506 = vmatmul.mubr.f32.gmra.mrb[212].mxu1 %v6776_v11  ;;  %12782 = vst [vmem:[#allocation37_spill] sm:$0xff] %v9855_v60  ;;  %v6777_v53 = vld [vmem:[%s7030_s23 + $0xb8] sm:$0xff]  ;;  %v9863_v45 = vpop.f32.mrb[121].mxu1  ;;  %v4094_v11 = vld [vmem:[#allocation2 + $0x4c0] sm:$0xff] }
 0x23d   : > { %v6341_v58 = vpop.eup %6340  ;;  %v3753_v29 = vmul.f32 %v3497_v20, %v9779_v37  ;;  %v9859_v55 = vmul.f32 0.5, %v9525_v31  ;;  %6348 = vtanh.f32 %v3000_v6  ;;  %v2752_v25 = vadd.f32 %v2496_v43, %v9565_v51  ;;  %1511 = vmatprep.mubr.f32.mxu1 %v6777_v53  ;;  %12783 = vst [vmem:[#allocation24_spill] sm:$0xff] %v9863_v45  ;;  %v4095_v37 = vld [vmem:[#allocation2 + $0x4c8] sm:$0xff]  ;;  %v4097_v19 = vld [vmem:[#allocation2 + $0x4d8] sm:$0xff] }
 0x23e   : > { %v3496_v16 = vadd.f32 1.0, %v6341_v58  ;;  %v9866_v8 = vmul.f32 %v2032_v23, %v9806_v17  ;;  %v9869_v14 = vmul.f32 %v2033_v0, %v9810_v59  ;;  %v3009_v4 = vmul.f32 0.7978846, %v2753_v52  ;;  %v4096_v0 = vld [vmem:[#allocation2 + $0x4d0] sm:$0xff] }
 0x23f   : > { %v6343_v31 = vpop.eup %6342  ;;  %4579 = vmatprep.mubr.f32.mxu0 %v3753_v29  ;;  %v2040_v20 = vmul.f32 0.044715, %v9837_v5  ;;  %v3008_v6 = vmul.f32 0.7978846, %v2752_v25  ;;  %v9874_v43 = vadd.f32 %v9591_v35, %v9093_v38  ;;  %v2505_v23 = vmul.f32 %v9694_v21, %v9641_v49  ;;  %v6778_v29 = vld [vmem:[%s7030_s23 + $0xb0] sm:$0xff]  ;;  %v9881_v25 = vpop.f32.mrb[122].mxu1 }
 0x240   : > { %v6345_v58 = vpop.eup %6344  ;;  %v3752_v52 = vmul.f32 %v3496_v16, %v9782_v40  ;;  %v3505_v53 = vadd.f32 1.0, %v6343_v31  ;;  %v2041_v45 = vmul.f32 0.044715, %v9851_v33  ;;  %6350 = vtanh.f32 %v3009_v4  ;;  %1512 = vmatmul.mubr.f32.gmra.mrb[214].mxu1 %v6778_v29  ;;  %v9889_v46 = vpop.f32.mrb[123].mxu1 }
 0x241   : > { %v3504_v60 = vadd.f32 1.0, %v6345_v58  ;;  %6352 = vtanh.f32 %v3008_v6  ;;  %v9885_v35 = vadd.f32 %v9600_v3, %v9101_v48  ;;  %v2761_v21 = vadd.f32 %v2505_v23, %v9641_v49  ;;  %1517 = vmatprep.mubr.f32.mxu1 %v6779_v15 }
 0x242   : > { %4580 = vmatmul.mubr.f32.gmra.mrb[16].mxu0 %v3752_v52  ;;  %v3761_v40 = vmul.f32 %v3505_v53, %v9799_v24  ;;  %v2504_v16 = vmul.f32 %v9673_v39, %v9620_v26  ;;  %v5797_v4 = vpack.c.bf16 %v4097_v19, %v4095_v37  ;;  %v5799_v31 = vpack.c.bf16 %v4096_v0, %v4094_v11  ;;  %v9908_v19 = vpop.f32.mrb[124].mxu1  ;;  %v6781_v53 = vld [vmem:[%s7030_s23 + $0xd8] sm:$0xff] }
 0x243   : > { %v9895_v6 = vmul.f32 %v2040_v20, %v9837_v5  ;;  %v9898_v3 = vmul.f32 0.5, %v9570_v36  ;;  %v2048_v23 = vmul.f32 0.044715, %v9874_v43  ;;  %v3017_v15 = vmul.f32 0.7978846, %v2761_v21 }
 0x244   : > { %4585 = vmatprep.mubr.f32.mxu0 %v3761_v40  ;;  %v3760_v58 = vmul.f32 %v3504_v60, %v9820_v10  ;;  %v9903_v24 = vmul.f32 0.5, %v9565_v51  ;;  %v2760_v39 = vadd.f32 %v2504_v16, %v9620_v26  ;;  %5798 = vmatprep.subr.bf16.mxu0 %v5797_v4  ;;  %v2513_v37 = vmul.f32 %v9713_v9, %v9660_v18  ;;  %v6780_v10 = vld [vmem:[%s7030_s23 + $0xc0] sm:$0xff]  ;;  %v9917_v60 = vpop.f32.mrb[125].mxu1 }
 0x245   : > { %v6347_v36 = vpop.eup %6346  ;;  %v9911_v20 = vmul.f32 %v2041_v45, %v9851_v33  ;;  %v2049_v11 = vmul.f32 0.044715, %v9885_v35  ;;  %6354 = vtanh.f32 %v3017_v15  ;;  %5800 = vmatpush1.bf16.msra.mxu0 %v5799_v31  ;;  %v2512_v51 = vmul.f32 %v9706_v41, %v9650_v1  ;;  %1518 = vmatmul.mubr.f32.gmra.mrb[216].mxu1 %v6780_v10  ;;  %v9936_v15 = vpop.f32.mrb[126].mxu1 }
 0x246   : > { %4586 = vmatmul.mubr.f32.gmra.mrb[18].mxu0 %v3760_v58  ;;  %v3513_v9 = vadd.f32 1.0, %v6347_v36  ;;  %v3016_v0 = vmul.f32 0.7978846, %v2760_v39  ;;  %v9921_v52 = vadd.f32 %v9624_v28, %v9093_v38  ;;  %v2769_v45 = vadd.f32 %v2513_v37, %v9660_v18  ;;  %1523 = vmatprep.mubr.f32.mxu1 %v6781_v53  ;;  %v4099_v39 = vld [vmem:[#allocation2 + $0x4e8] sm:$0xff]  ;;  %v4101_v37 = vld [vmem:[#allocation2 + $0x4f8] sm:$0xff] }
 0x247   : > { %v6349_v29 = vpop.eup %6348  ;;  %v9926_v21 = vmul.f32 %v2048_v23, %v9874_v43  ;;  %v9929_v41 = vmul.f32 0.5, %v9641_v49  ;;  %v9932_v40 = vmul.f32 0.5, %v9620_v26  ;;  %v2768_v16 = vadd.f32 %v2512_v51, %v9650_v1 }
 0x248   : > { %v3769_v28 = vmul.f32 %v3513_v9, %v9847_v44  ;;  %v3512_v4 = vadd.f32 1.0, %v6349_v29  ;;  %6356 = vtanh.f32 %v3016_v0  ;;  %v3025_v31 = vmul.f32 0.7978846, %v2769_v45  ;;  %v6782_v44 = vld [vmem:[%s7030_s23 + $0xd0] sm:$0xff]  ;;  %v6783_v0 = vld [vmem:[%s7030_s23 + $0xe8] sm:$0xff]  ;;  %v9954_v45 = vpop.f32.mrb[127].mxu1 }
 0x249   : > { %v9939_v58 = vmul.f32 %v2049_v11, %v9885_v35  ;;  %v9943_v49 = vadd.f32 %v9633_v54, %v9101_v48  ;;  %v3024_v23 = vmul.f32 0.7978846, %v2768_v16  ;;  %v2521_v26 = vmul.f32 %v9759_v27, %v9701_v32  ;;  %1524 = vmatmul.mubr.f32.gmra.mrb[218].mxu1 %v6782_v44  ;;  %v4098_v54 = vld [vmem:[#allocation2 + $0x4e0] sm:$0xff]  ;;  %v4100_v9 = vld [vmem:[#allocation2 + $0x4f0] sm:$0xff] }
 0x24a   : > { %v6351_v36 = vpop.eup %6350  ;;  %4591 = vmatprep.mubr.f32.mxu0 %v3769_v28  ;;  %v3768_v51 = vmul.f32 %v3512_v4, %v9859_v55  ;;  %v2056_v11 = vmul.f32 0.044715, %v9921_v52  ;;  %v9951_v10 = vmul.f32 0.5, %v9660_v18  ;;  %6358 = vtanh.f32 %v3025_v31  ;;  %1529 = vmatprep.mubr.f32.mxu1 %v6783_v0  ;;  %v9967_v31 = vpop.f32.mrb[128].mxu1 }
 0x24b   : > { %v6353_v27 = vpop.eup %6352  ;;  %v3521_v53 = vadd.f32 1.0, %v6351_v36  ;;  %6360 = vtanh.f32 %v3024_v23  ;;  %v9958_v29 = vadd.f32 %v9655_v34, %v9093_v38  ;;  %v9962_v55 = vadd.f32 %v9662_v7, %v9101_v48  ;;  %v6784_v36 = vld [vmem:[%s7030_s23 + $0xe0] sm:$0xff] }
 0x24c   : > { %4592 = vmatmul.mubr.f32.gmra.mrb[20].mxu0 %v3768_v51  ;;  %v3520_v18 = vadd.f32 1.0, %v6353_v27  ;;  %v2777_v16 = vadd.f32 %v2521_v26, %v9701_v32  ;;  %v2520_v28 = vmul.f32 %v9744_v56, %v9684_v12  ;;  %v5801_v4 = vpack.c.bf16 %v4101_v37, %v4099_v39  ;;  %v9975_v51 = vpop.f32.mrb[129].mxu1 }
 0x24d   : > { %v3777_v23 = vmul.f32 %v3521_v53, %v9898_v3  ;;  %v2057_v34 = vmul.f32 0.044715, %v9943_v49  ;;  %v9972_v44 = vmul.f32 0.5, %v9650_v1  ;;  %v5803_v7 = vpack.c.bf16 %v4100_v9, %v4098_v54  ;;  %1530 = vmatmul.mubr.f32.gmra.mrb[220].mxu1 %v6784_v36  ;;  %v6785_v3 = vld [vmem:[%s7030_s23 + $0xf8] sm:$0xff] }
 0x24e   : > { %v3776_v26 = vmul.f32 %v3520_v18, %v9903_v24  ;;  %v9979_v0 = vmul.f32 %v2056_v11, %v9921_v52  ;;  %v3033_v56 = vmul.f32 0.7978846, %v2777_v16  ;;  %v2776_v39 = vadd.f32 %v2520_v28, %v9684_v12  ;;  %5802 = vmatprep.subr.bf16.mxu0 %v5801_v4  ;;  %1535 = vmatprep.mubr.f32.mxu1 %v6785_v3  ;;  %v9993_v18 = vpop.f32.mrb[130].mxu1  ;;  %v6786_v4 = vld [vmem:[%s7030_s23 + $0xf0] sm:$0xff]  ;;  %v4103_v3 = vld [vmem:[#allocation2 + $0x508] sm:$0xff] }
 0x24f   : > { %v6355_v37 = vpop.eup %6354  ;;  %4597 = vmatprep.mubr.f32.mxu0 %v3777_v23  ;;  %v2064_v1 = vmul.f32 0.044715, %v9958_v29  ;;  %v2065_v54 = vmul.f32 0.044715, %v9962_v55  ;;  %5804 = vmatpush1.bf16.msra.mxu0 %v5803_v7  ;;  %v9987_v24 = vadd.f32 %v9678_v57, %v9093_v38  ;;  %v2529_v11 = vmul.f32 %v9787_v30, %v9732_v13  ;;  %12784 = vst [vmem:[#allocation23_spill] sm:$0xff] %v9993_v18  ;;  %v10007_v23 = vpop.f32.mrb[131].mxu1 }
 0x250   : > { %4598 = vmatmul.mubr.f32.gmra.mrb[22].mxu0 %v3776_v26  ;;  %v3529_v9 = vadd.f32 1.0, %v6355_v37  ;;  %6362 = vtanh.f32 %v3033_v56  ;;  %v3032_v27 = vmul.f32 0.7978846, %v2776_v39  ;;  %v2528_v53 = vmul.f32 %v9776_v2, %v9722_v63  ;;  %12785 = vst [vmem:[#allocation27_spill] sm:$0xff] %v10007_v23  ;;  %v4105_v37 = vld [vmem:[#allocation2 + $0x518] sm:$0xff]  ;;  %v12788_v23 = vld [vmem:[#allocation25_spill] sm:$0xff] }
 0x251   : > { %v9996_v16 = vmul.f32 %v2057_v34, %v9943_v49  ;;  %v9999_v28 = vmul.f32 0.5, %v9701_v32  ;;  %v10003_v57 = vadd.f32 %v9688_v61, %v9101_v48  ;;  %v2785_v30 = vadd.f32 %v2529_v11, %v9732_v13  ;;  %1536 = vmatmul.mubr.f32.gmra.mrb[222].mxu1 %v6786_v4  ;;  %v6787_v34 = vld [vmem:[%s7030_s23 + $0x108] sm:$0xff] }
 0x252   : > { %v6357_v7 = vpop.eup %6356  ;;  %v3785_v2 = vmul.f32 %v3529_v9, %v9929_v41  ;;  %v10011_v36 = vmul.f32 0.5, %v9684_v12  ;;  %6364 = vtanh.f32 %v3032_v27  ;;  %v2784_v32 = vadd.f32 %v2528_v53, %v9722_v63  ;;  %1541 = vmatprep.mubr.f32.mxu1 %v6787_v34  ;;  %v4102_v41 = vld [vmem:[#allocation2 + $0x500] sm:$0xff]  ;;  %v10028_v53 = vpop.f32.mrb[132].mxu1 }
 0x253   : > { %v3528_v26 = vadd.f32 1.0, %v6357_v7  ;;  %v10016_v61 = vmul.f32 %v2064_v1, %v9958_v29  ;;  %v10019_v56 = vmul.f32 %v2065_v54, %v9962_v55  ;;  %v3041_v39 = vmul.f32 0.7978846, %v2785_v30  ;;  %v4104_v54 = vld [vmem:[#allocation2 + $0x510] sm:$0xff]  ;;  %12786 = vst [vmem:[#allocation26_spill] sm:$0xff] %v10028_v53  ;;  %v6788_v34 = vld [vmem:[%s7030_s23 + $0x100] sm:$0xff] }
 0x254   : > { %v6359_v11 = vpop.eup %6358  ;;  %4603 = vmatprep.mubr.f32.mxu0 %v3785_v2  ;;  %v2072_v12 = vmul.f32 0.044715, %v9987_v24  ;;  %v3040_v9 = vmul.f32 0.7978846, %v2784_v32  ;;  %v10024_v27 = vadd.f32 %v9710_v50, %v9093_v38  ;;  %v2537_v1 = vmul.f32 %v9844_v62, %v9791_v42  ;;  %v10033_v32 = vpop.f32.mrb[133].mxu1  ;;  %v6789_v53 = vld [vmem:[%s7030_s23 + $0x118] sm:$0xff] }
 0x255   : > { %v6361_v30 = vpop.eup %6360  ;;  %v3784_v4 = vmul.f32 %v3528_v26, %v9932_v40  ;;  %v3537_v7 = vadd.f32 1.0, %v6359_v11  ;;  %v2073_v2 = vmul.f32 0.044715, %v10003_v57  ;;  %6366 = vtanh.f32 %v3041_v39  ;;  %1542 = vmatmul.mubr.f32.gmra.mrb[224].mxu1 %v6788_v34  ;;  %12787 = vst [vmem:[#allocation40_spill] sm:$0xff] %v10033_v32 }
 0x256   : > { %v3536_v50 = vadd.f32 1.0, %v6361_v30  ;;  %6368 = vtanh.f32 %v3040_v9  ;;  %v10037_v18 = vadd.f32 %v12788_v23, %v9101_v48  ;;  %v2793_v62 = vadd.f32 %v2537_v1, %v9791_v42  ;;  %1547 = vmatprep.mubr.f32.mxu1 %v6789_v53  ;;  %v10051_v30 = vpop.f32.mrb[134].mxu1 }
 0x257   : > { %4604 = vmatmul.mubr.f32.gmra.mrb[24].mxu0 %v3784_v4  ;;  %v3793_v40 = vmul.f32 %v3537_v7, %v9951_v10  ;;  %v2536_v26 = vmul.f32 %v9827_v47, %v9769_v22  ;;  %v5805_v39 = vpack.c.bf16 %v4105_v37, %v4103_v3  ;;  %v5807_v11 = vpack.c.bf16 %v4104_v54, %v4102_v41  ;;  %v10060_v3 = vpop.f32.mrb[135].mxu1 }
 0x258   : > { %v10045_v34 = vmul.f32 %v2072_v12, %v9987_v24  ;;  %v10048_v9 = vmul.f32 0.5, %v9732_v13  ;;  %v2080_v23 = vmul.f32 0.044715, %v10024_v27  ;;  %v3049_v1 = vmul.f32 0.7978846, %v2793_v62  ;;  %12789 = vst [vmem:[#allocation39_spill] sm:$0xff] %v10051_v30 }
 0x259   : > { %4609 = vmatprep.mubr.f32.mxu0 %v3793_v40  ;;  %v3792_v10 = vmul.f32 %v3536_v50, %v9972_v44  ;;  %v10055_v53 = vmul.f32 0.5, %v9722_v63  ;;  %v2792_v47 = vadd.f32 %v2536_v26, %v9769_v22  ;;  %5806 = vmatprep.subr.bf16.mxu0 %v5805_v39  ;;  %v2545_v13 = vmul.f32 %v9869_v14, %v9810_v59  ;;  %v6790_v44 = vld [vmem:[%s7030_s23 + $0x110] sm:$0xff]  ;;  %v12791_v14 = vld [vmem:[#allocation30_spill] sm:$0xff] }
 0x25a   : > { %12790 = vst [vmem:[#allocation29_spill] sm:$0xff] %v10060_v3  ;;  %v6363_v37 = vpop.eup %6362  ;;  %v10063_v41 = vmul.f32 %v2073_v2, %v10003_v57  ;;  %v2081_v12 = vmul.f32 0.044715, %v10037_v18  ;;  %6370 = vtanh.f32 %v3049_v1  ;;  %5808 = vmatpush1.bf16.msra.mxu0 %v5807_v11  ;;  %v2544_v63 = vmul.f32 %v9866_v8, %v9806_v17  ;;  %1548 = vmatmul.mubr.f32.gmra.mrb[226].mxu1 %v6790_v44  ;;  %v6791_v2 = vld [vmem:[%s7030_s23 + $0x128] sm:$0xff]  ;;  %v10085_v11 = vpop.f32.mrb[136].mxu1 }
 0x25b   : > { %4610 = vmatmul.mubr.f32.gmra.mrb[26].mxu0 %v3792_v10  ;;  %v3545_v54 = vadd.f32 1.0, %v6363_v37  ;;  %v3048_v4 = vmul.f32 0.7978846, %v2792_v47  ;;  %v10071_v7 = vadd.f32 %v12791_v14, %v9093_v38  ;;  %v2801_v50 = vadd.f32 %v2545_v13, %v9810_v59  ;;  %1553 = vmatprep.mubr.f32.mxu1 %v6791_v2  ;;  %12792 = vst [vmem:[#allocation28_spill] sm:$0xff] %v10085_v11  ;;  %v10088_v13 = vpop.f32.mrb[137].mxu1  ;;  %v4107_v44 = vld [vmem:[#allocation2 + $0x528] sm:$0xff] }
 0x25c   : > { %v6365_v62 = vpop.eup %6364  ;;  %v10076_v40 = vmul.f32 %v2080_v23, %v10024_v27  ;;  %v10079_v8 = vmul.f32 0.5, %v9791_v42  ;;  %v10082_v26 = vmul.f32 0.5, %v9769_v22  ;;  %v2800_v39 = vadd.f32 %v2544_v63, %v9806_v17  ;;  %12793 = vst [vmem:[#allocation46_spill] sm:$0xff] %v10088_v13  ;;  %v12794_v42 = vld [vmem:[#allocation20_spill] sm:$0xff]  ;;  %v4106_v2 = vld [vmem:[#allocation2 + $0x520] sm:$0xff]  ;;  %v12805_v30 = vld [vmem:[#allocation38_spill] sm:$0xff] }
 0x25d   : > { %v3801_v1 = vmul.f32 %v3545_v54, %v9999_v28  ;;  %v3544_v10 = vadd.f32 1.0, %v6365_v62  ;;  %6372 = vtanh.f32 %v3048_v4  ;;  %v3057_v47 = vmul.f32 0.7978846, %v2801_v50  ;;  %v4109_v14 = vld [vmem:[#allocation2 + $0x538] sm:$0xff]  ;;  %v6792_v28 = vld [vmem:[%s7030_s23 + $0x120] sm:$0xff]  ;;  %v4108_v62 = vld [vmem:[#allocation2 + $0x530] sm:$0xff] }
 0x25e   : > { %v10091_v23 = vmul.f32 %v2081_v12, %v10037_v18  ;;  %v10095_v37 = vadd.f32 %v12794_v42, %v9101_v48  ;;  %v3056_v22 = vmul.f32 0.7978846, %v2800_v39  ;;  %v2553_v63 = vmul.f32 %v9911_v20, %v9851_v33  ;;  %1554 = vmatmul.mubr.f32.gmra.mrb[228].mxu1 %v6792_v28  ;;  %v6793_v39 = vld [vmem:[%s7030_s23 + $0x138] sm:$0xff]  ;;  %v12795_v28 = vld [vmem:[#allocation19_spill] sm:$0xff] }
 0x25f   : > { %v6367_v54 = vpop.eup %6366  ;;  %4615 = vmatprep.mubr.f32.mxu0 %v3801_v1  ;;  %v3800_v4 = vmul.f32 %v3544_v10, %v10011_v36  ;;  %v2088_v12 = vmul.f32 0.044715, %v10071_v7  ;;  %v10103_v50 = vmul.f32 0.5, %v9810_v59  ;;  %6374 = vtanh.f32 %v3057_v47  ;;  %1559 = vmatprep.mubr.f32.mxu1 %v6793_v39  ;;  %v12796_v36 = vld [vmem:[#allocation22_spill] sm:$0xff]  ;;  %v10114_v10 = vpop.f32.mrb[138].mxu1 }
 0x260   : > { %v6369_v42 = vpop.eup %6368  ;;  %v3553_v20 = vadd.f32 1.0, %v6367_v54  ;;  %6376 = vtanh.f32 %v3056_v22  ;;  %v10108_v13 = vadd.f32 %v12795_v28, %v9093_v38  ;;  %v10112_v1 = vadd.f32 %v12796_v36, %v9101_v48  ;;  %12797 = vst [vmem:[#allocation45_spill] sm:$0xff] %v10114_v10  ;;  %v10119_v22 = vpop.f32.mrb[139].mxu1  ;;  %v6794_v10 = vld [vmem:[%s7030_s23 + $0x130] sm:$0xff] }
 0x261   : > { %4616 = vmatmul.mubr.f32.gmra.mrb[28].mxu0 %v3800_v4  ;;  %v3552_v59 = vadd.f32 1.0, %v6369_v42  ;;  %v2809_v47 = vadd.f32 %v2553_v63, %v9851_v33  ;;  %v2552_v39 = vmul.f32 %v9895_v6, %v9837_v5  ;;  %v5809_v54 = vpack.c.bf16 %v4109_v14, %v4107_v44  ;;  %12798 = vst [vmem:[#allocation34_spill] sm:$0xff] %v10119_v22  ;;  %v6795_v44 = vld [vmem:[%s7030_s23 + $0x148] sm:$0xff]  ;;  %v6798_v22 = vld [vmem:[%s7030_s23 + $0x150] sm:$0xff] }
 0x262   : > { %v3809_v28 = vmul.f32 %v3553_v20, %v10048_v9  ;;  %v2089_v11 = vmul.f32 0.044715, %v10095_v37  ;;  %v10124_v36 = vmul.f32 0.5, %v9806_v17  ;;  %v5811_v3 = vpack.c.bf16 %v4108_v62, %v4106_v2  ;;  %1560 = vmatmul.mubr.f32.gmra.mrb[230].mxu1 %v6794_v10  ;;  %v12799_v2 = vld [vmem:[#allocation21_spill] sm:$0xff] }
 0x263   : > { %v3808_v4 = vmul.f32 %v3552_v59, %v10055_v53  ;;  %v10129_v63 = vmul.f32 %v2088_v12, %v10071_v7  ;;  %v3065_v42 = vmul.f32 0.7978846, %v2809_v47  ;;  %v2808_v6 = vadd.f32 %v2552_v39, %v9837_v5  ;;  %5810 = vmatprep.subr.bf16.mxu0 %v5809_v54  ;;  %1565 = vmatprep.mubr.f32.mxu1 %v6795_v44  ;;  %v10141_v62 = vpop.f32.mrb[140].mxu1  ;;  %v6797_v44 = vld [vmem:[%s7030_s23 + $0x158] sm:$0xff] }
 0x264   : > { %v6371_v9 = vpop.eup %6370  ;;  %4621 = vmatprep.mubr.f32.mxu0 %v3809_v28  ;;  %v2096_v14 = vmul.f32 0.044715, %v10108_v13  ;;  %v2097_v17 = vmul.f32 0.044715, %v10112_v1  ;;  %5812 = vmatpush1.bf16.msra.mxu0 %v5811_v3  ;;  %v10137_v53 = vadd.f32 %v12799_v2, %v9093_v38  ;;  %v2561_v12 = vmul.f32 %v9939_v58, %v9885_v35  ;;  %12800 = vst [vmem:[#allocation33_spill] sm:$0xff] %v10141_v62  ;;  %v10145_v47 = vpop.f32.mrb[141].mxu1 }
 0x265   : > { %4622 = vmatmul.mubr.f32.gmra.mrb[30].mxu0 %v3808_v4  ;;  %v3561_v20 = vadd.f32 1.0, %v6371_v9  ;;  %6378 = vtanh.f32 %v3065_v42  ;;  %v3064_v10 = vmul.f32 0.7978846, %v2808_v6  ;;  %v2560_v59 = vmul.f32 %v9926_v21, %v9874_v43  ;;  %12801 = vst [vmem:[#allocation48_spill] sm:$0xff] %v10145_v47  ;;  %v12802_v58 = vld [vmem:[#allocation32_spill] sm:$0xff]  ;;  %v6796_v4 = vld [vmem:[%s7030_s23 + $0x140] sm:$0xff] }
 0x266   : > { %v10148_v3 = vmul.f32 %v2089_v11, %v10095_v37  ;;  %v10151_v39 = vmul.f32 0.5, %v9851_v33  ;;  %v10155_v54 = vadd.f32 %v12802_v58, %v9101_v48  ;;  %v2817_v28 = vadd.f32 %v2561_v12, %v9885_v35  ;;  %1566 = vmatmul.mubr.f32.gmra.mrb[232].mxu1 %v6796_v4  ;;  %v4111_v58 = vld [vmem:[#allocation2 + $0x548] sm:$0xff]  ;;  %v4113_v4 = vld [vmem:[#allocation2 + $0x558] sm:$0xff] }
 0x267   : > { %v6373_v42 = vpop.eup %6372  ;;  %v3817_v6 = vmul.f32 %v3561_v20, %v10079_v8  ;;  %v10161_v21 = vmul.f32 0.5, %v9837_v5  ;;  %6380 = vtanh.f32 %v3064_v10  ;;  %v2816_v11 = vadd.f32 %v2560_v59, %v9874_v43  ;;  %1571 = vmatprep.mubr.f32.mxu1 %v6797_v44  ;;  %v4110_v8 = vld [vmem:[#allocation2 + $0x540] sm:$0xff]  ;;  %v12803_v59 = vld [vmem:[#allocation31_spill] sm:$0xff] }
 0x268   : > { %v3560_v33 = vadd.f32 1.0, %v6373_v42  ;;  %v10166_v9 = vmul.f32 %v2096_v14, %v10108_v13  ;;  %v10169_v2 = vmul.f32 %v2097_v17, %v10112_v1  ;;  %v3073_v12 = vmul.f32 0.7978846, %v2817_v28  ;;  %v4112_v17 = vld [vmem:[#allocation2 + $0x550] sm:$0xff]  ;;  %v10178_v42 = vpop.f32.mrb[142].mxu1 }
 0x269   : > { %v6375_v20 = vpop.eup %6374  ;;  %4627 = vmatprep.mubr.f32.mxu0 %v3817_v6  ;;  %v2104_v5 = vmul.f32 0.044715, %v10137_v53  ;;  %v3072_v10 = vmul.f32 0.7978846, %v2816_v11  ;;  %v10174_v44 = vadd.f32 %v12803_v59, %v9093_v38  ;;  %v2569_v14 = vmul.f32 %v9996_v16, %v9943_v49  ;;  %12804 = vst [vmem:[#allocation47_spill] sm:$0xff] %v10178_v42  ;;  %v10183_v11 = vpop.f32.mrb[143].mxu1 }
 0x26a   : > { %v6377_v28 = vpop.eup %6376  ;;  %v3816_v47 = vmul.f32 %v3560_v33, %v10082_v26  ;;  %v3569_v62 = vadd.f32 1.0, %v6375_v20  ;;  %v2105_v6 = vmul.f32 0.044715, %v10155_v54  ;;  %6382 = vtanh.f32 %v3073_v12  ;;  %1572 = vmatmul.mubr.f32.gmra.mrb[234].mxu1 %v6798_v22  ;;  %v6799_v42 = vld [vmem:[%s7030_s23 + $0x168] sm:$0xff] }
 0x26b   : > { %v3568_v59 = vadd.f32 1.0, %v6377_v28  ;;  %6384 = vtanh.f32 %v3072_v10  ;;  %v10187_v32 = vadd.f32 %v12805_v30, %v9101_v48  ;;  %v2825_v16 = vadd.f32 %v2569_v14, %v9943_v49  ;;  %1577 = vmatprep.mubr.f32.mxu1 %v6799_v42  ;;  %v12806_v28 = vld [vmem:[#allocation37_spill] sm:$0xff] }
 0x26c   : > { %4628 = vmatmul.mubr.f32.gmra.mrb[32].mxu0 %v3816_v47  ;;  %v3825_v26 = vmul.f32 %v3569_v62, %v10103_v50  ;;  %v2568_v33 = vmul.f32 %v9979_v0, %v9921_v52  ;;  %v5813_v12 = vpack.c.bf16 %v4113_v4, %v4111_v58  ;;  %v5815_v22 = vpack.c.bf16 %v4112_v17, %v4110_v8 }
 0x26d   : > { %v10194_v20 = vpop.f32.mrb[144].mxu1  ;;  %v10197_v10 = vmul.f32 %v2104_v5, %v10137_v53  ;;  %v10200_v30 = vmul.f32 0.5, %v9885_v35  ;;  %v2112_v14 = vmul.f32 0.044715, %v10174_v44  ;;  %v3081_v42 = vmul.f32 0.7978846, %v2825_v16 }
 0x26e   : > { %v10203_v47 = vpop.f32.mrb[145].mxu1  ;;  %4633 = vmatprep.mubr.f32.mxu0 %v3825_v26  ;;  %v3824_v50 = vmul.f32 %v3568_v59, %v10124_v36  ;;  %v10207_v0 = vmul.f32 0.5, %v9874_v43  ;;  %v2824_v62 = vadd.f32 %v2568_v33, %v9921_v52  ;;  %5814 = vmatprep.subr.bf16.mxu0 %v5813_v12  ;;  %v2577_v35 = vmul.f32 %v10019_v56, %v9962_v55  ;;  %v6800_v43 = vld [vmem:[%s7030_s23 + $0x160] sm:$0xff] }
 0x26f   : > { %v6379_v58 = vpop.eup %6378  ;;  %v10213_v4 = vmul.f32 %v2105_v6, %v10155_v54  ;;  %v2113_v8 = vmul.f32 0.044715, %v10187_v32  ;;  %6386 = vtanh.f32 %v3081_v42  ;;  %5816 = vmatpush1.bf16.msra.mxu0 %v5815_v22  ;;  %v2576_v36 = vmul.f32 %v10016_v61, %v9958_v29  ;;  %1578 = vmatmul.mubr.f32.gmra.mrb[236].mxu1 %v6800_v43  ;;  %v6801_v6 = vld [vmem:[%s7030_s23 + $0x178] sm:$0xff] }
 0x270   : > { %4634 = vmatmul.mubr.f32.gmra.mrb[34].mxu0 %v3824_v50  ;;  %v3577_v5 = vadd.f32 1.0, %v6379_v58  ;;  %v3080_v17 = vmul.f32 0.7978846, %v2824_v62  ;;  %v10221_v59 = vadd.f32 %v12806_v28, %v9093_v38  ;;  %v2833_v56 = vadd.f32 %v2577_v35, %v9962_v55  ;;  %1583 = vmatprep.mubr.f32.mxu1 %v6801_v6  ;;  %v4117_v28 = vld [vmem:[#allocation2 + $0x578] sm:$0xff]  ;;  %v6802_v6 = vld [vmem:[%s7030_s23 + $0x170] sm:$0xff] }
 0x271   : > { %v10225_v16 = vpop.f32.mrb[146].mxu1  ;;  %v6381_v26 = vpop.eup %6380  ;;  %v10228_v33 = vmul.f32 %v2112_v14, %v10174_v44  ;;  %v10231_v61 = vmul.f32 0.5, %v9943_v49  ;;  %v10234_v12 = vmul.f32 0.5, %v9921_v52  ;;  %v2832_v22 = vadd.f32 %v2576_v36, %v9958_v29  ;;  %v12808_v14 = vld [vmem:[#allocation24_spill] sm:$0xff]  ;;  %v4115_v36 = vld [vmem:[#allocation2 + $0x568] sm:$0xff] }
 0x272   : > { %v10237_v42 = vpop.f32.mrb[147].mxu1  ;;  %v3833_v50 = vmul.f32 %v3577_v5, %v10151_v39  ;;  %v3576_v62 = vadd.f32 1.0, %v6381_v26  ;;  %6388 = vtanh.f32 %v3080_v17  ;;  %v3089_v35 = vmul.f32 0.7978846, %v2833_v56  ;;  %v4114_v56 = vld [vmem:[#allocation2 + $0x560] sm:$0xff]  ;;  %v4116_v26 = vld [vmem:[#allocation2 + $0x570] sm:$0xff] }
 0x273   : > { %12807 = vst [vmem:[#allocation54_spill] sm:$0xff] %v10237_v42  ;;  %v10241_v58 = vmul.f32 %v2113_v8, %v10187_v32  ;;  %v10245_v49 = vadd.f32 %v12808_v14, %v9101_v48  ;;  %v3088_v43 = vmul.f32 0.7978846, %v2832_v22  ;;  %v2585_v52 = vmul.f32 %v10063_v41, %v10003_v57  ;;  %1584 = vmatmul.mubr.f32.gmra.mrb[238].mxu1 %v6802_v6  ;;  %v6803_v22 = vld [vmem:[%s7030_s23 + $0x188] sm:$0xff] }
 0x274   : > { %v6383_v39 = vpop.eup %6382  ;;  %4639 = vmatprep.mubr.f32.mxu0 %v3833_v50  ;;  %v3832_v5 = vmul.f32 %v3576_v62, %v10161_v21  ;;  %v2120_v8 = vmul.f32 0.044715, %v10221_v59  ;;  %v10253_v17 = vmul.f32 0.5, %v9962_v55  ;;  %6390 = vtanh.f32 %v3089_v35  ;;  %1589 = vmatprep.mubr.f32.mxu1 %v6803_v22 }
 0x275   : > { %v10256_v14 = vpop.f32.mrb[148].mxu1  ;;  %v6385_v41 = vpop.eup %6384  ;;  %v3585_v42 = vadd.f32 1.0, %v6383_v39  ;;  %6392 = vtanh.f32 %v3088_v43  ;;  %v10260_v50 = vadd.f32 %v9881_v25, %v9093_v38  ;;  %v10264_v21 = vadd.f32 %v9889_v46, %v9101_v48 }
 0x276   : > { %12809 = vst [vmem:[#allocation53_spill] sm:$0xff] %v10256_v14  ;;  %v10266_v55 = vpop.f32.mrb[149].mxu1  ;;  %4640 = vmatmul.mubr.f32.gmra.mrb[36].mxu0 %v3832_v5  ;;  %v3584_v62 = vadd.f32 1.0, %v6385_v41  ;;  %v2841_v35 = vadd.f32 %v2585_v52, %v10003_v57  ;;  %v2584_v6 = vmul.f32 %v10045_v34, %v9987_v24  ;;  %v5817_v39 = vpack.c.bf16 %v4117_v28, %v4115_v36  ;;  %v6804_v14 = vld [vmem:[%s7030_s23 + $0x180] sm:$0xff]  ;;  %v6805_v34 = vld [vmem:[%s7030_s23 + $0x198] sm:$0xff] }
 0x277   : > { %12810 = vst [vmem:[#allocation36_spill] sm:$0xff] %v10266_v55  ;;  %v3841_v43 = vmul.f32 %v3585_v42, %v10200_v30  ;;  %v2121_v25 = vmul.f32 0.044715, %v10245_v49  ;;  %v10274_v22 = vmul.f32 0.5, %v9958_v29  ;;  %v5819_v46 = vpack.c.bf16 %v4116_v26, %v4114_v56  ;;  %1590 = vmatmul.mubr.f32.gmra.mrb[240].mxu1 %v6804_v14 }
 0x278   : > { %v3840_v5 = vmul.f32 %v3584_v62, %v10207_v0  ;;  %v10279_v41 = vmul.f32 %v2120_v8, %v10221_v59  ;;  %v3097_v52 = vmul.f32 0.7978846, %v2841_v35  ;;  %v2840_v55 = vadd.f32 %v2584_v6, %v9987_v24  ;;  %5818 = vmatprep.subr.bf16.mxu0 %v5817_v39  ;;  %1595 = vmatprep.mubr.f32.mxu1 %v6805_v34  ;;  %v6806_v6 = vld [vmem:[%s7030_s23 + $0x190] sm:$0xff] }
 0x279   : > { %v10283_v30 = vpop.f32.mrb[150].mxu1  ;;  %v6387_v42 = vpop.eup %6386  ;;  %4645 = vmatprep.mubr.f32.mxu0 %v3841_v43  ;;  %v2128_v29 = vmul.f32 0.044715, %v10260_v50  ;;  %v2129_v36 = vmul.f32 0.044715, %v10264_v21  ;;  %5820 = vmatpush1.bf16.msra.mxu0 %v5819_v46  ;;  %v10289_v0 = vadd.f32 %v9908_v19, %v9093_v38  ;;  %v2593_v28 = vmul.f32 %v10091_v23, %v10037_v18 }
 0x27a   : > { %v10293_v8 = vpop.f32.mrb[151].mxu1  ;;  %4646 = vmatmul.mubr.f32.gmra.mrb[38].mxu0 %v3840_v5  ;;  %v3593_v56 = vadd.f32 1.0, %v6387_v42  ;;  %6394 = vtanh.f32 %v3097_v52  ;;  %v3096_v26 = vmul.f32 0.7978846, %v2840_v55  ;;  %v2592_v14 = vmul.f32 %v10076_v40, %v10024_v27  ;;  %v4120_v42 = vld [vmem:[#allocation2 + $0x590] sm:$0xff] }
 0x27b   : > { %v10298_v62 = vmul.f32 %v2121_v25, %v10245_v49  ;;  %v10301_v35 = vmul.f32 0.5, %v10003_v57  ;;  %v10305_v19 = vadd.f32 %v9917_v60, %v9101_v48  ;;  %v2849_v23 = vadd.f32 %v2593_v28, %v10037_v18  ;;  %1596 = vmatmul.mubr.f32.gmra.mrb[242].mxu1 %v6806_v6  ;;  %v4119_v25 = vld [vmem:[#allocation2 + $0x588] sm:$0xff] }
 0x27c   : > { %v6389_v39 = vpop.eup %6388  ;;  %v3849_v55 = vmul.f32 %v3593_v56, %v10231_v61  ;;  %v10311_v43 = vmul.f32 0.5, %v9987_v24  ;;  %6396 = vtanh.f32 %v3096_v26  ;;  %v2848_v40 = vadd.f32 %v2592_v14, %v10024_v27  ;;  %v6807_v57 = vld [vmem:[%s7030_s23 + $0x1a8] sm:$0xff]  ;;  %v4121_v61 = vld [vmem:[#allocation2 + $0x598] sm:$0xff]  ;;  %v4118_v24 = vld [vmem:[#allocation2 + $0x580] sm:$0xff] }
 0x27d   : > { %1601 = vmatprep.mubr.f32.mxu1 %v6807_v57  ;;  %v10315_v46 = vpop.f32.mrb[152].mxu1  ;;  %v3592_v60 = vadd.f32 1.0, %v6389_v39  ;;  %v10318_v5 = vmul.f32 %v2128_v29, %v10260_v50  ;;  %v10321_v52 = vmul.f32 %v2129_v36, %v10264_v21  ;;  %v3105_v34 = vmul.f32 0.7978846, %v2849_v23 }
 0x27e   : > { %12811 = vst [vmem:[#allocation35_spill] sm:$0xff] %v10315_v46  ;;  %v6391_v28 = vpop.eup %6390  ;;  %4651 = vmatprep.mubr.f32.mxu0 %v3849_v55  ;;  %v2136_v56 = vmul.f32 0.044715, %v10289_v0  ;;  %v10325_v26 = vmul.f32 0.5, %v10037_v18  ;;  %v3104_v14 = vmul.f32 0.7978846, %v2848_v40  ;;  %v2601_v29 = vmul.f32 %v10148_v3, %v10095_v37 }
 0x27f   : > { %v10329_v6 = vpop.f32.mrb[153].mxu1  ;;  %v6393_v36 = vpop.eup %6392  ;;  %v3848_v23 = vmul.f32 %v3592_v60, %v10234_v12  ;;  %v3601_v39 = vadd.f32 1.0, %v6391_v28  ;;  %v2137_v57 = vmul.f32 0.044715, %v10305_v19  ;;  %6398 = vtanh.f32 %v3105_v34  ;;  %v6808_v55 = vld [vmem:[%s7030_s23 + $0x1a0] sm:$0xff]  ;;  %v6809_v3 = vld [vmem:[%s7030_s23 + $0x1b8] sm:$0xff] }
 0x280   : > { %12812 = vst [vmem:[#allocation42_spill] sm:$0xff] %v10329_v6  ;;  %1602 = vmatmul.mubr.f32.gmra.mrb[244].mxu1 %v6808_v55  ;;  %v3600_v46 = vadd.f32 1.0, %v6393_v36  ;;  %6400 = vtanh.f32 %v3104_v14  ;;  %v10336_v18 = vadd.f32 %v9936_v15, %v9093_v38  ;;  %v2857_v40 = vadd.f32 %v2601_v29, %v10095_v37  ;;  %v12813_v14 = vld [vmem:[#allocation15_spill] sm:$0xff] }
 0x281   : > { %1607 = vmatprep.mubr.f32.mxu1 %v6809_v3  ;;  %v10340_v6 = vpop.f32.mrb[154].mxu1  ;;  %4652 = vmatmul.mubr.f32.gmra.mrb[40].mxu0 %v3848_v23  ;;  %v3857_v12 = vmul.f32 %v3601_v39, %v10253_v17  ;;  %v2600_v60 = vmul.f32 %v10129_v63, %v10071_v7  ;;  %v5821_v34 = vpack.c.bf16 %v4121_v61, %v4119_v25  ;;  %v588_v29 = vsub.s32 4, %v12813_v14  ;;  %v6812_v3 = vld [vmem:[%s7030_s23 + $0x1c8] sm:$0xff] }
 0x282   : > { %v5823_v28 = vpack.c.bf16 %v4120_v42, %v4118_v24  ;;  %v10345_v36 = vpop.f32.mrb[155].mxu1  ;;  %v10349_v38 = vadd.f32 %v9954_v45, %v9101_v48  ;;  %v3113_v15 = vmul.f32 0.7978846, %v2857_v40  ;;  %v592_v55 = vsub.s32 5, %v12813_v14  ;;  %v6810_v45 = vld [vmem:[%s12519_s2] sm:$0xff] }
 0x283   : > { %4657 = vmatprep.mubr.f32.mxu0 %v3857_v12  ;;  %v3856_v17 = vmul.f32 %v3600_v46, %v10274_v22  ;;  %v10355_v23 = vmul.f32 0.5, %v10024_v27  ;;  %v2856_v63 = vadd.f32 %v2600_v60, %v10071_v7  ;;  %5822 = vmatprep.subr.bf16.mxu0 %v5821_v34  ;;  %v2609_v25 = vmul.f32 %v10169_v2, %v10112_v1  ;;  %v6811_v46 = vld [vmem:[%s7030_s23 + $0x1b0] sm:$0xff] }
 0x284   : > { %v6395_v48 = vpop.eup %6394  ;;  %6402 = vtanh.f32 %v3113_v15  ;;  %5824 = vmatpush1.bf16.msra.mxu0 %v5823_v28  ;;  %v10363_v61 = vrot.slane %v6810_v45, %v588_v29  ;;  %v10365_v22 = vrot.slane %v6810_v45, %v592_v55  ;;  %v2608_v27 = vmul.f32 %v10166_v9, %v10108_v13  ;;  %1608 = vmatmul.mubr.f32.gmra.mrb[246].mxu1 %v6811_v46  ;;  %v6814_v46 = vld [vmem:[%s7030_s23 + $0x1d8] sm:$0xff] }
 0x285   : > { %v10370_v24 = vpop.f32.mrb[156].mxu1  ;;  %4658 = vmatmul.mubr.f32.gmra.mrb[42].mxu0 %v3856_v17  ;;  %v3609_v2 = vadd.f32 1.0, %v6395_v48  ;;  %v10373_v42 = vmul.f32 %v2136_v56, %v10289_v0  ;;  %v3112_v39 = vmul.f32 0.7978846, %v2856_v63  ;;  %v2865_v40 = vadd.f32 %v2609_v25, %v10112_v1  ;;  %1613 = vmatprep.mubr.f32.mxu1 %v6812_v3  ;;  %v12817_v3 = vld [vmem:[#allocation23_spill] sm:$0xff] }
 0x286   : > { %v10377_v12 = vpop.f32.mrb[157].mxu1  ;;  %v6397_v60 = vpop.eup %6396  ;;  %v10380_v9 = vmul.f32 %v2137_v57, %v10305_v19  ;;  %v2144_v34 = vmul.f32 0.044715, %v10336_v18  ;;  %v10385_v28 = vadd.f32 %v9967_v31, %v10363_v61  ;;  %v2864_v56 = vadd.f32 %v2608_v27, %v10108_v13  ;;  %v6813_v31 = vld [vmem:[%s7030_s23 + $0x1c0] sm:$0xff] }
 0x287   : > { %12814 = vst [vmem:[#allocation41_spill] sm:$0xff] %v10377_v12  ;;  %v3865_v15 = vmul.f32 %v3609_v2, %v10301_v35  ;;  %v3608_v29 = vadd.f32 1.0, %v6397_v60  ;;  %6404 = vtanh.f32 %v3112_v39  ;;  %v3121_v55 = vmul.f32 0.7978846, %v2865_v40 }
 0x288   : > { %v2145_v17 = vmul.f32 0.044715, %v10349_v38  ;;  %v10391_v63 = vmul.f32 0.5, %v10095_v37  ;;  %v1898_v57 = vmul.f32 0.044715, %v10385_v28  ;;  %v10396_v25 = vadd.f32 %v9975_v51, %v10365_v22  ;;  %1614 = vmatmul.mubr.f32.gmra.mrb[248].mxu1 %v6813_v31  ;;  %v4122_v31 = vld [vmem:[#allocation2 + $0x5a0] sm:$0xff] }
 0x289   : > { %v10399_v48 = vpop.f32.mrb[158].mxu1  ;;  %v6399_v35 = vpop.eup %6398  ;;  %4663 = vmatprep.mubr.f32.mxu0 %v3865_v15  ;;  %v3864_v45 = vmul.f32 %v3608_v29, %v10311_v43  ;;  %v10403_v27 = vmul.f32 0.5, %v10071_v7  ;;  %6406 = vtanh.f32 %v3121_v55  ;;  %v3120_v37 = vmul.f32 0.7978846, %v2864_v56  ;;  %1619 = vmatprep.mubr.f32.mxu1 %v6814_v46  ;;  %v12818_v43 = vld [vmem:[#allocation27_spill] sm:$0xff]  ;;  %v4123_v7 = vld [vmem:[#allocation2 + $0x5a8] sm:$0xff] }
 0x28a   : > { %12815 = vst [vmem:[#allocation56_spill] sm:$0xff] %v10399_v48  ;;  %v10406_v2 = vpop.f32.mrb[159].mxu1  ;;  %v6401_v39 = vpop.eup %6400  ;;  %v3617_v51 = vadd.f32 1.0, %v6399_v35  ;;  %v2154_v40 = vmul.f32 %v1898_v57, %v10385_v28  ;;  %v10411_v60 = vadd.f32 %v12817_v3, %v10363_v61  ;;  %v10415_v15 = vadd.f32 %v12818_v43, %v10365_v22  ;;  %v4125_v29 = vld [vmem:[#allocation2 + $0x5b8] sm:$0xff]  ;;  %v4124_v35 = vld [vmem:[#allocation2 + $0x5b0] sm:$0xff] }
 0x28b   : > { %12816 = vst [vmem:[#allocation55_spill] sm:$0xff] %v10406_v2  ;;  %4664 = vmatmul.mubr.f32.gmra.mrb[44].mxu0 %v3864_v45  ;;  %v3616_v56 = vadd.f32 1.0, %v6401_v39  ;;  %v10418_v55 = vmul.f32 %v2144_v34, %v10336_v18  ;;  %6408 = vtanh.f32 %v3120_v37  ;;  %v2617_v57 = vmul.f32 %v10213_v4, %v10155_v54  ;;  %v6815_v39 = vld [vmem:[%s7030_s23 + $0x1d0] sm:$0xff] }
 0x28c   : > { %v3873_v46 = vmul.f32 %v3617_v51, %v10325_v26  ;;  %v10424_v3 = vmul.f32 %v2145_v17, %v10349_v38  ;;  %v2410_v43 = vmul.f32 %v2154_v40, %v10385_v28  ;;  %v1899_v45 = vmul.f32 0.044715, %v10396_v25  ;;  %1620 = vmatmul.mubr.f32.gmra.mrb[250].mxu1 %v6815_v39  ;;  %v6816_v26 = vld [vmem:[%s7030_s23 + $0x1e8] sm:$0xff] }
 0x28d   : > { %v10429_v34 = vpop.f32.mrb[160].mxu1  ;;  %v3872_v37 = vmul.f32 %v3616_v56, %v10355_v23  ;;  %v2873_v14 = vadd.f32 %v2617_v57, %v10155_v54  ;;  %v2616_v4 = vmul.f32 %v10197_v10, %v10137_v53  ;;  %v5825_v2 = vpack.c.bf16 %v4125_v29, %v4123_v7  ;;  %1625 = vmatprep.mubr.f32.mxu1 %v6816_v26 }
 0x28e   : > { %12819 = vst [vmem:[#allocation44_spill] sm:$0xff] %v10429_v34  ;;  %v10436_v17 = vpop.f32.mrb[161].mxu1  ;;  %v6403_v51 = vpop.eup %6402  ;;  %4669 = vmatprep.mubr.f32.mxu0 %v3873_v46  ;;  %v1841_v40 = vmul.f32 0.5, %v10112_v1  ;;  %v1906_v39 = vmul.f32 0.044715, %v10411_v60  ;;  %v5827_v23 = vpack.c.bf16 %v4124_v35, %v4122_v31  ;;  %v1840_v57 = vmul.f32 0.5, %v10108_v13 }
 0x28f   : > { %12820 = vst [vmem:[#allocation43_spill] sm:$0xff] %v10436_v17  ;;  %v1907_v34 = vmul.f32 0.044715, %v10415_v15  ;;  %4670 = vmatmul.mubr.f32.gmra.mrb[46].mxu0 %v3872_v37  ;;  %v3625_v56 = vadd.f32 1.0, %v6403_v51  ;;  %v3129_v10 = vmul.f32 0.7978846, %v2873_v14  ;;  %v2872_v7 = vadd.f32 %v2616_v4, %v10137_v53  ;;  %5826 = vmatprep.subr.bf16.mxu0 %v5825_v2 }
 0x290   : > { %v10444_v29 = vmul.f32 0.5, %v10385_v28  ;;  %v10447_v46 = vmul.f32 %v1899_v45, %v10396_v25  ;;  %v10450_v1 = vmul.f32 0.5, %v10155_v54  ;;  %5828 = vmatpush1.bf16.msra.mxu0 %v5827_v23  ;;  %v2625_v31 = vmul.f32 %v10241_v58, %v10187_v32  ;;  %v6817_v35 = vld [vmem:[%s7030_s23 + $0x1e0] sm:$0xff]  ;;  %v6818_v4 = vld [vmem:[%s7030_s23 + $0x1f8] sm:$0xff]  ;;  %v12822_v51 = vld [vmem:[#allocation26_spill] sm:$0xff] }
 0x291   : > { %1626 = vmatmul.mubr.f32.gmra.mrb[252].mxu1 %v6817_v35  ;;  %v6405_v13 = vpop.eup %6404  ;;  %v3881_v14 = vmul.f32 %v3625_v56, %v10391_v63  ;;  %v2666_v2 = vadd.f32 %v2410_v43, %v10385_v28  ;;  %6410 = vtanh.f32 %v3129_v10  ;;  %v3128_v37 = vmul.f32 0.7978846, %v2872_v7  ;;  %v10458_v45 = vpop.f32.mrb[162].mxu1  ;;  %v12824_v7 = vld [vmem:[#allocation40_spill] sm:$0xff] }
 0x292   : > { %1631 = vmatprep.mubr.f32.mxu1 %v6818_v4  ;;  %12821 = vst [vmem:[#allocation60_spill] sm:$0xff] %v10458_v45  ;;  %v3624_v26 = vadd.f32 1.0, %v6405_v13  ;;  %v10461_v54 = vmul.f32 %v1906_v39, %v10411_v60  ;;  %v10464_v58 = vmul.f32 %v1907_v34, %v10415_v15  ;;  %v10468_v23 = vadd.f32 %v12822_v51, %v10363_v61  ;;  %v10470_v63 = vpop.f32.mrb[163].mxu1  ;;  %v6819_v4 = vld [vmem:[%s7030_s23 + $0x1f0] sm:$0xff] }
 0x293   : > { %12823 = vst [vmem:[#allocation59_spill] sm:$0xff] %v10470_v63  ;;  %v6407_v28 = vpop.eup %6406  ;;  %4675 = vmatprep.mubr.f32.mxu0 %v3881_v14  ;;  %v10473_v43 = vmul.f32 0.5, %v10137_v53  ;;  %6412 = vtanh.f32 %v3128_v37  ;;  %v2881_v56 = vadd.f32 %v2625_v31, %v10187_v32  ;;  %v2624_v39 = vmul.f32 %v10228_v33, %v10174_v44  ;;  %v4127_v14 = vld [vmem:[#allocation2 + $0x5c8] sm:$0xff] }
 0x294   : > { %v3880_v34 = vmul.f32 %v3624_v26, %v10403_v27  ;;  %v3633_v10 = vadd.f32 1.0, %v6407_v28  ;;  %v10481_v35 = vadd.f32 %v12824_v7, %v10365_v22  ;;  %v10484_v13 = vmul.f32 0.5, %v10187_v32  ;;  %v4129_v26 = vld [vmem:[#allocation2 + $0x5d8] sm:$0xff] }
 0x295   : > { %1632 = vmatmul.mubr.f32.gmra.mrb[254].mxu1 %v6819_v4  ;;  %v10487_v53 = vpop.f32.mrb[164].mxu1  ;;  %v6409_v37 = vpop.eup %6408  ;;  %v2922_v31 = vmul.f32 0.7978846, %v2666_v2  ;;  %v3137_v51 = vmul.f32 0.7978846, %v2881_v56  ;;  %v2880_v33 = vadd.f32 %v2624_v39, %v10174_v44  ;;  %v2633_v27 = vmul.f32 %v10298_v62, %v10245_v49  ;;  %v12827_v4 = vld [vmem:[#allocation39_spill] sm:$0xff] }
 0x296   : > { %12825 = vst [vmem:[#allocation50_spill] sm:$0xff] %v10487_v53  ;;  %v10492_v28 = vpop.f32.mrb[165].mxu1  ;;  %4676 = vmatmul.mubr.f32.gmra.mrb[48].mxu0 %v3880_v34  ;;  %v3889_v7 = vmul.f32 %v3633_v10, %v1841_v40  ;;  %v3632_v32 = vadd.f32 1.0, %v6409_v37  ;;  %v1914_v63 = vmul.f32 0.044715, %v10468_v23  ;;  %v10497_v45 = vadd.f32 %v12827_v4, %v10363_v61  ;;  %v4126_v53 = vld [vmem:[#allocation2 + $0x5c0] sm:$0xff] }
 0x297   : > { %12826 = vst [vmem:[#allocation49_spill] sm:$0xff] %v10492_v28  ;;  %v4128_v2 = vld [vmem:[#allocation2 + $0x5d0] sm:$0xff]  ;;  %6414 = vtanh.f32 %v3137_v51  ;;  %v3136_v56 = vmul.f32 0.7978846, %v2880_v33  ;;  %v12828_v39 = vld [vmem:[#allocation29_spill] sm:$0xff]  ;;  %v2889_v62 = vadd.f32 %v2633_v27, %v10245_v49  ;;  %v2632_v10 = vmul.f32 %v10279_v41, %v10221_v59 }
 0x298   : > { %v10501_v17 = vadd.f32 %v12828_v39, %v10365_v22  ;;  %4681 = vmatprep.mubr.f32.mxu0 %v3889_v7  ;;  %v3888_v34 = vmul.f32 %v3632_v32, %v1840_v57  ;;  %v1915_v40 = vmul.f32 0.044715, %v10481_v35  ;;  %v5829_v37 = vpack.c.bf16 %v4129_v26, %v4127_v14 }
 0x299   : > { %v10507_v4 = vpop.f32.mrb[166].mxu1  ;;  %v10510_v28 = vmul.f32 0.5, %v10174_v44  ;;  %6416 = vtanh.f32 %v3136_v56  ;;  %v3145_v51 = vmul.f32 0.7978846, %v2889_v62  ;;  %v5831_v33 = vpack.c.bf16 %v4128_v2, %v4126_v53 }
 0x29a   : > { %12829 = vst [vmem:[#allocation52_spill] sm:$0xff] %v10507_v4  ;;  %v10512_v39 = vpop.f32.mrb[167].mxu1  ;;  %6418 = vtanh.f32 %v2922_v31  ;;  %4682 = vmatmul.mubr.f32.gmra.mrb[50].mxu0 %v3888_v34  ;;  %v10515_v57 = vmul.f32 %v1914_v63, %v10468_v23  ;;  %v2888_v27 = vadd.f32 %v2632_v10, %v10221_v59  ;;  %5830 = vmatprep.subr.bf16.mxu0 %v5829_v37  ;;  %v1922_v44 = vmul.f32 0.044715, %v10497_v45  ;;  %v12831_v63 = vld [vmem:[#allocation28_spill] sm:$0xff]  ;;  %v12833_v10 = vld [vmem:[#allocation46_spill] sm:$0xff] }
 0x29b   : > { %12830 = vst [vmem:[#allocation51_spill] sm:$0xff] %v10512_v39  ;;  %v2641_v41 = vmul.f32 %v10321_v52, %v10264_v21  ;;  %v6411_v14 = vpop.eup %6410  ;;  %v1923_v26 = vmul.f32 0.044715, %v10501_v17  ;;  %6420 = vtanh.f32 %v3145_v51  ;;  %5832 = vmatpush1.bf16.msra.mxu0 %v5831_v33  ;;  %v2640_v53 = vmul.f32 %v10318_v5, %v10260_v50  ;;  %v12837_v39 = vld [vmem:[#allocation45_spill] sm:$0xff] }
 0x29c   : > { %v3641_v31 = vadd.f32 1.0, %v6411_v14  ;;  %v3144_v7 = vmul.f32 0.7978846, %v2888_v27  ;;  %v10526_v32 = vadd.f32 %v12831_v63, %v10363_v61  ;;  %v10532_v62 = vmul.f32 %v1915_v40, %v10481_v35 }
 0x29d   : > { %v2897_v2 = vadd.f32 %v2641_v41, %v10264_v21  ;;  %v10529_v56 = vpop.f32.mrb[168].mxu1  ;;  %v6413_v52 = vpop.eup %6412  ;;  %v10535_v34 = vmul.f32 0.5, %v10245_v49  ;;  %v10539_v5 = vadd.f32 %v12833_v10, %v10365_v22  ;;  %v2896_v37 = vadd.f32 %v2640_v53, %v10260_v50  ;;  %v4131_v10 = vld [vmem:[#allocation2 + $0x5e8] sm:$0xff] }
 0x29e   : > { %12832 = vst [vmem:[#allocation58_spill] sm:$0xff] %v10529_v56  ;;  %v10542_v51 = vpop.f32.mrb[169].mxu1  ;;  %v3897_v33 = vmul.f32 %v3641_v31, %v10450_v1  ;;  %v3640_v27 = vadd.f32 1.0, %v6413_v52  ;;  %v10546_v41 = vmul.f32 0.5, %v10221_v59  ;;  %6422 = vtanh.f32 %v3144_v7  ;;  %v4133_v56 = vld [vmem:[#allocation2 + $0x5f8] sm:$0xff]  ;;  %v4132_v7 = vld [vmem:[#allocation2 + $0x5f0] sm:$0xff] }
 0x29f   : > { %12834 = vst [vmem:[#allocation57_spill] sm:$0xff] %v10542_v51  ;;  %v10549_v40 = vmul.f32 %v1922_v44, %v10497_v45  ;;  %v3153_v49 = vmul.f32 0.7978846, %v2897_v2  ;;  %v3152_v14 = vmul.f32 0.7978846, %v2896_v37  ;;  %v2649_v63 = vmul.f32 %v10380_v9, %v10305_v19  ;;  %v4130_v44 = vld [vmem:[#allocation2 + $0x5e0] sm:$0xff] }
 0x2a0   : > { %4687 = vmatprep.mubr.f32.mxu0 %v3897_v33  ;;  %v3896_v53 = vmul.f32 %v3640_v27, %v10473_v43  ;;  %v10555_v1 = vmul.f32 %v1923_v26, %v10501_v17  ;;  %v1930_v59 = vmul.f32 0.044715, %v10526_v32  ;;  %v10559_v31 = vmul.f32 0.5, %v10264_v21 }
 0x2a1   : > { %v6415_v2 = vpop.eup %6414  ;;  %v1931_v52 = vmul.f32 0.044715, %v10539_v5  ;;  %6424 = vtanh.f32 %v3153_v49  ;;  %v2905_v9 = vadd.f32 %v2649_v63, %v10305_v19  ;;  %v2648_v37 = vmul.f32 %v10373_v42, %v10289_v0  ;;  %v10565_v43 = vpop.f32.mrb[170].mxu1 }
 0x2a2   : > { %12835 = vst [vmem:[#allocation6_spill] sm:$0xff] %v10565_v43  ;;  %4688 = vmatmul.mubr.f32.gmra.mrb[52].mxu0 %v3896_v53  ;;  %v3649_v26 = vadd.f32 1.0, %v6415_v2  ;;  %v10568_v33 = vmul.f32 0.5, %v10260_v50  ;;  %6426 = vtanh.f32 %v3152_v14  ;;  %v5833_v21 = vpack.c.bf16 %v4133_v56, %v4131_v10  ;;  %v10570_v27 = vpop.f32.mrb[171].mxu1  ;;  %v12838_v56 = vld [vmem:[#allocation34_spill] sm:$0xff] }
 0x2a3   : > { %12836 = vst [vmem:[#allocation5_spill] sm:$0xff] %v10570_v27  ;;  %v6417_v51 = vpop.eup %6416  ;;  %v10574_v49 = vadd.f32 %v12837_v39, %v10363_v61  ;;  %v3161_v63 = vmul.f32 0.7978846, %v2905_v9  ;;  %v2904_v4 = vadd.f32 %v2648_v37, %v10289_v0  ;;  %v5835_v42 = vpack.c.bf16 %v4132_v7, %v4130_v44  ;;  %v12840_v7 = vld [vmem:[#allocation33_spill] sm:$0xff] }
 0x2a4   : > { %v10577_v48 = vpop.eup %6418  ;;  %v3905_v53 = vmul.f32 %v3649_v26, %v10484_v13  ;;  %v3648_v2 = vadd.f32 1.0, %v6417_v51  ;;  %v10581_v50 = vmul.f32 %v1930_v59, %v10526_v32  ;;  %v10585_v14 = vadd.f32 %v12838_v56, %v10365_v22  ;;  %5834 = vmatprep.subr.bf16.mxu0 %v5833_v21  ;;  %v12841_v26 = vld [vmem:[#allocation48_spill] sm:$0xff] }
 0x2a5   : > { %v6421_v10 = vpop.eup %6420  ;;  %v10588_v39 = vmul.f32 %v1931_v52, %v10539_v5  ;;  %6428 = vtanh.f32 %v3161_v63  ;;  %v3160_v9 = vmul.f32 0.7978846, %v2904_v4  ;;  %5836 = vmatpush1.bf16.msra.mxu0 %v5835_v42  ;;  %v2657_v44 = vmul.f32 %v10424_v3, %v10349_v38  ;;  %v10592_v13 = vpop.f32.mrb[172].mxu1 }
 0x2a6   : > { %12839 = vst [vmem:[#allocation7_spill] sm:$0xff] %v10592_v13  ;;  %4693 = vmatprep.mubr.f32.mxu0 %v3905_v53  ;;  %v3904_v51 = vmul.f32 %v3648_v2, %v10510_v28  ;;  %v3657_v59 = vadd.f32 1.0, %v6421_v10  ;;  %v10597_v37 = vadd.f32 %v12840_v7, %v10363_v61  ;;  %v10601_v52 = vadd.f32 %v12841_v26, %v10365_v22  ;;  %v10603_v21 = vpop.f32.mrb[173].mxu1  ;;  %v4135_v10 = vld [vmem:[#allocation2 + $0x608] sm:$0xff]  ;;  %v4137_v7 = vld [vmem:[#allocation2 + $0x618] sm:$0xff] }
 0x2a7   : > { %12842 = vst [vmem:[#allocation8_spill] sm:$0xff] %v10603_v21  ;;  %v1938_v4 = vmul.f32 0.044715, %v10574_v49  ;;  %6430 = vtanh.f32 %v3160_v9  ;;  %v2913_v3 = vadd.f32 %v2657_v44, %v10349_v38  ;;  %v2656_v63 = vmul.f32 %v10418_v55, %v10336_v18  ;;  %v12843_v21 = vld [vmem:[#allocation47_spill] sm:$0xff] }
 0x2a8   : > { %v6423_v28 = vpop.eup %6422  ;;  %4694 = vmatmul.mubr.f32.gmra.mrb[54].mxu0 %v3904_v51  ;;  %v3913_v42 = vmul.f32 %v3657_v59, %v10535_v34  ;;  %v1939_v53 = vmul.f32 0.044715, %v10585_v14  ;;  %v1881_v2 = vmul.f32 0.5, %v10305_v19  ;;  %v10613_v56 = vmul.f32 0.5, %v10289_v0 }
 0x2a9   : > { %v3656_v26 = vadd.f32 1.0, %v6423_v28  ;;  %v3169_v9 = vmul.f32 0.7978846, %v2913_v3  ;;  %v2912_v44 = vadd.f32 %v2656_v63, %v10336_v18  ;;  %v10618_v55 = vadd.f32 %v12843_v21, %v10363_v61 }
 0x2aa   : > { %4699 = vmatprep.mubr.f32.mxu0 %v3913_v42  ;;  %v1946_v34 = vmul.f32 0.044715, %v10597_v37  ;;  %v1947_v51 = vmul.f32 0.044715, %v10601_v52  ;;  %v10624_v19 = vadd.f32 %v10183_v11, %v10365_v22  ;;  %v2411_v0 = vmul.f32 %v10447_v46, %v10396_v25  ;;  %v10628_v59 = vpop.f32.mrb[174].mxu1 }
 0x2ab   : > { %12844 = vst [vmem:[#allocation9_spill] sm:$0xff] %v10628_v59  ;;  %v6425_v3 = vpop.eup %6424  ;;  %v3912_v63 = vmul.f32 %v3656_v26, %v10546_v41  ;;  %6432 = vtanh.f32 %v3169_v9  ;;  %v3168_v21 = vmul.f32 0.7978846, %v2912_v44  ;;  %v5837_v28 = vpack.c.bf16 %v4137_v7, %v4135_v10  ;;  %v10631_v42 = vpop.f32.mrb[175].mxu1 }
 0x2ac   : > { %v6427_v13 = vpop.eup %6426  ;;  %v3665_v27 = vadd.f32 1.0, %v6425_v3  ;;  %v10634_v43 = vmul.f32 %v1938_v4, %v10574_v49  ;;  %v10637_v11 = vmul.f32 %v1939_v53, %v10585_v14  ;;  %v2667_v46 = vadd.f32 %v2411_v0, %v10396_v25 }
 0x2ad   : > { %4700 = vmatmul.mubr.f32.gmra.mrb[56].mxu0 %v3912_v63  ;;  %v3664_v59 = vadd.f32 1.0, %v6427_v13  ;;  %v1889_v12 = vmul.f32 0.5, %v10349_v38  ;;  %6434 = vtanh.f32 %v3168_v21  ;;  %v1954_v41 = vmul.f32 0.044715, %v10618_v55  ;;  %5838 = vmatprep.subr.bf16.mxu0 %v5837_v28 }
 0x2ae   : > { %v3921_v10 = vmul.f32 %v3665_v27, %v10559_v31  ;;  %v10644_v7 = vmul.f32 0.5, %v10336_v18  ;;  %v1955_v4 = vmul.f32 0.044715, %v10624_v19  ;;  %v2923_v26 = vmul.f32 0.7978846, %v2667_v46  ;;  %v10647_v53 = vpop.f32.mrb[176].mxu1 }
 0x2af   : > { %v6429_v9 = vpop.eup %6428  ;;  %v3920_v44 = vmul.f32 %v3664_v59, %v10568_v33  ;;  %v10651_v13 = vmul.f32 %v1946_v34, %v10597_v37  ;;  %v10654_v38 = vmul.f32 %v1947_v51, %v10601_v52  ;;  %v2419_v31 = vmul.f32 %v10464_v58, %v10415_v15  ;;  %v10658_v27 = vpop.f32.mrb[177].mxu1  ;;  %v10664_v34 = vld [vmem:[#allocation2 + $0x600] sm:$0xff]  ;;  %v10666_v59 = vld [vmem:[#allocation2 + $0x610] sm:$0xff] }
 0x2b0   : > { %4705 = vmatprep.mubr.f32.mxu0 %v3921_v10  ;;  %v3673_v18 = vadd.f32 1.0, %v6429_v9  ;;  %v10661_v0 = vmul.f32 0.5, %v10396_v25  ;;  %6436 = vtanh.f32 %v2923_v26  ;;  %v3434_v3 = vadd.f32 1.0, %v10577_v48  ;;  %v12846_v9 = vld [vmem:[#allocation54_spill] sm:$0xff] }
 0x2b1   : > { %v6431_v33 = vpop.eup %6430  ;;  %4706 = vmatmul.mubr.f32.gmra.mrb[58].mxu0 %v3920_v44  ;;  %v10670_v51 = vadd.f32 %v10194_v20, %v10363_v61  ;;  %v10674_v58 = vadd.f32 %v10203_v47, %v10365_v22  ;;  %v2675_v25 = vadd.f32 %v2419_v31, %v10415_v15  ;;  %v2418_v63 = vmul.f32 %v10461_v54, %v10411_v60 }
 0x2b2   : > { %v3929_v48 = vmul.f32 %v3673_v18, %v1881_v2  ;;  %v3672_v21 = vadd.f32 1.0, %v6431_v33  ;;  %v10680_v28 = vmul.f32 %v1954_v41, %v10618_v55  ;;  %v10683_v46 = vmul.f32 %v1955_v4, %v10624_v19 }
 0x2b3   : > { %v10685_v10 = vpop.f32.mrb[178].mxu1  ;;  %v2931_v20 = vmul.f32 0.7978846, %v2675_v25  ;;  %v2674_v26 = vadd.f32 %v2418_v63, %v10411_v60  ;;  %v10690_v47 = vadd.f32 %v10225_v16, %v10363_v61  ;;  %v10694_v54 = vadd.f32 %v12846_v9, %v10365_v22 }
 0x2b4   : > { %12845 = vst [vmem:[#allocation10_spill] sm:$0xff] %v10685_v10  ;;  %4711 = vmatprep.mubr.f32.mxu0 %v3929_v48  ;;  %v3928_v2 = vmul.f32 %v3672_v21, %v10613_v56  ;;  %v10698_v41 = vmul.f32 %v3434_v3, %v10444_v29  ;;  %v2427_v44 = vmul.f32 %v10532_v62, %v10481_v35  ;;  %v10704_v31 = vpop.f32.mrb[179].mxu1  ;;  %v1962_v18 = vmul.f32 0.044715, %v10670_v51 }
 0x2b5   : > { %12847 = vst [vmem:[#allocation11_spill] sm:$0xff] %v10704_v31  ;;  %v6433_v16 = vpop.eup %6432  ;;  %v1963_v33 = vmul.f32 0.044715, %v10674_v58  ;;  %6438 = vtanh.f32 %v2931_v20  ;;  %v2930_v25 = vmul.f32 0.7978846, %v2674_v26  ;;  %v10709_v29 = vmul.f32 0.5, %v10415_v15 }
 0x2b6   : > { %4712 = vmatmul.mubr.f32.gmra.mrb[60].mxu0 %v3928_v2  ;;  %v3681_v56 = vadd.f32 1.0, %v6433_v16  ;;  %v2683_v3 = vadd.f32 %v2427_v44, %v10481_v35  ;;  %v2426_v63 = vmul.f32 %v10515_v57, %v10468_v23  ;;  %v10715_v48 = vmul.f32 0.5, %v10411_v60  ;;  %v4141_v31 = vld [vmem:[#allocation2 + $0x638] sm:$0xff] }
 0x2b7   : > { %v6435_v62 = vpop.eup %6434  ;;  %6440 = vtanh.f32 %v2930_v25  ;;  %v1970_v21 = vmul.f32 0.044715, %v10690_v47  ;;  %v1971_v20 = vmul.f32 0.044715, %v10694_v54  ;;  %v10719_v26 = vpop.f32.mrb[180].mxu1  ;;  %v10725_v57 = vmul.f32 %v1962_v18, %v10670_v51  ;;  %v12850_v25 = vld [vmem:[#allocation53_spill] sm:$0xff] }
 0x2b8   : > { %12848 = vst [vmem:[#allocation18_spill] sm:$0xff] %v10719_v26  ;;  %v3937_v9 = vmul.f32 %v3681_v56, %v1889_v12  ;;  %v3680_v2 = vadd.f32 1.0, %v6435_v62  ;;  %v2939_v15 = vmul.f32 0.7978846, %v2683_v3  ;;  %v2682_v16 = vadd.f32 %v2426_v63, %v10468_v23  ;;  %v10722_v44 = vpop.f32.mrb[181].mxu1  ;;  %v12851_v63 = vld [vmem:[#allocation36_spill] sm:$0xff] }
 0x2b9   : > { %12849 = vst [vmem:[#allocation12_spill] sm:$0xff] %v10722_v44  ;;  %v10728_v60 = vmul.f32 %v1963_v33, %v10674_v58  ;;  %v10732_v4 = vadd.f32 %v12850_v25, %v10363_v61  ;;  %v2435_v26 = vmul.f32 %v10555_v1, %v10501_v17  ;;  %v10739_v18 = vadd.f32 %v12851_v63, %v10365_v22  ;;  %v4139_v44 = vld [vmem:[#allocation2 + $0x628] sm:$0xff] }
 0x2ba   : > { %v6437_v12 = vpop.eup %6436  ;;  %4717 = vmatprep.mubr.f32.mxu0 %v3937_v9  ;;  %v3936_v56 = vmul.f32 %v3680_v2, %v10644_v7  ;;  %6442 = vtanh.f32 %v2939_v15  ;;  %v2938_v3 = vmul.f32 0.7978846, %v2682_v16  ;;  %v10742_v33 = vmul.f32 0.5, %v10481_v35  ;;  %v4138_v16 = vld [vmem:[#allocation2 + $0x620] sm:$0xff] }
 0x2bb   : > { %v3435_v62 = vadd.f32 1.0, %v6437_v12  ;;  %v10745_v25 = vmul.f32 0.5, %v10468_v23  ;;  %v2691_v1 = vadd.f32 %v2435_v26, %v10501_v17  ;;  %v10748_v9 = vpop.f32.mrb[182].mxu1  ;;  %v10751_v7 = vmul.f32 %v1970_v21, %v10690_v47  ;;  %v4140_v12 = vld [vmem:[#allocation2 + $0x630] sm:$0xff] }
 0x2bc   : > { %12852 = vst [vmem:[#allocation13_spill] sm:$0xff] %v10748_v9  ;;  %4718 = vmatmul.mubr.f32.gmra.mrb[62].mxu0 %v3936_v56  ;;  %v10754_v2 = vmul.f32 %v1971_v20, %v10694_v54  ;;  %6444 = vtanh.f32 %v2938_v3  ;;  %v2434_v35 = vmul.f32 %v10549_v40, %v10497_v45  ;;  %v10758_v15 = vpop.f32.mrb[183].mxu1  ;;  %v10763_v56 = vadd.f32 %v10283_v30, %v10363_v61 }
 0x2bd   : > { %12853 = vst [vmem:[#allocation14_spill] sm:$0xff] %v10758_v15  ;;  %v3691_v23 = vmul.f32 %v3435_v62, %v10661_v0  ;;  %v2947_v26 = vmul.f32 0.7978846, %v2691_v1  ;;  %v2443_v21 = vmul.f32 %v10588_v39, %v10539_v5  ;;  %v5841_v20 = vpack.c.bf16 %v4141_v31, %v4139_v44  ;;  %v4143_v39 = vld [vmem:[#allocation2 + $0x648] sm:$0xff]  ;;  %v4145_v31 = vld [vmem:[#allocation2 + $0x658] sm:$0xff] }
 0x2be   : > { %v1978_v3 = vmul.f32 0.044715, %v10732_v4  ;;  %v1979_v63 = vmul.f32 0.044715, %v10739_v18  ;;  %v2690_v40 = vadd.f32 %v2434_v35, %v10497_v45  ;;  %v10772_v0 = vadd.f32 %v10293_v8, %v10365_v22 }
 0x2bf   : > { %v6439_v15 = vpop.eup %6438  ;;  %4788 = vmatprep.mubr.f32.mxu0 %v3691_v23  ;;  %6446 = vtanh.f32 %v2947_v26  ;;  %v2699_v30 = vadd.f32 %v2443_v21, %v10539_v5  ;;  %v2442_v62 = vmul.f32 %v10581_v50, %v10526_v32  ;;  %v10777_v44 = vpop.f32.mrb[184].mxu1  ;;  %v5843_v35 = vpack.c.bf16 %v4140_v12, %v4138_v16  ;;  %v4142_v12 = vld [vmem:[#allocation2 + $0x640] sm:$0xff] }
 0x2c0   : > { %12854 = vst [vmem:[#allocation16_spill] sm:$0xff] %v10777_v44  ;;  %4789 = vmatmul.mubr.f32.vlgmr.msra.gmra.mrb[0].mxu0 %v10698_v41  ;;  %v3443_v1 = vadd.f32 1.0, %v6439_v15  ;;  %v10781_v23 = vmul.f32 0.5, %v10501_v17  ;;  %v2946_v26 = vmul.f32 0.7978846, %v2690_v40  ;;  %v10783_v9 = vpop.f32.mrb[185].mxu1  ;;  %v12856_v21 = vpack.c.bf16 %v10666_v59, %v10664_v34 }
 0x2c1   : > { %12855 = vst [vmem:[#allocation17_spill] sm:$0xff] %v10783_v9  ;;  %v6441_v8 = vpop.eup %6440  ;;  %v10789_v50 = vmul.f32 0.5, %v10497_v45  ;;  %v1986_v44 = vmul.f32 0.044715, %v10763_v56  ;;  %v2955_v10 = vmul.f32 0.7978846, %v2699_v30  ;;  %v2698_v41 = vadd.f32 %v2442_v62, %v10526_v32 }
 0x2c2   : > { %5840 = vmatpush1.bf16.msra.mxu0 %v12856_v21  ;;  %v3699_v15 = vmul.f32 %v3443_v1, %v10709_v29  ;;  %v3442_v17 = vadd.f32 1.0, %v6441_v8  ;;  %6448 = vtanh.f32 %v2946_v26  ;;  %v5845_v16 = vpack.c.bf16 %v4145_v31, %v4143_v39  ;;  %v4144_v40 = vld [vmem:[#allocation2 + $0x650] sm:$0xff] }
 0x2c3   : > { %5842 = vmatprep.subr.bf16.mxu0 %v5841_v20  ;;  %v10795_v9 = vmul.f32 %v1978_v3, %v10732_v4  ;;  %v1987_v34 = vmul.f32 0.044715, %v10772_v0  ;;  %6450 = vtanh.f32 %v2955_v10  ;;  %v2954_v45 = vmul.f32 0.7978846, %v2698_v41  ;;  %v10798_v59 = vpop.f32.mrb[186].mxu1  ;;  %v12857_v20 = vld [vmem:[#allocation35_spill] sm:$0xff] }
 0x2c4   : > { %v6443_v30 = vpop.eup %6442  ;;  %4794 = vmatprep.mubr.f32.mxu0 %v3699_v15  ;;  %v3698_v62 = vmul.f32 %v3442_v17, %v10715_v48  ;;  %v10802_v29 = vmul.f32 %v1979_v63, %v10739_v18  ;;  %v10806_v39 = vadd.f32 %v12857_v20, %v10363_v61  ;;  %v2451_v3 = vmul.f32 %v10637_v11, %v10585_v14  ;;  %v10810_v31 = vpop.f32.mrb[187].mxu1  ;;  %v4147_v17 = vld [vmem:[#allocation2 + $0x668] sm:$0xff] }
 0x2c5   : > { %v3451_v10 = vadd.f32 1.0, %v6443_v30  ;;  %6452 = vtanh.f32 %v2954_v45  ;;  %v5847_v1 = vpack.c.bf16 %v4144_v40, %v4142_v12  ;;  %v2450_v26 = vmul.f32 %v10634_v43, %v10574_v49 }
 0x2c6   : > { %5844 = vmatpush1.bf16.msra.mxu0 %v5843_v35  ;;  %v6445_v48 = vpop.eup %6444  ;;  %v10815_v63 = vmul.f32 %v1986_v44, %v10763_v56  ;;  %v1675_v8 = vmul.f32 0.5, %v10539_v5  ;;  %v10819_v21 = vmul.f32 0.5, %v10526_v32  ;;  %v2707_v11 = vadd.f32 %v2451_v3, %v10585_v14  ;;  %v12858_v5 = vld [vmem:[#allocation42_spill] sm:$0xff] }
 0x2c7   : > { %4795 = vmatmul.mubr.f32.gmra.mrb[2].mxu0 %v3698_v62  ;;  %5846 = vmatprep.subr.bf16.mxu0 %v5845_v16  ;;  %v3707_v35 = vmul.f32 %v3451_v10, %v10742_v33  ;;  %v3450_v41 = vadd.f32 1.0, %v6445_v48  ;;  %v10824_v15 = vmul.f32 %v1987_v34, %v10772_v0  ;;  %v2706_v43 = vadd.f32 %v2450_v26, %v10574_v49  ;;  %v10827_v12 = vpop.f32.mrb[188].mxu1  ;;  %v4149_v33 = vld [vmem:[#allocation2 + $0x678] sm:$0xff]  ;;  %v4146_v10 = vld [vmem:[#allocation2 + $0x660] sm:$0xff]  ;;  %v4148_v26 = vld [vmem:[#allocation2 + $0x670] sm:$0xff] }
 0x2c8   : > { %v1994_v44 = vmul.f32 0.044715, %v10806_v39  ;;  %v10832_v32 = vadd.f32 %v12858_v5, %v10365_v22  ;;  %v2963_v16 = vmul.f32 0.7978846, %v2707_v11  ;;  %v2459_v40 = vmul.f32 %v10654_v38, %v10601_v52  ;;  %v10836_v45 = vpop.f32.mrb[189].mxu1 }
 0x2c9   : > { %v6447_v34 = vpop.eup %6446  ;;  %4800 = vmatprep.mubr.f32.mxu0 %v3707_v35  ;;  %v3706_v30 = vmul.f32 %v3450_v41, %v10745_v25  ;;  %v2962_v62 = vmul.f32 0.7978846, %v2706_v43  ;;  %v10841_v20 = vadd.f32 %v10340_v6, %v10363_v61  ;;  %v2458_v3 = vmul.f32 %v10651_v13, %v10597_v37 }
 0x2ca   : > { %5848 = vmatpush1.bf16.msra.mxu0 %v5847_v1  ;;  %v3459_v48 = vadd.f32 1.0, %v6447_v34  ;;  %6454 = vtanh.f32 %v2963_v16  ;;  %v10847_v38 = vadd.f32 %v10345_v36, %v10365_v22  ;;  %v2715_v11 = vadd.f32 %v2459_v40, %v10601_v52 }
 0x2cb   : > { %4801 = vmatmul.mubr.f32.gmra.mrb[4].mxu0 %v3706_v30  ;;  %v10851_v25 = vmul.f32 0.5, %v10585_v14  ;;  %6456 = vtanh.f32 %v2962_v62  ;;  %v2714_v6 = vadd.f32 %v2458_v3, %v10597_v37  ;;  %v5849_v1 = vpack.c.bf16 %v4149_v33, %v4147_v17  ;;  %v10854_v35 = vpop.f32.mrb[190].mxu1 }
 0x2cc   : > { %v6449_v13 = vpop.eup %6448  ;;  %v3715_v41 = vmul.f32 %v3459_v48, %v10781_v23  ;;  %v1995_v43 = vmul.f32 0.044715, %v10832_v32  ;;  %v2971_v5 = vmul.f32 0.7978846, %v2715_v11  ;;  %v5851_v36 = vpack.c.bf16 %v4148_v26, %v4146_v10  ;;  %v10858_v16 = vpop.f32.mrb[191].mxu1 }
 0x2cd   : > { %12859 = vst [vmem:[#allocation25_spill] sm:$0xff] %v10858_v16  ;;  %v6451_v40 = vpop.eup %6450  ;;  %v3458_v34 = vadd.f32 1.0, %v6449_v13  ;;  %v1682_v14 = vmul.f32 0.5, %v10574_v49  ;;  %v2002_v30 = vmul.f32 0.044715, %v10841_v20  ;;  %5850 = vmatprep.subr.bf16.mxu0 %v5849_v1  ;;  %v2467_v23 = vmul.f32 %v10683_v46, %v10624_v19 }
 0x2ce   : > { %v2970_v62 = vmul.f32 0.7978846, %v2714_v6  ;;  %4806 = vmatprep.mubr.f32.mxu0 %v3715_v41  ;;  %v3467_v17 = vadd.f32 1.0, %v6451_v40  ;;  %v2003_v33 = vmul.f32 0.044715, %v10847_v38  ;;  %6458 = vtanh.f32 %v2971_v5  ;;  %5852 = vmatpush1.bf16.msra.mxu0 %v5851_v36  ;;  %v4151_v41 = vld [vmem:[#allocation2 + $0x688] sm:$0xff] }
 0x2cf   : > { %v6453_v3 = vpop.eup %6452  ;;  %v3714_v10 = vmul.f32 %v3458_v34, %v10789_v50  ;;  %v10867_v26 = vmul.f32 %v1994_v44, %v10806_v39  ;;  %v10871_v49 = vadd.f32 %v10370_v24, %v10363_v61  ;;  %v10874_v6 = vmul.f32 %v1995_v43, %v10832_v32  ;;  %v12860_v44 = vld [vmem:[#allocation41_spill] sm:$0xff] }
 0x2d0   : > { %6460 = vtanh.f32 %v2970_v62  ;;  %v3723_v48 = vmul.f32 %v3467_v17, %v1675_v8  ;;  %v3466_v11 = vadd.f32 1.0, %v6453_v3  ;;  %v2723_v1 = vadd.f32 %v2467_v23, %v10624_v19  ;;  %v4153_v8 = vld [vmem:[#allocation2 + $0x698] sm:$0xff]  ;;  %v4150_v17 = vld [vmem:[#allocation2 + $0x680] sm:$0xff] }
 0x2d1   : > { %4807 = vmatmul.mubr.f32.gmra.mrb[6].mxu0 %v3714_v10  ;;  %v1691_v46 = vmul.f32 0.5, %v10601_v52  ;;  %v1690_v50 = vmul.f32 0.5, %v10597_v37  ;;  %v10881_v13 = vadd.f32 %v12860_v44, %v10365_v22  ;;  %v2466_v24 = vmul.f32 %v10680_v28, %v10618_v55  ;;  %v12861_v28 = vld [vmem:[#allocation56_spill] sm:$0xff] }
 0x2d2   : > { %4812 = vmatprep.mubr.f32.mxu0 %v3723_v48  ;;  %v10886_v43 = vmul.f32 %v2002_v30, %v10841_v20  ;;  %v10889_v5 = vmul.f32 %v2003_v33, %v10847_v38  ;;  %v2979_v36 = vmul.f32 0.7978846, %v2723_v1  ;;  %v2475_v37 = vmul.f32 %v10728_v60, %v10674_v58  ;;  %v4152_v30 = vld [vmem:[#allocation2 + $0x690] sm:$0xff] }
 0x2d3   : > { %v3722_v52 = vmul.f32 %v3466_v11, %v10819_v21  ;;  %v2010_v40 = vmul.f32 0.044715, %v10871_v49  ;;  %v2722_v34 = vadd.f32 %v2466_v24, %v10618_v55  ;;  %v10898_v62 = vadd.f32 %v12861_v28, %v10363_v61  ;;  %v12862_v1 = vld [vmem:[#allocation55_spill] sm:$0xff] }
 0x2d4   : > { %v6455_v23 = vpop.eup %6454  ;;  %6462 = vtanh.f32 %v2979_v36  ;;  %v2731_v33 = vadd.f32 %v2475_v37, %v10674_v58  ;;  %v2474_v3 = vmul.f32 %v10725_v57, %v10670_v51  ;;  %v5853_v60 = vpack.c.bf16 %v4153_v8, %v4151_v41 }
 0x2d5   : > { %v6457_v10 = vpop.eup %6456  ;;  %4813 = vmatmul.mubr.f32.gmra.mrb[8].mxu0 %v3722_v52  ;;  %v3475_v21 = vadd.f32 1.0, %v6455_v23  ;;  %v2011_v48 = vmul.f32 0.044715, %v10881_v13  ;;  %v2978_v11 = vmul.f32 0.7978846, %v2722_v34  ;;  %v10906_v44 = vadd.f32 %v12862_v1, %v10365_v22 }
 0x2d6   : > { %v3474_v24 = vadd.f32 1.0, %v6457_v10  ;;  %v2987_v28 = vmul.f32 0.7978846, %v2731_v33  ;;  %v2730_v36 = vadd.f32 %v2474_v3, %v10670_v51  ;;  %5854 = vmatprep.subr.bf16.mxu0 %v5853_v60  ;;  %v5855_v37 = vpack.c.bf16 %v4152_v30, %v4150_v17 }
 0x2d7   : > { %v3731_v16 = vmul.f32 %v3475_v21, %v10851_v25  ;;  %v1699_v57 = vmul.f32 0.5, %v10624_v19  ;;  %v10912_v41 = vmul.f32 0.5, %v10618_v55  ;;  %6464 = vtanh.f32 %v2978_v11  ;;  %v12863_v11 = vld [vmem:[#allocation44_spill] sm:$0xff] }
 0x2d8   : > { %v6459_v8 = vpop.eup %6458  ;;  %v3730_v52 = vmul.f32 %v3474_v24, %v1682_v14  ;;  %v2018_v34 = vmul.f32 0.044715, %v10898_v62  ;;  %6466 = vtanh.f32 %v2987_v28  ;;  %v2986_v23 = vmul.f32 0.7978846, %v2730_v36  ;;  %5856 = vmatpush1.bf16.msra.mxu0 %v5855_v37  ;;  %v4155_v24 = vld [vmem:[#allocation2 + $0x6a8] sm:$0xff] }
 0x2d9   : > { %4818 = vmatprep.mubr.f32.mxu0 %v3731_v16  ;;  %v3483_v3 = vadd.f32 1.0, %v6459_v8  ;;  %v10916_v17 = vmul.f32 %v2010_v40, %v10871_v49  ;;  %v2019_v25 = vmul.f32 0.044715, %v10906_v44  ;;  %v2483_v55 = vmul.f32 %v10754_v2, %v10694_v54  ;;  %v12865_v8 = vld [vmem:[#allocation60_spill] sm:$0xff] }
 0x2da   : > { %v6461_v33 = vpop.eup %6460  ;;  %4819 = vmatmul.mubr.f32.gmra.mrb[10].mxu0 %v3730_v52  ;;  %v10922_v14 = vmul.f32 %v2011_v48, %v10881_v13  ;;  %6468 = vtanh.f32 %v2986_v23  ;;  %v2482_v30 = vmul.f32 %v10751_v7, %v10690_v47  ;;  %v1707_v16 = vmul.f32 0.5, %v10674_v58  ;;  %v4157_v7 = vld [vmem:[#allocation2 + $0x6b8] sm:$0xff] }
 0x2db   : > { %v3482_v19 = vadd.f32 1.0, %v6461_v33  ;;  %v3739_v60 = vmul.f32 %v3483_v3, %v1691_v46  ;;  %v10928_v40 = vmul.f32 0.5, %v10670_v51  ;;  %v2739_v10 = vadd.f32 %v2483_v55, %v10694_v54  ;;  %v12864_v51 = vld [vmem:[#allocation43_spill] sm:$0xff]  ;;  %v4154_v3 = vld [vmem:[#allocation2 + $0x6a0] sm:$0xff] }
 0x2dc   : > { %v10932_v2 = vmul.f32 %v2018_v34, %v10898_v62  ;;  %v10936_v48 = vadd.f32 %v12863_v11, %v10363_v61  ;;  %v2738_v1 = vadd.f32 %v2482_v30, %v10690_v47  ;;  %v10940_v58 = vmul.f32 %v2019_v25, %v10906_v44  ;;  %v12866_v34 = vld [vmem:[#allocation59_spill] sm:$0xff] }
 0x2dd   : > { %v3738_v21 = vmul.f32 %v3482_v19, %v1690_v50  ;;  %4824 = vmatprep.mubr.f32.mxu0 %v3739_v60  ;;  %v10944_v46 = vadd.f32 %v12864_v51, %v10365_v22  ;;  %v2995_v50 = vmul.f32 0.7978846, %v2739_v10  ;;  %v2491_v28 = vmul.f32 %v10802_v29, %v10739_v18  ;;  %v4156_v25 = vld [vmem:[#allocation2 + $0x6b0] sm:$0xff] }
 0x2de   : > { %v6463_v36 = vpop.eup %6462  ;;  %v2994_v37 = vmul.f32 0.7978846, %v2738_v1  ;;  %v10950_v52 = vadd.f32 %v12865_v8, %v10363_v61  ;;  %v10954_v23 = vadd.f32 %v12866_v34, %v10365_v22  ;;  %v2490_v33 = vmul.f32 %v10795_v9, %v10732_v4 }
 0x2df   : > { %4825 = vmatmul.mubr.f32.gmra.mrb[12].mxu0 %v3738_v21  ;;  %v3491_v55 = vadd.f32 1.0, %v6463_v36  ;;  %6470 = vtanh.f32 %v2995_v50  ;;  %v2747_v29 = vadd.f32 %v2491_v28, %v10739_v18  ;;  %v5857_v19 = vpack.c.bf16 %v4157_v7, %v4155_v24 }
 0x2e0   : > { %v2026_v30 = vmul.f32 0.044715, %v10936_v48  ;;  %v10961_v60 = vmul.f32 0.5, %v10694_v54  ;;  %6472 = vtanh.f32 %v2994_v37  ;;  %v2746_v10 = vadd.f32 %v2490_v33, %v10732_v4 }
 0x2e1   : > { %v6465_v21 = vpop.eup %6464  ;;  %v3747_v11 = vmul.f32 %v3491_v55, %v1699_v57  ;;  %v2027_v1 = vmul.f32 0.044715, %v10944_v46  ;;  %v3003_v9 = vmul.f32 0.7978846, %v2747_v29  ;;  %5858 = vmatprep.subr.bf16.mxu0 %v5857_v19  ;;  %v5859_v51 = vpack.c.bf16 %v4156_v25, %v4154_v3 }
 0x2e2   : > { %v6467_v36 = vpop.eup %6466  ;;  %v3490_v50 = vadd.f32 1.0, %v6465_v21  ;;  %v1714_v28 = vmul.f32 0.5, %v10690_v47  ;;  %v2034_v24 = vmul.f32 0.044715, %v10950_v52  ;;  %v3002_v7 = vmul.f32 0.7978846, %v2746_v10 }
 0x2e3   : > { %4830 = vmatprep.mubr.f32.mxu0 %v3747_v11  ;;  %v3499_v54 = vadd.f32 1.0, %v6467_v36  ;;  %v2035_v37 = vmul.f32 0.044715, %v10954_v23  ;;  %6474 = vtanh.f32 %v3003_v9  ;;  %5860 = vmatpush1.bf16.msra.mxu0 %v5859_v51  ;;  %v2499_v57 = vmul.f32 %v10824_v15, %v10772_v0  ;;  %v12867_v47 = vld [vmem:[#allocation50_spill] sm:$0xff]  ;;  %v4161_v9 = vld [vmem:[#allocation2 + $0x6d8] sm:$0xff] }
 0x2e4   : > { %v6469_v8 = vpop.eup %6468  ;;  %v3746_v34 = vmul.f32 %v3490_v50, %v10912_v41  ;;  %v10972_v33 = vmul.f32 %v2026_v30, %v10936_v48  ;;  %6476 = vtanh.f32 %v3002_v7  ;;  %v10976_v3 = vadd.f32 %v12867_v47, %v10363_v61  ;;  %v12868_v30 = vld [vmem:[#allocation49_spill] sm:$0xff]  ;;  %v4159_v11 = vld [vmem:[#allocation2 + $0x6c8] sm:$0xff] }
 0x2e5   : > { %v3755_v25 = vmul.f32 %v3499_v54, %v1707_v16  ;;  %v3498_v55 = vadd.f32 1.0, %v6469_v8  ;;  %v10979_v29 = vmul.f32 %v2027_v1, %v10944_v46  ;;  %v2755_v19 = vadd.f32 %v2499_v57, %v10772_v0  ;;  %v10982_v10 = vpop.f32.mrb[192].mxu1  ;;  %v4158_v57 = vld [vmem:[#allocation2 + $0x6c0] sm:$0xff]  ;;  %v4160_v8 = vld [vmem:[#allocation2 + $0x6d0] sm:$0xff] }
 0x2e6   : > { %4831 = vmatmul.mubr.f32.gmra.mrb[14].mxu0 %v3746_v34  ;;  %v1723_v15 = vmul.f32 0.5, %v10739_v18  ;;  %v1722_v41 = vmul.f32 0.5, %v10732_v4  ;;  %v10988_v21 = vadd.f32 %v12868_v30, %v10365_v22  ;;  %v2498_v16 = vmul.f32 %v10815_v63, %v10763_v56  ;;  %v10992_v1 = vpop.f32.mrb[193].mxu1 }
 0x2e7   : > { %12869 = vst [vmem:[#allocation30_spill] sm:$0xff] %v10992_v1  ;;  %4836 = vmatprep.mubr.f32.mxu0 %v3755_v25  ;;  %v10995_v51 = vmul.f32 %v2034_v24, %v10950_v52  ;;  %v10998_v36 = vmul.f32 %v2035_v37, %v10954_v23  ;;  %v3011_v18 = vmul.f32 0.7978846, %v2755_v19  ;;  %v2507_v4 = vmul.f32 %v10874_v6, %v10832_v32  ;;  %v12871_v19 = vld [vmem:[#allocation52_spill] sm:$0xff] }
 0x2e8   : > { %v3754_v50 = vmul.f32 %v3498_v55, %v10928_v40  ;;  %v2042_v7 = vmul.f32 0.044715, %v10976_v3  ;;  %v11005_v63 = vmul.f32 0.5, %v10772_v0  ;;  %v2754_v54 = vadd.f32 %v2498_v16, %v10763_v56 }
 0x2e9   : > { %v6471_v24 = vpop.eup %6470  ;;  %6478 = vtanh.f32 %v3011_v18  ;;  %v2763_v37 = vadd.f32 %v2507_v4, %v10832_v32  ;;  %v2506_v34 = vmul.f32 %v10867_v26, %v10806_v39  ;;  %v5861_v47 = vpack.c.bf16 %v4161_v9, %v4159_v11  ;;  %v11011_v6 = vpop.f32.mrb[194].mxu1 }
 0x2ea   : > { %12870 = vst [vmem:[#allocation20_spill] sm:$0xff] %v11011_v6  ;;  %v6473_v40 = vpop.eup %6472  ;;  %4837 = vmatmul.mubr.f32.gmra.mrb[16].mxu0 %v3754_v50  ;;  %v3507_v25 = vadd.f32 1.0, %v6471_v24  ;;  %v2043_v0 = vmul.f32 0.044715, %v10988_v21  ;;  %v3010_v55 = vmul.f32 0.7978846, %v2754_v54  ;;  %v11016_v30 = vadd.f32 %v12871_v19, %v10363_v61 }
 0x2eb   : > { %v11018_v16 = vpop.f32.mrb[195].mxu1  ;;  %v3506_v18 = vadd.f32 1.0, %v6473_v40  ;;  %v3019_v4 = vmul.f32 0.7978846, %v2763_v37  ;;  %v2762_v1 = vadd.f32 %v2506_v34, %v10806_v39  ;;  %5862 = vmatprep.subr.bf16.mxu0 %v5861_v47  ;;  %v5863_v26 = vpack.c.bf16 %v4160_v8, %v4158_v57  ;;  %v12873_v50 = vld [vmem:[#allocation51_spill] sm:$0xff] }
 0x2ec   : > { %12872 = vst [vmem:[#allocation19_spill] sm:$0xff] %v11018_v16  ;;  %v3763_v11 = vmul.f32 %v3507_v25, %v10961_v60  ;;  %v11023_v9 = vmul.f32 0.5, %v10763_v56  ;;  %6480 = vtanh.f32 %v3010_v55  ;;  %v11027_v54 = vadd.f32 %v12873_v50, %v10365_v22  ;;  %v4163_v50 = vld [vmem:[#allocation2 + $0x6e8] sm:$0xff] }
 0x2ed   : > { %v6475_v24 = vpop.eup %6474  ;;  %v3762_v19 = vmul.f32 %v3506_v18, %v1714_v28  ;;  %v11030_v16 = vmul.f32 %v2042_v7, %v10976_v3  ;;  %6482 = vtanh.f32 %v3019_v4  ;;  %v3018_v37 = vmul.f32 0.7978846, %v2762_v1  ;;  %5864 = vmatpush1.bf16.msra.mxu0 %v5863_v26  ;;  %v12876_v4 = vld [vmem:[#allocation58_spill] sm:$0xff] }
 0x2ee   : > { %v6477_v34 = vpop.eup %6476  ;;  %4842 = vmatprep.mubr.f32.mxu0 %v3763_v11  ;;  %v3515_v57 = vadd.f32 1.0, %v6475_v24  ;;  %v11033_v60 = vmul.f32 %v2043_v0, %v10988_v21  ;;  %v2050_v56 = vmul.f32 0.044715, %v11016_v30  ;;  %v2515_v8 = vmul.f32 %v10889_v5, %v10847_v38 }
 0x2ef   : > { %v11038_v47 = vpop.f32.mrb[196].mxu1  ;;  %4843 = vmatmul.mubr.f32.gmra.mrb[18].mxu0 %v3762_v19  ;;  %v3514_v28 = vadd.f32 1.0, %v6477_v34  ;;  %v1739_v7 = vmul.f32 0.5, %v10832_v32  ;;  %6484 = vtanh.f32 %v3018_v37  ;;  %v2514_v1 = vmul.f32 %v10886_v43, %v10841_v20  ;;  %v12877_v32 = vld [vmem:[#allocation57_spill] sm:$0xff] }
 0x2f0   : > { %12874 = vst [vmem:[#allocation22_spill] sm:$0xff] %v11038_v47  ;;  %v11043_v40 = vpop.f32.mrb[197].mxu1  ;;  %v3771_v25 = vmul.f32 %v3515_v57, %v1723_v15  ;;  %v2051_v0 = vmul.f32 0.044715, %v11027_v54  ;;  %v11047_v55 = vmul.f32 0.5, %v10806_v39  ;;  %v2771_v5 = vadd.f32 %v2515_v8, %v10847_v38  ;;  %v4165_v15 = vld [vmem:[#allocation2 + $0x6f8] sm:$0xff] }
 0x2f1   : > { %12875 = vst [vmem:[#allocation21_spill] sm:$0xff] %v11043_v40  ;;  %v3770_v18 = vmul.f32 %v3514_v28, %v1722_v41  ;;  %v11052_v26 = vadd.f32 %v12876_v4, %v10363_v61  ;;  %v11056_v11 = vadd.f32 %v12877_v32, %v10365_v22  ;;  %v2770_v43 = vadd.f32 %v2514_v1, %v10841_v20  ;;  %v12879_v8 = vld [vmem:[#allocation6_spill] sm:$0xff]  ;;  %v12880_v1 = vld [vmem:[#allocation5_spill] sm:$0xff] }
 0x2f2   : > { %4848 = vmatprep.mubr.f32.mxu0 %v3771_v25  ;;  %v11060_v24 = vmul.f32 %v2050_v56, %v11016_v30  ;;  %v11063_v39 = vmul.f32 0.5, %v10847_v38  ;;  %v3027_v41 = vmul.f32 0.7978846, %v2771_v5  ;;  %v2523_v19 = vmul.f32 %v10922_v14, %v10881_v13  ;;  %v4162_v25 = vld [vmem:[#allocation2 + $0x6e0] sm:$0xff]  ;;  %v4164_v5 = vld [vmem:[#allocation2 + $0x6f0] sm:$0xff] }
 0x2f3   : > { %v11067_v37 = vpop.f32.mrb[198].mxu1  ;;  %v6479_v34 = vpop.eup %6478  ;;  %4849 = vmatmul.mubr.f32.gmra.mrb[20].mxu0 %v3770_v18  ;;  %v3026_v57 = vmul.f32 0.7978846, %v2770_v43  ;;  %v11071_v28 = vadd.f32 %v12879_v8, %v10363_v61  ;;  %v11075_v56 = vadd.f32 %v12880_v1, %v10365_v22  ;;  %v2522_v38 = vmul.f32 %v10916_v17, %v10871_v49 }
 0x2f4   : > { %12878 = vst [vmem:[#allocation32_spill] sm:$0xff] %v11067_v37  ;;  %v3523_v4 = vadd.f32 1.0, %v6479_v34  ;;  %6486 = vtanh.f32 %v3027_v41  ;;  %v2779_v14 = vadd.f32 %v2523_v19, %v10881_v13  ;;  %v5865_v32 = vpack.c.bf16 %v4165_v15, %v4163_v50  ;;  %v11080_v18 = vpop.f32.mrb[199].mxu1 }
 0x2f5   : > { %12881 = vst [vmem:[#allocation31_spill] sm:$0xff] %v11080_v18  ;;  %v2058_v43 = vmul.f32 0.044715, %v11052_v26  ;;  %v2059_v8 = vmul.f32 0.044715, %v11056_v11  ;;  %6488 = vtanh.f32 %v3026_v57  ;;  %v2778_v1 = vadd.f32 %v2522_v38, %v10871_v49 }
 0x2f6   : > { %v6481_v37 = vpop.eup %6480  ;;  %v3779_v40 = vmul.f32 %v3523_v4, %v11005_v63  ;;  %v11087_v17 = vmul.f32 0.5, %v10841_v20  ;;  %v3035_v34 = vmul.f32 0.7978846, %v2779_v14  ;;  %5866 = vmatprep.subr.bf16.mxu0 %v5865_v32  ;;  %v5867_v41 = vpack.c.bf16 %v4164_v5, %v4162_v25  ;;  %v12884_v4 = vld [vmem:[#allocation7_spill] sm:$0xff] }
 0x2f7   : > { %v6483_v19 = vpop.eup %6482  ;;  %v3522_v50 = vadd.f32 1.0, %v6481_v37  ;;  %v11090_v15 = vmul.f32 %v2051_v0, %v11027_v54  ;;  %v2066_v18 = vmul.f32 0.044715, %v11071_v28  ;;  %v3034_v47 = vmul.f32 0.7978846, %v2778_v1  ;;  %v11093_v57 = vpop.f32.mrb[200].mxu1 }
 0x2f8   : > { %12882 = vst [vmem:[#allocation38_spill] sm:$0xff] %v11093_v57  ;;  %4854 = vmatprep.mubr.f32.mxu0 %v3779_v40  ;;  %v3531_v38 = vadd.f32 1.0, %v6483_v19  ;;  %v2067_v63 = vmul.f32 0.044715, %v11075_v56  ;;  %6490 = vtanh.f32 %v3035_v34  ;;  %5868 = vmatpush1.bf16.msra.mxu0 %v5867_v41  ;;  %v2531_v20 = vmul.f32 %v10940_v58, %v10906_v44  ;;  %v11098_v25 = vpop.f32.mrb[201].mxu1  ;;  %v4169_v19 = vld [vmem:[#allocation2 + $0x718] sm:$0xff] }
 0x2f9   : > { %12883 = vst [vmem:[#allocation37_spill] sm:$0xff] %v11098_v25  ;;  %v6485_v37 = vpop.eup %6484  ;;  %v3778_v0 = vmul.f32 %v3522_v50, %v11023_v9  ;;  %v11102_v5 = vmul.f32 %v2058_v43, %v11052_v26  ;;  %6492 = vtanh.f32 %v3034_v47  ;;  %v11106_v40 = vadd.f32 %v12884_v4, %v10363_v61  ;;  %v12885_v43 = vld [vmem:[#allocation8_spill] sm:$0xff] }
 0x2fa   : > { %v3787_v14 = vmul.f32 %v3531_v38, %v1739_v7  ;;  %v3530_v32 = vadd.f32 1.0, %v6485_v37  ;;  %v11109_v1 = vmul.f32 %v2059_v8, %v11056_v11  ;;  %v2787_v58 = vadd.f32 %v2531_v20, %v10906_v44  ;;  %v4167_v7 = vld [vmem:[#allocation2 + $0x708] sm:$0xff] }
 0x2fb   : > { %4855 = vmatmul.mubr.f32.gmra.mrb[22].mxu0 %v3778_v0  ;;  %v1755_v34 = vmul.f32 0.5, %v10881_v13  ;;  %v11114_v9 = vmul.f32 0.5, %v10871_v49  ;;  %v11118_v47 = vadd.f32 %v12885_v43, %v10365_v22  ;;  %v2530_v41 = vmul.f32 %v10932_v2, %v10898_v62  ;;  %v11122_v50 = vpop.f32.mrb[202].mxu1 }
 0x2fc   : > { %12886 = vst [vmem:[#allocation24_spill] sm:$0xff] %v11122_v50  ;;  %4860 = vmatprep.mubr.f32.mxu0 %v3787_v14  ;;  %v11125_v8 = vmul.f32 %v2066_v18, %v11071_v28  ;;  %v11128_v13 = vmul.f32 %v2067_v63, %v11075_v56  ;;  %v3043_v49 = vmul.f32 0.7978846, %v2787_v58  ;;  %v2539_v38 = vmul.f32 %v10979_v29, %v10944_v46  ;;  %v11132_v20 = vpop.f32.mrb[203].mxu1  ;;  %v4166_v18 = vld [vmem:[#allocation2 + $0x700] sm:$0xff]  ;;  %v4168_v14 = vld [vmem:[#allocation2 + $0x710] sm:$0xff] }
 0x2fd   : > { %12887 = vst [vmem:[#allocation23_spill] sm:$0xff] %v11132_v20  ;;  %v3786_v37 = vmul.f32 %v3530_v32, %v11047_v55  ;;  %v2074_v2 = vmul.f32 0.044715, %v11106_v40  ;;  %v11137_v0 = vmul.f32 0.5, %v10906_v44  ;;  %v2786_v4 = vadd.f32 %v2530_v41, %v10898_v62  ;;  %v12888_v44 = vld [vmem:[#allocation9_spill] sm:$0xff] }
 0x2fe   : > { %v6487_v43 = vpop.eup %6486  ;;  %6494 = vtanh.f32 %v3043_v49  ;;  %v2795_v63 = vadd.f32 %v2539_v38, %v10944_v46  ;;  %v2538_v29 = vmul.f32 %v10972_v33, %v10936_v48  ;;  %v5869_v58 = vpack.c.bf16 %v4169_v19, %v4167_v7 }
 0x2ff   : > { %v6489_v20 = vpop.eup %6488  ;;  %4861 = vmatmul.mubr.f32.gmra.mrb[24].mxu0 %v3786_v37  ;;  %v3539_v55 = vadd.f32 1.0, %v6487_v43  ;;  %v2075_v32 = vmul.f32 0.044715, %v11118_v47  ;;  %v3042_v50 = vmul.f32 0.7978846, %v2786_v4  ;;  %v11146_v25 = vadd.f32 %v12888_v44, %v10363_v61  ;;  %v11148_v41 = vpop.f32.mrb[204].mxu1 }
 0x300   : > { %v3538_v57 = vadd.f32 1.0, %v6489_v20  ;;  %v3051_v49 = vmul.f32 0.7978846, %v2795_v63  ;;  %v2794_v38 = vadd.f32 %v2538_v29, %v10936_v48  ;;  %5870 = vmatprep.subr.bf16.mxu0 %v5869_v58  ;;  %v5871_v6 = vpack.c.bf16 %v4168_v14, %v4166_v18  ;;  %v11151_v33 = vpop.f32.mrb[205].mxu1 }
 0x301   : > { %v3795_v7 = vmul.f32 %v3539_v55, %v11063_v39  ;;  %v11155_v19 = vmul.f32 0.5, %v10898_v62  ;;  %6496 = vtanh.f32 %v3042_v50  ;;  %v11159_v37 = vadd.f32 %v10631_v42, %v10365_v22 }
 0x302   : > { %v6491_v4 = vpop.eup %6490  ;;  %v3794_v20 = vmul.f32 %v3538_v57, %v11087_v17  ;;  %v11163_v43 = vmul.f32 %v2074_v2, %v11106_v40  ;;  %6498 = vtanh.f32 %v3051_v49  ;;  %v3050_v18 = vmul.f32 0.7978846, %v2794_v38  ;;  %5872 = vmatpush1.bf16.msra.mxu0 %v5871_v6  ;;  %v4173_v49 = vld [vmem:[#allocation2 + $0x738] sm:$0xff] }
 0x303   : > { %v6493_v14 = vpop.eup %6492  ;;  %4866 = vmatprep.mubr.f32.mxu0 %v3795_v7  ;;  %v3547_v39 = vadd.f32 1.0, %v6491_v4  ;;  %v11166_v62 = vmul.f32 %v2075_v32, %v11118_v47  ;;  %v2082_v50 = vmul.f32 0.044715, %v11146_v25  ;;  %v2547_v42 = vmul.f32 %v10998_v36, %v10954_v23  ;;  %v11171_v63 = vpop.f32.mrb[206].mxu1 }
 0x304   : > { %4867 = vmatmul.mubr.f32.gmra.mrb[26].mxu0 %v3794_v20  ;;  %v3546_v17 = vadd.f32 1.0, %v6493_v14  ;;  %v1771_v57 = vmul.f32 0.5, %v10944_v46  ;;  %6500 = vtanh.f32 %v3050_v18  ;;  %v2546_v6 = vmul.f32 %v10995_v51, %v10950_v52  ;;  %v11176_v2 = vpop.f32.mrb[207].mxu1  ;;  %v12891_v20 = vld [vmem:[#allocation10_spill] sm:$0xff]  ;;  %v12892_v14 = vld [vmem:[#allocation11_spill] sm:$0xff] }
 0x305   : > { %12889 = vst [vmem:[#allocation27_spill] sm:$0xff] %v11176_v2  ;;  %v3803_v29 = vmul.f32 %v3547_v39, %v1755_v34  ;;  %v2083_v58 = vmul.f32 0.044715, %v11159_v37  ;;  %v11180_v55 = vmul.f32 0.5, %v10936_v48  ;;  %v2803_v36 = vadd.f32 %v2547_v42, %v10954_v23  ;;  %v4171_v34 = vld [vmem:[#allocation2 + $0x728] sm:$0xff]  ;;  %v4172_v42 = vld [vmem:[#allocation2 + $0x730] sm:$0xff] }
 0x306   : > { %v3802_v32 = vmul.f32 %v3546_v17, %v11114_v9  ;;  %v11186_v44 = vadd.f32 %v10647_v53, %v10363_v61  ;;  %v11190_v46 = vadd.f32 %v10658_v27, %v10365_v22  ;;  %v2802_v51 = vadd.f32 %v2546_v6, %v10950_v52 }
 0x307   : > { %4872 = vmatprep.mubr.f32.mxu0 %v3803_v29  ;;  %v11194_v48 = vmul.f32 %v2082_v50, %v11146_v25  ;;  %v11197_v38 = vmul.f32 0.5, %v10954_v23  ;;  %v3059_v9 = vmul.f32 0.7978846, %v2803_v36  ;;  %v2555_v53 = vmul.f32 %v11033_v60, %v10988_v21  ;;  %v11201_v7 = vpop.f32.mrb[208].mxu1  ;;  %v4170_v50 = vld [vmem:[#allocation2 + $0x720] sm:$0xff] }
 0x308   : > { %12890 = vst [vmem:[#allocation26_spill] sm:$0xff] %v11201_v7  ;;  %v6495_v4 = vpop.eup %6494  ;;  %4873 = vmatmul.mubr.f32.gmra.mrb[28].mxu0 %v3802_v32  ;;  %v3058_v27 = vmul.f32 0.7978846, %v2802_v51  ;;  %v11205_v18 = vadd.f32 %v12891_v20, %v10363_v61  ;;  %v11209_v39 = vadd.f32 %v12892_v14, %v10365_v22  ;;  %v2554_v23 = vmul.f32 %v11030_v16, %v10976_v3  ;;  %v11214_v29 = vpop.f32.mrb[209].mxu1 }
 0x309   : > { %v3555_v17 = vadd.f32 1.0, %v6495_v4  ;;  %6502 = vtanh.f32 %v3059_v9  ;;  %v2811_v60 = vadd.f32 %v2555_v53, %v10988_v21  ;;  %v5873_v6 = vpack.c.bf16 %v4173_v49, %v4171_v34  ;;  %12893 = vst [vmem:[#allocation40_spill] sm:$0xff] %v11214_v29 }
 0x30a   : > { %v2090_v36 = vmul.f32 0.044715, %v11186_v44  ;;  %v2091_v32 = vmul.f32 0.044715, %v11190_v46  ;;  %6504 = vtanh.f32 %v3058_v27  ;;  %v2810_v51 = vadd.f32 %v2554_v23, %v10976_v3 }
 0x30b   : > { %v6497_v20 = vpop.eup %6496  ;;  %v3811_v14 = vmul.f32 %v3555_v17, %v11137_v0  ;;  %v11221_v16 = vmul.f32 0.5, %v10950_v52  ;;  %v3067_v4 = vmul.f32 0.7978846, %v2811_v60  ;;  %5874 = vmatprep.subr.bf16.mxu0 %v5873_v6  ;;  %v5875_v9 = vpack.c.bf16 %v4172_v42, %v4170_v50  ;;  %v11223_v53 = vpop.f32.mrb[210].mxu1  ;;  %v12896_v60 = vld [vmem:[#allocation18_spill] sm:$0xff] }
 0x30c   : > { %12894 = vst [vmem:[#allocation39_spill] sm:$0xff] %v11223_v53  ;;  %v6499_v34 = vpop.eup %6498  ;;  %v3554_v49 = vadd.f32 1.0, %v6497_v20  ;;  %v11226_v29 = vmul.f32 %v2083_v58, %v11159_v37  ;;  %v2098_v27 = vmul.f32 0.044715, %v11205_v18  ;;  %v3066_v7 = vmul.f32 0.7978846, %v2810_v51 }
 0x30d   : > { %v11229_v23 = vpop.f32.mrb[211].mxu1  ;;  %4878 = vmatprep.mubr.f32.mxu0 %v3811_v14  ;;  %v3563_v0 = vadd.f32 1.0, %v6499_v34  ;;  %v2099_v52 = vmul.f32 0.044715, %v11209_v39  ;;  %6506 = vtanh.f32 %v3067_v4  ;;  %5876 = vmatpush1.bf16.msra.mxu0 %v5875_v9  ;;  %v2563_v50 = vmul.f32 %v11090_v15, %v11027_v54  ;;  %v4175_v34 = vld [vmem:[#allocation2 + $0x748] sm:$0xff] }
 0x30e   : > { %12895 = vst [vmem:[#allocation29_spill] sm:$0xff] %v11229_v23  ;;  %v6501_v42 = vpop.eup %6500  ;;  %v3810_v17 = vmul.f32 %v3554_v49, %v11155_v19  ;;  %v11236_v58 = vmul.f32 %v2090_v36, %v11186_v44  ;;  %6508 = vtanh.f32 %v3066_v7  ;;  %v11240_v6 = vadd.f32 %v12896_v60, %v10363_v61  ;;  %v12898_v7 = vld [vmem:[#allocation12_spill] sm:$0xff] }
 0x30f   : > { %v3819_v51 = vmul.f32 %v3563_v0, %v1771_v57  ;;  %v3562_v20 = vadd.f32 1.0, %v6501_v42  ;;  %v11243_v14 = vmul.f32 %v2091_v32, %v11190_v46  ;;  %v2819_v4 = vadd.f32 %v2563_v50, %v11027_v54  ;;  %v11246_v9 = vpop.f32.mrb[212].mxu1  ;;  %v4177_v49 = vld [vmem:[#allocation2 + $0x758] sm:$0xff] }
 0x310   : > { %12897 = vst [vmem:[#allocation28_spill] sm:$0xff] %v11246_v9  ;;  %4879 = vmatmul.mubr.f32.gmra.mrb[30].mxu0 %v3810_v17  ;;  %v1787_v15 = vmul.f32 0.5, %v10988_v21  ;;  %v1786_v19 = vmul.f32 0.5, %v10976_v3  ;;  %v11252_v36 = vadd.f32 %v12898_v7, %v10365_v22  ;;  %v2562_v57 = vmul.f32 %v11060_v24, %v11016_v30  ;;  %v11256_v32 = vpop.f32.mrb[213].mxu1  ;;  %v4176_v7 = vld [vmem:[#allocation2 + $0x750] sm:$0xff] }
 0x311   : > { %12899 = vst [vmem:[#allocation46_spill] sm:$0xff] %v11256_v32  ;;  %4884 = vmatprep.mubr.f32.mxu0 %v3819_v51  ;;  %v11259_v0 = vmul.f32 %v2098_v27, %v11205_v18  ;;  %v11262_v50 = vmul.f32 %v2099_v52, %v11209_v39  ;;  %v3075_v21 = vmul.f32 0.7978846, %v2819_v4  ;;  %v2571_v3 = vmul.f32 %v11109_v1, %v11056_v11  ;;  %v4174_v51 = vld [vmem:[#allocation2 + $0x740] sm:$0xff] }
 0x312   : > { %v3818_v42 = vmul.f32 %v3562_v20, %v11180_v55  ;;  %v2106_v17 = vmul.f32 0.044715, %v11240_v6  ;;  %v11269_v24 = vmul.f32 0.5, %v11027_v54  ;;  %v2818_v60 = vadd.f32 %v2562_v57, %v11016_v30  ;;  %v12900_v57 = vld [vmem:[#allocation13_spill] sm:$0xff] }
 0x313   : > { %v6503_v27 = vpop.eup %6502  ;;  %6510 = vtanh.f32 %v3075_v21  ;;  %v2827_v52 = vadd.f32 %v2571_v3, %v11056_v11  ;;  %v2570_v4 = vmul.f32 %v11102_v5, %v11052_v26  ;;  %v5877_v32 = vpack.c.bf16 %v4177_v49, %v4175_v34  ;;  %v11275_v1 = vpop.f32.mrb[214].mxu1 }
 0x314   : > { %v6505_v55 = vpop.eup %6504  ;;  %4885 = vmatmul.mubr.f32.gmra.mrb[32].mxu0 %v3818_v42  ;;  %v3571_v20 = vadd.f32 1.0, %v6503_v27  ;;  %v2107_v54 = vmul.f32 0.044715, %v11252_v36  ;;  %v3074_v9 = vmul.f32 0.7978846, %v2818_v60  ;;  %v11280_v23 = vadd.f32 %v12900_v57, %v10363_v61  ;;  %v11282_v53 = vpop.f32.mrb[215].mxu1 }
 0x315   : > { %v3570_v21 = vadd.f32 1.0, %v6505_v55  ;;  %v3083_v3 = vmul.f32 0.7978846, %v2827_v52  ;;  %v2826_v2 = vadd.f32 %v2570_v4, %v11052_v26  ;;  %5878 = vmatprep.subr.bf16.mxu0 %v5877_v32  ;;  %v5879_v5 = vpack.c.bf16 %v4176_v7, %v4174_v51  ;;  %v12901_v42 = vld [vmem:[#allocation14_spill] sm:$0xff] }
 0x316   : > { %v3827_v34 = vmul.f32 %v3571_v20, %v11197_v38  ;;  %v11287_v49 = vmul.f32 0.5, %v11016_v30  ;;  %6512 = vtanh.f32 %v3074_v9  ;;  %v11291_v60 = vadd.f32 %v12901_v42, %v10365_v22 }
 0x317   : > { %v6507_v27 = vpop.eup %6506  ;;  %v3826_v57 = vmul.f32 %v3570_v21, %v11221_v16  ;;  %v11295_v55 = vmul.f32 %v2106_v17, %v11240_v6  ;;  %6514 = vtanh.f32 %v3083_v3  ;;  %v3082_v52 = vmul.f32 0.7978846, %v2826_v2  ;;  %5880 = vmatpush1.bf16.msra.mxu0 %v5879_v5  ;;  %v12903_v5 = vld [vmem:[#allocation16_spill] sm:$0xff] }
 0x318   : > { %v6509_v32 = vpop.eup %6508  ;;  %4890 = vmatprep.mubr.f32.mxu0 %v3827_v34  ;;  %v3579_v38 = vadd.f32 1.0, %v6507_v27  ;;  %v11298_v30 = vmul.f32 %v2107_v54, %v11252_v36  ;;  %v2114_v9 = vmul.f32 0.044715, %v11280_v23  ;;  %v2579_v51 = vmul.f32 %v11128_v13, %v11075_v56  ;;  %v11303_v7 = vpop.f32.mrb[216].mxu1  ;;  %v4179_v27 = vld [vmem:[#allocation2 + $0x768] sm:$0xff] }
 0x319   : > { %4891 = vmatmul.mubr.f32.gmra.mrb[34].mxu0 %v3826_v57  ;;  %v3578_v16 = vadd.f32 1.0, %v6509_v32  ;;  %v1803_v17 = vmul.f32 0.5, %v11056_v11  ;;  %6516 = vtanh.f32 %v3082_v52  ;;  %v2578_v2 = vmul.f32 %v11125_v8, %v11071_v28  ;;  %v11308_v4 = vpop.f32.mrb[217].mxu1  ;;  %v12904_v11 = vld [vmem:[#allocation17_spill] sm:$0xff] }
 0x31a   : > { %12902 = vst [vmem:[#allocation45_spill] sm:$0xff] %v11308_v4  ;;  %v3835_v20 = vmul.f32 %v3579_v38, %v1787_v15  ;;  %v2115_v54 = vmul.f32 0.044715, %v11291_v60  ;;  %v11312_v21 = vmul.f32 0.5, %v11052_v26  ;;  %v2835_v13 = vadd.f32 %v2579_v51, %v11075_v56  ;;  %v4181_v15 = vld [vmem:[#allocation2 + $0x778] sm:$0xff] }
 0x31b   : > { %v3834_v3 = vmul.f32 %v3578_v16, %v1786_v19  ;;  %v11317_v34 = vadd.f32 %v12903_v5, %v10363_v61  ;;  %v11321_v42 = vadd.f32 %v12904_v11, %v10365_v22  ;;  %v2834_v8 = vadd.f32 %v2578_v2, %v11071_v28  ;;  %v4178_v2 = vld [vmem:[#allocation2 + $0x760] sm:$0xff] }
 0x31c   : > { %4896 = vmatprep.mubr.f32.mxu0 %v3835_v20  ;;  %v11325_v57 = vmul.f32 %v2114_v9, %v11280_v23  ;;  %v11328_v26 = vmul.f32 0.5, %v11075_v56  ;;  %v3091_v19 = vmul.f32 0.7978846, %v2835_v13  ;;  %v2587_v52 = vmul.f32 %v11166_v62, %v11118_v47  ;;  %v11332_v32 = vpop.f32.mrb[218].mxu1  ;;  %v4180_v20 = vld [vmem:[#allocation2 + $0x770] sm:$0xff] }
 0x31d   : > { %12905 = vst [vmem:[#allocation34_spill] sm:$0xff] %v11332_v32  ;;  %v6511_v38 = vpop.eup %6510  ;;  %4897 = vmatmul.mubr.f32.gmra.mrb[36].mxu0 %v3834_v3  ;;  %v3090_v51 = vmul.f32 0.7978846, %v2834_v8  ;;  %v11336_v16 = vadd.f32 %v10798_v59, %v10363_v61  ;;  %v11340_v9 = vadd.f32 %v10810_v31, %v10365_v22  ;;  %v2586_v56 = vmul.f32 %v11163_v43, %v11106_v40  ;;  %v11345_v3 = vpop.f32.mrb[219].mxu1 }
 0x31e   : > { %v3587_v13 = vadd.f32 1.0, %v6511_v38  ;;  %6518 = vtanh.f32 %v3091_v19  ;;  %v2843_v62 = vadd.f32 %v2587_v52, %v11118_v47  ;;  %v5881_v5 = vpack.c.bf16 %v4181_v15, %v4179_v27  ;;  %12906 = vst [vmem:[#allocation33_spill] sm:$0xff] %v11345_v3 }
 0x31f   : > { %v2122_v11 = vmul.f32 0.044715, %v11317_v34  ;;  %v2123_v59 = vmul.f32 0.044715, %v11321_v42  ;;  %6520 = vtanh.f32 %v3090_v51  ;;  %v2842_v31 = vadd.f32 %v2586_v56, %v11106_v40 }
 0x320   : > { %v6513_v8 = vpop.eup %6512  ;;  %v3843_v32 = vmul.f32 %v3587_v13, %v11269_v24  ;;  %v11352_v43 = vmul.f32 0.5, %v11071_v28  ;;  %v3099_v38 = vmul.f32 0.7978846, %v2843_v62  ;;  %5882 = vmatprep.subr.bf16.mxu0 %v5881_v5  ;;  %v5883_v19 = vpack.c.bf16 %v4180_v20, %v4178_v2  ;;  %v11354_v52 = vpop.f32.mrb[220].mxu1 }
 0x321   : > { %v6515_v27 = vpop.eup %6514  ;;  %v3586_v15 = vadd.f32 1.0, %v6513_v8  ;;  %v11357_v3 = vmul.f32 %v2115_v54, %v11291_v60  ;;  %v2130_v51 = vmul.f32 0.044715, %v11336_v16  ;;  %v3098_v4 = vmul.f32 0.7978846, %v2842_v31  ;;  %v11360_v56 = vpop.f32.mrb[221].mxu1 }
 0x322   : > { %4902 = vmatprep.mubr.f32.mxu0 %v3843_v32  ;;  %v3595_v24 = vadd.f32 1.0, %v6515_v27  ;;  %v2131_v28 = vmul.f32 0.044715, %v11340_v9  ;;  %6522 = vtanh.f32 %v3099_v38  ;;  %5884 = vmatpush1.bf16.msra.mxu0 %v5883_v19  ;;  %v2595_v2 = vmul.f32 %v11226_v29, %v11159_v37 }
 0x323   : > { %v6517_v20 = vpop.eup %6516  ;;  %v3842_v13 = vmul.f32 %v3586_v15, %v11287_v49  ;;  %v11367_v54 = vmul.f32 %v2122_v11, %v11317_v34  ;;  %6524 = vtanh.f32 %v3098_v4  ;;  %v11371_v62 = vadd.f32 %v10827_v12, %v10363_v61  ;;  %v4185_v11 = vld [vmem:[#allocation2 + $0x798] sm:$0xff] }
 0x324   : > { %v3851_v32 = vmul.f32 %v3595_v24, %v1803_v17  ;;  %v3594_v5 = vadd.f32 1.0, %v6517_v20  ;;  %v11374_v31 = vmul.f32 %v2123_v59, %v11321_v42  ;;  %v2851_v8 = vadd.f32 %v2595_v2, %v11159_v37  ;;  %v11377_v38 = vpop.f32.mrb[222].mxu1  ;;  %v4183_v17 = vld [vmem:[#allocation2 + $0x788] sm:$0xff]  ;;  %v4182_v2 = vld [vmem:[#allocation2 + $0x780] sm:$0xff]  ;;  %v4184_v20 = vld [vmem:[#allocation2 + $0x790] sm:$0xff] }
 0x325   : > { %12907 = vst [vmem:[#allocation48_spill] sm:$0xff] %v11377_v38  ;;  %4903 = vmatmul.mubr.f32.gmra.mrb[38].mxu0 %v3842_v13  ;;  %v1819_v29 = vmul.f32 0.5, %v11118_v47  ;;  %v11381_v49 = vmul.f32 0.5, %v11106_v40  ;;  %v11385_v4 = vadd.f32 %v10836_v45, %v10365_v22  ;;  %v2594_v12 = vmul.f32 %v11194_v48, %v11146_v25  ;;  %v11389_v59 = vpop.f32.mrb[223].mxu1 }
 0x326   : > { %12908 = vst [vmem:[#allocation47_spill] sm:$0xff] %v11389_v59  ;;  %4908 = vmatprep.mubr.f32.mxu0 %v3851_v32  ;;  %v11392_v19 = vmul.f32 %v2130_v51, %v11336_v16  ;;  %v11395_v47 = vmul.f32 %v2131_v28, %v11340_v9  ;;  %v3107_v40 = vmul.f32 0.7978846, %v2851_v8  ;;  %v2603_v27 = vmul.f32 %v11243_v14, %v11190_v46 }
 0x327   : > { %v3850_v45 = vmul.f32 %v3594_v5, %v11312_v21  ;;  %v2138_v15 = vmul.f32 0.044715, %v11371_v62  ;;  %v11402_v48 = vmul.f32 0.5, %v11159_v37  ;;  %v2850_v24 = vadd.f32 %v2594_v12, %v11146_v25 }
 0x328   : > { %v6519_v51 = vpop.eup %6518  ;;  %6526 = vtanh.f32 %v3107_v40  ;;  %v2859_v28 = vadd.f32 %v2603_v27, %v11190_v46  ;;  %v2602_v13 = vmul.f32 %v11236_v58, %v11186_v44  ;;  %v5885_v32 = vpack.c.bf16 %v4185_v11, %v4183_v17  ;;  %v11408_v14 = vpop.f32.mrb[224].mxu1  ;;  %v12911_v11 = vld [vmem:[#allocation15_spill] sm:$0xff] }
 0x329   : > { %12909 = vst [vmem:[#allocation54_spill] sm:$0xff] %v11408_v14  ;;  %v6521_v21 = vpop.eup %6520  ;;  %4909 = vmatmul.mubr.f32.gmra.mrb[40].mxu0 %v3850_v45  ;;  %v3603_v5 = vadd.f32 1.0, %v6519_v51  ;;  %v2139_v37 = vmul.f32 0.044715, %v11385_v4  ;;  %v3106_v8 = vmul.f32 0.7978846, %v2850_v24  ;;  %v11413_v12 = vadd.f32 %v10854_v35, %v10363_v61 }
 0x32a   : > { %v11415_v59 = vpop.f32.mrb[225].mxu1  ;;  %v3602_v40 = vadd.f32 1.0, %v6521_v21  ;;  %v3115_v27 = vmul.f32 0.7978846, %v2859_v28  ;;  %v2858_v38 = vadd.f32 %v2602_v13, %v11186_v44  ;;  %5886 = vmatprep.subr.bf16.mxu0 %v5885_v32  ;;  %v5887_v58 = vpack.c.bf16 %v4184_v20, %v4182_v2  ;;  %v12912_v61 = vld [vmem:[#allocation25_spill] sm:$0xff] }
 0x32b   : > { %12910 = vst [vmem:[#allocation53_spill] sm:$0xff] %v11415_v59  ;;  %v3859_v17 = vmul.f32 %v3603_v5, %v11328_v26  ;;  %6528 = vtanh.f32 %v3106_v8  ;;  %v596_v45 = vsub.s32 6, %v12911_v11  ;;  %v600_v51 = vsub.s32 7, %v12911_v11  ;;  %v6820_v20 = vld [vmem:[%s12519_s2] sm:$0xff] }
 0x32c   : > { %v6523_v24 = vpop.eup %6522  ;;  %v3858_v14 = vmul.f32 %v3602_v40, %v11352_v43  ;;  %v11424_v35 = vadd.f32 %v12912_v61, %v10365_v22  ;;  %6530 = vtanh.f32 %v3115_v27  ;;  %v3114_v28 = vmul.f32 0.7978846, %v2858_v38  ;;  %5888 = vmatpush1.bf16.msra.mxu0 %v5887_v58 }
 0x32d   : > { %v6525_v13 = vpop.eup %6524  ;;  %4914 = vmatprep.mubr.f32.mxu0 %v3859_v17  ;;  %v3611_v2 = vadd.f32 1.0, %v6523_v24  ;;  %v1826_v26 = vmul.f32 0.5, %v11146_v25  ;;  %v11430_v32 = vrot.slane %v6820_v20, %v596_v45  ;;  %v2611_v43 = vmul.f32 %v11262_v50, %v11209_v39  ;;  %v11434_v21 = vpop.f32.mrb[226].mxu1 }
 0x32e   : > { %12913 = vst [vmem:[#allocation36_spill] sm:$0xff] %v11434_v21  ;;  %4915 = vmatmul.mubr.f32.gmra.mrb[42].mxu0 %v3858_v14  ;;  %v3610_v22 = vadd.f32 1.0, %v6525_v13  ;;  %v2146_v38 = vmul.f32 0.044715, %v11413_v12  ;;  %6532 = vtanh.f32 %v3114_v28  ;;  %v2610_v5 = vmul.f32 %v11259_v0, %v11205_v18  ;;  %v11439_v25 = vpop.f32.mrb[227].mxu1 }
 0x32f   : > { %12914 = vst [vmem:[#allocation35_spill] sm:$0xff] %v11439_v25  ;;  %v3867_v8 = vmul.f32 %v3611_v2, %v1819_v29  ;;  %v1448_v40 = vadd.f32 %v10982_v10, %v11430_v32  ;;  %v11443_v27 = vrot.slane %v6820_v20, %v600_v51  ;;  %v2867_v50 = vadd.f32 %v2611_v43, %v11209_v39  ;;  %v4187_v43 = vld [vmem:[#allocation2 + $0x7a8] sm:$0xff] }
 0x330   : > { %v3866_v58 = vmul.f32 %v3610_v22, %v11381_v49  ;;  %v11448_v14 = vmul.f32 %v2138_v15, %v11371_v62  ;;  %v2147_v17 = vmul.f32 0.044715, %v11424_v35  ;;  %v2866_v45 = vadd.f32 %v2610_v5, %v11205_v18  ;;  %v4189_v22 = vld [vmem:[#allocation2 + $0x7b8] sm:$0xff] }
 0x331   : > { %4920 = vmatprep.mubr.f32.mxu0 %v3867_v8  ;;  %v11453_v0 = vmul.f32 %v2139_v37, %v11385_v4  ;;  %v1835_v29 = vmul.f32 0.5, %v11190_v46  ;;  %v1834_v10 = vmul.f32 0.5, %v11186_v44  ;;  %v1900_v51 = vmul.f32 0.044715, %v1448_v40  ;;  %v12915_v37 = vld [vmem:[#allocation30_spill] sm:$0xff]  ;;  %v12916_v46 = vld [vmem:[#allocation20_spill] sm:$0xff] }
 0x332   : > { %v6527_v24 = vpop.eup %6526  ;;  %4921 = vmatmul.mubr.f32.gmra.mrb[44].mxu0 %v3866_v58  ;;  %v11458_v49 = vmul.f32 %v2146_v38, %v11413_v12  ;;  %v3123_v15 = vmul.f32 0.7978846, %v2867_v50  ;;  %v3122_v61 = vmul.f32 0.7978846, %v2866_v45  ;;  %v2619_v28 = vmul.f32 %v11298_v30, %v11252_v36  ;;  %v11470_v5 = vpop.f32.mrb[228].mxu1  ;;  %v4186_v50 = vld [vmem:[#allocation2 + $0x7a0] sm:$0xff] }
 0x333   : > { %v3619_v13 = vadd.f32 1.0, %v6527_v24  ;;  %v2156_v2 = vmul.f32 %v1900_v51, %v1448_v40  ;;  %v11464_v20 = vadd.f32 %v12915_v37, %v11443_v27  ;;  %v11468_v44 = vadd.f32 %v12916_v46, %v11430_v32  ;;  %12917 = vst [vmem:[#allocation42_spill] sm:$0xff] %v11470_v5  ;;  %v4188_v58 = vld [vmem:[#allocation2 + $0x7b0] sm:$0xff]  ;;  %v11479_v45 = vpop.f32.mrb[229].mxu1 }
 0x334   : > { %v11473_v38 = vmul.f32 %v2147_v17, %v11424_v35  ;;  %v11476_v8 = vmul.f32 0.5, %v11209_v39  ;;  %6534 = vtanh.f32 %v3123_v15  ;;  %v2875_v30 = vadd.f32 %v2619_v28, %v11252_v36  ;;  %12918 = vst [vmem:[#allocation41_spill] sm:$0xff] %v11479_v45  ;;  %v12919_v46 = vld [vmem:[#allocation19_spill] sm:$0xff] }
 0x335   : > { %v6529_v51 = vpop.eup %6528  ;;  %v3875_v24 = vmul.f32 %v3619_v13, %v11402_v48  ;;  %v2412_v37 = vmul.f32 %v2156_v2, %v1448_v40  ;;  %6536 = vtanh.f32 %v3122_v61  ;;  %v11484_v11 = vadd.f32 %v12919_v46, %v11443_v27  ;;  %v11486_v17 = vpop.f32.mrb[230].mxu1 }
 0x336   : > { %12920 = vst [vmem:[#allocation56_spill] sm:$0xff] %v11486_v17  ;;  %v6531_v39 = vpop.eup %6530  ;;  %v3618_v5 = vadd.f32 1.0, %v6529_v51  ;;  %v3131_v15 = vmul.f32 0.7978846, %v2875_v30  ;;  %v2618_v28 = vmul.f32 %v11295_v55, %v11240_v6  ;;  %v5889_v25 = vpack.c.bf16 %v4189_v22, %v4187_v43  ;;  %v11490_v21 = vpop.f32.mrb[231].mxu1 }
 0x337   : > { %12921 = vst [vmem:[#allocation55_spill] sm:$0xff] %v11490_v21  ;;  %4926 = vmatprep.mubr.f32.mxu0 %v3875_v24  ;;  %v3627_v45 = vadd.f32 1.0, %v6531_v39  ;;  %v1901_v48 = vmul.f32 0.044715, %v11464_v20  ;;  %v1908_v61 = vmul.f32 0.044715, %v11468_v44  ;;  %v5891_v13 = vpack.c.bf16 %v4188_v58, %v4186_v50 }
 0x338   : > { %v6533_v2 = vpop.eup %6532  ;;  %v3874_v46 = vmul.f32 %v3618_v5, %v1826_v26  ;;  %v1842_v17 = vmul.f32 0.5, %v11205_v18  ;;  %6538 = vtanh.f32 %v3131_v15  ;;  %v2874_v30 = vadd.f32 %v2618_v28, %v11240_v6  ;;  %5890 = vmatprep.subr.bf16.mxu0 %v5889_v25  ;;  %v12923_v26 = vld [vmem:[#allocation22_spill] sm:$0xff] }
 0x339   : > { %v3883_v51 = vmul.f32 %v3627_v45, %v1835_v29  ;;  %v3626_v55 = vadd.f32 1.0, %v6533_v2  ;;  %v2668_v43 = vadd.f32 %v2412_v37, %v1448_v40  ;;  %v1909_v22 = vmul.f32 0.044715, %v11484_v11  ;;  %5892 = vmatpush1.bf16.msra.mxu0 %v5891_v13  ;;  %v11497_v24 = vpop.f32.mrb[232].mxu1 }
 0x33a   : > { %12922 = vst [vmem:[#allocation44_spill] sm:$0xff] %v11497_v24  ;;  %4927 = vmatmul.mubr.f32.gmra.mrb[46].mxu0 %v3874_v46  ;;  %v11499_v39 = vmul.f32 0.5, %v1448_v40  ;;  %v3130_v50 = vmul.f32 0.7978846, %v2874_v30  ;;  %v11503_v5 = vadd.f32 %v12923_v26, %v11430_v32  ;;  %v2627_v18 = vmul.f32 %v11357_v3, %v11291_v60  ;;  %v11507_v25 = vpop.f32.mrb[233].mxu1 }
 0x33b   : > { %12924 = vst [vmem:[#allocation43_spill] sm:$0xff] %v11507_v25  ;;  %4932 = vmatprep.mubr.f32.mxu0 %v3883_v51  ;;  %v11510_v29 = vmul.f32 %v1901_v48, %v11464_v20  ;;  %v11513_v58 = vmul.f32 %v1908_v61, %v11468_v44  ;;  %v1851_v40 = vmul.f32 0.5, %v11252_v36  ;;  %v11517_v45 = vmul.f32 0.5, %v11240_v6  ;;  %v12925_v48 = vld [vmem:[#allocation21_spill] sm:$0xff] }
 0x33c   : > { %v3882_v37 = vmul.f32 %v3626_v55, %v1834_v10  ;;  %6540 = vtanh.f32 %v3130_v50  ;;  %v2883_v15 = vadd.f32 %v2627_v18, %v11291_v60  ;;  %v2626_v3 = vmul.f32 %v11325_v57, %v11280_v23 }
 0x33d   : > { %v2924_v28 = vmul.f32 0.7978846, %v2668_v43  ;;  %v11523_v13 = vmul.f32 %v1909_v22, %v11484_v11  ;;  %v11527_v61 = vadd.f32 %v12925_v48, %v11443_v27  ;;  %v2635_v36 = vmul.f32 %v11374_v31, %v11321_v42  ;;  %v11531_v6 = vpop.f32.mrb[234].mxu1  ;;  %v12928_v22 = vld [vmem:[#allocation32_spill] sm:$0xff]  ;;  %v12929_v31 = vld [vmem:[#allocation31_spill] sm:$0xff] }
 0x33e   : > { %12926 = vst [vmem:[#allocation60_spill] sm:$0xff] %v11531_v6  ;;  %v6535_v10 = vpop.eup %6534  ;;  %4933 = vmatmul.mubr.f32.gmra.mrb[48].mxu0 %v3882_v37  ;;  %v1916_v2 = vmul.f32 0.044715, %v11503_v5  ;;  %v3139_v46 = vmul.f32 0.7978846, %v2883_v15  ;;  %v2882_v57 = vadd.f32 %v2626_v3, %v11280_v23  ;;  %v2634_v30 = vmul.f32 %v11367_v54, %v11317_v34  ;;  %v11537_v51 = vpop.f32.mrb[235].mxu1 }
 0x33f   : > { %12927 = vst [vmem:[#allocation59_spill] sm:$0xff] %v11537_v51  ;;  %v6537_v55 = vpop.eup %6536  ;;  %v3635_v43 = vadd.f32 1.0, %v6535_v10  ;;  %v11541_v50 = vadd.f32 %v12928_v22, %v11430_v32  ;;  %v11545_v26 = vadd.f32 %v12929_v31, %v11443_v27  ;;  %v2891_v18 = vadd.f32 %v2635_v36, %v11321_v42  ;;  %v4191_v37 = vld [vmem:[#allocation2 + $0x7c8] sm:$0xff]  ;;  %v4193_v15 = vld [vmem:[#allocation2 + $0x7d8] sm:$0xff]  ;;  %v4190_v51 = vld [vmem:[#allocation2 + $0x7c0] sm:$0xff] }
 0x340   : > { %v3634_v3 = vadd.f32 1.0, %v6537_v55  ;;  %6542 = vtanh.f32 %v3139_v46  ;;  %v3138_v48 = vmul.f32 0.7978846, %v2882_v57  ;;  %v2890_v54 = vadd.f32 %v2634_v30, %v11317_v34  ;;  %v4192_v6 = vld [vmem:[#allocation2 + $0x7d0] sm:$0xff] }
 0x341   : > { %6544 = vtanh.f32 %v2924_v28  ;;  %v3891_v10 = vmul.f32 %v3635_v43, %v11476_v8  ;;  %v1917_v22 = vmul.f32 0.044715, %v11527_v61  ;;  %v3147_v25 = vmul.f32 0.7978846, %v2891_v18 }
 0x342   : > { %v6539_v24 = vpop.eup %6538  ;;  %v3890_v31 = vmul.f32 %v3634_v3, %v1842_v17  ;;  %6546 = vtanh.f32 %v3138_v48  ;;  %v3146_v21 = vmul.f32 0.7978846, %v2890_v54  ;;  %v5893_v36 = vpack.c.bf16 %v4193_v15, %v4191_v37  ;;  %v11551_v59 = vpop.f32.mrb[236].mxu1 }
 0x343   : > { %4938 = vmatprep.mubr.f32.mxu0 %v3891_v10  ;;  %v3643_v46 = vadd.f32 1.0, %v6539_v24  ;;  %v1924_v57 = vmul.f32 0.044715, %v11541_v50  ;;  %6548 = vtanh.f32 %v3147_v25  ;;  %v5895_v30 = vpack.c.bf16 %v4192_v6, %v4190_v51  ;;  %v11554_v55 = vpop.f32.mrb[237].mxu1  ;;  %v12931_v24 = vld [vmem:[#allocation38_spill] sm:$0xff] }
 0x344   : > { %12930 = vst [vmem:[#allocation50_spill] sm:$0xff] %v11554_v55  ;;  %4939 = vmatmul.mubr.f32.gmra.mrb[50].mxu0 %v3890_v31  ;;  %v1859_v8 = vmul.f32 0.5, %v11291_v60  ;;  %v1925_v28 = vmul.f32 0.044715, %v11545_v26  ;;  %6550 = vtanh.f32 %v3146_v21  ;;  %5894 = vmatprep.subr.bf16.mxu0 %v5893_v36  ;;  %v2643_v17 = vmul.f32 %v11395_v47, %v11340_v9  ;;  %v4195_v31 = vld [vmem:[#allocation2 + $0x7e8] sm:$0xff]  ;;  %v4197_v36 = vld [vmem:[#allocation2 + $0x7f8] sm:$0xff] }
 0x345   : > { %v3899_v43 = vmul.f32 %v3643_v46, %v1851_v40  ;;  %v11561_v18 = vmul.f32 %v1916_v2, %v11503_v5  ;;  %5896 = vmatpush1.bf16.msra.mxu0 %v5895_v30  ;;  %v11565_v25 = vadd.f32 %v12931_v24, %v11430_v32  ;;  %v2642_v6 = vmul.f32 %v11392_v19, %v11336_v16 }
 0x346   : > { %v6541_v60 = vpop.eup %6540  ;;  %v11570_v51 = vmul.f32 %v1917_v22, %v11527_v61  ;;  %v1858_v21 = vmul.f32 0.5, %v11280_v23  ;;  %v1867_v47 = vmul.f32 0.5, %v11321_v42  ;;  %v2899_v40 = vadd.f32 %v2643_v17, %v11340_v9  ;;  %v11575_v2 = vpop.f32.mrb[238].mxu1  ;;  %v12934_v42 = vld [vmem:[#allocation37_spill] sm:$0xff]  ;;  %v4196_v17 = vld [vmem:[#allocation2 + $0x7f0] sm:$0xff] }
 0x347   : > { %12932 = vst [vmem:[#allocation49_spill] sm:$0xff] %v11575_v2  ;;  %4944 = vmatprep.mubr.f32.mxu0 %v3899_v43  ;;  %v3642_v37 = vadd.f32 1.0, %v6541_v60  ;;  %v11578_v15 = vmul.f32 %v1924_v57, %v11541_v50  ;;  %v11581_v3 = vmul.f32 0.5, %v11317_v34  ;;  %v2898_v19 = vadd.f32 %v2642_v6, %v11336_v16  ;;  %v11584_v48 = vpop.f32.mrb[239].mxu1 }
 0x348   : > { %12933 = vst [vmem:[#allocation52_spill] sm:$0xff] %v11584_v48  ;;  %v11587_v23 = vmul.f32 %v1925_v28, %v11545_v26  ;;  %v11591_v54 = vadd.f32 %v12934_v42, %v11443_v27  ;;  %v11594_v10 = vmul.f32 0.5, %v11340_v9  ;;  %v3155_v22 = vmul.f32 0.7978846, %v2899_v40  ;;  %v4194_v28 = vld [vmem:[#allocation2 + $0x7e0] sm:$0xff]  ;;  %v12935_v9 = vld [vmem:[#allocation24_spill] sm:$0xff] }
 0x349   : > { %v3898_v34 = vmul.f32 %v3642_v37, %v11517_v45  ;;  %v1932_v46 = vmul.f32 0.044715, %v11565_v25  ;;  %v3154_v57 = vmul.f32 0.7978846, %v2898_v19  ;;  %v2651_v30 = vmul.f32 %v11453_v0, %v11385_v4 }
 0x34a   : > { %v6543_v43 = vpop.eup %6542  ;;  %6552 = vtanh.f32 %v3155_v22  ;;  %v11601_v24 = vmul.f32 0.5, %v11336_v16  ;;  %v11605_v6 = vadd.f32 %v12935_v9, %v11430_v32  ;;  %v2650_v45 = vmul.f32 %v11448_v14, %v11371_v62  ;;  %v11609_v60 = vpop.f32.mrb[240].mxu1  ;;  %v12937_v9 = vld [vmem:[#allocation23_spill] sm:$0xff] }
 0x34b   : > { %12936 = vst [vmem:[#allocation51_spill] sm:$0xff] %v11609_v60  ;;  %v11611_v40 = vpop.eup %6544  ;;  %4945 = vmatmul.mubr.f32.gmra.mrb[52].mxu0 %v3898_v34  ;;  %v3651_v0 = vadd.f32 1.0, %v6543_v43  ;;  %6554 = vtanh.f32 %v3154_v57  ;;  %v2907_v37 = vadd.f32 %v2651_v30, %v11385_v4  ;;  %v5897_v19 = vpack.c.bf16 %v4197_v36, %v4195_v31  ;;  %v11614_v42 = vpop.f32.mrb[241].mxu1 }
 0x34c   : > { %v6547_v16 = vpop.eup %6546  ;;  %v1933_v22 = vmul.f32 0.044715, %v11591_v54  ;;  %v11619_v48 = vadd.f32 %v12937_v9, %v11443_v27  ;;  %v2906_v14 = vadd.f32 %v2650_v45, %v11371_v62  ;;  %v5899_v60 = vpack.c.bf16 %v4196_v17, %v4194_v28 }
 0x34d   : > { %v6549_v2 = vpop.eup %6548  ;;  %v3907_v55 = vmul.f32 %v3651_v0, %v1859_v8  ;;  %v3650_v34 = vadd.f32 1.0, %v6547_v16  ;;  %v3163_v43 = vmul.f32 0.7978846, %v2907_v37  ;;  %5898 = vmatprep.subr.bf16.mxu0 %v5897_v19  ;;  %v11624_v31 = vadd.f32 %v11148_v41, %v11430_v32 }
 0x34e   : > { %v6551_v36 = vpop.eup %6550  ;;  %v3659_v57 = vadd.f32 1.0, %v6549_v2  ;;  %v3162_v30 = vmul.f32 0.7978846, %v2906_v14  ;;  %5900 = vmatpush1.bf16.msra.mxu0 %v5899_v60  ;;  %v11628_v9 = vadd.f32 %v11151_v33, %v11443_v27  ;;  %v2659_v28 = vmul.f32 %v11473_v38, %v11424_v35  ;;  %v11632_v17 = vpop.f32.mrb[242].mxu1 }
 0x34f   : > { %4950 = vmatprep.mubr.f32.mxu0 %v3907_v55  ;;  %v3906_v8 = vmul.f32 %v3650_v34, %v1858_v21  ;;  %v3658_v45 = vadd.f32 1.0, %v6551_v36  ;;  %v1940_v0 = vmul.f32 0.044715, %v11605_v6  ;;  %6556 = vtanh.f32 %v3163_v43  ;;  %v11635_v41 = vpop.f32.mrb[243].mxu1 }
 0x350   : > { %v3915_v2 = vmul.f32 %v3659_v57, %v1867_v47  ;;  %v1941_v60 = vmul.f32 0.044715, %v11619_v48  ;;  %6558 = vtanh.f32 %v3162_v30  ;;  %v2915_v33 = vadd.f32 %v2659_v28, %v11424_v35 }
 0x351   : > { %4951 = vmatmul.mubr.f32.gmra.mrb[54].mxu0 %v3906_v8  ;;  %v11640_v37 = vmul.f32 %v1932_v46, %v11565_v25  ;;  %v1883_v38 = vmul.f32 0.5, %v11385_v4  ;;  %v1948_v55 = vmul.f32 0.044715, %v11624_v31  ;;  %v2658_v21 = vmul.f32 %v11458_v49, %v11413_v12 }
 0x352   : > { %4956 = vmatprep.mubr.f32.mxu0 %v3915_v2  ;;  %v11647_v19 = vmul.f32 %v1933_v22, %v11591_v54  ;;  %v1882_v47 = vmul.f32 0.5, %v11371_v62  ;;  %v1949_v16 = vmul.f32 0.044715, %v11628_v9  ;;  %v3171_v14 = vmul.f32 0.7978846, %v2915_v33 }
 0x353   : > { %v11651_v34 = vpop.f32.mrb[244].mxu1  ;;  %v3914_v46 = vmul.f32 %v3658_v45, %v11581_v3  ;;  %v11655_v4 = vmul.f32 %v1940_v0, %v11605_v6  ;;  %v2914_v43 = vadd.f32 %v2658_v21, %v11413_v12  ;;  %v2413_v49 = vmul.f32 %v11510_v29, %v11464_v20 }
 0x354   : > { %v11660_v36 = vpop.f32.mrb[245].mxu1  ;;  %v6553_v22 = vpop.eup %6552  ;;  %v11663_v62 = vmul.f32 %v1941_v60, %v11619_v48  ;;  %v11666_v57 = vmul.f32 0.5, %v11424_v35  ;;  %6560 = vtanh.f32 %v3171_v14  ;;  %v11670_v3 = vadd.f32 %v11171_v63, %v11430_v32  ;;  %v12938_v35 = vld [vmem:[#allocation27_spill] sm:$0xff] }
 0x355   : > { %v6555_v30 = vpop.eup %6554  ;;  %4957 = vmatmul.mubr.f32.gmra.mrb[56].mxu0 %v3914_v46  ;;  %v3667_v28 = vadd.f32 1.0, %v6553_v22  ;;  %v11673_v8 = vmul.f32 %v1948_v55, %v11624_v31  ;;  %v3170_v29 = vmul.f32 0.7978846, %v2914_v43  ;;  %v2669_v45 = vadd.f32 %v2413_v49, %v11464_v20  ;;  %v12939_v55 = vld [vmem:[#allocation26_spill] sm:$0xff]  ;;  %v12941_v49 = vld [vmem:[#allocation40_spill] sm:$0xff] }
 0x356   : > { %v3666_v0 = vadd.f32 1.0, %v6555_v30  ;;  %v11677_v2 = vmul.f32 %v1949_v16, %v11628_v9  ;;  %v11681_v60 = vadd.f32 %v12938_v35, %v11443_v27  ;;  %v3436_v63 = vadd.f32 1.0, %v11611_v40 }
 0x357   : > { %v3923_v33 = vmul.f32 %v3667_v28, %v11594_v10  ;;  %6562 = vtanh.f32 %v3170_v29  ;;  %v2925_v21 = vmul.f32 0.7978846, %v2669_v45  ;;  %v11687_v14 = vadd.f32 %v12939_v55, %v11430_v32  ;;  %v11689_v46 = vpop.f32.mrb[246].mxu1 }
 0x358   : > { %12940 = vst [vmem:[#allocation58_spill] sm:$0xff] %v11689_v46  ;;  %v3922_v43 = vmul.f32 %v3666_v0, %v11601_v24  ;;  %v1956_v16 = vmul.f32 0.044715, %v11670_v3  ;;  %v11695_v22 = vadd.f32 %v12941_v49, %v11443_v27  ;;  %v2421_v40 = vmul.f32 %v11523_v13, %v11484_v11  ;;  %v11699_v10 = vpop.f32.mrb[247].mxu1 }
 0x359   : > { %12942 = vst [vmem:[#allocation57_spill] sm:$0xff] %v11699_v10  ;;  %v6557_v30 = vpop.eup %6556  ;;  %4962 = vmatprep.mubr.f32.mxu0 %v3923_v33  ;;  %v1890_v28 = vmul.f32 0.5, %v11413_v12  ;;  %v11703_v29 = vmul.f32 0.5, %v11464_v20  ;;  %6564 = vtanh.f32 %v2925_v21  ;;  %v2420_v24 = vmul.f32 %v11513_v58, %v11468_v44 }
 0x35a   : > { %v6559_v45 = vpop.eup %6558  ;;  %4963 = vmatmul.mubr.f32.gmra.mrb[58].mxu0 %v3922_v43  ;;  %v3675_v0 = vadd.f32 1.0, %v6557_v30  ;;  %v1957_v35 = vmul.f32 0.044715, %v11681_v60  ;;  %v11709_v13 = vmul.f32 %v3436_v63, %v11499_v39  ;;  %v2677_v55 = vadd.f32 %v2421_v40, %v11484_v11  ;;  %v12943_v40 = vld [vmem:[#allocation39_spill] sm:$0xff] }
 0x35b   : > { %v3674_v33 = vadd.f32 1.0, %v6559_v45  ;;  %v1964_v12 = vmul.f32 0.044715, %v11687_v14  ;;  %v2676_v20 = vadd.f32 %v2420_v24, %v11468_v44  ;;  %v2429_v21 = vmul.f32 %v11570_v51, %v11527_v61  ;;  %v11716_v49 = vpop.f32.mrb[248].mxu1 }
 0x35c   : > { %v3931_v58 = vmul.f32 %v3675_v0, %v1883_v38  ;;  %v11719_v43 = vmul.f32 %v1956_v16, %v11670_v3  ;;  %v1965_v30 = vmul.f32 0.044715, %v11695_v22  ;;  %v2933_v39 = vmul.f32 0.7978846, %v2677_v55  ;;  %v11727_v46 = vpop.f32.mrb[249].mxu1  ;;  %v12944_v16 = vld [vmem:[#allocation29_spill] sm:$0xff] }
 0x35d   : > { %v3930_v63 = vmul.f32 %v3674_v33, %v1882_v47  ;;  %v2932_v10 = vmul.f32 0.7978846, %v2676_v20  ;;  %v11724_v45 = vadd.f32 %v12943_v40, %v11430_v32  ;;  %v2685_v24 = vadd.f32 %v2429_v21, %v11527_v61 }
 0x35e   : > { %v6561_v51 = vpop.eup %6560  ;;  %4968 = vmatprep.mubr.f32.mxu0 %v3931_v58  ;;  %v11730_v38 = vmul.f32 %v1957_v35, %v11681_v60  ;;  %6566 = vtanh.f32 %v2933_v39  ;;  %v11734_v0 = vadd.f32 %v12944_v16, %v11443_v27  ;;  %v2428_v47 = vmul.f32 %v11561_v18, %v11503_v5 }
 0x35f   : > { %4969 = vmatmul.mubr.f32.gmra.mrb[60].mxu0 %v3930_v63  ;;  %v3683_v55 = vadd.f32 1.0, %v6561_v51  ;;  %v11739_v33 = vmul.f32 %v1964_v12, %v11687_v14  ;;  %6568 = vtanh.f32 %v2932_v10  ;;  %v2941_v20 = vmul.f32 0.7978846, %v2685_v24  ;;  %v11741_v21 = vpop.f32.mrb[250].mxu1 }
 0x360   : > { %12945 = vst [vmem:[#allocation6_spill] sm:$0xff] %v11741_v21  ;;  %v11744_v35 = vmul.f32 %v1965_v30, %v11695_v22  ;;  %v1653_v58 = vmul.f32 0.5, %v11484_v11  ;;  %v2684_v39 = vadd.f32 %v2428_v47, %v11503_v5  ;;  %v2437_v40 = vmul.f32 %v11587_v23, %v11545_v26  ;;  %v11750_v18 = vpop.f32.mrb[251].mxu1 }
 0x361   : > { %12946 = vst [vmem:[#allocation5_spill] sm:$0xff] %v11750_v18  ;;  %v6563_v63 = vpop.eup %6562  ;;  %v3939_v12 = vmul.f32 %v3683_v55, %v11666_v57  ;;  %v1652_v10 = vmul.f32 0.5, %v11468_v44  ;;  %v1972_v24 = vmul.f32 0.044715, %v11724_v45  ;;  %6570 = vtanh.f32 %v2941_v20  ;;  %v12947_v57 = vld [vmem:[#allocation28_spill] sm:$0xff] }
 0x362   : > { %v3682_v51 = vadd.f32 1.0, %v6563_v63  ;;  %v1973_v30 = vmul.f32 0.044715, %v11734_v0  ;;  %v2940_v16 = vmul.f32 0.7978846, %v2684_v39  ;;  %v2693_v11 = vadd.f32 %v2437_v40, %v11545_v26  ;;  %v12949_v40 = vld [vmem:[#allocation46_spill] sm:$0xff] }
 0x363   : > { %v6565_v47 = vpop.eup %6564  ;;  %4974 = vmatprep.mubr.f32.mxu0 %v3939_v12  ;;  %v1661_v23 = vmul.f32 0.5, %v11527_v61  ;;  %v11759_v18 = vmul.f32 0.5, %v11503_v5  ;;  %v11763_v55 = vadd.f32 %v12947_v57, %v11430_v32  ;;  %v2436_v44 = vmul.f32 %v11578_v15, %v11541_v50 }
 0x364   : > { %v11767_v20 = vpop.f32.mrb[252].mxu1  ;;  %v3938_v63 = vmul.f32 %v3682_v51, %v1890_v28  ;;  %v3437_v39 = vadd.f32 1.0, %v6565_v47  ;;  %6572 = vtanh.f32 %v2940_v16  ;;  %v11771_v12 = vadd.f32 %v12949_v40, %v11443_v27 }
 0x365   : > { %12948 = vst [vmem:[#allocation7_spill] sm:$0xff] %v11767_v20  ;;  %v11773_v61 = vpop.f32.mrb[253].mxu1  ;;  %v11776_v5 = vmul.f32 %v1972_v24, %v11724_v45  ;;  %v2949_v21 = vmul.f32 0.7978846, %v2693_v11  ;;  %v2692_v57 = vadd.f32 %v2436_v44, %v11541_v50  ;;  %v11781_v15 = vadd.f32 %v11275_v1, %v11430_v32 }
 0x366   : > { %12950 = vst [vmem:[#allocation8_spill] sm:$0xff] %v11773_v61  ;;  %4975 = vmatmul.mubr.f32.gmra.mrb[62].mxu0 %v3938_v63  ;;  %v3693_v28 = vmul.f32 %v3437_v39, %v11703_v29  ;;  %v11785_v51 = vmul.f32 %v1973_v30, %v11734_v0  ;;  %v11789_v16 = vadd.f32 %v11282_v53, %v11443_v27  ;;  %v1980_v11 = vmul.f32 0.044715, %v11763_v55 }
 0x367   : > { %v2445_v24 = vmul.f32 %v11647_v19, %v11591_v54  ;;  %v11795_v47 = vmul.f32 0.5, %v11545_v26  ;;  %6574 = vtanh.f32 %v2949_v21  ;;  %v2948_v1 = vmul.f32 0.7978846, %v2692_v57 }
 0x368   : > { %v11797_v44 = vpop.f32.mrb[254].mxu1  ;;  %v6567_v29 = vpop.eup %6566  ;;  %5045 = vmatprep.mubr.f32.mxu0 %v3693_v28  ;;  %v1981_v30 = vmul.f32 0.044715, %v11771_v12  ;;  %v11801_v63 = vmul.f32 0.5, %v11541_v50  ;;  %v2444_v19 = vmul.f32 %v11640_v37, %v11565_v25  ;;  %v1988_v21 = vmul.f32 0.044715, %v11781_v15 }
 0x369   : > { %12951 = vst [vmem:[#allocation9_spill] sm:$0xff] %v11797_v44  ;;  %v2701_v53 = vadd.f32 %v2445_v24, %v11591_v54  ;;  %v11806_v39 = vpop.f32.mrb[255].mxu1  ;;  %v6569_v26 = vpop.eup %6568  ;;  %v3445_v40 = vadd.f32 1.0, %v6567_v29  ;;  %6576 = vtanh.f32 %v2948_v1  ;;  %v2453_v57 = vmul.f32 %v11663_v62, %v11619_v48  ;;  %v12953_v1 = vld [vmem:[#allocation45_spill] sm:$0xff] }
 0x36a   : > { %12952 = vst [vmem:[#allocation10_spill] sm:$0xff] %v11806_v39  ;;  %5046 = vmatmul.mubr.f32.vlgmr.msra.gmra.mrb[0].mxu0 %v11709_v13  ;;  %v3444_v28 = vadd.f32 1.0, %v6569_v26  ;;  %v1989_v50 = vmul.f32 0.044715, %v11789_v16  ;;  %v2700_v24 = vadd.f32 %v2444_v19, %v11565_v25  ;;  %v11816_v39 = vadd.f32 %v11303_v7, %v11430_v32 }
 0x36b   : > { %v2957_v44 = vmul.f32 0.7978846, %v2701_v53  ;;  %v6571_v61 = vpop.eup %6570  ;;  %v3701_v37 = vmul.f32 %v3445_v40, %v1653_v58  ;;  %v11820_v29 = vadd.f32 %v12953_v1, %v11443_v27  ;;  %v2709_v62 = vadd.f32 %v2453_v57, %v11619_v48 }
 0x36c   : > { %v3700_v20 = vmul.f32 %v3444_v28, %v1652_v10  ;;  %v3453_v13 = vadd.f32 1.0, %v6571_v61  ;;  %v2956_v26 = vmul.f32 0.7978846, %v2700_v24  ;;  %v11824_v53 = vmul.f32 %v1980_v11, %v11763_v55  ;;  %v12954_v24 = vld [vmem:[#allocation34_spill] sm:$0xff] }
 0x36d   : > { %6578 = vtanh.f32 %v2957_v44  ;;  %5051 = vmatprep.mubr.f32.mxu0 %v3701_v37  ;;  %v11827_v58 = vmul.f32 %v1981_v30, %v11771_v12  ;;  %v2965_v19 = vmul.f32 0.7978846, %v2709_v62  ;;  %v2452_v7 = vmul.f32 %v11655_v4, %v11605_v6 }
 0x36e   : > { %v6573_v40 = vpop.eup %6572  ;;  %5052 = vmatmul.mubr.f32.gmra.mrb[2].mxu0 %v3700_v20  ;;  %v3709_v1 = vmul.f32 %v3453_v13, %v1661_v23  ;;  %v1677_v57 = vmul.f32 0.5, %v11591_v54  ;;  %v1676_v10 = vmul.f32 0.5, %v11565_v25  ;;  %6580 = vtanh.f32 %v2956_v26 }
 0x36f   : > { %v3452_v61 = vadd.f32 1.0, %v6573_v40  ;;  %v1996_v44 = vmul.f32 0.044715, %v11816_v39  ;;  %6582 = vtanh.f32 %v2965_v19  ;;  %v2708_v11 = vadd.f32 %v2452_v7, %v11605_v6  ;;  %v12955_v19 = vld [vmem:[#allocation33_spill] sm:$0xff] }
 0x370   : > { %5057 = vmatprep.mubr.f32.mxu0 %v3709_v1  ;;  %v11836_v30 = vmul.f32 %v1988_v21, %v11781_v15  ;;  %v11839_v4 = vmul.f32 %v1989_v50, %v11789_v16  ;;  %v1997_v23 = vmul.f32 0.044715, %v11820_v29  ;;  %v2461_v54 = vmul.f32 %v11677_v2, %v11628_v9 }
 0x371   : > { %v6575_v25 = vpop.eup %6574  ;;  %v3708_v20 = vmul.f32 %v3452_v61, %v11759_v18  ;;  %v2964_v28 = vmul.f32 0.7978846, %v2708_v11  ;;  %v11847_v37 = vadd.f32 %v12954_v24, %v11430_v32  ;;  %v2460_v21 = vmul.f32 %v11673_v8, %v11624_v31 }
 0x372   : > { %v3461_v62 = vadd.f32 1.0, %v6575_v25  ;;  %v1685_v50 = vmul.f32 0.5, %v11619_v48  ;;  %v11853_v13 = vmul.f32 0.5, %v11605_v6  ;;  %v2717_v26 = vadd.f32 %v2461_v54, %v11628_v9 }
 0x373   : > { %v6577_v2 = vpop.eup %6576  ;;  %5058 = vmatmul.mubr.f32.gmra.mrb[4].mxu0 %v3708_v20  ;;  %v11857_v18 = vmul.f32 %v1996_v44, %v11816_v39  ;;  %6584 = vtanh.f32 %v2964_v28  ;;  %v11861_v7 = vadd.f32 %v12955_v19, %v11443_v27  ;;  %v2716_v8 = vadd.f32 %v2460_v21, %v11624_v31 }
 0x374   : > { %v3717_v40 = vmul.f32 %v3461_v62, %v11795_v47  ;;  %v3460_v48 = vadd.f32 1.0, %v6577_v2  ;;  %v2973_v1 = vmul.f32 0.7978846, %v2717_v26  ;;  %v11867_v6 = vadd.f32 %v11354_v52, %v11430_v32 }
 0x375   : > { %v11870_v61 = vmul.f32 %v1997_v23, %v11820_v29  ;;  %v2004_v44 = vmul.f32 0.044715, %v11847_v37  ;;  %v2972_v11 = vmul.f32 0.7978846, %v2716_v8  ;;  %v2469_v54 = vmul.f32 %v11730_v38, %v11681_v60 }
 0x376   : > { %5063 = vmatprep.mubr.f32.mxu0 %v3717_v40  ;;  %v3716_v20 = vmul.f32 %v3460_v48, %v11801_v63  ;;  %6586 = vtanh.f32 %v2973_v1  ;;  %v11878_v47 = vadd.f32 %v11360_v56, %v11443_v27  ;;  %v2468_v52 = vmul.f32 %v11719_v43, %v11670_v3 }
 0x377   : > { %v6579_v25 = vpop.eup %6578  ;;  %v1693_v28 = vmul.f32 0.5, %v11628_v9  ;;  %6588 = vtanh.f32 %v2972_v11  ;;  %v2725_v24 = vadd.f32 %v2469_v54, %v11681_v60  ;;  %v2005_v38 = vmul.f32 0.044715, %v11861_v7  ;;  %v12956_v11 = vld [vmem:[#allocation48_spill] sm:$0xff] }
 0x378   : > { %v3469_v23 = vadd.f32 1.0, %v6579_v25  ;;  %v6581_v21 = vpop.eup %6580  ;;  %5064 = vmatmul.mubr.f32.gmra.mrb[6].mxu0 %v3716_v20  ;;  %v1692_v63 = vmul.f32 0.5, %v11624_v31  ;;  %v2012_v62 = vmul.f32 0.044715, %v11867_v6  ;;  %v2724_v56 = vadd.f32 %v2468_v52, %v11670_v3 }
 0x379   : > { %v6583_v26 = vpop.eup %6582  ;;  %v3468_v19 = vadd.f32 1.0, %v6581_v21  ;;  %v2981_v43 = vmul.f32 0.7978846, %v2725_v24  ;;  %v2477_v9 = vmul.f32 %v11744_v35, %v11695_v22  ;;  %v11891_v40 = vmul.f32 %v2004_v44, %v11847_v37 }
 0x37a   : > { %v3725_v2 = vmul.f32 %v3469_v23, %v1677_v57  ;;  %v3477_v8 = vadd.f32 1.0, %v6583_v26  ;;  %v2013_v48 = vmul.f32 0.044715, %v11878_v47  ;;  %v2980_v1 = vmul.f32 0.7978846, %v2724_v56  ;;  %v12957_v23 = vld [vmem:[#allocation47_spill] sm:$0xff] }
 0x37b   : > { %v3724_v31 = vmul.f32 %v3468_v19, %v1676_v10  ;;  %6590 = vtanh.f32 %v2981_v43  ;;  %v11896_v54 = vadd.f32 %v12956_v11, %v11430_v32  ;;  %v2733_v57 = vadd.f32 %v2477_v9, %v11695_v22 }
 0x37c   : > { %5069 = vmatprep.mubr.f32.mxu0 %v3725_v2  ;;  %v3733_v25 = vmul.f32 %v3477_v8, %v1685_v50  ;;  %v11900_v20 = vmul.f32 %v2005_v38, %v11861_v7  ;;  %6592 = vtanh.f32 %v2980_v1  ;;  %v2476_v35 = vmul.f32 %v11739_v33, %v11687_v14 }
 0x37d   : > { %v6585_v44 = vpop.eup %6584  ;;  %5070 = vmatmul.mubr.f32.gmra.mrb[8].mxu0 %v3724_v31  ;;  %v11905_v52 = vmul.f32 %v2012_v62, %v11867_v6  ;;  %v1701_v10 = vmul.f32 0.5, %v11681_v60  ;;  %v11910_v24 = vadd.f32 %v12957_v23, %v11443_v27  ;;  %v2989_v21 = vmul.f32 0.7978846, %v2733_v57  ;;  %v12960_v23 = vld [vmem:[#allocation36_spill] sm:$0xff] }
 0x37e   : > { %5075 = vmatprep.mubr.f32.mxu0 %v3733_v25  ;;  %v3476_v50 = vadd.f32 1.0, %v6585_v44  ;;  %v1700_v38 = vmul.f32 0.5, %v11670_v3  ;;  %v2732_v56 = vadd.f32 %v2476_v35, %v11687_v14  ;;  %v2485_v33 = vmul.f32 %v11785_v51, %v11734_v0 }
 0x37f   : > { %v11917_v26 = vmul.f32 %v2013_v48, %v11878_v47  ;;  %v2020_v62 = vmul.f32 0.044715, %v11896_v54  ;;  %v1709_v60 = vmul.f32 0.5, %v11695_v22  ;;  %6594 = vtanh.f32 %v2989_v21  ;;  %v12958_v48 = vld [vmem:[#allocation54_spill] sm:$0xff]  ;;  %v12959_v22 = vld [vmem:[#allocation53_spill] sm:$0xff] }
 0x380   : > { %v6587_v2 = vpop.eup %6586  ;;  %v3732_v19 = vmul.f32 %v3476_v50, %v11853_v13  ;;  %v2988_v43 = vmul.f32 0.7978846, %v2732_v56  ;;  %v2741_v9 = vadd.f32 %v2485_v33, %v11734_v0  ;;  %v2484_v3 = vmul.f32 %v11776_v5, %v11724_v45 }
 0x381   : > { %v6589_v8 = vpop.eup %6588  ;;  %v3485_v1 = vadd.f32 1.0, %v6587_v2  ;;  %v2021_v51 = vmul.f32 0.044715, %v11910_v24  ;;  %v11928_v31 = vadd.f32 %v12958_v48, %v11430_v32  ;;  %v11932_v11 = vadd.f32 %v12959_v22, %v11443_v27 }
 0x382   : > { %5076 = vmatmul.mubr.f32.gmra.mrb[10].mxu0 %v3732_v19  ;;  %v3484_v13 = vadd.f32 1.0, %v6589_v8  ;;  %6596 = vtanh.f32 %v2988_v43  ;;  %v2997_v57 = vmul.f32 0.7978846, %v2741_v9  ;;  %v2740_v25 = vadd.f32 %v2484_v3, %v11724_v45  ;;  %v12961_v9 = vld [vmem:[#allocation35_spill] sm:$0xff] }
 0x383   : > { %v3741_v35 = vmul.f32 %v3485_v1, %v1693_v28  ;;  %v11936_v5 = vmul.f32 %v2020_v62, %v11896_v54  ;;  %v1708_v44 = vmul.f32 0.5, %v11687_v14  ;;  %v11941_v21 = vadd.f32 %v12960_v23, %v11430_v32 }
 0x384   : > { %v3740_v50 = vmul.f32 %v3484_v13, %v1692_v63  ;;  %6598 = vtanh.f32 %v2997_v57  ;;  %v2996_v56 = vmul.f32 0.7978846, %v2740_v25  ;;  %v2493_v33 = vmul.f32 %v11827_v58, %v11771_v12  ;;  %v12962_v57 = vld [vmem:[#allocation42_spill] sm:$0xff] }
 0x385   : > { %v6591_v2 = vpop.eup %6590  ;;  %5081 = vmatprep.mubr.f32.mxu0 %v3741_v35  ;;  %v11946_v19 = vmul.f32 %v2021_v51, %v11910_v24  ;;  %v2028_v28 = vmul.f32 0.044715, %v11928_v31  ;;  %v2029_v62 = vmul.f32 0.044715, %v11932_v11  ;;  %v2492_v14 = vmul.f32 %v11824_v53, %v11763_v55 }
 0x386   : > { %v6593_v43 = vpop.eup %6592  ;;  %5082 = vmatmul.mubr.f32.gmra.mrb[12].mxu0 %v3740_v50  ;;  %v3493_v63 = vadd.f32 1.0, %v6591_v2  ;;  %6600 = vtanh.f32 %v2996_v56  ;;  %v11954_v3 = vadd.f32 %v12961_v9, %v11443_v27  ;;  %v2749_v58 = vadd.f32 %v2493_v33, %v11771_v12 }
 0x387   : > { %v3492_v8 = vadd.f32 1.0, %v6593_v43  ;;  %v1717_v1 = vmul.f32 0.5, %v11734_v0  ;;  %v1716_v51 = vmul.f32 0.5, %v11724_v45  ;;  %v2748_v48 = vadd.f32 %v2492_v14, %v11763_v55 }
 0x388   : > { %v3749_v22 = vmul.f32 %v3493_v63, %v1701_v10  ;;  %v2036_v53 = vmul.f32 0.044715, %v11941_v21  ;;  %v3005_v13 = vmul.f32 0.7978846, %v2749_v58  ;;  %v11963_v25 = vadd.f32 %v12962_v57, %v11430_v32  ;;  %v12963_v63 = vld [vmem:[#allocation41_spill] sm:$0xff] }
 0x389   : > { %v6595_v35 = vpop.eup %6594  ;;  %v3748_v23 = vmul.f32 %v3492_v8, %v1700_v38  ;;  %v11966_v50 = vmul.f32 %v2028_v28, %v11928_v31  ;;  %v3004_v56 = vmul.f32 0.7978846, %v2748_v48  ;;  %v2501_v0 = vmul.f32 %v11839_v4, %v11789_v16 }
 0x38a   : > { %5087 = vmatprep.mubr.f32.mxu0 %v3749_v22  ;;  %v3501_v45 = vadd.f32 1.0, %v6595_v35  ;;  %v11971_v10 = vmul.f32 %v2029_v62, %v11932_v11  ;;  %v2037_v33 = vmul.f32 0.044715, %v11954_v3  ;;  %6602 = vtanh.f32 %v3005_v13 }
 0x38b   : > { %5088 = vmatmul.mubr.f32.gmra.mrb[14].mxu0 %v3748_v23  ;;  %v1725_v2 = vmul.f32 0.5, %v11771_v12  ;;  %6604 = vtanh.f32 %v3004_v56  ;;  %v2757_v38 = vadd.f32 %v2501_v0, %v11789_v16  ;;  %v2500_v28 = vmul.f32 %v11836_v30, %v11781_v15 }
 0x38c   : > { %v6597_v14 = vpop.eup %6596  ;;  %v3757_v43 = vmul.f32 %v3501_v45, %v1709_v60  ;;  %v11979_v4 = vmul.f32 %v2036_v53, %v11941_v21  ;;  %v2044_v62 = vmul.f32 0.044715, %v11963_v25  ;;  %v11984_v9 = vadd.f32 %v12963_v63, %v11443_v27  ;;  %v12964_v53 = vld [vmem:[#allocation56_spill] sm:$0xff] }
 0x38d   : > { %v3500_v58 = vadd.f32 1.0, %v6597_v14  ;;  %v3013_v8 = vmul.f32 0.7978846, %v2757_v38  ;;  %v2756_v12 = vadd.f32 %v2500_v28, %v11781_v15  ;;  %v2509_v48 = vmul.f32 %v11870_v61, %v11820_v29 }
 0x38e   : > { %v6599_v22 = vpop.eup %6598  ;;  %5093 = vmatprep.mubr.f32.mxu0 %v3757_v43  ;;  %v11990_v30 = vmul.f32 %v2037_v33, %v11954_v3  ;;  %v1724_v60 = vmul.f32 0.5, %v11763_v55  ;;  %v11995_v13 = vadd.f32 %v12964_v53, %v11430_v32  ;;  %v2508_v57 = vmul.f32 %v11857_v18, %v11816_v39 }
 0x38f   : > { %v3756_v35 = vmul.f32 %v3500_v58, %v1708_v44  ;;  %v3509_v23 = vadd.f32 1.0, %v6599_v22  ;;  %6606 = vtanh.f32 %v3013_v8  ;;  %v3012_v56 = vmul.f32 0.7978846, %v2756_v12  ;;  %v12965_v44 = vld [vmem:[#allocation55_spill] sm:$0xff]  ;;  %v12966_v12 = vld [vmem:[#allocation44_spill] sm:$0xff] }
 0x390   : > { %v6601_v0 = vpop.eup %6600  ;;  %v2045_v61 = vmul.f32 0.044715, %v11984_v9  ;;  %v1733_v45 = vmul.f32 0.5, %v11789_v16  ;;  %v2765_v33 = vadd.f32 %v2509_v48, %v11820_v29  ;;  %v2764_v55 = vadd.f32 %v2508_v57, %v11816_v39 }
 0x391   : > { %5094 = vmatmul.mubr.f32.gmra.mrb[16].mxu0 %v3756_v35  ;;  %v3765_v38 = vmul.f32 %v3509_v23, %v1717_v1  ;;  %v3508_v28 = vadd.f32 1.0, %v6601_v0  ;;  %v12004_v14 = vmul.f32 %v2044_v62, %v11963_v25  ;;  %6608 = vtanh.f32 %v3012_v56  ;;  %v12967_v35 = vld [vmem:[#allocation43_spill] sm:$0xff] }
 0x392   : > { %v1732_v18 = vmul.f32 0.5, %v11781_v15  ;;  %v12009_v43 = vadd.f32 %v12965_v44, %v11443_v27  ;;  %v3021_v63 = vmul.f32 0.7978846, %v2765_v33  ;;  %v3020_v58 = vmul.f32 0.7978846, %v2764_v55 }
 0x393   : > { %5099 = vmatprep.mubr.f32.mxu0 %v3765_v38  ;;  %v3764_v16 = vmul.f32 %v3508_v28, %v1716_v51  ;;  %v2052_v8 = vmul.f32 0.044715, %v11995_v13  ;;  %v12014_v1 = vadd.f32 %v12966_v12, %v11430_v32  ;;  %v2517_v62 = vmul.f32 %v11900_v20, %v11861_v7 }
 0x394   : > { %v6603_v48 = vpop.eup %6602  ;;  %v12019_v15 = vmul.f32 %v2045_v61, %v11984_v9  ;;  %v1741_v22 = vmul.f32 0.5, %v11820_v29  ;;  %6610 = vtanh.f32 %v3021_v63  ;;  %v2516_v53 = vmul.f32 %v11891_v40, %v11847_v37  ;;  %v12968_v63 = vld [vmem:[#allocation60_spill] sm:$0xff] }
 0x395   : > { %v6605_v51 = vpop.eup %6604  ;;  %5100 = vmatmul.mubr.f32.gmra.mrb[18].mxu0 %v3764_v16  ;;  %v3517_v57 = vadd.f32 1.0, %v6603_v48  ;;  %6612 = vtanh.f32 %v3020_v58  ;;  %v12026_v23 = vadd.f32 %v12967_v35, %v11443_v27  ;;  %v2773_v20 = vadd.f32 %v2517_v62, %v11861_v7 }
 0x396   : > { %v3516_v56 = vadd.f32 1.0, %v6605_v51  ;;  %v2053_v0 = vmul.f32 0.044715, %v12009_v43  ;;  %v1740_v61 = vmul.f32 0.5, %v11816_v39  ;;  %v2772_v29 = vadd.f32 %v2516_v53, %v11847_v37 }
 0x397   : > { %v3773_v33 = vmul.f32 %v3517_v57, %v1725_v2  ;;  %v12033_v40 = vmul.f32 %v2052_v8, %v11995_v13  ;;  %v2060_v55 = vmul.f32 0.044715, %v12014_v1  ;;  %v3029_v38 = vmul.f32 0.7978846, %v2773_v20  ;;  %v12969_v2 = vld [vmem:[#allocation59_spill] sm:$0xff] }
 0x398   : > { %v3772_v28 = vmul.f32 %v3516_v56, %v1724_v60  ;;  %v3028_v44 = vmul.f32 0.7978846, %v2772_v29  ;;  %v12038_v58 = vadd.f32 %v12968_v63, %v11430_v32  ;;  %v2525_v16 = vmul.f32 %v11917_v26, %v11878_v47 }
 0x399   : > { %v6607_v12 = vpop.eup %6606  ;;  %5105 = vmatprep.mubr.f32.mxu0 %v3773_v33  ;;  %v2061_v39 = vmul.f32 0.044715, %v12026_v23  ;;  %6614 = vtanh.f32 %v3029_v38  ;;  %v12045_v8 = vadd.f32 %v12969_v2, %v11443_v27  ;;  %v2524_v60 = vmul.f32 %v11905_v52, %v11867_v6 }
 0x39a   : > { %5106 = vmatmul.mubr.f32.gmra.mrb[20].mxu0 %v3772_v28  ;;  %v3525_v62 = vadd.f32 1.0, %v6607_v12  ;;  %v12050_v48 = vmul.f32 %v2053_v0, %v12009_v43  ;;  %6616 = vtanh.f32 %v3028_v44  ;;  %v2781_v26 = vadd.f32 %v2525_v16, %v11878_v47 }
 0x39b   : > { %v6609_v53 = vpop.eup %6608  ;;  %v12054_v51 = vmul.f32 %v2060_v55, %v12014_v1  ;;  %v1749_v57 = vmul.f32 0.5, %v11861_v7  ;;  %v1748_v35 = vmul.f32 0.5, %v11847_v37  ;;  %v2780_v20 = vadd.f32 %v2524_v60, %v11867_v6 }
 0x39c   : > { %v3781_v56 = vmul.f32 %v3525_v62, %v1733_v45  ;;  %v3524_v52 = vadd.f32 1.0, %v6609_v53  ;;  %v2068_v29 = vmul.f32 0.044715, %v12038_v58  ;;  %v3037_v33 = vmul.f32 0.7978846, %v2781_v26 }
 0x39d   : > { %v12061_v0 = vmul.f32 %v2061_v39, %v12026_v23  ;;  %v2069_v38 = vmul.f32 0.044715, %v12045_v8  ;;  %v3036_v28 = vmul.f32 0.7978846, %v2780_v20  ;;  %v2533_v55 = vmul.f32 %v11946_v19, %v11910_v24 }
 0x39e   : > { %v6611_v44 = vpop.eup %6610  ;;  %5111 = vmatprep.mubr.f32.mxu0 %v3781_v56  ;;  %v3780_v7 = vmul.f32 %v3524_v52, %v1732_v18  ;;  %6618 = vtanh.f32 %v3037_v33  ;;  %v12068_v37 = vadd.f32 %v11551_v59, %v11430_v32  ;;  %v2532_v45 = vmul.f32 %v11936_v5, %v11896_v54  ;;  %v12970_v18 = vld [vmem:[#allocation50_spill] sm:$0xff] }
 0x39f   : > { %v6613_v63 = vpop.eup %6612  ;;  %v3533_v16 = vadd.f32 1.0, %v6611_v44  ;;  %v1757_v12 = vmul.f32 0.5, %v11878_v47  ;;  %6620 = vtanh.f32 %v3036_v28  ;;  %v2789_v39 = vadd.f32 %v2533_v55, %v11910_v24 }
 0x3a0   : > { %5112 = vmatmul.mubr.f32.gmra.mrb[22].mxu0 %v3780_v7  ;;  %v3532_v19 = vadd.f32 1.0, %v6613_v63  ;;  %v12075_v2 = vmul.f32 %v2068_v29, %v12038_v58  ;;  %v12079_v60 = vadd.f32 %v12970_v18, %v11443_v27  ;;  %v2788_v59 = vadd.f32 %v2532_v45, %v11896_v54  ;;  %v12972_v7 = vld [vmem:[#allocation52_spill] sm:$0xff] }
 0x3a1   : > { %v3789_v62 = vmul.f32 %v3533_v16, %v1741_v22  ;;  %v1756_v5 = vmul.f32 0.5, %v11867_v6  ;;  %v3045_v26 = vmul.f32 0.7978846, %v2789_v39  ;;  %v2541_v47 = vmul.f32 %v11971_v10, %v11932_v11 }
 0x3a2   : > { %v3788_v53 = vmul.f32 %v3532_v19, %v1740_v61  ;;  %v12086_v20 = vmul.f32 %v2069_v38, %v12045_v8  ;;  %v2076_v56 = vmul.f32 0.044715, %v12068_v37  ;;  %v3044_v52 = vmul.f32 0.7978846, %v2788_v59  ;;  %v12971_v38 = vld [vmem:[#allocation49_spill] sm:$0xff] }
 0x3a3   : > { %v6615_v29 = vpop.eup %6614  ;;  %5117 = vmatprep.mubr.f32.mxu0 %v3789_v62  ;;  %v1765_v33 = vmul.f32 0.5, %v11910_v24  ;;  %6622 = vtanh.f32 %v3045_v26  ;;  %v2797_v22 = vadd.f32 %v2541_v47, %v11932_v11  ;;  %v2540_v6 = vmul.f32 %v11966_v50, %v11928_v31  ;;  %v12973_v62 = vld [vmem:[#allocation51_spill] sm:$0xff] }
 0x3a4   : > { %v6617_v28 = vpop.eup %6616  ;;  %5118 = vmatmul.mubr.f32.gmra.mrb[24].mxu0 %v3788_v53  ;;  %v3541_v10 = vadd.f32 1.0, %v6615_v29  ;;  %v2077_v61 = vmul.f32 0.044715, %v12079_v60  ;;  %6624 = vtanh.f32 %v3044_v52  ;;  %v12096_v55 = vadd.f32 %v12971_v38, %v11430_v32 }
 0x3a5   : > { %v3540_v44 = vadd.f32 1.0, %v6617_v28  ;;  %v12100_v24 = vadd.f32 %v12972_v7, %v11443_v27  ;;  %v3053_v45 = vmul.f32 0.7978846, %v2797_v22  ;;  %v2796_v63 = vadd.f32 %v2540_v6, %v11928_v31 }
 0x3a6   : > { %v3797_v16 = vmul.f32 %v3541_v10, %v1749_v57  ;;  %v12104_v50 = vmul.f32 %v2076_v56, %v12068_v37  ;;  %v1764_v39 = vmul.f32 0.5, %v11896_v54  ;;  %v2549_v19 = vmul.f32 %v11990_v30, %v11954_v3 }
 0x3a7   : > { %v3796_v18 = vmul.f32 %v3540_v44, %v1748_v35  ;;  %6626 = vtanh.f32 %v3053_v45  ;;  %v3052_v59 = vmul.f32 0.7978846, %v2796_v63  ;;  %v12111_v26 = vadd.f32 %v12973_v62, %v11430_v32 }
 0x3a8   : > { %v6619_v47 = vpop.eup %6618  ;;  %5123 = vmatprep.mubr.f32.mxu0 %v3797_v16  ;;  %v12114_v53 = vmul.f32 %v2077_v61, %v12079_v60  ;;  %v2084_v57 = vmul.f32 0.044715, %v12096_v55  ;;  %v2805_v56 = vadd.f32 %v2549_v19, %v11954_v3  ;;  %v2548_v54 = vmul.f32 %v11979_v4, %v11941_v21 }
 0x3a9   : > { %v6621_v30 = vpop.eup %6620  ;;  %5124 = vmatmul.mubr.f32.gmra.mrb[26].mxu0 %v3796_v18  ;;  %v3549_v35 = vadd.f32 1.0, %v6619_v47  ;;  %v2085_v52 = vmul.f32 0.044715, %v12100_v24  ;;  %6628 = vtanh.f32 %v3052_v59  ;;  %v12123_v29 = vadd.f32 %v11614_v42, %v11443_v27 }
 0x3aa   : > { %v3548_v22 = vadd.f32 1.0, %v6621_v30  ;;  %v1773_v6 = vmul.f32 0.5, %v11932_v11  ;;  %v3061_v28 = vmul.f32 0.7978846, %v2805_v56  ;;  %v2804_v10 = vadd.f32 %v2548_v54, %v11941_v21 }
 0x3ab   : > { %v3805_v61 = vmul.f32 %v3549_v35, %v1757_v12  ;;  %v1772_v38 = vmul.f32 0.5, %v11928_v31  ;;  %v2092_v4 = vmul.f32 0.044715, %v12111_v26  ;;  %v12131_v44 = vadd.f32 %v11632_v17, %v11430_v32 }
 0x3ac   : > { %v3804_v7 = vmul.f32 %v3548_v22, %v1756_v5  ;;  %6630 = vtanh.f32 %v3061_v28  ;;  %v3060_v45 = vmul.f32 0.7978846, %v2804_v10  ;;  %v2557_v42 = vmul.f32 %v12019_v15, %v11984_v9 }
 0x3ad   : > { %v6623_v63 = vpop.eup %6622  ;;  %5129 = vmatprep.mubr.f32.mxu0 %v3805_v61  ;;  %v12136_v11 = vmul.f32 %v2084_v57, %v12096_v55  ;;  %v12139_v12 = vmul.f32 %v2085_v52, %v12100_v24  ;;  %v2093_v31 = vmul.f32 0.044715, %v12123_v29  ;;  %v2556_v17 = vmul.f32 %v12004_v14, %v11963_v25 }
 0x3ae   : > { %v6625_v16 = vpop.eup %6624  ;;  %5130 = vmatmul.mubr.f32.gmra.mrb[28].mxu0 %v3804_v7  ;;  %v3557_v5 = vadd.f32 1.0, %v6623_v63  ;;  %v1781_v19 = vmul.f32 0.5, %v11954_v3  ;;  %6632 = vtanh.f32 %v3060_v45  ;;  %v2813_v15 = vadd.f32 %v2557_v42, %v11984_v9 }
 0x3af   : > { %v3556_v18 = vadd.f32 1.0, %v6625_v16  ;;  %v1780_v59 = vmul.f32 0.5, %v11941_v21  ;;  %v2100_v62 = vmul.f32 0.044715, %v12131_v44  ;;  %v2812_v47 = vadd.f32 %v2556_v17, %v11963_v25 }
 0x3b0   : > { %v3813_v57 = vmul.f32 %v3557_v5, %v1765_v33  ;;  %v12150_v56 = vmul.f32 %v2092_v4, %v12111_v26  ;;  %v12154_v14 = vadd.f32 %v11635_v41, %v11443_v27  ;;  %v3069_v54 = vmul.f32 0.7978846, %v2813_v15 }
 0x3b1   : > { %v6627_v3 = vpop.eup %6626  ;;  %v3812_v30 = vmul.f32 %v3556_v18, %v1764_v39  ;;  %v12157_v35 = vmul.f32 %v2093_v31, %v12123_v29  ;;  %v3068_v52 = vmul.f32 0.7978846, %v2812_v47  ;;  %v2565_v21 = vmul.f32 %v12050_v48, %v12009_v43 }
 0x3b2   : > { %5135 = vmatprep.mubr.f32.mxu0 %v3813_v57  ;;  %v3565_v22 = vadd.f32 1.0, %v6627_v3  ;;  %v1789_v33 = vmul.f32 0.5, %v11984_v9  ;;  %6634 = vtanh.f32 %v3069_v54  ;;  %v12164_v28 = vadd.f32 %v11651_v34, %v11430_v32 }
 0x3b3   : > { %v6629_v41 = vpop.eup %6628  ;;  %5136 = vmatmul.mubr.f32.gmra.mrb[30].mxu0 %v3812_v30  ;;  %v12167_v39 = vmul.f32 %v2100_v62, %v12131_v44  ;;  %6636 = vtanh.f32 %v3068_v52  ;;  %v2821_v10 = vadd.f32 %v2565_v21, %v12009_v43  ;;  %v2564_v48 = vmul.f32 %v12033_v40, %v11995_v13 }
 0x3b4   : > { %v3821_v61 = vmul.f32 %v3565_v22, %v1773_v6  ;;  %v3564_v4 = vadd.f32 1.0, %v6629_v41  ;;  %v2101_v9 = vmul.f32 0.044715, %v12154_v14  ;;  %v12175_v7 = vadd.f32 %v11660_v36, %v11443_v27  ;;  %v12974_v6 = vld [vmem:[#allocation58_spill] sm:$0xff]  ;;  %v12975_v36 = vld [vmem:[#allocation57_spill] sm:$0xff] }
 0x3b5   : > { %v1788_v34 = vmul.f32 0.5, %v11963_v25  ;;  %v3077_v45 = vmul.f32 0.7978846, %v2821_v10  ;;  %v2820_v42 = vadd.f32 %v2564_v48, %v11995_v13  ;;  %v2573_v63 = vmul.f32 %v12061_v0, %v12026_v23 }
 0x3b6   : > { %v6631_v31 = vpop.eup %6630  ;;  %5141 = vmatprep.mubr.f32.mxu0 %v3821_v61  ;;  %v3820_v17 = vmul.f32 %v3564_v4, %v1772_v38  ;;  %v2108_v40 = vmul.f32 0.044715, %v12164_v28  ;;  %v12184_v16 = vadd.f32 %v12974_v6, %v11430_v32  ;;  %v12188_v5 = vadd.f32 %v12975_v36, %v11443_v27 }
 0x3b7   : > { %v3573_v25 = vadd.f32 1.0, %v6631_v31  ;;  %6638 = vtanh.f32 %v3077_v45  ;;  %v3076_v15 = vmul.f32 0.7978846, %v2820_v42  ;;  %v2829_v18 = vadd.f32 %v2573_v63, %v12026_v23 }
 0x3b8   : > { %v6633_v62 = vpop.eup %6632  ;;  %5142 = vmatmul.mubr.f32.gmra.mrb[32].mxu0 %v3820_v17  ;;  %v12192_v0 = vmul.f32 %v2101_v9, %v12154_v14  ;;  %v2109_v38 = vmul.f32 0.044715, %v12175_v7  ;;  %v1797_v47 = vmul.f32 0.5, %v12009_v43  ;;  %v2572_v57 = vmul.f32 %v12054_v51, %v12014_v1 }
 0x3b9   : > { %v3829_v54 = vmul.f32 %v3573_v25, %v1781_v19  ;;  %v3572_v3 = vadd.f32 1.0, %v6633_v62  ;;  %6640 = vtanh.f32 %v3076_v15  ;;  %v3085_v30 = vmul.f32 0.7978846, %v2829_v18 }
 0x3ba   : > { %v12199_v52 = vmul.f32 %v2108_v40, %v12164_v28  ;;  %v1796_v21 = vmul.f32 0.5, %v11995_v13  ;;  %v2116_v22 = vmul.f32 0.044715, %v12184_v16  ;;  %v2828_v41 = vadd.f32 %v2572_v57, %v12014_v1 }
 0x3bb   : > { %5147 = vmatprep.mubr.f32.mxu0 %v3829_v54  ;;  %v3828_v10 = vmul.f32 %v3572_v3, %v1780_v59  ;;  %v2117_v43 = vmul.f32 0.044715, %v12188_v5  ;;  %6642 = vtanh.f32 %v3085_v30  ;;  %v2581_v51 = vmul.f32 %v12086_v20, %v12045_v8  ;;  %v12978_v30 = vld [vmem:[#allocation7_spill] sm:$0xff] }
 0x3bc   : > { %v6635_v19 = vpop.eup %6634  ;;  %v12208_v48 = vmul.f32 %v2109_v38, %v12175_v7  ;;  %v3084_v61 = vmul.f32 0.7978846, %v2828_v41  ;;  %v12212_v13 = vadd.f32 %v11716_v49, %v11430_v32  ;;  %v2580_v4 = vmul.f32 %v12075_v2, %v12038_v58 }
 0x3bd   : > { %v6637_v9 = vpop.eup %6636  ;;  %5148 = vmatmul.mubr.f32.gmra.mrb[34].mxu0 %v3828_v10  ;;  %v3581_v59 = vadd.f32 1.0, %v6635_v19  ;;  %v1805_v45 = vmul.f32 0.5, %v12026_v23  ;;  %v12218_v42 = vmul.f32 0.5, %v12014_v1  ;;  %v2837_v20 = vadd.f32 %v2581_v51, %v12045_v8 }
 0x3be   : > { %v3580_v63 = vadd.f32 1.0, %v6637_v9  ;;  %v12222_v31 = vmul.f32 %v2116_v22, %v12184_v16  ;;  %6644 = vtanh.f32 %v3084_v61  ;;  %v2836_v49 = vadd.f32 %v2580_v4, %v12038_v58  ;;  %v12979_v9 = vld [vmem:[#allocation8_spill] sm:$0xff] }
 0x3bf   : > { %v3837_v17 = vmul.f32 %v3581_v59, %v1789_v33  ;;  %v12226_v2 = vmul.f32 %v2117_v43, %v12188_v5  ;;  %v12230_v40 = vadd.f32 %v11727_v46, %v11443_v27  ;;  %v3093_v23 = vmul.f32 0.7978846, %v2837_v20  ;;  %v12976_v33 = vld [vmem:[#allocation6_spill] sm:$0xff]  ;;  %v12977_v46 = vld [vmem:[#allocation5_spill] sm:$0xff] }
 0x3c0   : > { %v3836_v1 = vmul.f32 %v3580_v63, %v1788_v34  ;;  %v2124_v6 = vmul.f32 0.044715, %v12212_v13  ;;  %v3092_v36 = vmul.f32 0.7978846, %v2836_v49  ;;  %v2589_v25 = vmul.f32 %v12114_v53, %v12079_v60 }
 0x3c1   : > { %v6639_v15 = vpop.eup %6638  ;;  %5153 = vmatprep.mubr.f32.mxu0 %v3837_v17  ;;  %v1813_v18 = vmul.f32 0.5, %v12045_v8  ;;  %6646 = vtanh.f32 %v3093_v23  ;;  %v12238_v62 = vadd.f32 %v12976_v33, %v11430_v32  ;;  %v12242_v38 = vadd.f32 %v12977_v46, %v11443_v27 }
 0x3c2   : > { %5154 = vmatmul.mubr.f32.gmra.mrb[36].mxu0 %v3836_v1  ;;  %v3589_v34 = vadd.f32 1.0, %v6639_v15  ;;  %6648 = vtanh.f32 %v3092_v36  ;;  %v2845_v57 = vadd.f32 %v2589_v25, %v12079_v60  ;;  %v2588_v53 = vmul.f32 %v12104_v50, %v12068_v37 }
 0x3c3   : > { %v6641_v54 = vpop.eup %6640  ;;  %v2125_v8 = vmul.f32 0.044715, %v12230_v40  ;;  %v1812_v3 = vmul.f32 0.5, %v12038_v58  ;;  %v12251_v22 = vadd.f32 %v12978_v30, %v11430_v32  ;;  %v2597_v41 = vmul.f32 %v12139_v12, %v12100_v24 }
 0x3c4   : > { %v3845_v10 = vmul.f32 %v3589_v34, %v1797_v47  ;;  %v3588_v43 = vadd.f32 1.0, %v6641_v54  ;;  %v3101_v51 = vmul.f32 0.7978846, %v2845_v57  ;;  %v2844_v19 = vadd.f32 %v2588_v53, %v12068_v37 }
 0x3c5   : > { %v6643_v61 = vpop.eup %6642  ;;  %v2132_v50 = vmul.f32 0.044715, %v12238_v62  ;;  %v2133_v4 = vmul.f32 0.044715, %v12242_v38  ;;  %v12260_v58 = vadd.f32 %v12979_v9, %v11443_v27  ;;  %v2853_v59 = vadd.f32 %v2597_v41, %v12100_v24 }
 0x3c6   : > { %5159 = vmatprep.mubr.f32.mxu0 %v3845_v10  ;;  %v3844_v20 = vmul.f32 %v3588_v43, %v1796_v21  ;;  %v3597_v63 = vadd.f32 1.0, %v6643_v61  ;;  %6650 = vtanh.f32 %v3101_v51  ;;  %v3100_v12 = vmul.f32 0.7978846, %v2844_v19 }
 0x3c7   : > { %v12264_v47 = vmul.f32 %v2124_v6, %v12212_v13  ;;  %v12267_v49 = vmul.f32 %v2125_v8, %v12230_v40  ;;  %v3109_v17 = vmul.f32 0.7978846, %v2853_v59  ;;  %v2596_v23 = vmul.f32 %v12136_v11, %v12096_v55 }
 0x3c8   : > { %v6645_v1 = vpop.eup %6644  ;;  %5160 = vmatmul.mubr.f32.gmra.mrb[38].mxu0 %v3844_v20  ;;  %v3853_v36 = vmul.f32 %v3597_v63, %v1805_v45  ;;  %v1821_v25 = vmul.f32 0.5, %v12079_v60  ;;  %6652 = vtanh.f32 %v3100_v12  ;;  %v2140_v21 = vmul.f32 0.044715, %v12251_v22 }
 0x3c9   : > { %v3596_v15 = vadd.f32 1.0, %v6645_v1  ;;  %v12274_v33 = vmul.f32 %v2132_v50, %v12238_v62  ;;  %6654 = vtanh.f32 %v3109_v17  ;;  %v2852_v6 = vadd.f32 %v2596_v23, %v12096_v55  ;;  %v12980_v50 = vld [vmem:[#allocation9_spill] sm:$0xff] }
 0x3ca   : > { %5165 = vmatprep.mubr.f32.mxu0 %v3853_v36  ;;  %v12278_v46 = vmul.f32 %v2133_v4, %v12242_v38  ;;  %v1820_v11 = vmul.f32 0.5, %v12068_v37  ;;  %v2141_v45 = vmul.f32 0.044715, %v12260_v58  ;;  %v2605_v60 = vmul.f32 %v12157_v35, %v12123_v29 }
 0x3cb   : > { %v6647_v34 = vpop.eup %6646  ;;  %v3852_v57 = vmul.f32 %v3596_v15, %v12218_v42  ;;  %v1829_v53 = vmul.f32 0.5, %v12100_v24  ;;  %v3108_v54 = vmul.f32 0.7978846, %v2852_v6  ;;  %v2604_v8 = vmul.f32 %v12150_v56, %v12111_v26 }
 0x3cc   : > { %v6649_v30 = vpop.eup %6648  ;;  %v3605_v41 = vadd.f32 1.0, %v6647_v34  ;;  %v12289_v10 = vmul.f32 %v2140_v21, %v12251_v22  ;;  %v12292_v37 = vmul.f32 0.5, %v12096_v55  ;;  %v2861_v43 = vadd.f32 %v2605_v60, %v12123_v29 }
 0x3cd   : > { %5166 = vmatmul.mubr.f32.gmra.mrb[40].mxu0 %v3852_v57  ;;  %v3604_v35 = vadd.f32 1.0, %v6649_v30  ;;  %6656 = vtanh.f32 %v3108_v54  ;;  %v2860_v42 = vadd.f32 %v2604_v8, %v12111_v26  ;;  %v2613_v24 = vmul.f32 %v12192_v0, %v12154_v14  ;;  %v12981_v0 = vld [vmem:[#allocation10_spill] sm:$0xff] }
 0x3ce   : > { %v3861_v51 = vmul.f32 %v3605_v41, %v1813_v18  ;;  %v12299_v56 = vmul.f32 %v2141_v45, %v12260_v58  ;;  %v3117_v19 = vmul.f32 0.7978846, %v2861_v43  ;;  %v2612_v61 = vmul.f32 %v12167_v39, %v12131_v44 }
 0x3cf   : > { %v3860_v55 = vmul.f32 %v3604_v35, %v1812_v3  ;;  %v12305_v4 = vadd.f32 %v12980_v50, %v11430_v32  ;;  %v3116_v9 = vmul.f32 0.7978846, %v2860_v42  ;;  %v2869_v59 = vadd.f32 %v2613_v24, %v12154_v14 }
 0x3d0   : > { %v6651_v20 = vpop.eup %6650  ;;  %5171 = vmatprep.mubr.f32.mxu0 %v3861_v51  ;;  %v12310_v18 = vadd.f32 %v12981_v0, %v11443_v27  ;;  %6658 = vtanh.f32 %v3117_v19  ;;  %v2868_v63 = vadd.f32 %v2612_v61, %v12131_v44  ;;  %v2621_v39 = vmul.f32 %v12208_v48, %v12175_v7 }
 0x3d1   : > { %5172 = vmatmul.mubr.f32.gmra.mrb[42].mxu0 %v3860_v55  ;;  %v3613_v3 = vadd.f32 1.0, %v6651_v20  ;;  %6660 = vtanh.f32 %v3116_v9  ;;  %v3125_v32 = vmul.f32 0.7978846, %v2869_v59  ;;  %v2620_v12 = vmul.f32 %v12199_v52, %v12164_v28 }
 0x3d2   : > { %v6653_v17 = vpop.eup %6652  ;;  %v1837_v23 = vmul.f32 0.5, %v12123_v29  ;;  %v3124_v1 = vmul.f32 0.7978846, %v2868_v63  ;;  %v2877_v27 = vadd.f32 %v2621_v39, %v12175_v7  ;;  %v2629_v36 = vmul.f32 %v12226_v2, %v12188_v5 }
 0x3d3   : > { %v6655_v21 = vpop.eup %6654  ;;  %v3869_v15 = vmul.f32 %v3613_v3, %v1821_v25  ;;  %v3612_v6 = vadd.f32 1.0, %v6653_v17  ;;  %6662 = vtanh.f32 %v3125_v32  ;;  %v2876_v48 = vadd.f32 %v2620_v12, %v12164_v28 }
 0x3d4   : > { %v3621_v45 = vadd.f32 1.0, %v6655_v21  ;;  %6664 = vtanh.f32 %v3124_v1  ;;  %v3133_v60 = vmul.f32 0.7978846, %v2877_v27  ;;  %v2885_v52 = vadd.f32 %v2629_v36, %v12188_v5 }
 0x3d5   : > { %5177 = vmatprep.mubr.f32.mxu0 %v3869_v15  ;;  %v3868_v34 = vmul.f32 %v3612_v6, %v1820_v11  ;;  %v2148_v29 = vmul.f32 0.044715, %v12305_v4  ;;  %v3132_v57 = vmul.f32 0.7978846, %v2876_v48  ;;  %v2628_v54 = vmul.f32 %v12222_v31, %v12184_v16 }
 0x3d6   : > { %v3877_v2 = vmul.f32 %v3621_v45, %v1829_v53  ;;  %v2149_v25 = vmul.f32 0.044715, %v12310_v18  ;;  %6666 = vtanh.f32 %v3133_v60  ;;  %v3141_v8 = vmul.f32 0.7978846, %v2885_v52 }
 0x3d7   : > { %v6657_v30 = vpop.eup %6656  ;;  %5178 = vmatmul.mubr.f32.gmra.mrb[44].mxu0 %v3868_v34  ;;  %v1836_v41 = vmul.f32 0.5, %v12111_v26  ;;  %6668 = vtanh.f32 %v3132_v57  ;;  %v2884_v43 = vadd.f32 %v2628_v54, %v12184_v16  ;;  %v2637_v11 = vmul.f32 %v12267_v49, %v12230_v40 }
 0x3d8   : > { %5183 = vmatprep.mubr.f32.mxu0 %v3877_v2  ;;  %v3620_v35 = vadd.f32 1.0, %v6657_v30  ;;  %v1845_v42 = vmul.f32 0.5, %v12154_v14  ;;  %6670 = vtanh.f32 %v3141_v8  ;;  %v2636_v31 = vmul.f32 %v12264_v47, %v12212_v13 }
 0x3d9   : > { %v2404_v53 = vmul.f32 %v2148_v29, %v12305_v4  ;;  %v3140_v24 = vmul.f32 0.7978846, %v2884_v43  ;;  %v2893_v51 = vadd.f32 %v2637_v11, %v12230_v40  ;;  %v2645_v26 = vmul.f32 %v12278_v46, %v12242_v38 }
 0x3da   : > { %v6659_v19 = vpop.eup %6658  ;;  %v3876_v61 = vmul.f32 %v3620_v35, %v12292_v37  ;;  %v2405_v49 = vmul.f32 %v2149_v25, %v12310_v18  ;;  %v2892_v55 = vadd.f32 %v2636_v31, %v12212_v13  ;;  %v2644_v14 = vmul.f32 %v12274_v33, %v12238_v62 }
 0x3db   : > { %v6661_v50 = vpop.eup %6660  ;;  %v3629_v47 = vadd.f32 1.0, %v6659_v19  ;;  %6672 = vtanh.f32 %v3140_v24  ;;  %v3149_v9 = vmul.f32 0.7978846, %v2893_v51  ;;  %v2901_v59 = vadd.f32 %v2645_v26, %v12242_v38 }
 0x3dc   : > { %5184 = vmatmul.mubr.f32.gmra.mrb[46].mxu0 %v3876_v61  ;;  %v3628_v20 = vadd.f32 1.0, %v6661_v50  ;;  %v3148_v0 = vmul.f32 0.7978846, %v2892_v55  ;;  %v2900_v46 = vadd.f32 %v2644_v14, %v12238_v62  ;;  %v2653_v37 = vmul.f32 %v12299_v56, %v12260_v58 }
 0x3dd   : > { %v6663_v63 = vpop.eup %6662  ;;  %v3885_v39 = vmul.f32 %v3629_v47, %v1837_v23  ;;  %v1844_v3 = vmul.f32 0.5, %v12131_v44  ;;  %6674 = vtanh.f32 %v3149_v9  ;;  %v3157_v33 = vmul.f32 0.7978846, %v2901_v59 }
 0x3de   : > { %v6665_v32 = vpop.eup %6664  ;;  %v3884_v12 = vmul.f32 %v3628_v20, %v1836_v41  ;;  %v3637_v17 = vadd.f32 1.0, %v6663_v63  ;;  %6676 = vtanh.f32 %v3148_v0  ;;  %v3156_v1 = vmul.f32 0.7978846, %v2900_v46 }
 0x3df   : > { %5189 = vmatprep.mubr.f32.mxu0 %v3885_v39  ;;  %v3636_v27 = vadd.f32 1.0, %v6665_v32  ;;  %6678 = vtanh.f32 %v3157_v33  ;;  %v2909_v36 = vadd.f32 %v2653_v37, %v12260_v58  ;;  %v2652_v21 = vmul.f32 %v12289_v10, %v12251_v22 }
 0x3e0   : > { %v6667_v56 = vpop.eup %6666  ;;  %5190 = vmatmul.mubr.f32.gmra.mrb[48].mxu0 %v3884_v12  ;;  %v3893_v23 = vmul.f32 %v3637_v17, %v1845_v42  ;;  %v1853_v44 = vmul.f32 0.5, %v12175_v7  ;;  %v1861_v15 = vmul.f32 0.5, %v12188_v5  ;;  %v2661_v6 = vmul.f32 %v2405_v49, %v12310_v18 }
 0x3e1   : > { %v6669_v48 = vpop.eup %6668  ;;  %v3645_v45 = vadd.f32 1.0, %v6667_v56  ;;  %6680 = vtanh.f32 %v3156_v1  ;;  %v3165_v60 = vmul.f32 0.7978846, %v2909_v36  ;;  %v2908_v52 = vadd.f32 %v2652_v21, %v12251_v22  ;;  %v4198_v36 = vld [vmem:[%s12521_s4] sm:$0x3]  ;;  %v12982_v21 = vld [vmem:[#allocation15_spill] sm:$0xff] }
 0x3e2   : > { %v6671_v34 = vpop.eup %6670  ;;  %5195 = vmatprep.mubr.f32.mxu0 %v3893_v23  ;;  %v3892_v29 = vmul.f32 %v3636_v27, %v1844_v3  ;;  %v3644_v57 = vadd.f32 1.0, %v6669_v48  ;;  %v2917_v10 = vadd.f32 %v2661_v6, %v12310_v18  ;;  %v2660_v54 = vmul.f32 %v2404_v53, %v12305_v4 }
 0x3e3   : > { %v3901_v2 = vmul.f32 %v3645_v45, %v1853_v44  ;;  %v3653_v7 = vadd.f32 1.0, %v6671_v34  ;;  %6682 = vtanh.f32 %v3165_v60  ;;  %v3164_v5 = vmul.f32 0.7978846, %v2908_v52 }
 0x3e4   : > { %5196 = vmatmul.mubr.f32.gmra.mrb[50].mxu0 %v3892_v29  ;;  %v1852_v25 = vmul.f32 0.5, %v12164_v28  ;;  %v3173_v8 = vmul.f32 0.7978846, %v2917_v10  ;;  %v2916_v30 = vadd.f32 %v2660_v54, %v12305_v4  ;;  %v1860_v24 = vmul.f32 0.5, %v12184_v16 }
 0x3e5   : > { %v6673_v41 = vpop.eup %6672  ;;  %5201 = vmatprep.mubr.f32.mxu0 %v3901_v2  ;;  %v3909_v43 = vmul.f32 %v3653_v7, %v1861_v15  ;;  %6684 = vtanh.f32 %v3164_v5  ;;  %v1869_v51 = vmul.f32 0.5, %v12230_v40  ;;  %v1877_v50 = vmul.f32 0.5, %v12242_v38 }
 0x3e6   : > { %v3900_v11 = vmul.f32 %v3644_v57, %v1852_v25  ;;  %v3652_v35 = vadd.f32 1.0, %v6673_v41  ;;  %6686 = vtanh.f32 %v3173_v8  ;;  %v3172_v42 = vmul.f32 0.7978846, %v2916_v30 }
 0x3e7   : > { %v6675_v31 = vpop.eup %6674  ;;  %v1868_v47 = vmul.f32 0.5, %v12212_v13  ;;  %v1885_v46 = vmul.f32 0.5, %v12260_v58  ;;  %v1876_v63 = vmul.f32 0.5, %v12238_v62  ;;  %v1893_v13 = vmul.f32 0.5, %v12310_v18 }
 0x3e8   : > { %v6677_v53 = vpop.eup %6676  ;;  %5202 = vmatmul.mubr.f32.gmra.mrb[52].mxu0 %v3900_v11  ;;  %v3661_v26 = vadd.f32 1.0, %v6675_v31  ;;  %6688 = vtanh.f32 %v3172_v42  ;;  %v3908_v19 = vmul.f32 %v3652_v35, %v1860_v24  ;;  %v1884_v12 = vmul.f32 0.5, %v12251_v22 }
 0x3e9   : > { %v6679_v28 = vpop.eup %6678  ;;  %5207 = vmatprep.mubr.f32.mxu0 %v3909_v43  ;;  %v3660_v49 = vadd.f32 1.0, %v6677_v53  ;;  %v1892_v27 = vmul.f32 0.5, %v12305_v4  ;;  %v12983_v56 = vsub.s32 0, %v12982_v21  ;;  %v12984_v22 = vsub.s32 1, %v12982_v21 }
 0x3ea   : > { %v3917_v61 = vmul.f32 %v3661_v26, %v1869_v51  ;;  %v3669_v55 = vadd.f32 1.0, %v6679_v28 }
 0x3eb   : > { %v6681_v14 = vpop.eup %6680  ;;  %v3916_v16 = vmul.f32 %v3660_v49, %v1868_v47  ;;  %v12373_v18 = vrot.slane %v4198_v36, %v12983_v56  ;;  %v12377_v23 = vrot.slane %v4198_v36, %v12984_v22 }
 0x3ec   : > { %5208 = vmatmul.mubr.f32.gmra.mrb[54].mxu0 %v3908_v19  ;;  %v3925_v59 = vmul.f32 %v3669_v55, %v1877_v50  ;;  %v3668_v20 = vadd.f32 1.0, %v6681_v14 }
 0x3ed   : > { %v6683_v9 = vpop.eup %6682  ;;  %5213 = vmatprep.mubr.f32.mxu0 %v3917_v61 }
 0x3ee   : > { %v3677_v40 = vadd.f32 1.0, %v6683_v9  ;;  %v3924_v38 = vmul.f32 %v3668_v20, %v1876_v63 }
 0x3ef   : > { %v6685_v0 = vpop.eup %6684 }
 0x3f0   : > { %v6687_v37 = vpop.eup %6686  ;;  %5214 = vmatmul.mubr.f32.gmra.mrb[56].mxu0 %v3916_v16  ;;  %v3933_v39 = vmul.f32 %v3677_v40, %v1885_v46  ;;  %v3676_v33 = vadd.f32 1.0, %v6685_v0 }
 0x3f1   : > { %5219 = vmatprep.mubr.f32.mxu0 %v3925_v59  ;;  %v3685_v3 = vadd.f32 1.0, %v6687_v37 }
 0x3f2   : > { %v6689_v32 = vpop.eup %6688  ;;  %v3932_v1 = vmul.f32 %v3676_v33, %v1884_v12 }
 0x3f3   : > { %v3941_v17 = vmul.f32 %v3685_v3, %v1893_v13  ;;  %v3684_v58 = vadd.f32 1.0, %v6689_v32 }
 0x3f4   : > { %5220 = vmatmul.mubr.f32.gmra.mrb[58].mxu0 %v3924_v38 }
 0x3f5   : > { %5225 = vmatprep.mubr.f32.mxu0 %v3933_v39  ;;  %v3940_v62 = vmul.f32 %v3684_v58, %v1892_v27 }
 0x3f8   : > { %5226 = vmatmul.mubr.f32.gmra.mrb[60].mxu0 %v3932_v1 }
 0x3f9   : > { %5231 = vmatprep.mubr.f32.mxu0 %v3941_v17 }
 0x3fc   : > { %5232 = vmatmul.mubr.f32.gmra.mrb[62].mxu0 %v3940_v62 }
 0x43d   : > { %v5047_v4 = vpop.f32.mrb[0].mxu0 }
 0x43e   : > { %v5901_v44 = vadd.f32 %v5047_v4, %v12373_v18  ;;  %v5049_v15 = vpop.f32.mrb[1].mxu0 }
 0x43f   : > { %v5902_v6 = vadd.f32 %v5049_v15, %v12377_v23 }
 0x440   : > { %5238 = vst [vmem:[%s12384_s8] sm:$0xff] %v5901_v44 }
 0x441   : > { %5239 = vst [vmem:[%s12384_s8 + $0x8] sm:$0xff] %v5902_v6  ;;  %v5053_v48 = vpop.f32.mrb[2].mxu0 }
 0x442   : > { %v5903_v45 = vadd.f32 %v5053_v48, %v12373_v18  ;;  %v5055_v60 = vpop.f32.mrb[3].mxu0 }
 0x443   : > { %v5904_v52 = vadd.f32 %v5055_v60, %v12377_v23 }
 0x444   : > { %5240 = vst [vmem:[%s12384_s8 + $0x10] sm:$0xff] %v5903_v45 }
 0x445   : > { %5241 = vst [vmem:[%s12384_s8 + $0x18] sm:$0xff] %v5904_v52 }
 0x446   : > { %v5059_v34 = vpop.f32.mrb[4].mxu0 }
 0x447   : > { %v5905_v29 = vadd.f32 %v5059_v34, %v12373_v18  ;;  %v5061_v57 = vpop.f32.mrb[5].mxu0 }
 0x448   : > { %v5906_v10 = vadd.f32 %v5061_v57, %v12377_v23 }
 0x449   : > { %5242 = vst [vmem:[%s12384_s8 + $0x20] sm:$0xff] %v5905_v29 }
 0x44a   : > { %5243 = vst [vmem:[%s12384_s8 + $0x28] sm:$0xff] %v5906_v10 }
 0x44b   : > { %v5065_v54 = vpop.f32.mrb[6].mxu0 }
 0x44c   : > { %v5907_v2 = vadd.f32 %v5065_v54, %v12373_v18  ;;  %v5067_v7 = vpop.f32.mrb[7].mxu0 }
 0x44d   : > { %v5908_v5 = vadd.f32 %v5067_v7, %v12377_v23 }
 0x44e   : > { %5244 = vst [vmem:[%s12384_s8 + $0x30] sm:$0xff] %v5907_v2 }
 0x44f   : > { %5245 = vst [vmem:[%s12384_s8 + $0x38] sm:$0xff] %v5908_v5 }
 0x450   : > { %v5071_v25 = vpop.f32.mrb[8].mxu0 }
 0x451   : > { %v5909_v8 = vadd.f32 %v5071_v25, %v12373_v18  ;;  %v5073_v30 = vpop.f32.mrb[9].mxu0 }
 0x452   : > { %v5910_v41 = vadd.f32 %v5073_v30, %v12377_v23 }
 0x453   : > { %5246 = vst [vmem:[%s12384_s8 + $0x40] sm:$0xff] %v5909_v8 }
 0x454   : > { %5247 = vst [vmem:[%s12384_s8 + $0x48] sm:$0xff] %v5910_v41 }
 0x455   : > { %v5077_v43 = vpop.f32.mrb[10].mxu0 }
 0x456   : > { %v5911_v11 = vadd.f32 %v5077_v43, %v12373_v18  ;;  %v5079_v35 = vpop.f32.mrb[11].mxu0 }
 0x457   : > { %v5912_v42 = vadd.f32 %v5079_v35, %v12377_v23 }
 0x458   : > { %5248 = vst [vmem:[%s12384_s8 + $0x50] sm:$0xff] %v5911_v11 }
 0x459   : > { %5249 = vst [vmem:[%s12384_s8 + $0x58] sm:$0xff] %v5912_v42  ;;  %v5083_v31 = vpop.f32.mrb[12].mxu0 }
 0x45a   : > { %v5913_v53 = vadd.f32 %v5083_v31, %v12373_v18  ;;  %v5085_v24 = vpop.f32.mrb[13].mxu0 }
 0x45b   : > { %v5914_v51 = vadd.f32 %v5085_v24, %v12377_v23 }
 0x45c   : > { %5250 = vst [vmem:[%s12384_s8 + $0x60] sm:$0xff] %v5913_v53 }
 0x45d   : > { %5251 = vst [vmem:[%s12384_s8 + $0x68] sm:$0xff] %v5914_v51 }
 0x45e   : > { %v5089_v26 = vpop.f32.mrb[14].mxu0 }
 0x45f   : > { %v5915_v28 = vadd.f32 %v5089_v26, %v12373_v18  ;;  %v5091_v19 = vpop.f32.mrb[15].mxu0 }
 0x460   : > { %v5916_v61 = vadd.f32 %v5091_v19, %v12377_v23 }
 0x461   : > { %5252 = vst [vmem:[%s12384_s8 + $0x70] sm:$0xff] %v5915_v28 }
 0x462   : > { %5253 = vst [vmem:[%s12384_s8 + $0x78] sm:$0xff] %v5916_v61 }
 0x464   : > { %v5095_v49 = vpop.f32.mrb[16].mxu0 }
 0x465   : > { %v5917_v55 = vadd.f32 %v5095_v49, %v12373_v18  ;;  %v5097_v14 = vpop.f32.mrb[17].mxu0 }
 0x466   : > { %v5918_v50 = vadd.f32 %v5097_v14, %v12377_v23 }
 0x467   : > { %5254 = vst [vmem:[%s12384_s8 + $0x80] sm:$0xff] %v5917_v55 }
 0x468   : > { %5255 = vst [vmem:[%s12384_s8 + $0x88] sm:$0xff] %v5918_v50  ;;  %v5101_v47 = vpop.f32.mrb[18].mxu0 }
 0x469   : > { %v5919_v9 = vadd.f32 %v5101_v47, %v12373_v18  ;;  %v5103_v59 = vpop.f32.mrb[19].mxu0 }
 0x46a   : > { %v5920_v16 = vadd.f32 %v5103_v59, %v12377_v23 }
 0x46b   : > { %5256 = vst [vmem:[%s12384_s8 + $0x90] sm:$0xff] %v5919_v9 }
 0x46c   : > { %5257 = vst [vmem:[%s12384_s8 + $0x98] sm:$0xff] %v5920_v16 }
 0x46d   : > { %v5107_v20 = vpop.f32.mrb[20].mxu0 }
 0x46e   : > { %v5921_v40 = vadd.f32 %v5107_v20, %v12373_v18  ;;  %v5109_v0 = vpop.f32.mrb[21].mxu0 }
 0x46f   : > { %v5922_v46 = vadd.f32 %v5109_v0, %v12377_v23 }
 0x470   : > { %5258 = vst [vmem:[%s12384_s8 + $0xa0] sm:$0xff] %v5921_v40 }
 0x471   : > { %5259 = vst [vmem:[%s12384_s8 + $0xa8] sm:$0xff] %v5922_v46 }
 0x473   : > { %v5113_v37 = vpop.f32.mrb[22].mxu0 }
 0x474   : > { %v5923_v63 = vadd.f32 %v5113_v37, %v12373_v18  ;;  %v5115_v39 = vpop.f32.mrb[23].mxu0 }
 0x475   : > { %v5924_v3 = vadd.f32 %v5115_v39, %v12377_v23 }
 0x476   : > { %5260 = vst [vmem:[%s12384_s8 + $0xb0] sm:$0xff] %v5923_v63 }
 0x477   : > { %5261 = vst [vmem:[%s12384_s8 + $0xb8] sm:$0xff] %v5924_v3  ;;  %v5119_v38 = vpop.f32.mrb[24].mxu0 }
 0x478   : > { %v5925_v33 = vadd.f32 %v5119_v38, %v12373_v18  ;;  %v5121_v32 = vpop.f32.mrb[25].mxu0 }
 0x479   : > { %v5926_v13 = vadd.f32 %v5121_v32, %v12377_v23 }
 0x47a   : > { %5262 = vst [vmem:[%s12384_s8 + $0xc0] sm:$0xff] %v5925_v33 }
 0x47b   : > { %5263 = vst [vmem:[%s12384_s8 + $0xc8] sm:$0xff] %v5926_v13 }
 0x47c   : > { %v5125_v12 = vpop.f32.mrb[26].mxu0 }
 0x47d   : > { %v5927_v17 = vadd.f32 %v5125_v12, %v12373_v18  ;;  %v5127_v1 = vpop.f32.mrb[27].mxu0 }
 0x47e   : > { %v5928_v58 = vadd.f32 %v5127_v1, %v12377_v23 }
 0x47f   : > { %5264 = vst [vmem:[%s12384_s8 + $0xd0] sm:$0xff] %v5927_v17 }
 0x480   : > { %5265 = vst [vmem:[%s12384_s8 + $0xd8] sm:$0xff] %v5928_v58 }
 0x481   : > { %v5131_v27 = vpop.f32.mrb[28].mxu0 }
 0x482   : > { %v5929_v62 = vadd.f32 %v5131_v27, %v12373_v18  ;;  %v5133_v36 = vpop.f32.mrb[29].mxu0 }
 0x483   : > { %v5930_v21 = vadd.f32 %v5133_v36, %v12377_v23 }
 0x484   : > { %5266 = vst [vmem:[%s12384_s8 + $0xe0] sm:$0xff] %v5929_v62 }
 0x485   : > { %5267 = vst [vmem:[%s12384_s8 + $0xe8] sm:$0xff] %v5930_v21 }
 0x486   : > { %v5137_v56 = vpop.f32.mrb[30].mxu0 }
 0x487   : > { %v5931_v22 = vadd.f32 %v5137_v56, %v12373_v18  ;;  %v5139_v4 = vpop.f32.mrb[31].mxu0 }
 0x488   : > { %v5932_v44 = vadd.f32 %v5139_v4, %v12377_v23 }
 0x489   : > { %5268 = vst [vmem:[%s12384_s8 + $0xf0] sm:$0xff] %v5931_v22 }
 0x48a   : > { %5269 = vst [vmem:[%s12384_s8 + $0xf8] sm:$0xff] %v5932_v44 }
 0x48b   : > { %v5143_v15 = vpop.f32.mrb[32].mxu0 }
 0x48c   : > { %v5933_v6 = vadd.f32 %v5143_v15, %v12373_v18  ;;  %v5145_v48 = vpop.f32.mrb[33].mxu0 }
 0x48d   : > { %v5934_v45 = vadd.f32 %v5145_v48, %v12377_v23 }
 0x48e   : > { %5270 = vst [vmem:[%s12384_s8 + $0x100] sm:$0xff] %v5933_v6 }
 0x48f   : > { %5271 = vst [vmem:[%s12384_s8 + $0x108] sm:$0xff] %v5934_v45 }
 0x490   : > { %v5149_v60 = vpop.f32.mrb[34].mxu0 }
 0x491   : > { %v5935_v52 = vadd.f32 %v5149_v60, %v12373_v18  ;;  %v5151_v34 = vpop.f32.mrb[35].mxu0 }
 0x492   : > { %v5936_v29 = vadd.f32 %v5151_v34, %v12377_v23 }
 0x493   : > { %5272 = vst [vmem:[%s12384_s8 + $0x110] sm:$0xff] %v5935_v52 }
 0x494   : > { %5273 = vst [vmem:[%s12384_s8 + $0x118] sm:$0xff] %v5936_v29 }
 0x495   : > { %v5155_v57 = vpop.f32.mrb[36].mxu0 }
 0x496   : > { %v5937_v10 = vadd.f32 %v5155_v57, %v12373_v18  ;;  %v5157_v54 = vpop.f32.mrb[37].mxu0 }
 0x497   : > { %v5938_v2 = vadd.f32 %v5157_v54, %v12377_v23 }
 0x498   : > { %5274 = vst [vmem:[%s12384_s8 + $0x120] sm:$0xff] %v5937_v10 }
 0x499   : > { %5275 = vst [vmem:[%s12384_s8 + $0x128] sm:$0xff] %v5938_v2 }
 0x49b   : > { %v5161_v7 = vpop.f32.mrb[38].mxu0 }
 0x49c   : > { %v5939_v5 = vadd.f32 %v5161_v7, %v12373_v18  ;;  %v5163_v25 = vpop.f32.mrb[39].mxu0 }
 0x49d   : > { %v5940_v8 = vadd.f32 %v5163_v25, %v12377_v23 }
 0x49e   : > { %5276 = vst [vmem:[%s12384_s8 + $0x130] sm:$0xff] %v5939_v5 }
 0x49f   : > { %5277 = vst [vmem:[%s12384_s8 + $0x138] sm:$0xff] %v5940_v8 }
 0x4a0   : > { %v5167_v30 = vpop.f32.mrb[40].mxu0 }
 0x4a1   : > { %v5941_v41 = vadd.f32 %v5167_v30, %v12373_v18  ;;  %v5169_v43 = vpop.f32.mrb[41].mxu0 }
 0x4a2   : > { %v5942_v11 = vadd.f32 %v5169_v43, %v12377_v23 }
 0x4a3   : > { %5278 = vst [vmem:[%s12384_s8 + $0x140] sm:$0xff] %v5941_v41 }
 0x4a4   : > { %5279 = vst [vmem:[%s12384_s8 + $0x148] sm:$0xff] %v5942_v11  ;;  %v5173_v35 = vpop.f32.mrb[42].mxu0 }
 0x4a5   : > { %v5943_v42 = vadd.f32 %v5173_v35, %v12373_v18  ;;  %v5175_v31 = vpop.f32.mrb[43].mxu0 }
 0x4a6   : > { %v5944_v53 = vadd.f32 %v5175_v31, %v12377_v23 }
 0x4a7   : > { %5280 = vst [vmem:[%s12384_s8 + $0x150] sm:$0xff] %v5943_v42 }
 0x4a8   : > { %5281 = vst [vmem:[%s12384_s8 + $0x158] sm:$0xff] %v5944_v53 }
 0x4aa   : > { %v5179_v24 = vpop.f32.mrb[44].mxu0 }
 0x4ab   : > { %v5945_v51 = vadd.f32 %v5179_v24, %v12373_v18  ;;  %v5181_v26 = vpop.f32.mrb[45].mxu0 }
 0x4ac   : > { %v5946_v28 = vadd.f32 %v5181_v26, %v12377_v23 }
 0x4ad   : > { %5282 = vst [vmem:[%s12384_s8 + $0x160] sm:$0xff] %v5945_v51 }
 0x4ae   : > { %5283 = vst [vmem:[%s12384_s8 + $0x168] sm:$0xff] %v5946_v28 }
 0x4af   : > { %v5185_v19 = vpop.f32.mrb[46].mxu0 }
 0x4b0   : > { %v5947_v61 = vadd.f32 %v5185_v19, %v12373_v18  ;;  %v5187_v49 = vpop.f32.mrb[47].mxu0 }
 0x4b1   : > { %v5948_v55 = vadd.f32 %v5187_v49, %v12377_v23 }
 0x4b2   : > { %5284 = vst [vmem:[%s12384_s8 + $0x170] sm:$0xff] %v5947_v61 }
 0x4b3   : > { %5285 = vst [vmem:[%s12384_s8 + $0x178] sm:$0xff] %v5948_v55  ;;  %v5191_v14 = vpop.f32.mrb[48].mxu0 }
 0x4b4   : > { %v5949_v50 = vadd.f32 %v5191_v14, %v12373_v18  ;;  %v5193_v47 = vpop.f32.mrb[49].mxu0 }
 0x4b5   : > { %v5950_v9 = vadd.f32 %v5193_v47, %v12377_v23 }
 0x4b6   : > { %5286 = vst [vmem:[%s12384_s8 + $0x180] sm:$0xff] %v5949_v50 }
 0x4b7   : > { %5287 = vst [vmem:[%s12384_s8 + $0x188] sm:$0xff] %v5950_v9  ;;  %v5197_v59 = vpop.f32.mrb[50].mxu0 }
 0x4b8   : > { %v5951_v16 = vadd.f32 %v5197_v59, %v12373_v18  ;;  %v5199_v20 = vpop.f32.mrb[51].mxu0 }
 0x4b9   : > { %v5952_v40 = vadd.f32 %v5199_v20, %v12377_v23 }
 0x4ba   : > { %5288 = vst [vmem:[%s12384_s8 + $0x190] sm:$0xff] %v5951_v16 }
 0x4bb   : > { %5289 = vst [vmem:[%s12384_s8 + $0x198] sm:$0xff] %v5952_v40  ;;  %v5203_v0 = vpop.f32.mrb[52].mxu0 }
 0x4bc   : > { %v5953_v46 = vadd.f32 %v5203_v0, %v12373_v18  ;;  %v5205_v37 = vpop.f32.mrb[53].mxu0 }
 0x4bd   : > { %v5954_v63 = vadd.f32 %v5205_v37, %v12377_v23 }
 0x4be   : > { %5290 = vst [vmem:[%s12384_s8 + $0x1a0] sm:$0xff] %v5953_v46 }
 0x4bf   : > { %5291 = vst [vmem:[%s12384_s8 + $0x1a8] sm:$0xff] %v5954_v63  ;;  %v5209_v39 = vpop.f32.mrb[54].mxu0 }
 0x4c0   : > { %v5955_v3 = vadd.f32 %v5209_v39, %v12373_v18  ;;  %v5211_v38 = vpop.f32.mrb[55].mxu0 }
 0x4c1   : > { %v5956_v33 = vadd.f32 %v5211_v38, %v12377_v23 }
 0x4c2   : > { %5292 = vst [vmem:[%s12384_s8 + $0x1b0] sm:$0xff] %v5955_v3 }
 0x4c3   : > { %5293 = vst [vmem:[%s12384_s8 + $0x1b8] sm:$0xff] %v5956_v33  ;;  %v5215_v32 = vpop.f32.mrb[56].mxu0 }
 0x4c4   : > { %v5957_v13 = vadd.f32 %v5215_v32, %v12373_v18  ;;  %v5217_v12 = vpop.f32.mrb[57].mxu0 }
 0x4c5   : > { %v5958_v17 = vadd.f32 %v5217_v12, %v12377_v23 }
 0x4c6   : > { %5294 = vst [vmem:[%s12384_s8 + $0x1c0] sm:$0xff] %v5957_v13 }
 0x4c7   : > { %5295 = vst [vmem:[%s12384_s8 + $0x1c8] sm:$0xff] %v5958_v17  ;;  %v5221_v1 = vpop.f32.mrb[58].mxu0 }
 0x4c8   : > { %v5959_v58 = vadd.f32 %v5221_v1, %v12373_v18  ;;  %v5223_v27 = vpop.f32.mrb[59].mxu0 }
 0x4c9   : > { %v5960_v62 = vadd.f32 %v5223_v27, %v12377_v23 }
 0x4ca   : > { %5296 = vst [vmem:[%s12384_s8 + $0x1d0] sm:$0xff] %v5959_v58 }
 0x4cb   : > { %5297 = vst [vmem:[%s12384_s8 + $0x1d8] sm:$0xff] %v5960_v62  ;;  %v5227_v36 = vpop.f32.mrb[60].mxu0 }
 0x4cc   : > { %v5961_v21 = vadd.f32 %v5227_v36, %v12373_v18  ;;  %v5229_v56 = vpop.f32.mrb[61].mxu0 }
 0x4cd   : > { %v5962_v22 = vadd.f32 %v5229_v56, %v12377_v23 }
 0x4ce   : > { %5298 = vst [vmem:[%s12384_s8 + $0x1e0] sm:$0xff] %v5961_v21 }
 0x4cf   : > { %5299 = vst [vmem:[%s12384_s8 + $0x1e8] sm:$0xff] %v5962_v22  ;;  %v5233_v4 = vpop.f32.mrb[62].mxu0 }
 0x4d0   : > { %v5963_v44 = vadd.f32 %v5233_v4, %v12373_v18  ;;  %v5235_v15 = vpop.f32.mrb[63].mxu0 }
 0x4d1   : > { %v5964_v6 = vadd.f32 %v5235_v15, %v12377_v23 }
 0x4d2   : > { %5300 = vst [vmem:[%s12384_s8 + $0x1f0] sm:$0xff] %v5963_v44 }
 0x4d3   : > { %5301 = vst [vmem:[%s12384_s8 + $0x1f8] sm:$0xff] %v5964_v6 }
 0x4d4 PF: > { %s16_s18 = sadd.s32 1, %s6859_s18  }
 0x4d5   : > { %p13_p3 = scmp.ge.s32.totalorder %s16_s18, 4  }
 0x4d7   :  { %15 = sbr.rel (!%p13_p3) target bundleno = 1 (0x1), region = 75 }
 0x4de   :  { %5326 = vsyncpa [#allocation3], 1 }
 0x4df   :  { %5328 = vsyncpa [#allocation3 + $0x1], 1 }

</bundles_post_ra>
